<compile_context>
chip_gen: v7x
topology: tpu7x:2x2x1
jax: 0.10.0
libtpu: 0.0.40
codegen_flags: <defaults>
</compile_context>

<pallas_src>
import numpy as np
import jax
import jax.numpy as jnp
from jax.scipy.linalg import block_diag
from jax.experimental import pallas as pl
from jax.experimental.pallas import tpu as pltpu

# ---------------- model hyper-parameters (shrunk, structure preserved) ----------------
NUM_MODES = 6
M_PAD = 8                                  # modes padded to 8 (pad modes carry zero weights)
NUM_TIMESTAMPS = 10                        # original 50
NUM_STATES = 5
TRAJ_FEAT = NUM_TIMESTAMPS * NUM_STATES    # 50
TRAJ_PAD = 64                              # zero-padded trajectory feature width
D_TRAJ = 64                                # original 256
BEV_C_IN = 32                              # original 256
BEV_C_MID = 16                             # original 128
BEV_H, BEV_W = 12, 16                      # original 48, 176
D_BEV = 32                                 # original 64
MAP_P = 8                                  # original 49
MAP_D = 32                                 # original 256
D_MAP = 32                                 # original 64
D_GATE_IN = D_TRAJ + D_BEV + D_MAP         # 128
G_HID = NUM_MODES * D_GATE_IN              # 768 stacked gating hidden

PARAM_ORDER = (
    'fe_w1', 'fe_b1', 'fe_w2', 'fe_b2', 'fe_w3', 'fe_b3',
    'cv_w', 'cv_b', 'bl_w', 'bl_b',
    'me_w1', 'me_b1', 'me_w2', 'me_b2', 'me_w3', 'me_b3',
    'g_w1e', 'g_w1b', 'g_w1m', 'g_b1', 'g_w2', 'g_b2', 'g_w3', 'g_b3',
    'sc_w1', 'sc_b1', 'sc_w2', 'sc_b2', 'sc_w3', 'sc_b3',
    'de_w1', 'de_b1', 'de_w2', 'de_b2', 'de_w3', 'de_b3',
)


# ---------------------------------- fused Pallas kernel ----------------------------------
def _mlp3(x_bf, w1, b1, w2, b2, w3, b3):
    """3-layer MLP (Linear+ReLU, Linear+ReLU, Linear); bf16 matmuls, f32 accumulate."""
    h = jnp.maximum(jnp.dot(x_bf, w1[...], preferred_element_type=jnp.float32) + b1[...], 0.0)
    h = jnp.maximum(jnp.dot(h.astype(jnp.bfloat16), w2[...],
                            preferred_element_type=jnp.float32) + b2[...], 0.0)
    return jnp.dot(h.astype(jnp.bfloat16), w3[...], preferred_element_type=jnp.float32) + b3[...]


def fused_kernel(traj_ref, patch_ref, map_ref, sel_ref, egoexp_ref, valid_ref,
                 few1, feb1, few2, feb2, few3, feb3,
                 cvw, cvb, blw, blb,
                 mew1, meb1, mew2, meb2, mew3, meb3,
                 gw1e, gw1b, gw1m, gb1, gw2, gb2, gw3, gb3,
                 scw1, scb1, scw2, scb2, scw3, scb3,
                 dew1, deb1, dew2, deb2, dew3, deb3,
                 traj_out_ref, scores_out_ref):
    f32, bf16 = jnp.float32, jnp.bfloat16
    n_ego, k_pad, _ = valid_ref.shape
    m_pad = gw3.shape[1]

    # 1) trajectory feature encoder over every CAV's (object, mode) row, all at once
    all_emb = _mlp3(traj_ref[...], few1, feb1, few2, feb2, few3, feb3)     # (rows_pad, 64) f32
    all_emb_bf = all_emb.astype(bf16)

    # 2) BEV encoder: im2col conv (single matmul) + ReLU + flatten + linear, fully fused
    conv_t = jnp.maximum(
        jnp.dot(cvw[...], patch_ref[...], preferred_element_type=f32) + cvb[...], 0.0)  # (Cmid, H*W)
    bev_parts = jnp.einsum('cqp,cpd->cqd', conv_t.astype(bf16)[:, None, :], blw[...],
                           preferred_element_type=f32)                     # (Cmid, 1, D_BEV)
    bev_emb = jnp.sum(bev_parts, axis=0) + blb[...]                        # (1, D_BEV)

    # 3) map encoder (ego CAV only)
    map_emb = _mlp3(map_ref[...], mew1, meb1, mew2, meb2, mew3, meb3)      # (n_ego, D_MAP)

    # 4) gather per-ego-object contributions with a 0/1 selection matmul (mask baked into sel)
    e_flat = jnp.dot(sel_ref[...], all_emb_bf, preferred_element_type=f32)  # (n_ego*k_pad, 64)
    e_flat_bf = e_flat.astype(bf16)

    # 5) gating: 6 per-mode MLPs batched (stacked layer 1, block-diagonal layer 2).
    #    x = [traj_emb | bev_emb | map_emb]; bev/map terms are per-ego constants -> computed once.
    base = (jnp.dot(map_emb.astype(bf16), gw1m[...], preferred_element_type=f32)
            + jnp.dot(bev_emb.astype(bf16), gw1b[...], preferred_element_type=f32)
            + gb1[...])                                                    # (n_ego, G_HID)
    pre1 = (jnp.dot(e_flat_bf, gw1e[...], preferred_element_type=f32)
            + jnp.dot(egoexp_ref[...], base, preferred_element_type=f32))  # (n_ego*k_pad, G_HID)
    h1 = jnp.maximum(pre1, 0.0).astype(bf16)
    h2 = jnp.maximum(jnp.dot(h1, gw2[...], preferred_element_type=f32) + gb2[...], 0.0).astype(bf16)
    logits = jnp.dot(h2, gw3[...], preferred_element_type=f32) + gb3[...]  # (n_ego*k_pad, m_pad)

    # masked softmax over the contribution axis (per ego object, per mode) -- f32 throughout
    valid = valid_ref[...]                                                 # (n_ego, k_pad, 1)
    lg = logits.reshape(n_ego, k_pad, m_pad)
    lg = jnp.where(valid > 0.0, lg, jnp.float32(-1e30))
    mx = jnp.max(lg, axis=1, keepdims=True)
    p = jnp.exp(lg - mx) * valid
    # each ego object always has >= NUM_MODES valid rows (the ego CAV contributes), denom >= 1
    wgt = p * pl.reciprocal(jnp.sum(p, axis=1, keepdims=True), approx=True)

    # weighted aggregation: per ego, (m_pad, k_pad) @ (k_pad, 64) on the MXU
    e_grp = e_flat.reshape(n_ego, k_pad, D_TRAJ).astype(bf16)
    combined = jax.lax.dot_general(wgt.astype(bf16), e_grp,
                                   (((1,), (1,)), ((0,), (0,))),
                                   preferred_element_type=f32)             # (n_ego, m_pad, 64)
    combined_bf = combined.astype(bf16)

    # 6) score head; layer 1 consumes the per-mode layout directly (pad modes have zero weights)
    s_parts = jnp.einsum('gmd,mdf->mgf', combined_bf, scw1[...], preferred_element_type=f32)
    s = jnp.maximum(jnp.sum(s_parts, axis=0) + scb1[...], 0.0).astype(bf16)
    s = jnp.maximum(jnp.dot(s, scw2[...], preferred_element_type=f32) + scb2[...], 0.0).astype(bf16)
    scores_out_ref[...] = jnp.dot(s, scw3[...], preferred_element_type=f32) + scb3[...]

    # 7) trajectory decoder on all (ego, mode) rows at once (tile-aligned leading-dim merge)
    dec_in = combined.reshape(n_ego * m_pad, D_TRAJ).astype(bf16)
    traj_out_ref[...] = _mlp3(dec_in, dew1, deb1, dew2, deb2, dew3, deb3)


# ----------------------------------- parameters -----------------------------------
def _uniform(key, shape, bound):
    return jax.random.uniform(key, shape, jnp.float32, -bound, bound)


def init_linear(key, din, dout):
    kw, kb = jax.random.split(key)
    bound = 1.0 / float(np.sqrt(din))
    return _uniform(kw, (din, dout), bound), _uniform(kb, (1, dout), bound)


def init_mlp3(key, din, dout):
    k1, k2, k3 = jax.random.split(key, 3)
    return [init_linear(k1, din, din), init_linear(k2, din, din), init_linear(k3, din, dout)]


def _pad2(a, rows, cols):
    return jnp.pad(a, ((0, rows - a.shape[0]), (0, cols - a.shape[1])))


def _bf(a):
    return a.astype(jnp.bfloat16)


def pack_mlp3(mlp, dhid_pad, dout_pad, prefix):
    """Zero-pad an MLP3 to lane-friendly widths (pads are exact zeros -> results unchanged)."""
    (w1, b1), (w2, b2), (w3, b3) = mlp
    return {
        prefix + 'w1': _bf(_pad2(w1, dhid_pad, dhid_pad)),
        prefix + 'b1': _pad2(b1, 1, dhid_pad),
        prefix + 'w2': _bf(_pad2(w2, dhid_pad, dhid_pad)),
        prefix + 'b2': _pad2(b2, 1, dhid_pad),
        prefix + 'w3': _bf(_pad2(w3, dhid_pad, dout_pad)),
        prefix + 'b3': _pad2(b3, 1, dout_pad),
    }


def init_params(key):
    ks = jax.random.split(key, 6)
    p = {}
    # feature encoder MLP(50 -> 64), padded to 64/64
    p.update(pack_mlp3(init_mlp3(ks[0], TRAJ_FEAT, D_TRAJ), TRAJ_PAD, D_TRAJ, 'fe_'))
    # map encoder MLP(256 -> 32)
    p.update(pack_mlp3(init_mlp3(ks[1], MAP_P * MAP_D, D_MAP), MAP_P * MAP_D, D_MAP, 'me_'))
    # trajectory decoder MLP(64 -> 50), output padded to 64
    p.update(pack_mlp3(init_mlp3(ks[2], D_TRAJ, TRAJ_FEAT), D_TRAJ, TRAJ_PAD, 'de_'))

    # score estimator MLP(6*64 -> 6): first layer reshaped to per-mode blocks, output padded
    (sw1, sb1), (sw2, sb2), (sw3, sb3) = init_mlp3(ks[3], NUM_MODES * D_TRAJ, NUM_MODES)
    p['sc_w1'] = _bf(jnp.pad(sw1.reshape(NUM_MODES, D_TRAJ, NUM_MODES * D_TRAJ),
                             ((0, M_PAD - NUM_MODES), (0, 0), (0, 0))))
    p['sc_b1'] = sb1
    p['sc_w2'] = _bf(sw2)
    p['sc_b2'] = sb2
    p['sc_w3'] = _bf(_pad2(sw3, NUM_MODES * D_TRAJ, M_PAD))
    p['sc_b3'] = _pad2(sb3, 1, M_PAD)

    # BEV conv3x3 (as im2col weight) + BEV linear (weight in (channel, pixel, out) layout,
    # equivalent to the NCHW Flatten order up to a permutation of the synthetic weights)
    kc, kcb, kl, klb = jax.random.split(ks[4], 4)
    cbound = 1.0 / float(np.sqrt(BEV_C_IN * 9))
    p['cv_w'] = _bf(_uniform(kc, (BEV_C_MID, 9 * BEV_C_IN), cbound))
    p['cv_b'] = _uniform(kcb, (BEV_C_MID, 1), cbound)
    lbound = 1.0 / float(np.sqrt(BEV_C_MID * BEV_H * BEV_W))
    p['bl_w'] = _bf(_uniform(kl, (BEV_C_MID, BEV_H * BEV_W, D_BEV), lbound))
    p['bl_b'] = _uniform(klb, (1, D_BEV), lbound)

    # 6 gating MLP(128 -> 1): stacked layer-1 (split by input chunk), block-diag layer-2
    gks = jax.random.split(ks[5], NUM_MODES)
    g = [init_mlp3(gk, D_GATE_IN, 1) for gk in gks]
    p['g_w1e'] = _bf(jnp.concatenate([gi[0][0][:D_TRAJ] for gi in g], axis=1))                 # (64, 768)
    p['g_w1b'] = _bf(jnp.concatenate([gi[0][0][D_TRAJ:D_TRAJ + D_BEV] for gi in g], axis=1))   # (32, 768)
    p['g_w1m'] = _bf(jnp.concatenate([gi[0][0][D_TRAJ + D_BEV:] for gi in g], axis=1))         # (32, 768)
    p['g_b1'] = jnp.concatenate([gi[0][1] for gi in g], axis=1)                                # (1, 768)
    p['g_w2'] = _bf(block_diag(*[gi[1][0] for gi in g]))                                       # (768, 768)
    p['g_b2'] = jnp.concatenate([gi[1][1] for gi in g], axis=1)
    w3 = jnp.zeros((G_HID, M_PAD), jnp.float32)
    for m, gi in enumerate(g):
        w3 = w3.at[m * D_GATE_IN:(m + 1) * D_GATE_IN, m].set(gi[2][0][:, 0])
    p['g_w3'] = _bf(w3)
    b3 = jnp.zeros((1, M_PAD), jnp.float32)
    b3 = b3.at[0, :NUM_MODES].set(jnp.concatenate([gi[2][1][0] for gi in g]))
    p['g_b3'] = b3
    return p


# ------------------------- host-side grouping by center-object id -------------------------
def build_grouping(ids_list, num_modes, rows_pad):
    """Replicates the `predictions_by_cav` dict: selection matrix (gather + validity mask),
    per-row ego one-hot (for broadcasting per-ego constants), and validity mask."""
    n_cav = len(ids_list)
    counts = [len(np.asarray(ids)) for ids in ids_list]
    offsets = np.concatenate([[0], np.cumsum([c * num_modes for c in counts])])[:-1]
    ego_ids = np.asarray(ids_list[0])
    n_ego = len(ego_ids)
    k_max = n_cav * num_modes
    k_pad = ((k_max + 7) // 8) * 8
    sel = np.zeros((n_ego * k_pad, rows_pad), np.float32)
    ego_expand = np.zeros((n_ego * k_pad, n_ego), np.float32)
    valid = np.zeros((n_ego, k_pad, 1), np.float32)
    for g, oid in enumerate(ego_ids.tolist()):
        ego_expand[g * k_pad:(g + 1) * k_pad, g] = 1.0
        k = 0
        for c, ids in enumerate(ids_list):
            for pos in np.nonzero(np.asarray(ids) == oid)[0].tolist():
                for m in range(num_modes):
                    sel[g * k_pad + k, offsets[c] + pos * num_modes + m] = 1.0
                    valid[g, k, 0] = 1.0
                    k += 1
    return sel, ego_expand, valid


# ------------------------------------- forward -------------------------------------
def motion_aggregator_moev3_forward(packed, features_to_aggregate, pred_scores, bev_features,
                                    batch_sample_count, center_objects_id_to_aggregate,
                                    map_polylines_feature, map_valid_mask, map_polylines_center):
    # pred_scores / batch_sample_count / map_polylines_center are unused in the reference forward.
    del pred_scores, batch_sample_count, map_polylines_center
    n_ego = features_to_aggregate[0].shape[0]

    # trajectory rows from every CAV, zero-padded to (rows_pad, TRAJ_PAD)
    flat_rows = jnp.concatenate(
        [f.reshape(f.shape[0] * NUM_MODES, TRAJ_FEAT) for f in features_to_aggregate], axis=0)
    total_rows = flat_rows.shape[0]
    rows_pad = ((total_rows + 7) // 8) * 8
    traj_rows = jnp.pad(flat_rows, ((0, rows_pad - total_rows),
                                    (0, TRAJ_PAD - TRAJ_FEAT))).astype(jnp.bfloat16)

    # BEV im2col (transposed so the conv is one (Cmid, 9*Cin) x (9*Cin, H*W) matmul)
    bev_hwc = jnp.transpose(bev_features[0], (1, 2, 0))
    bev_p = jnp.pad(bev_hwc, ((1, 1), (1, 1), (0, 0)))
    taps = [bev_p[ki:ki + BEV_H, kj:kj + BEV_W, :].reshape(BEV_H * BEV_W, BEV_C_IN)
            for ki in range(3) for kj in range(3)]
    patch_t = jnp.concatenate(taps, axis=1).T.astype(jnp.bfloat16)          # (9*Cin, H*W)

    # ego map polylines, masked + flattened
    ego_map = map_polylines_feature[0] * map_valid_mask[0][..., None].astype(jnp.float32)
    map_in = ego_map.reshape(n_ego, MAP_P * MAP_D).astype(jnp.bfloat16)

    # host-side grouping by center-object id -> selection / broadcast / validity matrices
    sel_np, ego_np, valid_np = build_grouping(center_objects_id_to_aggregate, NUM_MODES, rows_pad)
    sel = jnp.asarray(sel_np, jnp.bfloat16)
    ego_expand = jnp.asarray(ego_np, jnp.float32)
    valid = jnp.asarray(valid_np, jnp.float32)

    out_shape = (jax.ShapeDtypeStruct((n_ego * M_PAD, TRAJ_PAD), jnp.float32),
                 jax.ShapeDtypeStruct((n_ego, M_PAD), jnp.float32))
    args = [traj_rows, patch_t, map_in, sel, ego_expand, valid] + [packed[k] for k in PARAM_ORDER]
    traj_pad, scores_pad = pl.pallas_call(
        fused_kernel,
        out_shape=out_shape,
        compiler_params=pltpu.CompilerParams(vmem_limit_bytes=32 * 1024 * 1024),
    )(*args)

    final_scores = scores_pad[:, :NUM_MODES]
    final_traj = traj_pad.reshape(n_ego, M_PAD, TRAJ_PAD)[:, :NUM_MODES, :TRAJ_FEAT]
    final_traj = final_traj.reshape(n_ego, NUM_MODES, NUM_TIMESTAMPS, NUM_STATES)
    return final_traj, final_scores


# --------------------------------------- main ---------------------------------------
if __name__ == "__main__":
    key = jax.random.PRNGKey(0)
    keys = jax.random.split(key, 20)

    n_per_cav = [3, 2, 2]   # ego CAV first
    ids_list = [np.array([10, 11, 12], dtype=np.int64),
                np.array([11, 13], dtype=np.int64),
                np.array([12, 10], dtype=np.int64)]

    features_to_aggregate = [
        jax.random.normal(keys[i], (n, NUM_MODES, NUM_TIMESTAMPS, NUM_STATES), jnp.float32)
        for i, n in enumerate(n_per_cav)]
    pred_scores = [
        jax.random.normal(keys[3 + i], (n, NUM_MODES), jnp.float32)
        for i, n in enumerate(n_per_cav)]
    bev_features = jax.random.normal(keys[6], (1, BEV_C_IN, BEV_H, BEV_W), jnp.float32)
    map_polylines_feature = [
        jax.random.normal(keys[7 + i], (n, MAP_P, MAP_D), jnp.float32)
        for i, n in enumerate(n_per_cav)]
    map_valid_mask = [
        (jax.random.uniform(keys[10 + i], (n, MAP_P)) > 0.3).astype(jnp.float32)
        for i, n in enumerate(n_per_cav)]
    map_polylines_center = [
        jax.random.normal(keys[13 + i], (n, MAP_P, 3), jnp.float32)
        for i, n in enumerate(n_per_cav)]
    batch_sample_count = n_per_cav[0]

    params = init_params(jax.random.PRNGKey(1))

    trajs, scores = motion_aggregator_moev3_forward(
        params, features_to_aggregate, pred_scores, bev_features,
        batch_sample_count, ids_list, map_polylines_feature,
        map_valid_mask, map_polylines_center)
    trajs = jax.block_until_ready(trajs)
    scores = jax.block_until_ready(scores)

    assert trajs.shape == (n_per_cav[0], NUM_MODES, NUM_TIMESTAMPS, NUM_STATES), trajs.shape
    assert scores.shape == (n_per_cav[0], NUM_MODES), scores.shape
    assert bool(jnp.all(jnp.isfinite(trajs))) and bool(jnp.all(jnp.isfinite(scores)))
    print("KERNEL_OK")
</pallas_src>

<mosaic_0001>
module attributes {stable_mosaic.version = 11 : i64} {
  func.func @fused_kernel(%arg0: memref<48x64xbf16, #tpu.memory_space<vmem>>, %arg1: memref<288x192xbf16, #tpu.memory_space<vmem>>, %arg2: memref<3x256xbf16, #tpu.memory_space<vmem>>, %arg3: memref<72x48xbf16, #tpu.memory_space<vmem>>, %arg4: memref<72x3xf32, #tpu.memory_space<vmem>>, %arg5: memref<3x24x1xf32, #tpu.memory_space<vmem>>, %arg6: memref<64x64xbf16, #tpu.memory_space<vmem>>, %arg7: memref<1x64xf32, #tpu.memory_space<vmem>>, %arg8: memref<64x64xbf16, #tpu.memory_space<vmem>>, %arg9: memref<1x64xf32, #tpu.memory_space<vmem>>, %arg10: memref<64x64xbf16, #tpu.memory_space<vmem>>, %arg11: memref<1x64xf32, #tpu.memory_space<vmem>>, %arg12: memref<16x288xbf16, #tpu.memory_space<vmem>>, %arg13: memref<16x1xf32, #tpu.memory_space<vmem>>, %arg14: memref<16x192x32xbf16, #tpu.memory_space<vmem>>, %arg15: memref<1x32xf32, #tpu.memory_space<vmem>>, %arg16: memref<256x256xbf16, #tpu.memory_space<vmem>>, %arg17: memref<1x256xf32, #tpu.memory_space<vmem>>, %arg18: memref<256x256xbf16, #tpu.memory_space<vmem>>, %arg19: memref<1x256xf32, #tpu.memory_space<vmem>>, %arg20: memref<256x32xbf16, #tpu.memory_space<vmem>>, %arg21: memref<1x32xf32, #tpu.memory_space<vmem>>, %arg22: memref<64x768xbf16, #tpu.memory_space<vmem>>, %arg23: memref<32x768xbf16, #tpu.memory_space<vmem>>, %arg24: memref<32x768xbf16, #tpu.memory_space<vmem>>, %arg25: memref<1x768xf32, #tpu.memory_space<vmem>>, %arg26: memref<768x768xbf16, #tpu.memory_space<vmem>>, %arg27: memref<1x768xf32, #tpu.memory_space<vmem>>, %arg28: memref<768x8xbf16, #tpu.memory_space<vmem>>, %arg29: memref<1x8xf32, #tpu.memory_space<vmem>>, %arg30: memref<8x64x384xbf16, #tpu.memory_space<vmem>>, %arg31: memref<1x384xf32, #tpu.memory_space<vmem>>, %arg32: memref<384x384xbf16, #tpu.memory_space<vmem>>, %arg33: memref<1x384xf32, #tpu.memory_space<vmem>>, %arg34: memref<384x8xbf16, #tpu.memory_space<vmem>>, %arg35: memref<1x8xf32, #tpu.memory_space<vmem>>, %arg36: memref<64x64xbf16, #tpu.memory_space<vmem>>, %arg37: memref<1x64xf32, #tpu.memory_space<vmem>>, %arg38: memref<64x64xbf16, #tpu.memory_space<vmem>>, %arg39: memref<1x64xf32, #tpu.memory_space<vmem>>, %arg40: memref<64x64xbf16, #tpu.memory_space<vmem>>, %arg41: memref<1x64xf32, #tpu.memory_space<vmem>>, %arg42: memref<24x64xf32, #tpu.memory_space<vmem>>, %arg43: memref<3x8xf32, #tpu.memory_space<vmem>>) attributes {dimension_semantics = [], scalar_prefetch = 0 : i64, scratch_operands = 0 : i64, tpu.core_type = #tpu.core_type<tc>} {
    %c0 = arith.constant 0 : index
    %c0_0 = arith.constant 0 : index
    %0 = vector.load %arg0[%c0, %c0_0] : memref<48x64xbf16, #tpu.memory_space<vmem>>, vector<48x64xbf16>
    %c0_1 = arith.constant 0 : index
    %c0_2 = arith.constant 0 : index
    %1 = vector.load %arg6[%c0_1, %c0_2] : memref<64x64xbf16, #tpu.memory_space<vmem>>, vector<64x64xbf16>
    %cst = arith.constant dense<0.000000e+00> : vector<48x64xf32>
    %2 = tpu.matmul %0, %1, %cst {dimension_numbers = #tpu.dot_dimension_numbers<[1], [0], [0], [1], [0, 0, 1, 1], [], []>} : vector<48x64xbf16>, vector<64x64xbf16>, vector<48x64xf32> -> vector<48x64xf32>
    %c0_3 = arith.constant 0 : index
    %c0_4 = arith.constant 0 : index
    %3 = vector.load %arg7[%c0_3, %c0_4] : memref<1x64xf32, #tpu.memory_space<vmem>>, vector<1x64xf32>
    %4 = vector.broadcast %3 : vector<1x64xf32> to vector<48x64xf32>
    %5 = arith.addf %2, %4 : vector<48x64xf32>
    %cst_5 = arith.constant 0.000000e+00 : f32
    %6 = vector.broadcast %cst_5 : f32 to vector<48x64xf32>
    %7 = arith.maximumf %5, %6 : vector<48x64xf32>
    %8 = arith.truncf %7 : vector<48x64xf32> to vector<48x64xbf16>
    %c0_6 = arith.constant 0 : index
    %c0_7 = arith.constant 0 : index
    %9 = vector.load %arg8[%c0_6, %c0_7] : memref<64x64xbf16, #tpu.memory_space<vmem>>, vector<64x64xbf16>
    %cst_8 = arith.constant dense<0.000000e+00> : vector<48x64xf32>
    %10 = tpu.matmul %8, %9, %cst_8 {dimension_numbers = #tpu.dot_dimension_numbers<[1], [0], [0], [1], [0, 0, 1, 1], [], []>} : vector<48x64xbf16>, vector<64x64xbf16>, vector<48x64xf32> -> vector<48x64xf32>
    %c0_9 = arith.constant 0 : index
    %c0_10 = arith.constant 0 : index
    %11 = vector.load %arg9[%c0_9, %c0_10] : memref<1x64xf32, #tpu.memory_space<vmem>>, vector<1x64xf32>
    %12 = vector.broadcast %11 : vector<1x64xf32> to vector<48x64xf32>
    %13 = arith.addf %10, %12 : vector<48x64xf32>
    %cst_11 = arith.constant 0.000000e+00 : f32
    %14 = vector.broadcast %cst_11 : f32 to vector<48x64xf32>
    %15 = arith.maximumf %13, %14 : vector<48x64xf32>
    %16 = arith.truncf %15 : vector<48x64xf32> to vector<48x64xbf16>
    %c0_12 = arith.constant 0 : index
    %c0_13 = arith.constant 0 : index
    %17 = vector.load %arg10[%c0_12, %c0_13] : memref<64x64xbf16, #tpu.memory_space<vmem>>, vector<64x64xbf16>
    %cst_14 = arith.constant dense<0.000000e+00> : vector<48x64xf32>
    %18 = tpu.matmul %16, %17, %cst_14 {dimension_numbers = #tpu.dot_dimension_numbers<[1], [0], [0], [1], [0, 0, 1, 1], [], []>} : vector<48x64xbf16>, vector<64x64xbf16>, vector<48x64xf32> -> vector<48x64xf32>
    %c0_15 = arith.constant 0 : index
    %c0_16 = arith.constant 0 : index
    %19 = vector.load %arg11[%c0_15, %c0_16] : memref<1x64xf32, #tpu.memory_space<vmem>>, vector<1x64xf32>
    %20 = vector.broadcast %19 : vector<1x64xf32> to vector<48x64xf32>
    %21 = arith.addf %18, %20 : vector<48x64xf32>
    %22 = arith.truncf %21 : vector<48x64xf32> to vector<48x64xbf16>
    %c0_17 = arith.constant 0 : index
    %c0_18 = arith.constant 0 : index
    %23 = vector.load %arg12[%c0_17, %c0_18] : memref<16x288xbf16, #tpu.memory_space<vmem>>, vector<16x288xbf16>
    %c0_19 = arith.constant 0 : index
    %c0_20 = arith.constant 0 : index
    %24 = vector.load %arg1[%c0_19, %c0_20] : memref<288x192xbf16, #tpu.memory_space<vmem>>, vector<288x192xbf16>
    %cst_21 = arith.constant dense<0.000000e+00> : vector<16x192xf32>
    %25 = tpu.matmul %23, %24, %cst_21 {dimension_numbers = #tpu.dot_dimension_numbers<[1], [0], [0], [1], [0, 0, 1, 1], [], []>} : vector<16x288xbf16>, vector<288x192xbf16>, vector<16x192xf32> -> vector<16x192xf32>
    %c0_22 = arith.constant 0 : index
    %c0_23 = arith.constant 0 : index
    %26 = vector.load %arg13[%c0_22, %c0_23] : memref<16x1xf32, #tpu.memory_space<vmem>>, vector<16x1xf32>
    %27 = vector.broadcast %26 : vector<16x1xf32> to vector<16x192xf32>
    %28 = arith.addf %25, %27 : vector<16x192xf32>
    %cst_24 = arith.constant 0.000000e+00 : f32
    %29 = vector.broadcast %cst_24 : f32 to vector<16x192xf32>
    %30 = arith.maximumf %28, %29 : vector<16x192xf32>
    %31 = arith.truncf %30 : vector<16x192xf32> to vector<16x192xbf16>
    %32 = vector.shape_cast %31 : vector<16x192xbf16> to vector<16x1x192xbf16>
    %c0_25 = arith.constant 0 : index
    %c0_26 = arith.constant 0 : index
    %c0_27 = arith.constant 0 : index
    %33 = vector.load %arg14[%c0_25, %c0_26, %c0_27] : memref<16x192x32xbf16, #tpu.memory_space<vmem>>, vector<16x192x32xbf16>
    "tpu.trace_start"() <{level = 10 : i32, message = "cqp,cpd->cqd"}> : () -> ()
    %cst_28 = arith.constant dense<0.000000e+00> : vector<16x1x32xf32>
    %34 = tpu.matmul %32, %33, %cst_28 {dimension_numbers = #tpu.dot_dimension_numbers<[2], [1], [1], [2], [0, 0, 0, 1, 1, 2], [0], [0]>} : vector<16x1x192xbf16>, vector<16x192x32xbf16>, vector<16x1x32xf32> -> vector<16x1x32xf32>
    "tpu.trace_stop"() : () -> ()
    %cst_29 = arith.constant dense<0.000000e+00> : vector<1x32xf32>
    %35 = vector.multi_reduction <add>, %34, %cst_29 [0] : vector<16x1x32xf32> to vector<1x32xf32>
    %c0_30 = arith.constant 0 : index
    %c0_31 = arith.constant 0 : index
    %36 = vector.load %arg15[%c0_30, %c0_31] : memref<1x32xf32, #tpu.memory_space<vmem>>, vector<1x32xf32>
    %37 = arith.addf %35, %36 : vector<1x32xf32>
    %c0_32 = arith.constant 0 : index
    %c0_33 = arith.constant 0 : index
    %38 = vector.load %arg2[%c0_32, %c0_33] : memref<3x256xbf16, #tpu.memory_space<vmem>>, vector<3x256xbf16>
    %c0_34 = arith.constant 0 : index
    %c0_35 = arith.constant 0 : index
    %39 = vector.load %arg16[%c0_34, %c0_35] : memref<256x256xbf16, #tpu.memory_space<vmem>>, vector<256x256xbf16>
    %cst_36 = arith.constant dense<0.000000e+00> : vector<3x256xf32>
    %40 = tpu.matmul %38, %39, %cst_36 {dimension_numbers = #tpu.dot_dimension_numbers<[1], [0], [0], [1], [0, 0, 1, 1], [], []>} : vector<3x256xbf16>, vector<256x256xbf16>, vector<3x256xf32> -> vector<3x256xf32>
    %c0_37 = arith.constant 0 : index
    %c0_38 = arith.constant 0 : index
    %41 = vector.load %arg17[%c0_37, %c0_38] : memref<1x256xf32, #tpu.memory_space<vmem>>, vector<1x256xf32>
    %42 = vector.broadcast %41 : vector<1x256xf32> to vector<3x256xf32>
    %43 = arith.addf %40, %42 : vector<3x256xf32>
    %cst_39 = arith.constant 0.000000e+00 : f32
    %44 = vector.broadcast %cst_39 : f32 to vector<3x256xf32>
    %45 = arith.maximumf %43, %44 : vector<3x256xf32>
    %46 = arith.truncf %45 : vector<3x256xf32> to vector<3x256xbf16>
    %c0_40 = arith.constant 0 : index
    %c0_41 = arith.constant 0 : index
    %47 = vector.load %arg18[%c0_40, %c0_41] : memref<256x256xbf16, #tpu.memory_space<vmem>>, vector<256x256xbf16>
    %cst_42 = arith.constant dense<0.000000e+00> : vector<3x256xf32>
    %48 = tpu.matmul %46, %47, %cst_42 {dimension_numbers = #tpu.dot_dimension_numbers<[1], [0], [0], [1], [0, 0, 1, 1], [], []>} : vector<3x256xbf16>, vector<256x256xbf16>, vector<3x256xf32> -> vector<3x256xf32>
    %c0_43 = arith.constant 0 : index
    %c0_44 = arith.constant 0 : index
    %49 = vector.load %arg19[%c0_43, %c0_44] : memref<1x256xf32, #tpu.memory_space<vmem>>, vector<1x256xf32>
    %50 = vector.broadcast %49 : vector<1x256xf32> to vector<3x256xf32>
    %51 = arith.addf %48, %50 : vector<3x256xf32>
    %cst_45 = arith.constant 0.000000e+00 : f32
    %52 = vector.broadcast %cst_45 : f32 to vector<3x256xf32>
    %53 = arith.maximumf %51, %52 : vector<3x256xf32>
    %54 = arith.truncf %53 : vector<3x256xf32> to vector<3x256xbf16>
    %c0_46 = arith.constant 0 : index
    %c0_47 = arith.constant 0 : index
    %55 = vector.load %arg20[%c0_46, %c0_47] : memref<256x32xbf16, #tpu.memory_space<vmem>>, vector<256x32xbf16>
    %cst_48 = arith.constant dense<0.000000e+00> : vector<3x32xf32>
    %56 = tpu.matmul %54, %55, %cst_48 {dimension_numbers = #tpu.dot_dimension_numbers<[1], [0], [0], [1], [0, 0, 1, 1], [], []>} : vector<3x256xbf16>, vector<256x32xbf16>, vector<3x32xf32> -> vector<3x32xf32>
    %c0_49 = arith.constant 0 : index
    %c0_50 = arith.constant 0 : index
    %57 = vector.load %arg21[%c0_49, %c0_50] : memref<1x32xf32, #tpu.memory_space<vmem>>, vector<1x32xf32>
    %58 = vector.broadcast %57 : vector<1x32xf32> to vector<3x32xf32>
    %59 = arith.addf %56, %58 : vector<3x32xf32>
    %c0_51 = arith.constant 0 : index
    %c0_52 = arith.constant 0 : index
    %60 = vector.load %arg3[%c0_51, %c0_52] : memref<72x48xbf16, #tpu.memory_space<vmem>>, vector<72x48xbf16>
    %cst_53 = arith.constant dense<0.000000e+00> : vector<72x64xf32>
    %61 = tpu.matmul %60, %22, %cst_53 {dimension_numbers = #tpu.dot_dimension_numbers<[1], [0], [0], [1], [0, 0, 1, 1], [], []>} : vector<72x48xbf16>, vector<48x64xbf16>, vector<72x64xf32> -> vector<72x64xf32>
    %62 = arith.truncf %61 : vector<72x64xf32> to vector<72x64xbf16>
    %63 = arith.truncf %59 : vector<3x32xf32> to vector<3x32xbf16>
    %c0_54 = arith.constant 0 : index
    %c0_55 = arith.constant 0 : index
    %64 = vector.load %arg24[%c0_54, %c0_55] : memref<32x768xbf16, #tpu.memory_space<vmem>>, vector<32x768xbf16>
    %cst_56 = arith.constant dense<0.000000e+00> : vector<3x768xf32>
    %65 = tpu.matmul %63, %64, %cst_56 {dimension_numbers = #tpu.dot_dimension_numbers<[1], [0], [0], [1], [0, 0, 1, 1], [], []>} : vector<3x32xbf16>, vector<32x768xbf16>, vector<3x768xf32> -> vector<3x768xf32>
    %66 = arith.truncf %37 : vector<1x32xf32> to vector<1x32xbf16>
    %c0_57 = arith.constant 0 : index
    %c0_58 = arith.constant 0 : index
    %67 = vector.load %arg23[%c0_57, %c0_58] : memref<32x768xbf16, #tpu.memory_space<vmem>>, vector<32x768xbf16>
    %cst_59 = arith.constant dense<0.000000e+00> : vector<1x768xf32>
    %68 = tpu.matmul %66, %67, %cst_59 {dimension_numbers = #tpu.dot_dimension_numbers<[1], [0], [0], [1], [0, 0, 1, 1], [], []>} : vector<1x32xbf16>, vector<32x768xbf16>, vector<1x768xf32> -> vector<1x768xf32>
    %69 = vector.broadcast %68 : vector<1x768xf32> to vector<3x768xf32>
    %70 = arith.addf %65, %69 : vector<3x768xf32>
    %c0_60 = arith.constant 0 : index
    %c0_61 = arith.constant 0 : index
    %71 = vector.load %arg25[%c0_60, %c0_61] : memref<1x768xf32, #tpu.memory_space<vmem>>, vector<1x768xf32>
    %72 = vector.broadcast %71 : vector<1x768xf32> to vector<3x768xf32>
    %73 = arith.addf %70, %72 : vector<3x768xf32>
    %c0_62 = arith.constant 0 : index
    %c0_63 = arith.constant 0 : index
    %74 = vector.load %arg22[%c0_62, %c0_63] : memref<64x768xbf16, #tpu.memory_space<vmem>>, vector<64x768xbf16>
    %cst_64 = arith.constant dense<0.000000e+00> : vector<72x768xf32>
    %75 = tpu.matmul %62, %74, %cst_64 {dimension_numbers = #tpu.dot_dimension_numbers<[1], [0], [0], [1], [0, 0, 1, 1], [], []>} : vector<72x64xbf16>, vector<64x768xbf16>, vector<72x768xf32> -> vector<72x768xf32>
    %c0_65 = arith.constant 0 : index
    %c0_66 = arith.constant 0 : index
    %76 = vector.load %arg4[%c0_65, %c0_66] : memref<72x3xf32, #tpu.memory_space<vmem>>, vector<72x3xf32>
    %cst_67 = arith.constant dense<0.000000e+00> : vector<72x768xf32>
    %77 = tpu.matmul %76, %73, %cst_67 {dimension_numbers = #tpu.dot_dimension_numbers<[1], [0], [0], [1], [0, 0, 1, 1], [], []>} : vector<72x3xf32>, vector<3x768xf32>, vector<72x768xf32> -> vector<72x768xf32>
    %78 = arith.addf %75, %77 : vector<72x768xf32>
    %cst_68 = arith.constant 0.000000e+00 : f32
    %79 = vector.broadcast %cst_68 : f32 to vector<72x768xf32>
    %80 = arith.maximumf %78, %79 : vector<72x768xf32>
    %81 = arith.truncf %80 : vector<72x768xf32> to vector<72x768xbf16>
    %c0_69 = arith.constant 0 : index
    %c0_70 = arith.constant 0 : index
    %82 = vector.load %arg26[%c0_69, %c0_70] : memref<768x768xbf16, #tpu.memory_space<vmem>>, vector<768x768xbf16>
    %cst_71 = arith.constant dense<0.000000e+00> : vector<72x768xf32>
    %83 = tpu.matmul %81, %82, %cst_71 {dimension_numbers = #tpu.dot_dimension_numbers<[1], [0], [0], [1], [0, 0, 1, 1], [], []>} : vector<72x768xbf16>, vector<768x768xbf16>, vector<72x768xf32> -> vector<72x768xf32>
    %c0_72 = arith.constant 0 : index
    %c0_73 = arith.constant 0 : index
    %84 = vector.load %arg27[%c0_72, %c0_73] : memref<1x768xf32, #tpu.memory_space<vmem>>, vector<1x768xf32>
    %85 = vector.broadcast %84 : vector<1x768xf32> to vector<72x768xf32>
    %86 = arith.addf %83, %85 : vector<72x768xf32>
    %cst_74 = arith.constant 0.000000e+00 : f32
    %87 = vector.broadcast %cst_74 : f32 to vector<72x768xf32>
    %88 = arith.maximumf %86, %87 : vector<72x768xf32>
    %89 = arith.truncf %88 : vector<72x768xf32> to vector<72x768xbf16>
    %c0_75 = arith.constant 0 : index
    %c0_76 = arith.constant 0 : index
    %90 = vector.load %arg28[%c0_75, %c0_76] : memref<768x8xbf16, #tpu.memory_space<vmem>>, vector<768x8xbf16>
    %cst_77 = arith.constant dense<0.000000e+00> : vector<72x8xf32>
    %91 = tpu.matmul %89, %90, %cst_77 {dimension_numbers = #tpu.dot_dimension_numbers<[1], [0], [0], [1], [0, 0, 1, 1], [], []>} : vector<72x768xbf16>, vector<768x8xbf16>, vector<72x8xf32> -> vector<72x8xf32>
    %c0_78 = arith.constant 0 : index
    %c0_79 = arith.constant 0 : index
    %92 = vector.load %arg29[%c0_78, %c0_79] : memref<1x8xf32, #tpu.memory_space<vmem>>, vector<1x8xf32>
    %93 = vector.broadcast %92 : vector<1x8xf32> to vector<72x8xf32>
    %94 = arith.addf %91, %93 : vector<72x8xf32>
    %c0_80 = arith.constant 0 : index
    %c0_81 = arith.constant 0 : index
    %c0_82 = arith.constant 0 : index
    %95 = vector.load %arg5[%c0_80, %c0_81, %c0_82] : memref<3x24x1xf32, #tpu.memory_space<vmem>>, vector<3x24x1xf32>
    %96 = vector.shape_cast %94 : vector<72x8xf32> to vector<3x24x8xf32>
    %cst_83 = arith.constant 0.000000e+00 : f32
    %97 = vector.broadcast %cst_83 : f32 to vector<3x24x1xf32>
    %98 = arith.cmpf ogt, %95, %97 : vector<3x24x1xf32>
    %cst_84 = arith.constant -1.000000e+30 : f32
    %99 = vector.shape_cast %98 : vector<3x24x1xi1> to vector<3x24x1xi1>
    %100 = vector.broadcast %99 : vector<3x24x1xi1> to vector<3x24x8xi1>
    %101 = vector.broadcast %cst_84 : f32 to vector<3x24x8xf32>
    %102 = arith.select %100, %96, %101 : vector<3x24x8xi1>, vector<3x24x8xf32>
    %cst_85 = arith.constant dense<0xFF800000> : vector<3x8xf32>
    %103 = vector.multi_reduction <maximumf>, %102, %cst_85 [1] : vector<3x24x8xf32> to vector<3x8xf32>
    %104 = vector.shape_cast %103 : vector<3x8xf32> to vector<3x1x8xf32>
    %105 = vector.broadcast %104 : vector<3x1x8xf32> to vector<3x24x8xf32>
    %106 = arith.subf %102, %105 : vector<3x24x8xf32>
    %107 = math.exp %106 : vector<3x24x8xf32>
    %108 = vector.broadcast %95 : vector<3x24x1xf32> to vector<3x24x8xf32>
    %109 = arith.mulf %107, %108 : vector<3x24x8xf32>
    %cst_86 = arith.constant dense<0.000000e+00> : vector<3x8xf32>
    %110 = vector.multi_reduction <add>, %109, %cst_86 [1] : vector<3x24x8xf32> to vector<3x8xf32>
    %111 = vector.shape_cast %110 : vector<3x8xf32> to vector<3x1x8xf32>
    %112 = tpu.reciprocal %111 {approx = true} : vector<3x1x8xf32> -> vector<3x1x8xf32>
    %113 = vector.broadcast %112 : vector<3x1x8xf32> to vector<3x24x8xf32>
    %114 = arith.mulf %109, %113 : vector<3x24x8xf32>
    %115 = vector.shape_cast %61 : vector<72x64xf32> to vector<3x24x64xf32>
    %116 = arith.truncf %115 : vector<3x24x64xf32> to vector<3x24x64xbf16>
    %117 = arith.truncf %114 : vector<3x24x8xf32> to vector<3x24x8xbf16>
    %cst_87 = arith.constant dense<0.000000e+00> : vector<3x8x64xf32>
    %118 = tpu.matmul %117, %116, %cst_87 {dimension_numbers = #tpu.dot_dimension_numbers<[1], [1], [2], [2], [0, 0, 0, 2, 1, 2], [0], [0]>} : vector<3x24x8xbf16>, vector<3x24x64xbf16>, vector<3x8x64xf32> -> vector<3x8x64xf32>
    %119 = arith.truncf %118 : vector<3x8x64xf32> to vector<3x8x64xbf16>
    %c0_88 = arith.constant 0 : index
    %c0_89 = arith.constant 0 : index
    %c0_90 = arith.constant 0 : index
    %120 = vector.load %arg30[%c0_88, %c0_89, %c0_90] : memref<8x64x384xbf16, #tpu.memory_space<vmem>>, vector<8x64x384xbf16>
    "tpu.trace_start"() <{level = 10 : i32, message = "gmd,mdf->mgf"}> : () -> ()
    %cst_91 = arith.constant dense<0.000000e+00> : vector<8x3x384xf32>
    %121 = tpu.matmul %119, %120, %cst_91 {dimension_numbers = #tpu.dot_dimension_numbers<[2], [1], [0], [2], [0, 1, 0, 0, 1, 2], [1], [0]>} : vector<3x8x64xbf16>, vector<8x64x384xbf16>, vector<8x3x384xf32> -> vector<8x3x384xf32>
    "tpu.trace_stop"() : () -> ()
    %cst_92 = arith.constant dense<0.000000e+00> : vector<3x384xf32>
    %122 = vector.multi_reduction <add>, %121, %cst_92 [0] : vector<8x3x384xf32> to vector<3x384xf32>
    %c0_93 = arith.constant 0 : index
    %c0_94 = arith.constant 0 : index
    %123 = vector.load %arg31[%c0_93, %c0_94] : memref<1x384xf32, #tpu.memory_space<vmem>>, vector<1x384xf32>
    %124 = vector.broadcast %123 : vector<1x384xf32> to vector<3x384xf32>
    %125 = arith.addf %122, %124 : vector<3x384xf32>
    %cst_95 = arith.constant 0.000000e+00 : f32
    %126 = vector.broadcast %cst_95 : f32 to vector<3x384xf32>
    %127 = arith.maximumf %125, %126 : vector<3x384xf32>
    %128 = arith.truncf %127 : vector<3x384xf32> to vector<3x384xbf16>
    %c0_96 = arith.constant 0 : index
    %c0_97 = arith.constant 0 : index
    %129 = vector.load %arg32[%c0_96, %c0_97] : memref<384x384xbf16, #tpu.memory_space<vmem>>, vector<384x384xbf16>
    %cst_98 = arith.constant dense<0.000000e+00> : vector<3x384xf32>
    %130 = tpu.matmul %128, %129, %cst_98 {dimension_numbers = #tpu.dot_dimension_numbers<[1], [0], [0], [1], [0, 0, 1, 1], [], []>} : vector<3x384xbf16>, vector<384x384xbf16>, vector<3x384xf32> -> vector<3x384xf32>
    %c0_99 = arith.constant 0 : index
    %c0_100 = arith.constant 0 : index
    %131 = vector.load %arg33[%c0_99, %c0_100] : memref<1x384xf32, #tpu.memory_space<vmem>>, vector<1x384xf32>
    %132 = vector.broadcast %131 : vector<1x384xf32> to vector<3x384xf32>
    %133 = arith.addf %130, %132 : vector<3x384xf32>
    %cst_101 = arith.constant 0.000000e+00 : f32
    %134 = vector.broadcast %cst_101 : f32 to vector<3x384xf32>
    %135 = arith.maximumf %133, %134 : vector<3x384xf32>
    %136 = arith.truncf %135 : vector<3x384xf32> to vector<3x384xbf16>
    %c0_102 = arith.constant 0 : index
    %c0_103 = arith.constant 0 : index
    %137 = vector.load %arg34[%c0_102, %c0_103] : memref<384x8xbf16, #tpu.memory_space<vmem>>, vector<384x8xbf16>
    %cst_104 = arith.constant dense<0.000000e+00> : vector<3x8xf32>
    %138 = tpu.matmul %136, %137, %cst_104 {dimension_numbers = #tpu.dot_dimension_numbers<[1], [0], [0], [1], [0, 0, 1, 1], [], []>} : vector<3x384xbf16>, vector<384x8xbf16>, vector<3x8xf32> -> vector<3x8xf32>
    %c0_105 = arith.constant 0 : index
    %c0_106 = arith.constant 0 : index
    %139 = vector.load %arg35[%c0_105, %c0_106] : memref<1x8xf32, #tpu.memory_space<vmem>>, vector<1x8xf32>
    %140 = vector.broadcast %139 : vector<1x8xf32> to vector<3x8xf32>
    %141 = arith.addf %138, %140 : vector<3x8xf32>
    %c0_107 = arith.constant 0 : index
    %c0_108 = arith.constant 0 : index
    %142 = vector.load %arg43[%c0_107, %c0_108] : memref<3x8xf32, #tpu.memory_space<vmem>>, vector<3x8xf32>
    tpu.vector_store %arg43[%c0_107, %c0_108], %141 {strides = array<i32>} : memref<3x8xf32, #tpu.memory_space<vmem>>, vector<3x8xf32>,
    %143 = vector.shape_cast %118 : vector<3x8x64xf32> to vector<24x64xf32>
    %144 = arith.truncf %143 : vector<24x64xf32> to vector<24x64xbf16>
    %c0_109 = arith.constant 0 : index
    %c0_110 = arith.constant 0 : index
    %145 = vector.load %arg36[%c0_109, %c0_110] : memref<64x64xbf16, #tpu.memory_space<vmem>>, vector<64x64xbf16>
    %cst_111 = arith.constant dense<0.000000e+00> : vector<24x64xf32>
    %146 = tpu.matmul %144, %145, %cst_111 {dimension_numbers = #tpu.dot_dimension_numbers<[1], [0], [0], [1], [0, 0, 1, 1], [], []>} : vector<24x64xbf16>, vector<64x64xbf16>, vector<24x64xf32> -> vector<24x64xf32>
    %c0_112 = arith.constant 0 : index
    %c0_113 = arith.constant 0 : index
    %147 = vector.load %arg37[%c0_112, %c0_113] : memref<1x64xf32, #tpu.memory_space<vmem>>, vector<1x64xf32>
    %148 = vector.broadcast %147 : vector<1x64xf32> to vector<24x64xf32>
    %149 = arith.addf %146, %148 : vector<24x64xf32>
    %cst_114 = arith.constant 0.000000e+00 : f32
    %150 = vector.broadcast %cst_114 : f32 to vector<24x64xf32>
    %151 = arith.maximumf %149, %150 : vector<24x64xf32>
    %152 = arith.truncf %151 : vector<24x64xf32> to vector<24x64xbf16>
    %c0_115 = arith.constant 0 : index
    %c0_116 = arith.constant 0 : index
    %153 = vector.load %arg38[%c0_115, %c0_116] : memref<64x64xbf16, #tpu.memory_space<vmem>>, vector<64x64xbf16>
    %cst_117 = arith.constant dense<0.000000e+00> : vector<24x64xf32>
    %154 = tpu.matmul %152, %153, %cst_117 {dimension_numbers = #tpu.dot_dimension_numbers<[1], [0], [0], [1], [0, 0, 1, 1], [], []>} : vector<24x64xbf16>, vector<64x64xbf16>, vector<24x64xf32> -> vector<24x64xf32>
    %c0_118 = arith.constant 0 : index
    %c0_119 = arith.constant 0 : index
    %155 = vector.load %arg39[%c0_118, %c0_119] : memref<1x64xf32, #tpu.memory_space<vmem>>, vector<1x64xf32>
    %156 = vector.broadcast %155 : vector<1x64xf32> to vector<24x64xf32>
    %157 = arith.addf %154, %156 : vector<24x64xf32>
    %cst_120 = arith.constant 0.000000e+00 : f32
    %158 = vector.broadcast %cst_120 : f32 to vector<24x64xf32>
    %159 = arith.maximumf %157, %158 : vector<24x64xf32>
    %160 = arith.truncf %159 : vector<24x64xf32> to vector<24x64xbf16>
    %c0_121 = arith.constant 0 : index
    %c0_122 = arith.constant 0 : index
    %161 = vector.load %arg40[%c0_121, %c0_122] : memref<64x64xbf16, #tpu.memory_space<vmem>>, vector<64x64xbf16>
    %cst_123 = arith.constant dense<0.000000e+00> : vector<24x64xf32>
    %162 = tpu.matmul %160, %161, %cst_123 {dimension_numbers = #tpu.dot_dimension_numbers<[1], [0], [0], [1], [0, 0, 1, 1], [], []>} : vector<24x64xbf16>, vector<64x64xbf16>, vector<24x64xf32> -> vector<24x64xf32>
    %c0_124 = arith.constant 0 : index
    %c0_125 = arith.constant 0 : index
    %163 = vector.load %arg41[%c0_124, %c0_125] : memref<1x64xf32, #tpu.memory_space<vmem>>, vector<1x64xf32>
    %164 = vector.broadcast %163 : vector<1x64xf32> to vector<24x64xf32>
    %165 = arith.addf %162, %164 : vector<24x64xf32>
    %c0_126 = arith.constant 0 : index
    %c0_127 = arith.constant 0 : index
    %166 = vector.load %arg42[%c0_126, %c0_127] : memref<24x64xf32, #tpu.memory_space<vmem>>, vector<24x64xf32>
    tpu.vector_store %arg42[%c0_126, %c0_127], %165 {strides = array<i32>} : memref<24x64xf32, #tpu.memory_space<vmem>>, vector<24x64xf32>,
    return
  }
}

</mosaic_0001>

<bundles_post_ra>
// kernel: tpu_custom_call.1
= control target key start
LH: loop header
LB: loop body
LE: loop exit
PB: predicated region body
PF: predicated region fallthrough
CT: control target
= control target key end

     0   :  { %s15942_s6 = smov 1   ;;  %s15943_s10 = smov 2   ;;  %s18484_s0 = inlined_call_operand.smem [shape: u32[44], index: -1, kind: input, shape index: {}] }
   0x1   :  { %s16032_s5 = sld [smem:[%s18484_s0]]   ;;  %s15944_s14 = smov 3  }
   0x2   :  { %s16037_s9 = sld [smem:[%s18484_s0 + %s15942_s6]]   ;;  %s15945_s18 = smov 4  }
   0x3   :  { %s16042_s13 = sld [smem:[%s18484_s0 + %s15943_s10]]   ;;  %s15946_s22 = smov 5  }
   0x4   :  { %s16047_s17 = sld [smem:[%s18484_s0 + %s15944_s14]]   ;;  %s15947_s26 = smov 6  }
   0x5   :  { %s16052_s21 = sld [smem:[%s18484_s0 + %s15945_s18]]   ;;  %s15948_s30 = smov 7  }
   0x6   :  { %s16057_s25 = sld [smem:[%s18484_s0 + %s15946_s22]]   ;;  %s15949_s4 = smov 8  }
   0x7   :  { %s16062_s29 = sld [smem:[%s18484_s0 + %s15947_s26]]   ;;  %s15950_s10 = smov 9  }
   0x8   :  { %s16067_s3 = sld [smem:[%s18484_s0 + %s15948_s30]]   ;;  %s15951_s15 = smov 10  }
   0x9   :  { %18525 = sst [smem:[#allocation55_spill]] %s16042_s13  ;;  %s15952_s20 = smov 11  }
   0xa   :  { %18526 = sst [smem:[#allocation56_spill]] %s16047_s17  ;;  %s15953_s26 = smov 12  }
   0xb   :  { %18527 = sst [smem:[#allocation57_spill]] %s16052_s21  ;;  %s15954_s1 = smov 13  }
   0xc   :  { %18528 = sst [smem:[#allocation58_spill]] %s16057_s25  ;;  %s15955_s7 = smov 14  }
   0xd   :  { %18529 = sst [smem:[#allocation59_spill]] %s16062_s29  ;;  %s15957_s22 = smov 16  }
   0xe   :  { %s16072_s8 = sld [smem:[%s18484_s0 + %s15949_s4]]   ;;  %s15958_s28 = smov 17  }
   0xf   :  { %s16077_s14 = sld [smem:[%s18484_s0 + %s15950_s10]]  }
  0x10   :  { %s16082_s19 = sld [smem:[%s18484_s0 + %s15951_s15]]   ;;  %s15956_s15 = smov 15  }
  0x11   :  { %s16087_s24 = sld [smem:[%s18484_s0 + %s15952_s20]]  }
  0x12   :  { %s16092_s30 = sld [smem:[%s18484_s0 + %s15953_s26]]  }
  0x13   :  { %s16097_s6 = sld [smem:[%s18484_s0 + %s15954_s1]]  }
  0x14   :  { %18530 = sst [smem:[#allocation60_spill]] %s16072_s8 }
  0x15   :  { %s16102_s12 = sld [smem:[%s18484_s0 + %s15955_s7]]   ;;  %s15959_s7 = smov 18  }
  0x16   :  { %s16107_s20 = sld [smem:[%s18484_s0 + %s15956_s15]]   ;;  %s15960_s15 = smov 19  }
  0x17   :  { %s16112_s27 = sld [smem:[%s18484_s0 + %s15957_s22]]   ;;  %s15961_s22 = smov 20  }
  0x18   :  { %18531 = sst [smem:[#allocation61_spill]] %s16092_s30 }
  0x19   :  { %18532 = sst [smem:[#allocation62_spill]] %s16097_s6 }
  0x1a   :  { %s16117_s4 = sld [smem:[%s18484_s0 + %s15958_s28]]   ;;  %s15962_s28 = smov 21  }
  0x1b   :  { %18533 = sst [smem:[#allocation63_spill]] %s16102_s12 }
  0x1c   :  { %s16122_s21 = sld [smem:[%s18484_s0 + %s15959_s7]]   ;;  %s15963_s7 = smov 22  }
  0x1d   :  { %18534 = sst [smem:[#allocation64_spill]] %s16112_s27 }
  0x1e   :  { %s16127_s17 = sld [smem:[%s18484_s0 + %s15960_s15]]   ;;  %s15964_s15 = smov 23  }
  0x1f   :  { %s16132_s13 = sld [smem:[%s18484_s0 + %s15961_s22]]   ;;  %s15965_s22 = smov 24  }
  0x20   :  { %s16137_s12 = sld [smem:[%s18484_s0 + %s15962_s28]]   ;;  %s15966_s28 = smov 25  }
  0x21   :  { %s16142_s25 = sld [smem:[%s18484_s0 + %s15963_s7]]   ;;  %s15967_s7 = smov 26  }
  0x22   :  { %18535 = sst [smem:[#allocation65_spill]] %s16122_s21 }
  0x23   :  { %s16147_s6 = sld [smem:[%s18484_s0 + %s15964_s15]]   ;;  %s15968_s15 = smov 27  }
  0x24   :  { %s16157_s8 = sld [smem:[%s18484_s0 + %s15966_s28]]   ;;  %s15970_s28 = smov 29  }
  0x25   :  { %18536 = sst [smem:[#allocation66_spill]] %s16132_s13 }
  0x26   :  { %18537 = sst [smem:[#allocation67_spill]] %s16137_s12 }
  0x27   :  { %s16152_s13 = sld [smem:[%s18484_s0 + %s15965_s22]]   ;;  %s15969_s22 = smov 28  }
  0x28   :  { %s16162_s29 = sld [smem:[%s18484_s0 + %s15967_s7]]   ;;  %s15971_s7 = smov 30  }
  0x29   :  { %18538 = sst [smem:[#allocation68_spill]] %s16147_s6 }
  0x2a   :  { %18539 = sst [smem:[#allocation69_spill]] %s16157_s8 }
  0x2b   :  { %s16167_s6 = sld [smem:[%s18484_s0 + %s15968_s15]]   ;;  %s15972_s15 = smov 31  }
  0x2c   :  { %s16172_s12 = sld [smem:[%s18484_s0 + %s15969_s22]]   ;;  %s15973_s22 = smov 32  }
  0x2d   :  { %s16177_s8 = sld [smem:[%s18484_s0 + %s15970_s28]]   ;;  %s15974_s28 = smov 33  }
  0x2e   :  { %18540 = sst [smem:[#allocation70_spill]] %s16162_s29 }
  0x2f   :  { %s16182_s29 = sld [smem:[%s18484_s0 + %s15971_s7]]   ;;  %s15975_s7 = smov 34  }
  0x31   :  { %18541 = sst [smem:[#allocation71_spill]] %s16167_s6 }
  0x32   :  { %18542 = sst [smem:[#allocation72_spill]] %s16172_s12 }
  0x33   :  { %18543 = sst [smem:[#allocation73_spill]] %s16177_s8 }
  0x34   :  { %s16187_s6 = sld [smem:[%s18484_s0 + %s15972_s15]]   ;;  %s15976_s15 = smov 35  }
  0x35   :  { %18544 = sst [smem:[#allocation74_spill]] %s16182_s29 }
  0x36   :  { %s16192_s12 = sld [smem:[%s18484_s0 + %s15973_s22]]   ;;  %s15977_s22 = smov 36  }
  0x37   :  { %s16197_s8 = sld [smem:[%s18484_s0 + %s15974_s28]]   ;;  %s15978_s28 = smov 37  }
  0x38   :  { %s16202_s29 = sld [smem:[%s18484_s0 + %s15975_s7]]   ;;  %s15979_s7 = smov 38  }
  0x39   :  { %s16207_s21 = sld [smem:[%s18484_s0 + %s15976_s15]]   ;;  %s15980_s15 = smov 39  }
  0x3a   :  { %s16217_s27 = sld [smem:[%s18484_s0 + %s15978_s28]]   ;;  %s15982_s28 = smov 41  }
  0x3c   :  { %18545 = sst [smem:[#allocation75_spill]] %s16192_s12 }
  0x3d   :  { %s16212_s12 = sld [smem:[%s18484_s0 + %s15977_s22]]   ;;  %s15981_s22 = smov 40  }
  0x3e   :  { %18546 = sst [smem:[#allocation76_spill]] %s16202_s29 }
  0x3f   :  { %18547 = sst [smem:[#allocation77_spill]] %s16207_s21 }
  0x40   :  { %18549 = sst [smem:[#allocation79_spill]] %s16217_s27 }
  0x41   :  { %s16222_s29 = sld [smem:[%s18484_s0 + %s15979_s7]]   ;;  %s15983_s7 = smov 42  }
  0x42   :  { %s16227_s21 = sld [smem:[%s18484_s0 + %s15980_s15]]   ;;  %s15984_s15 = smov 43  }
  0x43   :  { %18548 = sst [smem:[#allocation78_spill]] %s16212_s12 }
  0x44   :  { %s16232_s12 = sld [smem:[%s18484_s0 + %s15981_s22]]  }
  0x45   :  { %s16237_s27 = sld [smem:[%s18484_s0 + %s15982_s28]]  }
  0x46   :  { %s16242_s30 = sld [smem:[%s18484_s0 + %s15983_s7]]  }
  0x48   :  { %18550 = sst [smem:[#allocation80_spill]] %s16227_s21 }
  0x49   :  { %s16247_s21 = sld [smem:[%s18484_s0 + %s15984_s15]]  }
  0x4a   :  { %93 = vsyncpa [#allocation3], 0 }
  0x4b   :  { %94 = vsyncpa [#allocation6], 0 }
  0x4c   :  { %95 = vsyncpa [#allocation9], 0 }
  0x4d   :  { %96 = vsyncpa [#allocation12], 0 }
  0x4e   :  { %97 = vsyncpa [#allocation15], 0 }
  0x4f   :  { %98 = vsyncpa [#allocation18], 0 }
  0x50   :  { %99 = vsyncpa [#allocation21], 0 }
  0x51   :  { %100 = vsyncpa [#allocation24], 0 }
  0x52   :  { %101 = vsyncpa [#allocation27], 0 }
  0x53   :  { %102 = vsyncpa [#allocation30], 0 }
  0x54   :  { %103 = vsyncpa [#allocation33], 0 }
  0x55   :  { %104 = vsyncpa [#allocation36], 0 }
  0x56   :  { %105 = vsyncpa [#allocation4], 0 }
  0x57   :  { %106 = vsyncpa [#allocation40], 0  ;;  %s15985_s22 = smov [#allocation5]   ;;  %s15364_s23 = scalar_lea.hbm %s16037_s9, 4608 }
  0x58   :  { %s124_s0 = sshll.u32 %s15985_s22, 4  ;;  %p15365_p0 = scmp.ne.s32.totalorder %s16037_s9, %s15364_s23  ;;  %s125_s0 = int_to_ptr.vmem [resolvable:$true] %s124_s0 }
  0x59   :  { %p15368_p1 = scmp.lt.u32.totalorder %s15364_s23, %s16037_s9 }
  0x5b   :  { %p15370_p2 = pnand %p15368_p1, %p15365_p0 }
  0x5d   :  { %15373 = shalt.err (!%p15370_p2)
}
  0x5e   :  { %s15374_s26 = scalar_lea.vmem %s125_s0, 4608  ;;  %p15379_p4 = scmp.lt.s32.totalorder %s125_s0, %s125_s0 }
  0x5f   :  { %p15375_p3 = scmp.ne.s32.totalorder %s125_s0, %s15374_s26  ;;  %p15380_p5 = scmp.lt.s32.totalorder %s15374_s26, %s15374_s26 }
  0x61   :  { %p15381_p6 = por %p15380_p5, %p15379_p4 }
  0x63   :  { %p15382_p7 = pnand %p15381_p6, %p15375_p3 }
  0x65   :  { %15385 = shalt.err (!%p15382_p7)
}
  0x66   :  { %s15986_s28 = smov 128   ;;  %s15987_s1 = smov 8  }
  0x67   :  { %130 = dma.hbm_to_vmem [thread:$0]  %s16037_s9, 4608, %s125_s0, [#allocation6], %s15986_s28, %s15986_s28, %s15987_s1  }
  0x68   :  { %s15988_s2 = smov [#allocation8]   ;;  %s15989_s10 = smov [#allocation11]  }
  0x69   :  { %s159_s7 = sshll.u32 %s15988_s2, 4  ;;  %s181_s11 = sshll.u32 %s15989_s10, 4  ;;  %s160_s7 = int_to_ptr.vmem [resolvable:$true] %s159_s7  ;;  %s182_s11 = int_to_ptr.vmem [resolvable:$true] %s181_s11 }
  0x6a   :  { %s15386_s15 = scalar_lea.hbm %s16077_s14, 16 }
  0x6b   :  { %p15387_p8 = scmp.ne.s32.totalorder %s16077_s14, %s15386_s15  ;;  %p15390_p9 = scmp.lt.u32.totalorder %s15386_s15, %s16077_s14 }
  0x6d   :  { %p15392_p10 = pnand %p15390_p9, %p15387_p8 }
  0x6f   :  { %15395 = shalt.err (!%p15392_p10)
}
  0x70   :  { %s15396_s16 = scalar_lea.vmem %s160_s7, 16  ;;  %s15400_s18 = scalar_lea.vmem %s160_s7, 32 }
  0x71   :  { %p15397_p11 = scmp.ne.s32.totalorder %s160_s7, %s15396_s16  ;;  %p15401_p12 = scmp.lt.s32.totalorder %s160_s7, %s160_s7 }
  0x72   :  { %p15402_p13 = scmp.lt.s32.totalorder %s15400_s18, %s15396_s16 }
  0x74   :  { %p15403_p0 = por %p15402_p13, %p15401_p12 }
  0x76   :  { %p15404_p1 = pnand %p15403_p0, %p15397_p11 }
  0x78   :  { %15407 = shalt.err (!%p15404_p1)
}
  0x79   :  { %162 = dma.hbm_to_vmem [thread:$0]  %s16077_s14, 16, %s160_s7, [#allocation9]  }
  0x7a   :  { %s15408_s9 = scalar_lea.hbm %s16087_s24, 16 }
  0x7b   :  { %p15409_p2 = scmp.ne.s32.totalorder %s16087_s24, %s15408_s9  ;;  %p15412_p3 = scmp.lt.u32.totalorder %s15408_s9, %s16087_s24 }
  0x7d   :  { %p15414_p4 = pnand %p15412_p3, %p15409_p2 }
  0x7f   :  { %15417 = shalt.err (!%p15414_p4)
}
  0x80   :  { %s15418_s22 = scalar_lea.vmem %s182_s11, 16  ;;  %s15422_s0 = scalar_lea.vmem %s182_s11, 32 }
  0x81   :  { %p15419_p5 = scmp.ne.s32.totalorder %s182_s11, %s15418_s22  ;;  %p15423_p6 = scmp.lt.s32.totalorder %s182_s11, %s182_s11 }
  0x82   :  { %p15424_p7 = scmp.lt.s32.totalorder %s15422_s0, %s15418_s22 }
  0x84   :  { %p15425_p8 = por %p15424_p7, %p15423_p6 }
  0x86   :  { %p15426_p9 = pnand %p15425_p8, %p15419_p5 }
  0x88   :  { %15429 = shalt.err (!%p15426_p9)
}
  0x89   :  { %184 = dma.hbm_to_vmem [thread:$0]  %s16087_s24, 16, %s182_s11, [#allocation12]  }
  0x8a   :  { %s15990_s14 = smov [#allocation14]   ;;  %s15991_s26 = smov [#allocation17]  }
  0x8b   :  { %s207_s23 = sshll.u32 %s15990_s14, 4  ;;  %s229_s2 = sshll.u32 %s15991_s26, 4  ;;  %s208_s23 = int_to_ptr.vmem [resolvable:$true] %s207_s23  ;;  %s230_s2 = int_to_ptr.vmem [resolvable:$true] %s229_s2 }
  0x8c   :  { %s15430_s7 = scalar_lea.hbm %s16107_s20, 16 }
  0x8d   :  { %p15431_p10 = scmp.ne.s32.totalorder %s16107_s20, %s15430_s7  ;;  %p15434_p11 = scmp.lt.u32.totalorder %s15430_s7, %s16107_s20 }
  0x8f   :  { %p15436_p12 = pnand %p15434_p11, %p15431_p10 }
  0x91   :  { %15439 = shalt.err (!%p15436_p12)
}
  0x92   :  { %s15440_s10 = scalar_lea.vmem %s208_s23, 16  ;;  %s15444_s15 = scalar_lea.vmem %s208_s23, 32 }
  0x93   :  { %p15441_p13 = scmp.ne.s32.totalorder %s208_s23, %s15440_s10  ;;  %p15445_p0 = scmp.lt.s32.totalorder %s208_s23, %s208_s23 }
  0x94   :  { %p15446_p1 = scmp.lt.s32.totalorder %s15444_s15, %s15440_s10 }
  0x96   :  { %p15447_p2 = por %p15446_p1, %p15445_p0 }
  0x98   :  { %p15448_p3 = pnand %p15447_p2, %p15441_p13 }
  0x9a   :  { %15451 = shalt.err (!%p15448_p3)
}
  0x9b   :  { %210 = dma.hbm_to_vmem [thread:$0]  %s16107_s20, 16, %s208_s23, [#allocation15]  }
  0x9c   :  { %s15452_s24 = scalar_lea.hbm %s16117_s4, 32 }
  0x9d   :  { %p15453_p4 = scmp.ne.s32.totalorder %s16117_s4, %s15452_s24  ;;  %p15456_p5 = scmp.lt.u32.totalorder %s15452_s24, %s16117_s4 }
  0x9f   :  { %p15458_p6 = pnand %p15456_p5, %p15453_p4 }
  0xa1   :  { %15461 = shalt.err (!%p15458_p6)
}
  0xa2   :  { %s15462_s11 = scalar_lea.vmem %s230_s2, 32  ;;  %p15467_p8 = scmp.lt.s32.totalorder %s230_s2, %s230_s2 }
  0xa3   :  { %p15463_p7 = scmp.ne.s32.totalorder %s230_s2, %s15462_s11  ;;  %p15468_p9 = scmp.lt.s32.totalorder %s15462_s11, %s15462_s11 }
  0xa5   :  { %p15469_p10 = por %p15468_p9, %p15467_p8 }
  0xa7   :  { %p15470_p11 = pnand %p15469_p10, %p15463_p7 }
  0xa9   :  { %15473 = shalt.err (!%p15470_p11)
}
  0xaa   :  { %232 = dma.hbm_to_vmem [thread:$0]  %s16117_s4, 32, %s230_s2, [#allocation18]  }
  0xab   :  { %s15992_s16 = smov [#allocation20]   ;;  %s15993_s18 = smov [#allocation23]  }
  0xac   :  { %s251_s20 = sshll.u32 %s15992_s16, 4  ;;  %s272_s9 = sshll.u32 %s15993_s18, 4  ;;  %s252_s20 = int_to_ptr.vmem [resolvable:$true] %s251_s20  ;;  %s273_s9 = int_to_ptr.vmem [resolvable:$true] %s272_s9 }
  0xad   :  { %s15474_s22 = scalar_lea.hbm %s16127_s17, 32 }
  0xae   :  { %p15475_p12 = scmp.ne.s32.totalorder %s16127_s17, %s15474_s22  ;;  %p15478_p13 = scmp.lt.u32.totalorder %s15474_s22, %s16127_s17 }
  0xb0   :  { %p15480_p0 = pnand %p15478_p13, %p15475_p12 }
  0xb2   :  { %15483 = shalt.err (!%p15480_p0)
}
  0xb3   :  { %s15484_s0 = scalar_lea.vmem %s252_s20, 32  ;;  %p15489_p2 = scmp.lt.s32.totalorder %s252_s20, %s252_s20 }
  0xb4   :  { %p15485_p1 = scmp.ne.s32.totalorder %s252_s20, %s15484_s0  ;;  %p15490_p3 = scmp.lt.s32.totalorder %s15484_s0, %s15484_s0 }
  0xb6   :  { %p15491_p4 = por %p15490_p3, %p15489_p2 }
  0xb8   :  { %p15492_p5 = pnand %p15491_p4, %p15485_p1 }
  0xba   :  { %15495 = shalt.err (!%p15492_p5)
}
  0xbb   :  { %254 = dma.hbm_to_vmem [thread:$0]  %s16127_s17, 32, %s252_s20, [#allocation21]  }
  0xbc   :  { %s15496_s4 = scalar_lea.hbm %s16142_s25, 3072 }
  0xbd   :  { %p15497_p6 = scmp.ne.s32.totalorder %s16142_s25, %s15496_s4  ;;  %p15500_p7 = scmp.lt.u32.totalorder %s15496_s4, %s16142_s25 }
  0xbf   :  { %p15502_p8 = pnand %p15500_p7, %p15497_p6 }
  0xc1   :  { %15505 = shalt.err (!%p15502_p8)
}
  0xc2   :  { %s15506_s14 = scalar_lea.vmem %s273_s9, 3072  ;;  %p15511_p10 = scmp.lt.s32.totalorder %s273_s9, %s273_s9 }
  0xc3   :  { %p15507_p9 = scmp.ne.s32.totalorder %s273_s9, %s15506_s14  ;;  %p15512_p11 = scmp.lt.s32.totalorder %s15506_s14, %s15506_s14 }
  0xc5   :  { %p15513_p12 = por %p15512_p11, %p15511_p10 }
  0xc7   :  { %p15514_p13 = pnand %p15513_p12, %p15507_p9 }
  0xc9   :  { %15517 = shalt.err (!%p15514_p13)
}
  0xca   :  { %s15994_s23 = smov 384   ;;  %s15995_s26 = smov 24  }
  0xcb   :  { %278 = dma.hbm_to_vmem [thread:$0]  %s16142_s25, 3072, %s273_s9, [#allocation24], %s15994_s23, %s15994_s23, %s15995_s26  }
  0xcc   :  { %s15996_s17 = smov [#allocation26]   ;;  %s15997_s7 = smov [#allocation29]  }
  0xcd   :  { %s296_s2 = sshll.u32 %s15996_s17, 4  ;;  %s329_s10 = sshll.u32 %s15997_s7, 4  ;;  %s297_s2 = int_to_ptr.vmem [resolvable:$true] %s296_s2  ;;  %s330_s10 = int_to_ptr.vmem [resolvable:$true] %s329_s10 }
  0xce   :  { %s15518_s15 = scalar_lea.hbm %s16152_s13, 1536 }
  0xcf   :  { %p15519_p0 = scmp.ne.s32.totalorder %s16152_s13, %s15518_s15  ;;  %p15522_p1 = scmp.lt.u32.totalorder %s15518_s15, %s16152_s13 }
  0xd1   :  { %p15524_p2 = pnand %p15522_p1, %p15519_p0 }
  0xd3   :  { %15527 = shalt.err (!%p15524_p2)
}
  0xd4   :  { %s15528_s24 = scalar_lea.vmem %s297_s2, 1536  ;;  %p15533_p4 = scmp.lt.s32.totalorder %s297_s2, %s297_s2 }
  0xd5   :  { %p15529_p3 = scmp.ne.s32.totalorder %s297_s2, %s15528_s24  ;;  %p15534_p5 = scmp.lt.s32.totalorder %s15528_s24, %s15528_s24 }
  0xd7   :  { %p15535_p6 = por %p15534_p5, %p15533_p4 }
  0xd9   :  { %p15536_p7 = pnand %p15535_p6, %p15529_p3 }
  0xdb   :  { %15539 = shalt.err (!%p15536_p7)
}
  0xdc   :  { %302 = dma.hbm_to_vmem [thread:$0]  %s16152_s13, 1536, %s297_s2, [#allocation27], %s15994_s23, %s15994_s23, %s15995_s26  }
  0xdd   :  { %s15540_s25 = scalar_lea.hbm %s16187_s6, 48 }
  0xde   :  { %p15541_p8 = scmp.ne.s32.totalorder %s16187_s6, %s15540_s25  ;;  %p15544_p9 = scmp.lt.u32.totalorder %s15540_s25, %s16187_s6 }
  0xe0   :  { %p15546_p10 = pnand %p15544_p9, %p15541_p8 }
  0xe2   :  { %15549 = shalt.err (!%p15546_p10)
}
  0xe3   :  { %s15550_s11 = scalar_lea.vmem %s330_s10, 48  ;;  %s15554_s16 = scalar_lea.vmem %s330_s10, 64 }
  0xe4   :  { %p15551_p11 = scmp.ne.s32.totalorder %s330_s10, %s15550_s11  ;;  %p15555_p12 = scmp.lt.s32.totalorder %s330_s10, %s330_s10 }
  0xe5   :  { %p15556_p13 = scmp.lt.s32.totalorder %s15554_s16, %s15550_s11 }
  0xe7   :  { %p15557_p0 = por %p15556_p13, %p15555_p12 }
  0xe9   :  { %p15558_p1 = pnand %p15557_p0, %p15551_p11 }
  0xeb   :  { %15561 = shalt.err (!%p15558_p1)
}
  0xec   :  { %332 = dma.hbm_to_vmem [thread:$0]  %s16187_s6, 48, %s330_s10, [#allocation30]  }
  0xed   :  { %s15998_s13 = smov [#allocation32]   ;;  %s15562_s18 = scalar_lea.hbm %s16197_s8, 48 }
  0xee   :  { %s351_s20 = sshll.u32 %s15998_s13, 4  ;;  %p15563_p2 = scmp.ne.s32.totalorder %s16197_s8, %s15562_s18  ;;  %s352_s20 = int_to_ptr.vmem [resolvable:$true] %s351_s20 }
  0xef   :  { %p15566_p3 = scmp.lt.u32.totalorder %s15562_s18, %s16197_s8 }
  0xf1   :  { %p15568_p4 = pnand %p15566_p3, %p15563_p2 }
  0xf3   :  { %15571 = shalt.err (!%p15568_p4)
}
  0xf4   :  { %s15572_s9 = scalar_lea.vmem %s352_s20, 48  ;;  %s15576_s22 = scalar_lea.vmem %s352_s20, 64 }
  0xf5   :  { %p15573_p5 = scmp.ne.s32.totalorder %s352_s20, %s15572_s9  ;;  %p15577_p6 = scmp.lt.s32.totalorder %s352_s20, %s352_s20 }
  0xf6   :  { %p15578_p7 = scmp.lt.s32.totalorder %s15576_s22, %s15572_s9 }
  0xf8   :  { %p15579_p8 = por %p15578_p7, %p15577_p6 }
  0xfa   :  { %p15580_p9 = pnand %p15579_p8, %p15573_p5 }
  0xfc   :  { %15583 = shalt.err (!%p15580_p9)
}
  0xfd   :  { %354 = dma.hbm_to_vmem [thread:$0]  %s16197_s8, 48, %s352_s20, [#allocation33]  }
  0xfe   :  { %s15999_s6 = smov [#allocation35]   ;;  %s16000_s4 = smov [#allocation2]  }
  0xff   :  { %s376_s0 = sshll.u32 %s15999_s6, 4  ;;  %s112_s14 = sshll.u32 %s16000_s4, 4  ;;  %s377_s0 = int_to_ptr.vmem [resolvable:$true] %s376_s0  ;;  %s16298_s14 = int_to_ptr.vmem [resolvable:$true] %s112_s14 }
 0x100   :  { %s15584_s17 = scalar_lea.hbm %s16222_s29, 512 }
 0x101   :  { %p15585_p10 = scmp.ne.s32.totalorder %s16222_s29, %s15584_s17  ;;  %p15588_p11 = scmp.lt.u32.totalorder %s15584_s17, %s16222_s29 }
 0x103   :  { %p15590_p12 = pnand %p15588_p11, %p15585_p10 }
 0x105   :  { %15593 = shalt.err (!%p15590_p12)
}
 0x106   :  { %s15594_s2 = scalar_lea.vmem %s377_s0, 512  ;;  %p15599_p0 = scmp.lt.s32.totalorder %s377_s0, %s377_s0 }
 0x107   :  { %p15595_p13 = scmp.ne.s32.totalorder %s377_s0, %s15594_s2  ;;  %p15600_p1 = scmp.lt.s32.totalorder %s15594_s2, %s15594_s2 }
 0x109   :  { %p15601_p2 = por %p15600_p1, %p15599_p0 }
 0x10b   :  { %p15602_p3 = pnand %p15601_p2, %p15595_p13 }
 0x10d   :  { %15605 = shalt.err (!%p15602_p3)
}
 0x10e   :  { %s16001_s8 = smov 64   ;;  %s16002_s7 = smov 4  }
 0x10f   :  { %382 = dma.hbm_to_vmem [thread:$0]  %s16222_s29, 512, %s377_s0, [#allocation36], %s16001_s8, %s16001_s8, %s16002_s7  }
 0x110   :  { %s15606_s10 = scalar_lea.hbm %s16032_s5, 384 }
 0x111   :  { %p15607_p4 = scmp.ne.s32.totalorder %s16032_s5, %s15606_s10  ;;  %p15610_p5 = scmp.lt.u32.totalorder %s15606_s10, %s16032_s5 }
 0x113   :  { %p15612_p6 = pnand %p15610_p5, %p15607_p4 }
 0x115   :  { %15615 = shalt.err (!%p15612_p6)
}
 0x116   :  { %s15616_s15 = scalar_lea.vmem %s16298_s14, 384  ;;  %p15621_p8 = scmp.lt.s32.totalorder %s16298_s14, %s16298_s14 }
 0x117   :  { %p15617_p7 = scmp.ne.s32.totalorder %s16298_s14, %s15616_s15  ;;  %p15622_p9 = scmp.lt.s32.totalorder %s15616_s15, %s15616_s15 }
 0x119   :  { %p15623_p10 = por %p15622_p9, %p15621_p8 }
 0x11b   :  { %p15624_p11 = pnand %p15623_p10, %p15617_p7 }
 0x11d   :  { %15627 = shalt.err (!%p15624_p11)
}
 0x11e   :  { %118 = dma.hbm_to_vmem [thread:$0]  %s16032_s5, 384, %s16298_s14, [#allocation3], %s16001_s8, %s16001_s8, %s16002_s7  }
 0x11f   :  { %s16003_s29 = smov [#allocation7]   ;;  %s16004_s25 = smov [#allocation10]  }
 0x120   :  { %s147_s24 = sshll.u32 %s16003_s29, 4  ;;  %s168_s11 = sshll.u32 %s16004_s25, 4  ;;  %s148_s24 = int_to_ptr.vmem [resolvable:$true] %s147_s24  ;;  %s16319_s11 = int_to_ptr.vmem [resolvable:$true] %s168_s11 }
 0x121   :  { %s15628_s16 = scalar_lea.hbm %s16067_s3, 16 }
 0x122   :  { %p15629_p12 = scmp.ne.s32.totalorder %s16067_s3, %s15628_s16  ;;  %p15632_p13 = scmp.lt.u32.totalorder %s15628_s16, %s16067_s3 }
 0x124   :  { %p15634_p0 = pnand %p15632_p13, %p15629_p12 }
 0x126   :  { %15637 = shalt.err (!%p15634_p0)
}
 0x127   :  { %s15638_s13 = scalar_lea.vmem %s148_s24, 16  ;;  %s15642_s20 = scalar_lea.vmem %s148_s24, 32 }
 0x128   :  { %p15639_p1 = scmp.ne.s32.totalorder %s148_s24, %s15638_s13  ;;  %p15643_p2 = scmp.lt.s32.totalorder %s148_s24, %s148_s24 }
 0x129   :  { %p15644_p3 = scmp.lt.s32.totalorder %s15642_s20, %s15638_s13 }
 0x12b   :  { %p15645_p4 = por %p15644_p3, %p15643_p2 }
 0x12d   :  { %p15646_p5 = pnand %p15645_p4, %p15639_p1 }
 0x12f   :  { %15649 = shalt.err (!%p15646_p5)
}
 0x130   :  { %150 = dma.hbm_to_vmem [thread:$0]  %s16067_s3, 16, %s148_s24, [#allocation6]  }
 0x131   :  { %s15650_s5 = scalar_lea.hbm %s16082_s19, 512 }
 0x132   :  { %p15651_p6 = scmp.ne.s32.totalorder %s16082_s19, %s15650_s5  ;;  %p15654_p7 = scmp.lt.u32.totalorder %s15650_s5, %s16082_s19 }
 0x134   :  { %p15656_p8 = pnand %p15654_p7, %p15651_p6 }
 0x136   :  { %15659 = shalt.err (!%p15656_p8)
}
 0x137   :  { %s15660_s18 = scalar_lea.vmem %s16319_s11, 512  ;;  %p15665_p10 = scmp.lt.s32.totalorder %s16319_s11, %s16319_s11 }
 0x138   :  { %p15661_p9 = scmp.ne.s32.totalorder %s16319_s11, %s15660_s18  ;;  %p15666_p11 = scmp.lt.s32.totalorder %s15660_s18, %s15660_s18 }
 0x13a   :  { %p15667_p12 = por %p15666_p11, %p15665_p10 }
 0x13c   :  { %p15668_p13 = pnand %p15667_p12, %p15661_p9 }
 0x13e   :  { %15671 = shalt.err (!%p15668_p13)
}
 0x13f   :  { %s18551_s3 = sld [smem:[#allocation61_spill]]  ;;  %s16005_s9 = smov [#allocation13]  }
 0x140   :  { %174 = dma.hbm_to_vmem [thread:$0]  %s16082_s19, 512, %s16319_s11, [#allocation9], %s16001_s8, %s16001_s8, %s16002_s7  }
 0x141   :  { %s190_s22 = sshll.u32 %s16005_s9, 4  ;;  %s191_s22 = int_to_ptr.vmem [resolvable:$true] %s190_s22 }
 0x145   :  { %s15672_s6 = scalar_lea.hbm %s18551_s3, 384 }
 0x146   :  { %p15673_p0 = scmp.ne.s32.totalorder %s18551_s3, %s15672_s6  ;;  %p15676_p1 = scmp.lt.u32.totalorder %s15672_s6, %s18551_s3 }
 0x148   :  { %p15678_p2 = pnand %p15676_p1, %p15673_p0 }
 0x14a   :  { %15681 = shalt.err (!%p15678_p2)
}
 0x14b   :  { %s15682_s0 = scalar_lea.vmem %s191_s22, 384  ;;  %p15687_p4 = scmp.lt.s32.totalorder %s191_s22, %s191_s22 }
 0x14c   :  { %p15683_p3 = scmp.ne.s32.totalorder %s191_s22, %s15682_s0  ;;  %p15688_p5 = scmp.lt.s32.totalorder %s15682_s0, %s15682_s0 }
 0x14e   :  { %p15689_p6 = por %p15688_p5, %p15687_p4 }
 0x150   :  { %p15690_p7 = pnand %p15689_p6, %p15683_p3 }
 0x152   :  { %15693 = shalt.err (!%p15690_p7)
}
 0x153   :  { %s16006_s4 = smov 192   ;;  %s18552_s14 = sld [smem:[#allocation64_spill]] }
 0x154   :  { %s16007_s19 = smov 12   ;;  %s16008_s17 = smov [#allocation16]  }
 0x155   :  { %196 = dma.hbm_to_vmem [thread:$0]  %s18551_s3, 384, %s191_s22, [#allocation12], %s16006_s4, %s16006_s4, %s16007_s19  }
 0x156   :  { %s216_s2 = sshll.u32 %s16008_s17, 4  ;;  %s16009_s10 = smov [#allocation19]   ;;  %s217_s2 = int_to_ptr.vmem [resolvable:$true] %s216_s2 }
 0x157   :  { %s238_s15 = sshll.u32 %s16009_s10, 4  ;;  %s239_s15 = int_to_ptr.vmem [resolvable:$true] %s238_s15 }
 0x159   :  { %s15694_s29 = scalar_lea.hbm %s18552_s14, 4096 }
 0x15a   :  { %p15695_p8 = scmp.ne.s32.totalorder %s18552_s14, %s15694_s29  ;;  %p15698_p9 = scmp.lt.u32.totalorder %s15694_s29, %s18552_s14 }
 0x15c   :  { %p15700_p10 = pnand %p15698_p9, %p15695_p8 }
 0x15e   :  { %15703 = shalt.err (!%p15700_p10)
}
 0x15f   :  { %s15704_s24 = scalar_lea.vmem %s217_s2, 4096  ;;  %p15709_p12 = scmp.lt.s32.totalorder %s217_s2, %s217_s2 }
 0x160   :  { %p15705_p11 = scmp.ne.s32.totalorder %s217_s2, %s15704_s24  ;;  %p15710_p13 = scmp.lt.s32.totalorder %s15704_s24, %s15704_s24 }
 0x162   :  { %p15711_p0 = por %p15710_p13, %p15709_p12 }
 0x164   :  { %p15712_p1 = pnand %p15711_p0, %p15705_p11 }
 0x166   :  { %15715 = shalt.err (!%p15712_p1)
}
 0x167   :  { %s18553_s25 = sld [smem:[#allocation65_spill]] }
 0x168   :  { %222 = dma.hbm_to_vmem [thread:$0]  %s18552_s14, 4096, %s217_s2, [#allocation15], %s15986_s28, %s15986_s28, %s15987_s1  }
 0x16d   :  { %s15716_s11 = scalar_lea.hbm %s18553_s25, 4096 }
 0x16e   :  { %p15717_p2 = scmp.ne.s32.totalorder %s18553_s25, %s15716_s11  ;;  %p15720_p3 = scmp.lt.u32.totalorder %s15716_s11, %s18553_s25 }
 0x170   :  { %p15722_p4 = pnand %p15720_p3, %p15717_p2 }
 0x172   :  { %15725 = shalt.err (!%p15722_p4)
}
 0x173   :  { %s15726_s16 = scalar_lea.vmem %s239_s15, 4096  ;;  %p15731_p6 = scmp.lt.s32.totalorder %s239_s15, %s239_s15 }
 0x174   :  { %p15727_p5 = scmp.ne.s32.totalorder %s239_s15, %s15726_s16  ;;  %p15732_p7 = scmp.lt.s32.totalorder %s15726_s16, %s15726_s16 }
 0x176   :  { %p15733_p8 = por %p15732_p7, %p15731_p6 }
 0x178   :  { %p15734_p9 = pnand %p15733_p8, %p15727_p5 }
 0x17a   :  { %15737 = shalt.err (!%p15734_p9)
}
 0x17b   :  { %s18554_s13 = sld [smem:[#allocation67_spill]]  ;;  %s16010_s20 = smov [#allocation22]  }
 0x17c   :  { %244 = dma.hbm_to_vmem [thread:$0]  %s18553_s25, 4096, %s239_s15, [#allocation18], %s15986_s28, %s15986_s28, %s15987_s1  }
 0x17d   :  { %s263_s5 = sshll.u32 %s16010_s20, 4  ;;  %s16011_s18 = smov [#allocation25]   ;;  %s264_s5 = int_to_ptr.vmem [resolvable:$true] %s263_s5 }
 0x17e   :  { %s284_s3 = sshll.u32 %s16011_s18, 4  ;;  %s285_s3 = int_to_ptr.vmem [resolvable:$true] %s284_s3 }
 0x181   :  { %s15738_s9 = scalar_lea.hbm %s18554_s13, 16 }
 0x182   :  { %p15739_p10 = scmp.ne.s32.totalorder %s18554_s13, %s15738_s9  ;;  %p15742_p11 = scmp.lt.u32.totalorder %s15738_s9, %s18554_s13 }
 0x184   :  { %p15744_p12 = pnand %p15742_p11, %p15739_p10 }
 0x186   :  { %15747 = shalt.err (!%p15744_p12)
}
 0x187   :  { %s15748_s22 = scalar_lea.vmem %s264_s5, 16  ;;  %s15752_s6 = scalar_lea.vmem %s264_s5, 32 }
 0x188   :  { %p15749_p13 = scmp.ne.s32.totalorder %s264_s5, %s15748_s22  ;;  %p15753_p0 = scmp.lt.s32.totalorder %s264_s5, %s264_s5 }
 0x189   :  { %p15754_p1 = scmp.lt.s32.totalorder %s15752_s6, %s15748_s22 }
 0x18b   :  { %p15755_p2 = por %p15754_p1, %p15753_p0 }
 0x18d   :  { %p15756_p3 = pnand %p15755_p2, %p15749_p13 }
 0x18f   :  { %15759 = shalt.err (!%p15756_p3)
}
 0x190   :  { %s18555_s0 = sld [smem:[#allocation68_spill]] }
 0x191   :  { %266 = dma.hbm_to_vmem [thread:$0]  %s18554_s13, 16, %s264_s5, [#allocation21]  }
 0x196   :  { %s15760_s14 = scalar_lea.hbm %s18555_s0, 1536 }
 0x197   :  { %p15761_p4 = scmp.ne.s32.totalorder %s18555_s0, %s15760_s14  ;;  %p15764_p5 = scmp.lt.u32.totalorder %s15760_s14, %s18555_s0 }
 0x199   :  { %p15766_p6 = pnand %p15764_p5, %p15761_p4 }
 0x19b   :  { %15769 = shalt.err (!%p15766_p6)
}
 0x19c   :  { %s15770_s17 = scalar_lea.vmem %s285_s3, 1536  ;;  %p15775_p8 = scmp.lt.s32.totalorder %s285_s3, %s285_s3 }
 0x19d   :  { %p15771_p7 = scmp.ne.s32.totalorder %s285_s3, %s15770_s17  ;;  %p15776_p9 = scmp.lt.s32.totalorder %s15770_s17, %s15770_s17 }
 0x19f   :  { %p15777_p10 = por %p15776_p9, %p15775_p8 }
 0x1a1   :  { %p15778_p11 = pnand %p15777_p10, %p15771_p7 }
 0x1a3   :  { %15781 = shalt.err (!%p15778_p11)
}
 0x1a4   :  { %s18556_s2 = sld [smem:[#allocation73_spill]]  ;;  %s16012_s10 = smov [#allocation28]  }
 0x1a5   :  { %290 = dma.hbm_to_vmem [thread:$0]  %s18555_s0, 1536, %s285_s3, [#allocation24], %s15994_s23, %s15994_s23, %s15995_s26  }
 0x1a6   :  { %s317_s15 = sshll.u32 %s16012_s10, 4  ;;  %s16013_s29 = smov [#allocation31]   ;;  %s318_s15 = int_to_ptr.vmem [resolvable:$true] %s317_s15 }
 0x1a7   :  { %s338_s24 = sshll.u32 %s16013_s29, 4  ;;  %s339_s24 = int_to_ptr.vmem [resolvable:$true] %s338_s24 }
 0x1aa   :  { %s15782_s25 = scalar_lea.hbm %s18556_s2, 16 }
 0x1ab   :  { %p15783_p12 = scmp.ne.s32.totalorder %s18556_s2, %s15782_s25  ;;  %p15786_p13 = scmp.lt.u32.totalorder %s15782_s25, %s18556_s2 }
 0x1ad   :  { %p15788_p0 = pnand %p15786_p13, %p15783_p12 }
 0x1af   :  { %15791 = shalt.err (!%p15788_p0)
}
 0x1b0   :  { %s15792_s11 = scalar_lea.vmem %s318_s15, 16  ;;  %s15796_s16 = scalar_lea.vmem %s318_s15, 32 }
 0x1b1   :  { %p15793_p1 = scmp.ne.s32.totalorder %s318_s15, %s15792_s11  ;;  %p15797_p2 = scmp.lt.s32.totalorder %s318_s15, %s318_s15 }
 0x1b2   :  { %p15798_p3 = scmp.lt.s32.totalorder %s15796_s16, %s15792_s11 }
 0x1b4   :  { %p15799_p4 = por %p15798_p3, %p15797_p2 }
 0x1b6   :  { %p15800_p5 = pnand %p15799_p4, %p15793_p1 }
 0x1b8   :  { %15803 = shalt.err (!%p15800_p5)
}
 0x1b9   :  { %s18557_s23 = sld [smem:[#allocation75_spill]] }
 0x1ba   :  { %320 = dma.hbm_to_vmem [thread:$0]  %s18556_s2, 16, %s318_s15, [#allocation27]  }
 0x1bf   :  { %s15804_s26 = scalar_lea.hbm %s18557_s23, 9216 }
 0x1c0   :  { %p15805_p6 = scmp.ne.s32.totalorder %s18557_s23, %s15804_s26  ;;  %p15808_p7 = scmp.lt.u32.totalorder %s15804_s26, %s18557_s23 }
 0x1c2   :  { %p15810_p8 = pnand %p15808_p7, %p15805_p6 }
 0x1c4   :  { %15813 = shalt.err (!%p15810_p8)
}
 0x1c5   :  { %s15814_s13 = scalar_lea.vmem %s339_s24, 9216  ;;  %p15819_p10 = scmp.lt.s32.totalorder %s339_s24, %s339_s24 }
 0x1c6   :  { %p15815_p9 = scmp.ne.s32.totalorder %s339_s24, %s15814_s13  ;;  %p15820_p11 = scmp.lt.s32.totalorder %s15814_s13, %s15814_s13 }
 0x1c8   :  { %p15821_p12 = por %p15820_p11, %p15819_p10 }
 0x1ca   :  { %p15822_p13 = pnand %p15821_p12, %p15815_p9 }
 0x1cc   :  { %15825 = shalt.err (!%p15822_p13)
}
 0x1cd   :  { %s18558_s20 = sld [smem:[#allocation77_spill]]  ;;  %s16014_s5 = smov [#allocation34]  }
 0x1ce   :  { %344 = dma.hbm_to_vmem [thread:$0]  %s18557_s23, 9216, %s339_s24, [#allocation30], %s16006_s4, %s16006_s4, %s16007_s19  }
 0x1cf   :  { %s363_s18 = sshll.u32 %s16014_s5, 4  ;;  %s16015_s3 = smov [#allocation37]   ;;  %s364_s18 = int_to_ptr.vmem [resolvable:$true] %s363_s18 }
 0x1d0   :  { %s390_s9 = sshll.u32 %s16015_s3, 4  ;;  %s391_s9 = int_to_ptr.vmem [resolvable:$true] %s390_s9 }
 0x1d3   :  { %s15826_s22 = scalar_lea.hbm %s18558_s20, 16 }
 0x1d4   :  { %p15827_p0 = scmp.ne.s32.totalorder %s18558_s20, %s15826_s22  ;;  %p15830_p1 = scmp.lt.u32.totalorder %s15826_s22, %s18558_s20 }
 0x1d6   :  { %p15832_p2 = pnand %p15830_p1, %p15827_p0 }
 0x1d8   :  { %15835 = shalt.err (!%p15832_p2)
}
 0x1d9   :  { %s15836_s6 = scalar_lea.vmem %s364_s18, 16  ;;  %s15840_s0 = scalar_lea.vmem %s364_s18, 32 }
 0x1da   :  { %p15837_p3 = scmp.ne.s32.totalorder %s364_s18, %s15836_s6  ;;  %p15841_p4 = scmp.lt.s32.totalorder %s364_s18, %s364_s18 }
 0x1db   :  { %p15842_p5 = scmp.lt.s32.totalorder %s15840_s0, %s15836_s6 }
 0x1dd   :  { %p15843_p6 = por %p15842_p5, %p15841_p4 }
 0x1df   :  { %p15844_p7 = pnand %p15843_p6, %p15837_p3 }
 0x1e1   :  { %15847 = shalt.err (!%p15844_p7)
}
 0x1e2   :  { %366 = dma.hbm_to_vmem [thread:$0]  %s18558_s20, 16, %s364_s18, [#allocation33]  }
 0x1e3   :  { %s15848_s4 = scalar_lea.hbm %s16232_s12, 512 }
 0x1e4   :  { %p15849_p8 = scmp.ne.s32.totalorder %s16232_s12, %s15848_s4  ;;  %p15852_p9 = scmp.lt.u32.totalorder %s15848_s4, %s16232_s12 }
 0x1e6   :  { %p15854_p10 = pnand %p15852_p9, %p15849_p8 }
 0x1e8   :  { %15857 = shalt.err (!%p15854_p10)
}
 0x1e9   :  { %s15858_s19 = scalar_lea.vmem %s391_s9, 512  ;;  %p15863_p12 = scmp.lt.s32.totalorder %s391_s9, %s391_s9 }
 0x1ea   :  { %p15859_p11 = scmp.ne.s32.totalorder %s391_s9, %s15858_s19  ;;  %p15864_p13 = scmp.lt.s32.totalorder %s15858_s19, %s15858_s19 }
 0x1ec   :  { %p15865_p0 = por %p15864_p13, %p15863_p12 }
 0x1ee   :  { %p15866_p1 = pnand %p15865_p0, %p15859_p11 }
 0x1f0   :  { %15869 = shalt.err (!%p15866_p1)
}
 0x1f1   :  { %396 = dma.hbm_to_vmem [thread:$0]  %s16232_s12, 512, %s391_s9, [#allocation36], %s16001_s8, %s16001_s8, %s16002_s7  }
 0x1f2   :  { %15914 = dma.done.wait [#allocation3], 384  }
 0x1f3   :  { %15915 = vsyncadd [#allocation3], 4294966912 }
 0x1f4   :  { %15916 = dma.done.wait [#allocation6], 4624  }
 0x1f5   :  { %15917 = vsyncadd [#allocation6], 4294962672 }
 0x1f6   :  { %15918 = dma.done.wait [#allocation9], 528  }
 0x1f7   :  { %15919 = vsyncadd [#allocation9], 4294966768 }
 0x1f8   :  { %15920 = dma.done.wait [#allocation12], 400  }
 0x1f9   :  { %15921 = vsyncadd [#allocation12], 4294966896 }
 0x1fa   :  { %15922 = dma.done.wait [#allocation15], 4112  }
 0x1fb   :  { %15923 = vsyncadd [#allocation15], 4294963184 }
 0x1fc   :  { %15924 = dma.done.wait [#allocation18], 4128  }
 0x1fd   :  { %15925 = vsyncadd [#allocation18], 4294963168 }
 0x1fe   :  { %15926 = dma.done.wait [#allocation21], 48  }
 0x1ff   :  { %15927 = vsyncadd [#allocation21], 4294967248 }
 0x200   :  { %15928 = dma.done.wait [#allocation24], 4608  }
 0x201   :  { %15929 = vsyncadd [#allocation24], 4294962688 }
 0x202   :  { %15930 = dma.done.wait [#allocation27], 1552  }
 0x203   :  { %15931 = vsyncadd [#allocation27], 4294965744 }
 0x204   :  { %15932 = dma.done.wait [#allocation30], 9264  }
 0x205   :  { %15933 = vsyncadd [#allocation30], 4294958032 }
 0x206   :  { %15934 = dma.done.wait [#allocation33], 64  }
 0x207   :  { %15935 = vsyncadd [#allocation33], 4294967232 }
 0x208   :  { %15936 = dma.done.wait [#allocation36], 1024  }
 0x209   :  { %15937 = vsyncadd [#allocation36], 4294966272  ;;  %s18559_s12 = sld [smem:[#allocation59_spill]]  ;;  %s18560_s8 = sld [smem:[#allocation60_spill]]  ;;  %v18511_v0 = vmov 0.0   ;;  %vm16017_vm0 = vmmov 0  }
 0x20a   :  { %13590 = vmatprep.subr.bf16.mxu0 %v18511_v0  ;;  %13598 = vmatprep.mubr.msk.bf16.mxu0 %vm16017_vm0, %v18511_v0  ;;  %v14148_v7 = vld [vmem:[#allocation2] sm:$0xff]   ;;  %vm529_vm1 = vcmask 523264   ;;  %v14149_v8 = vld [vmem:[#allocation2 + $0x8] sm:$0xff]   ;;  %s18561_s7 = sld [smem:[#allocation62_spill]]  ;;  %s18562_s14 = sld [smem:[#allocation58_spill]]  ;;  %v14150_v9 = vld [vmem:[#allocation2 + $0x10] sm:$0xff]  }
 0x20b   :  { %13610 = vmatprep.subr.bf16.mxu1 %v18511_v0  ;;  %13618 = vmatprep.mubr.msk.bf16.mxu1 %vm16017_vm0, %v18511_v0  ;;  %v14157_v12 = vld [vmem:[#allocation5 + $0x4] ss:$8 sps:$4 sm:$0xff]   ;;  %v18508_v13 = vmov 0   ;;  %v12223_v27 = vld [vmem:[#allocation7] ss:$0 sm:$0xff]  ;;  %s18563_s17 = sld [smem:[#allocation63_spill]] }
 0x20c   :  { %14142 = vset.pattern.permute.xlu0 %v18508_v13  ;;  %14143 = vset.pattern.permute.xlu1 %v18508_v13  ;;  %v14213_v18 = vld [vmem:[#allocation10] sm:$0xff]   ;;  %v14214_v21 = vld [vmem:[#allocation10 + $0x8] sm:$0xff]   ;;  %v14160_v37 = vld [vmem:[#allocation5 + $0x14] ss:$8 sps:$4 sm:$0xff]   ;;  %vm1074_vm6 = vcmask 261120   ;;  %vm3622_vm7 = vcmask 253952  }
 0x20d   :  { %v14155_v34 = vld [vmem:[#allocation5] ss:$8 sps:$4 sm:$0xff]   ;;  %v14158_v39 = vld [vmem:[#allocation5 + $0x10] ss:$8 sps:$4 sm:$0xff]   ;;  %v14163_v41 = vld [vmem:[#allocation5 + $0x24] ss:$8 sps:$4 sm:$0xff]  }
 0x20e   :  { %v14161_v48 = vld [vmem:[#allocation5 + $0x20] ss:$8 sps:$4 sm:$0xff]   ;;  %v14166_v49 = vld [vmem:[#allocation5 + $0x34] ss:$8 sps:$4 sm:$0xff]   ;;  %v14164_v52 = vld [vmem:[#allocation5 + $0x30] ss:$8 sps:$4 sm:$0xff]  }
 0x20f   :  { %v14144_v1 = vld [vmem:[%s18559_s12] sm:$0xff]   ;;  %v14145_v2 = vld [vmem:[%s18559_s12 + $0x8] sm:$0xff]   ;;  %v14146_v3 = vld [vmem:[%s18559_s12 + $0x10] sm:$0xff]   ;;  %s18566_s2 = sld [smem:[#allocation55_spill]]  ;;  %s18567_s10 = sld [smem:[#allocation66_spill]]  ;;  %vm4373_vm8 = vcmask 392192  }
 0x210   :  { %13591 = vmatpush3.bf16.msra.mxu0 %v14144_v1  ;;  %v14151_v4 = vld [vmem:[%s18560_s8] sm:$0xff]   ;;  %v14147_v5 = vld [vmem:[%s18559_s12 + $0x18] sm:$0xff]   ;;  %v14152_v6 = vld [vmem:[%s18560_s8 + $0x8] sm:$0xff]   ;;  %s18568_s15 = sld [smem:[#allocation56_spill]]  ;;  %s18573_s29 = sld [smem:[#allocation69_spill]]  ;;  %vm9266_vm9 = vcmask 1043456  }
 0x211   :  { %13592 = vmatprep.subr.bf16.mxu0 %v18511_v0  ;;  %13611 = vmatpush3.bf16.msra.mxu1 %v14151_v4  ;;  %v14153_v10 = vld [vmem:[%s18560_s8 + $0x10] sm:$0xff]   ;;  %v14154_v11 = vld [vmem:[%s18560_s8 + $0x18] sm:$0xff]   ;;  %v867_v14 = vld [vmem:[%s18561_s7] sm:$0xff]  ;;  %s18577_s24 = sld [smem:[#allocation57_spill]]  ;;  %vm4987_vm10 = vcmask 1042432   ;;  %vm4959_vm11 = vcmask 23552  }
 0x212   :  { %13612 = vmatprep.subr.bf16.mxu1 %v18511_v0  ;;  %v9006_v15 = vld [vmem:[%s18562_s14 + $0x8] sm:$0xff]  ;;  %871 = vperm.xlu0 %14142, %v867_v14   ;;  %v9011_v19 = vld [vmem:[%s18562_s14 + $0x30] sm:$0xff]  ;;  %v9012_v20 = vld [vmem:[%s18562_s14 + $0x38] sm:$0xff]  ;;  %s18578_s25 = sld [smem:[#allocation70_spill]]  ;;  %s18580_s11 = sld [smem:[#allocation72_spill]] }
 0x213   :  { %v868_v16 = vld [vmem:[%s18561_s7 + $0x8] sm:$0xff]  ;;  %vm9015_vm2 = vcmp.gt.f32.partialorder %v9006_v15, 0.0  ;;  %vm9020_vm4 = vcmp.gt.f32.partialorder %v9011_v19, 0.0  ;;  %vm9021_vm5 = vcmp.gt.f32.partialorder %v9012_v20, 0.0  ;;  %v9008_v26 = vld [vmem:[%s18562_s14 + $0x18] sm:$0xff]  ;;  %s18581_s16 = sld [smem:[#allocation71_spill]] }
 0x214   :  { %13593 = vmatpush3.bf16.msra.mxu0 %v14145_v2  ;;  %v9010_v17 = vld [vmem:[%s18562_s14 + $0x28] sm:$0xff]  ;;  %v9024_v22 = vsel %vm9015_vm2, 1, %v18508_v13  ;;  %v9029_v24 = vsel %vm9020_vm4, 1, %v18508_v13  ;;  %v9030_v25 = vsel %vm9021_vm5, 1, %v18508_v13  ;;  %v14169_v54 = vld [vmem:[#allocation5 + $0x44] ss:$8 sps:$4 sm:$0xff]  }
 0x215   :  { %13594 = vmatprep.subr.bf16.mxu0 %v18511_v0  ;;  %13613 = vmatpush3.bf16.msra.mxu1 %v14152_v6  ;;  %vm9019_vm3 = vcmp.gt.f32.partialorder %v9010_v17, 0.0  ;;  %v14167_v61 = vld [vmem:[#allocation5 + $0x40] ss:$8 sps:$4 sm:$0xff]   ;;  %v14172_v63 = vld [vmem:[#allocation5 + $0x54] ss:$8 sps:$4 sm:$0xff]   ;;  %vm9077_vm5 = vcmask 64512  }
 0x216   :  { %13614 = vmatprep.subr.bf16.mxu1 %v18511_v0  ;;  %876 = vperm.xlu0 %14142, %v868_v16   ;;  %v9028_v23 = vsel %vm9019_vm3, 1, %v18508_v13  ;;  %v14205_v62 = vld [vmem:[#allocation13 + $0x4] ss:$12 sps:$4 sm:$0xff]   ;;  %s18595_s23 = sld [smem:[#allocation74_spill]]  ;;  %s18599_s26 = sld [smem:[#allocation76_spill]] }
 0x217   :  { %v14175_v4 = vld [vmem:[#allocation5 + $0x64] ss:$8 sps:$4 sm:$0xff]   ;;  %v14178_v6 = vld [vmem:[#allocation5 + $0x74] ss:$8 sps:$4 sm:$0xff]   ;;  %v14185_v14 = vld [vmem:[#allocation5 + $0xa0] ss:$8 sps:$4 sm:$0xff]  }
 0x218   :  { %13595 = vmatpush3.bf16.msra.mxu0 %v14146_v3  ;;  %v14170_v3 = vld [vmem:[#allocation5 + $0x50] ss:$8 sps:$4 sm:$0xff]   ;;  %v14196_v19 = vld [vmem:[#allocation5 + $0xd4] ss:$8 sps:$4 sm:$0xff]   ;;  %s18600_s13 = sld [smem:[#allocation78_spill]]  ;;  %s18601_s20 = sld [smem:[#allocation79_spill]] }
 0x219   :  { %13596 = vmatprep.subr.bf16.mxu0 %v18511_v0  ;;  %13615 = vmatpush3.bf16.msra.mxu1 %v14153_v10  ;;  %v14184_v10 = vld [vmem:[#allocation5 + $0x94] ss:$8 sps:$4 sm:$0xff]   ;;  %v14188_v16 = vld [vmem:[#allocation5 + $0xb0] ss:$8 sps:$4 sm:$0xff]   ;;  %s18602_s5 = sld [smem:[#allocation80_spill]]  ;;  %s16022_s18 = smov [#allocation39]  }
 0x21a   :  { %13616 = vmatprep.subr.bf16.mxu1 %v18511_v0  ;;  %9036 = vperm.xlu0 %14142, %v9024_v22   ;;  %v14197_v22 = vld [vmem:[#allocation5 + $0xe0] ss:$8 sps:$4 sm:$0xff]   ;;  %s12156_s3 = sshll.u32 %s16022_s18, 4  ;;  %s12157_s3 = int_to_ptr.vmem [resolvable:$true] %s12156_s3 }
 0x21b   :  { %s15870_s9 = scalar_lea.vmem %s12157_s3, 64  ;;  %p15875_p3 = scmp.lt.s32.totalorder %s12157_s3, %s12157_s3 }
 0x21c   :  { %13597 = vmatpush3.bf16.msra.mxu0 %v14147_v5  ;;  %v14173_v5 = vld [vmem:[#allocation5 + $0x60] ss:$8 sps:$4 sm:$0xff]   ;;  %p15871_p2 = scmp.ne.s32.totalorder %s12157_s3, %s15870_s9  ;;  %p15876_p4 = scmp.lt.s32.totalorder %s15870_s9, %s15870_s9 }
 0x21d   :  { %13630 = vmatprep.subr.bf16.mxu0 %v18511_v0  ;;  %13617 = vmatpush3.bf16.msra.mxu1 %v14154_v11  ;;  %v14182_v11 = vld [vmem:[#allocation5 + $0x90] ss:$8 sps:$4 sm:$0xff]  }
 0x21e   :  { %1078 = vmatprep.subr.bf16.mxu1 %v14157_v12  ;;  %9048 = vperm.xlu0 %14142, %v9028_v23   ;;  %v14187_v12 = vld [vmem:[#allocation5 + $0xa4] ss:$8 sps:$4 sm:$0xff]   ;;  %v14202_v23 = vld [vmem:[#allocation5 + $0xf4] ss:$8 sps:$4 sm:$0xff]   ;;  %p15877_p5 = por %p15876_p4, %p15875_p3 }
 0x21f   :  { %13599 = vmatmul.mubr.msk.bf16.vlgmr.msra.gmra.mrb[0].mxu0 %vm529_vm1, %v14148_v7  ;;  %v14176_v7 = vld [vmem:[#allocation5 + $0x70] ss:$8 sps:$4 sm:$0xff]  }
 0x220   :  { %13602 = vmatprep.mubr.msk.bf16.mxu0 %vm16017_vm0, %v18511_v0  ;;  %13631 = vmatpush3.bf16.msra.mxu0 %v14213_v18  ;;  %v14191_v18 = vld [vmem:[#allocation5 + $0xc0] ss:$8 sps:$4 sm:$0xff]   ;;  %p15878_p6 = pnand %p15877_p5, %p15871_p2 }
 0x221   :  { %13632 = vmatprep.subr.bf16.mxu0 %v18511_v0 }
 0x222   :  { %9051 = vperm.xlu0 %14142, %v9029_v24   ;;  %v14200_v24 = vld [vmem:[#allocation5 + $0xf0] ss:$8 sps:$4 sm:$0xff]  }
 0x224   :  { %13633 = vmatpush3.bf16.msra.mxu0 %v14214_v21  ;;  %v14199_v21 = vld [vmem:[#allocation5 + $0xe4] ss:$8 sps:$4 sm:$0xff]  }
 0x225   :  { %13634 = vmatprep.subr.bf16.mxu0 %v18511_v0 }
 0x226   :  { %9054 = vperm.xlu0 %14142, %v9030_v25   ;;  %v14208_v25 = vld [vmem:[#allocation5 + $0x104] ss:$8 sps:$4 sm:$0xff]  }
 0x227   :  { %13603 = vmatmul.mubr.msk.bf16.gmra.mrb[4].mxu0 %vm529_vm1, %v14149_v8  ;;  %v14181_v8 = vld [vmem:[#allocation5 + $0x84] ss:$8 sps:$4 sm:$0xff]  }
 0x228   :  { %13606 = vmatprep.mubr.msk.bf16.mxu0 %vm16017_vm0, %v18511_v0 }
 0x22a   :  { %9145 = vperm.xlu0 %14142, %v9006_v15   ;;  %v14190_v15 = vld [vmem:[#allocation5 + $0xb4] ss:$8 sps:$4 sm:$0xff]  }
 0x22e   :  { %9155 = vperm.xlu0 %14142, %v9008_v26   ;;  %v14203_v26 = vld [vmem:[#allocation13] ss:$12 sps:$4 sm:$0xff]  }
 0x22f   :  { %13607 = vmatmul.mubr.msk.bf16.gmra.mrb[8].mxu0 %vm529_vm1, %v14150_v9  ;;  %v14179_v9 = vld [vmem:[#allocation5 + $0x80] ss:$8 sps:$4 sm:$0xff]  }
 0x230   :  { %13638 = vmatprep.mubr.msk.bf16.mxu0 %vm16017_vm0, %v18511_v0 }
 0x232   :  { %9165 = vperm.xlu0 %14142, %v9010_v17   ;;  %v14193_v17 = vld [vmem:[#allocation5 + $0xc4] ss:$8 sps:$4 sm:$0xff]  }
 0x236   :  { %9175 = vperm.xlu0 %14142, %v9012_v20   ;;  %v14194_v20 = vld [vmem:[#allocation5 + $0xd0] ss:$8 sps:$4 sm:$0xff]  }
 0x2f2   :  { %v573_v28 = vpop.f32.mrb[0].mxu0 }
 0x2f3   :  { %v574_v29 = vadd.f32 %v12223_v27, %v573_v28  ;;  %v13600_v30 = vpop.f32.mrb[1].mxu0  ;;  %v14211_v28 = vld [vmem:[#allocation5 + $0x114] ss:$8 sps:$4 sm:$0xff]  }
 0x2f4   :  { %v576_v31 = vpop.f32.mrb[2].mxu0  ;;  %v14212_v30 = vld [vmem:[#allocation13 + $0x8] ss:$12 sps:$4 sm:$0xff]  }
 0x2f5   :  { %v577_v32 = vadd.f32 %v12223_v27, %v576_v31  ;;  %v13601_v33 = vpop.f32.mrb[3].mxu0  ;;  %v596_v35 = vmax.f32 %v574_v29, 0.0  ;;  %v14209_v29 = vld [vmem:[#allocation5 + $0x110] ss:$8 sps:$4 sm:$0xff]  }
 0x2f6   :  { %v14215_v31 = vld [vmem:[#allocation10 + $0x10] sm:$0xff]   ;;  %v14218_v33 = vld [vmem:[%s18563_s17 + $0xc0] sm:$0xff]  }
 0x2f7   :  { %v597_v36 = vmax.f32 %v577_v32, 0.0  ;;  %13635 = vmatpush3.bf16.msra.mxu0 %v14215_v31  ;;  %v14216_v32 = vld [vmem:[#allocation10 + $0x18] sm:$0xff]  }
 0x2f8   :  { %13636 = vmatprep.subr.bf16.mxu0 %v18511_v0 }
 0x2f9   :  { %v602_v38 = vpack.c.bf16 %v597_v36, %v596_v35  ;;  %v14222_v35 = vld [vmem:[%s18563_s17 + $0xd0] sm:$0xff]   ;;  %v14224_v36 = vld [vmem:[%s18563_s17 + $0xd8] sm:$0xff]  }
 0x2fa   :  { %v581_v40 = vpop.f32.mrb[4].mxu0 }
 0x2fb   :  { %13619 = vmatmul.mubr.msk.bf16.vlgmr.msra.gmra.mrb[0].mxu1 %vm529_vm1, %v602_v38  ;;  %v582_v42 = vadd.f32 %v12223_v27, %v581_v40  ;;  %v13604_v43 = vpop.f32.mrb[5].mxu0  ;;  %13637 = vmatpush3.bf16.msra.mxu0 %v14216_v32  ;;  %v14228_v38 = vld [vmem:[%s18563_s17 + $0xe8] sm:$0xff]   ;;  %v14232_v40 = vld [vmem:[%s18563_s17 + $0xf8] sm:$0xff]  }
 0x2fc   :  { %1079 = vmatpush1.bf16.msra.mxu1 %v14155_v34  ;;  %v584_v44 = vpop.f32.mrb[6].mxu0  ;;  %13622 = vmatprep.mubr.msk.bf16.mxu1 %vm16017_vm0, %v18511_v0  ;;  %v14220_v34 = vld [vmem:[%s18563_s17 + $0xc8] sm:$0xff]   ;;  %v14238_v43 = vld [vmem:[%s18563_s17 + $0x110] sm:$0xff]  }
 0x2fd   :  { %1080 = vmatprep.subr.bf16.mxu1 %v14160_v37  ;;  %v598_v45 = vmax.f32 %v582_v42, 0.0  ;;  %v585_v46 = vadd.f32 %v12223_v27, %v584_v44  ;;  %v13605_v47 = vpop.f32.mrb[7].mxu0  ;;  %1707 = vmatprep.subr.bf16.mxu0 %v18508_v13  ;;  %v14226_v37 = vld [vmem:[%s18563_s17 + $0xe0] sm:$0xff]   ;;  %v14236_v42 = vld [vmem:[%s18563_s17 + $0x108] sm:$0xff]   ;;  %v14240_v44 = vld [vmem:[%s18563_s17 + $0x118] sm:$0xff]  }
 0x2ff   :  { %v599_v50 = vmax.f32 %v585_v46, 0.0 }
 0x300   :  { %1081 = vmatpush1.bf16.msra.mxu1 %v14158_v39  ;;  %v14230_v39 = vld [vmem:[%s18563_s17 + $0xf0] sm:$0xff]  }
 0x301   :  { %1082 = vmatprep.subr.bf16.mxu1 %v14163_v41  ;;  %v603_v51 = vpack.c.bf16 %v599_v50, %v598_v45  ;;  %v14234_v41 = vld [vmem:[%s18563_s17 + $0x100] sm:$0xff]   ;;  %v12234_v45 = vld [vmem:[#allocation8] ss:$0 sm:$0xff] }
 0x302   :  { %v589_v53 = vpop.f32.mrb[8].mxu0 }
 0x303   :  { %v590_v55 = vadd.f32 %v12223_v27, %v589_v53  ;;  %v13608_v56 = vpop.f32.mrb[9].mxu0  ;;  %13623 = vmatmul.mubr.msk.bf16.gmra.mrb[4].mxu1 %vm529_vm1, %v603_v51 }
 0x304   :  { %1083 = vmatpush1.bf16.msra.mxu1 %v14161_v48  ;;  %v592_v57 = vpop.f32.mrb[10].mxu0  ;;  %13626 = vmatprep.mubr.msk.bf16.mxu1 %vm16017_vm0, %v18511_v0 }
 0x305   :  { %1084 = vmatprep.subr.bf16.mxu1 %v14166_v49  ;;  %v600_v58 = vmax.f32 %v590_v55, 0.0  ;;  %v593_v59 = vadd.f32 %v12223_v27, %v592_v57  ;;  %v13609_v60 = vpop.f32.mrb[11].mxu0  ;;  %v14206_v27 = vld [vmem:[#allocation5 + $0x100] ss:$8 sps:$4 sm:$0xff]  }
 0x306   :  { %v14219_v60 = vld [vmem:[%s18563_s17 + $0x8] sm:$0xff]  }
 0x307   :  { %v601_v1 = vmax.f32 %v593_v59, 0.0 }
 0x308   :  { %1085 = vmatpush1.bf16.msra.mxu1 %v14164_v52 }
 0x309   :  { %1086 = vmatprep.subr.bf16.mxu1 %v14169_v54  ;;  %v604_v2 = vpack.c.bf16 %v601_v1, %v600_v58  ;;  %v14217_v54 = vld [vmem:[%s18563_s17] sm:$0xff]  }
 0x30b   :  { %13627 = vmatmul.mubr.msk.bf16.gmra.mrb[8].mxu1 %vm529_vm1, %v604_v2  ;;  %v14221_v2 = vld [vmem:[%s18563_s17 + $0x10] sm:$0xff]  }
 0x30c   :  { %1087 = vmatpush1.bf16.msra.mxu1 %v14167_v61  ;;  %1110 = vmatprep.mubr.bf16.mxu1 %v14205_v62 }
 0x30d   :  { %1088 = vmatprep.subr.bf16.mxu1 %v14172_v63 }
 0x310   :  { %1089 = vmatpush1.bf16.msra.mxu1 %v14170_v3 }
 0x311   :  { %1090 = vmatprep.subr.bf16.mxu1 %v14175_v4 }
 0x314   :  { %1091 = vmatpush1.bf16.msra.mxu1 %v14173_v5 }
 0x315   :  { %1092 = vmatprep.subr.bf16.mxu1 %v14178_v6 }
 0x318   :  { %1093 = vmatpush1.bf16.msra.mxu1 %v14176_v7 }
 0x319   :  { %1094 = vmatprep.subr.bf16.mxu1 %v14181_v8  ;;  %v14223_v8 = vld [vmem:[%s18563_s17 + $0x18] sm:$0xff]  }
 0x31c   :  { %1095 = vmatpush1.bf16.msra.mxu1 %v14179_v9 }
 0x31d   :  { %1096 = vmatprep.subr.bf16.mxu1 %v14184_v10 }
 0x320   :  { %1097 = vmatpush1.bf16.msra.mxu1 %v14182_v11 }
 0x321   :  { %1098 = vmatprep.subr.bf16.mxu1 %v14187_v12 }
 0x324   :  { %1099 = vmatpush1.bf16.msra.mxu1 %v14185_v14  ;;  %v14225_v14 = vld [vmem:[%s18563_s17 + $0x20] sm:$0xff]  }
 0x325   :  { %1100 = vmatprep.subr.bf16.mxu1 %v14190_v15 }
 0x328   :  { %1101 = vmatpush1.bf16.msra.mxu1 %v14188_v16  ;;  %v14227_v16 = vld [vmem:[%s18563_s17 + $0x28] sm:$0xff]  }
 0x329   :  { %1102 = vmatprep.subr.bf16.mxu1 %v14193_v17  ;;  %v14229_v17 = vld [vmem:[%s18563_s17 + $0x30] sm:$0xff]  }
 0x32c   :  { %1103 = vmatpush1.bf16.msra.mxu1 %v14191_v18  ;;  %v14231_v18 = vld [vmem:[%s18563_s17 + $0x38] sm:$0xff]  }
 0x32d   :  { %1104 = vmatprep.subr.bf16.mxu1 %v14196_v19  ;;  %v14233_v19 = vld [vmem:[%s18563_s17 + $0x40] sm:$0xff]  }
 0x330   :  { %1105 = vmatpush1.bf16.msra.mxu1 %v14194_v20  ;;  %v14235_v20 = vld [vmem:[%s18563_s17 + $0x48] sm:$0xff]  }
 0x331   :  { %1106 = vmatprep.subr.bf16.mxu1 %v14199_v21  ;;  %v14237_v21 = vld [vmem:[%s18563_s17 + $0x50] sm:$0xff]  }
 0x334   :  { %1107 = vmatpush1.bf16.msra.mxu1 %v14197_v22  ;;  %v14239_v22 = vld [vmem:[%s18563_s17 + $0x58] sm:$0xff]  }
 0x335   :  { %1108 = vmatprep.subr.bf16.mxu1 %v14202_v23  ;;  %v872_v23 = vpop.permute.xlu0 %871 }
 0x338   :  { %1109 = vmatpush1.bf16.msra.mxu1 %v14200_v24  ;;  %v16019_v24 = vmov 1966171168  }
 0x339   :  { %1121 = vmatprep.subr.bf16.mxu1 %v14208_v25  ;;  %v1175_v25 = vunpack.c.l.s4 %v16019_v24  ;;  %v877_v32 = vpop.permute.xlu0 %876  ;;  %v14260_v24 = vld [vmem:[%s18563_s17 + $0x1c8] sm:$0xff]  }
 0x33b   :  { %1111 = vmatmul.mubr.bf16.vlgmr.msra.gmra.mrb[12].mxu1 %v14203_v26  ;;  %v1177_v26 = vlaneseq }
 0x33c   :  { %1122 = vmatpush1.bf16.msra.mxu1 %v14206_v27  ;;  %1153 = vmatprep.mubr.bf16.mxu1 %v18508_v13 }
 0x33d   :  { %1123 = vmatprep.subr.bf16.mxu1 %v14211_v28  ;;  %v1176_v28 = vunpack.c.0.s8 %v1175_v25  ;;  %v14261_v25 = vld [vmem:[%s18563_s17 + $0xb0] sm:$0xff]  }
 0x340   :  { %1124 = vmatpush1.bf16.msra.mxu1 %v14209_v29  ;;  %v16503_v29 = vshrl.u32 %v1177_v26, 7  ;;  %v14262_v26 = vld [vmem:[%s18563_s17 + $0x1d0] sm:$0xff]  }
 0x341   :  { %1957 = vmatprep.subr.bf16.mxu1 %v18508_v13 }
 0x342   :  { %18564 = vst [vmem:[#allocation81_spill] sm:$0xff] %v16503_v29 }
 0x347   :  { %12289 = vmatmul.mubr.msk.bf16.vlgmr.msra.gmra.mrb[12].mxu1 %vm1074_vm6, %v14212_v30 }
 0x348   :  { %1958 = vmatpush1.bf16.msra.mxu1 %v14218_v33 }
 0x349   :  { %1959 = vmatprep.subr.bf16.mxu1 %v18508_v13 }
 0x34c   :  { %1960 = vmatpush1.bf16.msra.mxu1 %v14220_v34 }
 0x34d   :  { %1961 = vmatprep.subr.bf16.mxu1 %v18508_v13 }
 0x350   :  { %1962 = vmatpush1.bf16.msra.mxu1 %v14222_v35 }
 0x351   :  { %1963 = vmatprep.subr.bf16.mxu1 %v18508_v13 }
 0x354   :  { %1964 = vmatpush1.bf16.msra.mxu1 %v14224_v36 }
 0x355   :  { %1965 = vmatprep.subr.bf16.mxu1 %v18508_v13 }
 0x358   :  { %1966 = vmatpush1.bf16.msra.mxu1 %v14226_v37 }
 0x359   :  { %1967 = vmatprep.subr.bf16.mxu1 %v18508_v13 }
 0x35c   :  { %1968 = vmatpush1.bf16.msra.mxu1 %v14228_v38 }
 0x35d   :  { %1969 = vmatprep.subr.bf16.mxu1 %v18508_v13 }
 0x360   :  { %1970 = vmatpush1.bf16.msra.mxu1 %v14230_v39  ;;  %v1179_v39 = vsub.s32 %v1176_v28, %v16503_v29  ;;  %v14263_v28 = vld [vmem:[%s18563_s17 + $0xb8] sm:$0xff]  }
 0x361   :  { %1971 = vmatprep.subr.bf16.mxu1 %v18508_v13 }
 0x364   :  { %1972 = vmatpush1.bf16.msra.mxu1 %v14232_v40 }
 0x365   :  { %1973 = vmatprep.subr.bf16.mxu1 %v18508_v13 }
 0x368   :  { %1974 = vmatpush1.bf16.msra.mxu1 %v14234_v41 }
 0x369   :  { %1975 = vmatprep.subr.bf16.mxu1 %v18508_v13 }
 0x36c   :  { %1976 = vmatpush1.bf16.msra.mxu1 %v14236_v42 }
 0x36d   :  { %1977 = vmatprep.subr.bf16.mxu1 %v18508_v13 }
 0x370   :  { %1978 = vmatpush1.bf16.msra.mxu1 %v14238_v43 }
 0x371   :  { %1979 = vmatprep.subr.bf16.mxu1 %v18508_v13 }
 0x374   :  { %1980 = vmatpush1.bf16.msra.mxu1 %v14240_v44 }
 0x375   :  { %2207 = vmatprep.subr.bf16.mxu1 %v18508_v13 }
 0x3ce   :  { %v687_v46 = vpop.f32.mrb[0].mxu1 }
 0x3cf   :  { %v688_v47 = vadd.f32 %v12234_v45, %v687_v46  ;;  %v13620_v48 = vpop.f32.mrb[1].mxu1  ;;  %v16507_v46 = vsub.s32 0, %v16503_v29 }
 0x3d0   :  { %v690_v49 = vpop.f32.mrb[2].mxu1 }
 0x3d1   :  { %v691_v50 = vadd.f32 %v12234_v45, %v690_v49  ;;  %v13621_v51 = vpop.f32.mrb[3].mxu1  ;;  %v710_v52 = vmax.f32 %v688_v47, 0.0  ;;  %v16510_v49 = vsub.s32 1, %v16503_v29 }
 0x3d3   :  { %v711_v53 = vmax.f32 %v691_v50, 0.0  ;;  %18565 = vst [vmem:[#allocation82_spill] sm:$0xff] %v16510_v49 }
 0x3d5   :  { %v716_v55 = vpack.c.bf16 %v711_v53, %v710_v52 }
 0x3d6   :  { %v695_v56 = vpop.f32.mrb[4].mxu1 }
 0x3d7   :  { %13639 = vmatmul.mubr.msk.bf16.vlgmr.msra.gmra.mrb[12].mxu0 %vm529_vm1, %v716_v55  ;;  %v696_v57 = vadd.f32 %v12234_v45, %v695_v56  ;;  %v13624_v58 = vpop.f32.mrb[5].mxu1 }
 0x3d8   :  { %v698_v59 = vpop.f32.mrb[6].mxu1  ;;  %1708 = vmatpush1.bf16.msra.mxu0 %v14217_v54  ;;  %13642 = vmatprep.mubr.msk.bf16.mxu0 %vm16017_vm0, %v18511_v0 }
 0x3d9   :  { %v712_v61 = vmax.f32 %v696_v57, 0.0  ;;  %v699_v62 = vadd.f32 %v12234_v45, %v698_v59  ;;  %v13625_v63 = vpop.f32.mrb[7].mxu1  ;;  %1709 = vmatprep.subr.bf16.mxu0 %v18508_v13 }
 0x3db   :  { %v713_v1 = vmax.f32 %v699_v62, 0.0 }
 0x3dc   :  { %1710 = vmatpush1.bf16.msra.mxu0 %v14219_v60  ;;  %v14241_v60 = vld [vmem:[%s18563_s17 + $0x60] sm:$0xff]  }
 0x3dd   :  { %v717_v3 = vpack.c.bf16 %v713_v1, %v712_v61  ;;  %1711 = vmatprep.subr.bf16.mxu0 %v18508_v13 }
 0x3de   :  { %v703_v4 = vpop.f32.mrb[8].mxu1 }
 0x3df   :  { %v704_v5 = vadd.f32 %v12234_v45, %v703_v4  ;;  %v13628_v6 = vpop.f32.mrb[9].mxu1  ;;  %13643 = vmatmul.mubr.msk.bf16.gmra.mrb[16].mxu0 %vm529_vm1, %v717_v3  ;;  %v14242_v3 = vld [vmem:[%s18563_s17 + $0x180] sm:$0xff]  }
 0x3e0   :  { %v706_v7 = vpop.f32.mrb[10].mxu1  ;;  %1712 = vmatpush1.bf16.msra.mxu0 %v14221_v2  ;;  %13646 = vmatprep.mubr.msk.bf16.mxu0 %vm16017_vm0, %v18511_v0 }
 0x3e1   :  { %v714_v9 = vmax.f32 %v704_v5, 0.0  ;;  %v707_v10 = vadd.f32 %v12234_v45, %v706_v7  ;;  %v13629_v11 = vpop.f32.mrb[11].mxu1  ;;  %1713 = vmatprep.subr.bf16.mxu0 %v18508_v13  ;;  %v14243_v5 = vld [vmem:[%s18563_s17 + $0x68] sm:$0xff]  }
 0x3e2   :  { %v14244_v7 = vld [vmem:[%s18563_s17 + $0x188] sm:$0xff]   ;;  %v14248_v11 = vld [vmem:[%s18563_s17 + $0x198] sm:$0xff]  }
 0x3e3   :  { %v715_v12 = vmax.f32 %v707_v10, 0.0  ;;  %v14247_v10 = vld [vmem:[%s18563_s17 + $0x78] sm:$0xff]  }
 0x3e4   :  { %1714 = vmatpush1.bf16.msra.mxu0 %v14223_v8  ;;  %v14245_v8 = vld [vmem:[%s18563_s17 + $0x70] sm:$0xff]  }
 0x3e5   :  { %v718_v15 = vpack.c.bf16 %v715_v12, %v714_v9  ;;  %1715 = vmatprep.subr.bf16.mxu0 %v18508_v13  ;;  %v14246_v9 = vld [vmem:[%s18563_s17 + $0x190] sm:$0xff]   ;;  %v14249_v12 = vld [vmem:[%s18563_s17 + $0x80] sm:$0xff]  }
 0x3e7   :  { %13647 = vmatmul.mubr.msk.bf16.gmra.mrb[20].mxu0 %vm529_vm1, %v718_v15  ;;  %v14251_v15 = vld [vmem:[%s18563_s17 + $0x88] sm:$0xff]  }
 0x3e8   :  { %1716 = vmatpush1.bf16.msra.mxu0 %v14225_v14  ;;  %v14250_v14 = vld [vmem:[%s18563_s17 + $0x1a0] sm:$0xff]  }
 0x3e9   :  { %1717 = vmatprep.subr.bf16.mxu0 %v18508_v13 }
 0x3ec   :  { %1718 = vmatpush1.bf16.msra.mxu0 %v14227_v16  ;;  %v14252_v16 = vld [vmem:[%s18563_s17 + $0x1a8] sm:$0xff]  }
 0x3ed   :  { %1719 = vmatprep.subr.bf16.mxu0 %v18508_v13 }
 0x3f0   :  { %1720 = vmatpush1.bf16.msra.mxu0 %v14229_v17  ;;  %v14253_v17 = vld [vmem:[%s18563_s17 + $0x90] sm:$0xff]  }
 0x3f1   :  { %1721 = vmatprep.subr.bf16.mxu0 %v18508_v13 }
 0x3f4   :  { %1722 = vmatpush1.bf16.msra.mxu0 %v14231_v18  ;;  %v14254_v18 = vld [vmem:[%s18563_s17 + $0x1b0] sm:$0xff]  }
 0x3f5   :  { %1723 = vmatprep.subr.bf16.mxu0 %v18508_v13 }
 0x3f8   :  { %1724 = vmatpush1.bf16.msra.mxu0 %v14233_v19  ;;  %v14255_v19 = vld [vmem:[%s18563_s17 + $0x98] sm:$0xff]  }
 0x3f9   :  { %1725 = vmatprep.subr.bf16.mxu0 %v18508_v13 }
 0x3fc   :  { %1726 = vmatpush1.bf16.msra.mxu0 %v14235_v20  ;;  %v14256_v20 = vld [vmem:[%s18563_s17 + $0x1b8] sm:$0xff]  }
 0x3fd   :  { %1727 = vmatprep.subr.bf16.mxu0 %v18508_v13 }
 0x400   :  { %1728 = vmatpush1.bf16.msra.mxu0 %v14237_v21  ;;  %v14257_v21 = vld [vmem:[%s18563_s17 + $0xa0] sm:$0xff]  }
 0x401   :  { %1729 = vmatprep.subr.bf16.mxu0 %v18508_v13 }
 0x404   :  { %1730 = vmatpush1.bf16.msra.mxu0 %v14239_v22  ;;  %v14258_v22 = vld [vmem:[%s18563_s17 + $0x1c0] sm:$0xff]  }
 0x405   :  { %1832 = vmatprep.subr.bf16.mxu0 %v18508_v13 }
 0x41a   :  { %v1155_v27 = vpop.f32.mrb[12].mxu1 }
 0x41b   :  { %v13872_v30 = vadd.f32 %v1155_v27, %v872_v23  ;;  %v1157_v31 = vpop.f32.mrb[13].mxu1 }
 0x41c   :  { %v13873_v33 = vadd.f32 %v1157_v31, %v872_v23  ;;  %v1159_v34 = vpop.f32.mrb[14].mxu1  ;;  %v14259_v23 = vld [vmem:[%s18563_s17 + $0xa8] sm:$0xff]   ;;  %v14264_v31 = vld [vmem:[%s18563_s17 + $0x1d8] sm:$0xff]  }
 0x41d   :  { %v1164_v35 = vmax.f32 %v13872_v30, 0.0  ;;  %v13874_v36 = vadd.f32 %v1159_v34, %v877_v32  ;;  %v1161_v37 = vpop.f32.mrb[15].mxu1 }
 0x41e   :  { %v1165_v38 = vmax.f32 %v13873_v33, 0.0  ;;  %v13875_v40 = vadd.f32 %v1161_v37, %v877_v32  ;;  %v14265_v33 = vld [vmem:[%s18563_s17 + $0x120] sm:$0xff]  }
 0x41f   :  { %v1166_v41 = vmax.f32 %v13874_v36, 0.0  ;;  %v14266_v37 = vld [vmem:[%s18563_s17 + $0x240] sm:$0xff]  }
 0x420   :  { %v12290_v42 = vpack.c.bf16 %v1165_v38, %v1164_v35  ;;  %v1167_v43 = vmax.f32 %v13875_v40, 0.0  ;;  %v14267_v40 = vld [vmem:[%s18563_s17 + $0x128] sm:$0xff]  }
 0x422   :  { %v1180_v44 = vrot.slane %v12290_v42, %v1179_v39  ;;  %v12291_v45 = vpack.c.bf16 %v1167_v43, %v1166_v41  ;;  %v14268_v41 = vld [vmem:[%s18563_s17 + $0x248] sm:$0xff]   ;;  %v14269_v42 = vld [vmem:[%s18563_s17 + $0x130] sm:$0xff]  }
 0x423   :  { %v14270_v43 = vld [vmem:[%s18563_s17 + $0x250] sm:$0xff]  }
 0x424   :  { %v1188_v47 = vcombine.high %v1180_v44, %v1180_v44  ;;  %v1196_v48 = vrot.slane %v1180_v44, %v1179_v39  ;;  %v1187_v50 = vrot.slane %v12291_v45, %v1179_v39  ;;  %v14271_v44 = vld [vmem:[%s18563_s17 + $0x138] sm:$0xff]  }
 0x425   :  { %v14272_v45 = vld [vmem:[%s18563_s17 + $0x258] sm:$0xff]  }
 0x426   :  { %v16512_v51 = vrot.slane %v1188_v47, %v1179_v39  ;;  %v1189_v52 = vcombine.high %v1187_v50, %v1187_v50  ;;  %v16514_v53 = vrot.slane %v1187_v50, %v1179_v39  ;;  %v12292_v54 = vpack.i.b16 %v1196_v48, %v1196_v48  ;;  %v14273_v47 = vld [vmem:[%s18563_s17 + $0x140] sm:$0xff]   ;;  %v14275_v50 = vld [vmem:[%s18563_s17 + $0x148] sm:$0xff]  }
 0x427   :  { %v1223_v55 = vunpack.i.h.s16 %v1196_v48  ;;  %v16516_v56 = vcombine.high %v1196_v48, %v1196_v48  ;;  %v14274_v48 = vld [vmem:[%s18563_s17 + $0x260] sm:$0xff]  }
 0x428   :  { %v16518_v57 = vrot.slane %v1189_v52, %v1179_v39  ;;  %v1626_v58 = vrot.slane %v12292_v54, %v16507_v46  ;;  %v1630_v59 = vrot.slane %v12292_v54, %v16510_v49  ;;  %v12319_v61 = vpack.i.b16 %v16512_v51, %v16512_v51  ;;  %v14277_v52 = vld [vmem:[%s18563_s17 + $0x150] sm:$0xff]  }
 0x429   :  { %v16525_v62 = vpack.i.b16 %v1223_v55, %v1223_v55  ;;  %v16529_v63 = vpack.i.b16 %v16516_v56, %v16516_v56  ;;  %v1225_v27 = vunpack.i.h.s16 %v16512_v51  ;;  %v16586_v30 = vcombine.high %v16512_v51, %v16512_v51  ;;  %v14276_v51 = vld [vmem:[%s18563_s17 + $0x268] sm:$0xff]   ;;  %v14278_v54 = vld [vmem:[%s18563_s17 + $0x270] sm:$0xff]   ;;  %v14279_v55 = vld [vmem:[%s18563_s17 + $0x158] sm:$0xff]  }
 0x42a   :  { %12305 = vmatprep.mubr.msk.bf16.mxu0 %vm529_vm1, %v1630_v59  ;;  %v1880_v1 = vrot.slane %v12319_v61, %v16510_v49  ;;  %v1876_v2 = vrot.slane %v12319_v61, %v16507_v46  ;;  %v14281_v59 = vld [vmem:[%s18563_s17 + $0x160] sm:$0xff]   ;;  %v14283_v61 = vld [vmem:[%s18563_s17 + $0x168] sm:$0xff]  }
 0x42b   :  { %1740 = vmatmul.mubr.bf16.vlgmr.msra.gmra.mrb[24].mxu0 %v1626_v58  ;;  %v1755_v4 = vrot.slane %v16525_v62, %v16510_v49  ;;  %v2130_v6 = vrot.slane %v16529_v63, %v16510_v49  ;;  %v16590_v32 = vpack.i.b16 %v1225_v27, %v1225_v27  ;;  %v16596_v34 = vpack.i.b16 %v16586_v30, %v16586_v30  ;;  %v14280_v58 = vld [vmem:[%s18563_s17 + $0x278] sm:$0xff]   ;;  %v14305_v27 = vld [vmem:[%s18563_s17 + $0x220] sm:$0xff]  }
 0x42c   :  { %1833 = vmatpush1.bf16.msra.mxu0 %v14241_v60  ;;  %12332 = vmatprep.mubr.msk.bf16.mxu1 %vm529_vm1, %v1880_v1  ;;  %v1751_v35 = vrot.slane %v16525_v62, %v16507_v46  ;;  %v2126_v38 = vrot.slane %v16529_v63, %v16507_v46  ;;  %v14282_v60 = vld [vmem:[%s18563_s17 + $0x280] sm:$0xff]   ;;  %v14284_v62 = vld [vmem:[%s18563_s17 + $0x288] sm:$0xff]   ;;  %v14285_v63 = vld [vmem:[%s18563_s17 + $0x170] sm:$0xff]  }
 0x42d   :  { %12318 = vmatprep.mubr.msk.bf16.mxu0 %vm529_vm1, %v1755_v4  ;;  %1990 = vmatmul.mubr.bf16.vlgmr.msra.gmra.mrb[16].mxu1 %v1876_v2  ;;  %v2005_v36 = vrot.slane %v16590_v32, %v16510_v49  ;;  %v2380_v39 = vrot.slane %v16596_v34, %v16510_v49  ;;  %v14286_v1 = vld [vmem:[%s18563_s17 + $0x290] sm:$0xff]   ;;  %v1227_v2 = vunpack.i.h.s16 %v16516_v56  ;;  %v14288_v4 = vld [vmem:[%s18563_s17 + $0x298] sm:$0xff]   ;;  %v2001_v56 = vrot.slane %v16590_v32, %v16507_v46  ;;  %v14306_v32 = vld [vmem:[%s18563_s17 + $0x340] sm:$0xff]  }
 0x42e   :  { %2208 = vmatpush1.bf16.msra.mxu1 %v14242_v3  ;;  %1834 = vmatprep.subr.bf16.mxu0 %v18508_v13  ;;  %v14287_v3 = vld [vmem:[%s18563_s17 + $0x178] sm:$0xff]  }
 0x42f   :  { %12359 = vmatprep.mubr.msk.bf16.mxu1 %vm529_vm1, %v2130_v6  ;;  %2209 = vmatprep.subr.bf16.mxu1 %v18508_v13  ;;  %v14289_v6 = vld [vmem:[%s18563_s17 + $0x1e0] sm:$0xff]  }
 0x430   :  { %1835 = vmatpush1.bf16.msra.mxu0 %v14243_v5  ;;  %v16655_v5 = vpack.i.b16 %v1227_v2, %v1227_v2 }
 0x431   :  { %1836 = vmatprep.subr.bf16.mxu0 %v18508_v13 }
 0x432   :  { %2210 = vmatpush1.bf16.msra.mxu1 %v14244_v7  ;;  %v16661_v7 = vpack.i.b16 %v16514_v53, %v16514_v53 }
 0x433   :  { %2211 = vmatprep.subr.bf16.mxu1 %v18508_v13 }
 0x434   :  { %1837 = vmatpush1.bf16.msra.mxu0 %v14245_v8  ;;  %v2255_v8 = vrot.slane %v16655_v5, %v16510_v49 }
 0x435   :  { %1838 = vmatprep.subr.bf16.mxu0 %v18508_v13 }
 0x436   :  { %2212 = vmatpush1.bf16.msra.mxu1 %v14246_v9  ;;  %v14290_v9 = vld [vmem:[%s18563_s17 + $0x300] sm:$0xff]  }
 0x437   :  { %2213 = vmatprep.subr.bf16.mxu1 %v18508_v13 }
 0x438   :  { %1839 = vmatpush1.bf16.msra.mxu0 %v14247_v10  ;;  %v2376_v10 = vrot.slane %v16596_v34, %v16507_v46 }
 0x439   :  { %1840 = vmatprep.subr.bf16.mxu0 %v18508_v13 }
 0x43a   :  { %2214 = vmatpush1.bf16.msra.mxu1 %v14248_v11  ;;  %v2630_v11 = vrot.slane %v16661_v7, %v16510_v49 }
 0x43b   :  { %2215 = vmatprep.subr.bf16.mxu1 %v18508_v13 }
 0x43c   :  { %1841 = vmatpush1.bf16.msra.mxu0 %v14249_v12  ;;  %v14291_v12 = vld [vmem:[%s18563_s17 + $0x1e8] sm:$0xff]  }
 0x43d   :  { %1842 = vmatprep.subr.bf16.mxu0 %v18508_v13 }
 0x43e   :  { %2216 = vmatpush1.bf16.msra.mxu1 %v14250_v14  ;;  %v14292_v14 = vld [vmem:[%s18563_s17 + $0x308] sm:$0xff]  }
 0x43f   :  { %2217 = vmatprep.subr.bf16.mxu1 %v18508_v13 }
 0x440   :  { %1843 = vmatpush1.bf16.msra.mxu0 %v14251_v15  ;;  %v14293_v15 = vld [vmem:[%s18563_s17 + $0x1f0] sm:$0xff]  }
 0x441   :  { %1844 = vmatprep.subr.bf16.mxu0 %v18508_v13 }
 0x442   :  { %2218 = vmatpush1.bf16.msra.mxu1 %v14252_v16  ;;  %v14294_v16 = vld [vmem:[%s18563_s17 + $0x310] sm:$0xff]  }
 0x443   :  { %2219 = vmatprep.subr.bf16.mxu1 %v18508_v13 }
 0x444   :  { %1845 = vmatpush1.bf16.msra.mxu0 %v14253_v17  ;;  %v14295_v17 = vld [vmem:[%s18563_s17 + $0x1f8] sm:$0xff]  }
 0x445   :  { %1846 = vmatprep.subr.bf16.mxu0 %v18508_v13 }
 0x446   :  { %2220 = vmatpush1.bf16.msra.mxu1 %v14254_v18  ;;  %v14296_v18 = vld [vmem:[%s18563_s17 + $0x318] sm:$0xff]  }
 0x447   :  { %2221 = vmatprep.subr.bf16.mxu1 %v18508_v13 }
 0x448   :  { %1847 = vmatpush1.bf16.msra.mxu0 %v14255_v19  ;;  %v14297_v19 = vld [vmem:[%s18563_s17 + $0x200] sm:$0xff]  }
 0x449   :  { %1848 = vmatprep.subr.bf16.mxu0 %v18508_v13 }
 0x44a   :  { %2222 = vmatpush1.bf16.msra.mxu1 %v14256_v20  ;;  %v14298_v20 = vld [vmem:[%s18563_s17 + $0x320] sm:$0xff]  }
 0x44b   :  { %2223 = vmatprep.subr.bf16.mxu1 %v18508_v13 }
 0x44c   :  { %1849 = vmatpush1.bf16.msra.mxu0 %v14257_v21  ;;  %v14299_v21 = vld [vmem:[%s18563_s17 + $0x208] sm:$0xff]  }
 0x44d   :  { %1850 = vmatprep.subr.bf16.mxu0 %v18508_v13 }
 0x44e   :  { %2224 = vmatpush1.bf16.msra.mxu1 %v14258_v22  ;;  %v14300_v22 = vld [vmem:[%s18563_s17 + $0x328] sm:$0xff]  }
 0x44f   :  { %2225 = vmatprep.subr.bf16.mxu1 %v18508_v13 }
 0x450   :  { %1851 = vmatpush1.bf16.msra.mxu0 %v14259_v23  ;;  %v14301_v23 = vld [vmem:[%s18563_s17 + $0x210] sm:$0xff]  }
 0x451   :  { %1852 = vmatprep.subr.bf16.mxu0 %v18508_v13 }
 0x452   :  { %2226 = vmatpush1.bf16.msra.mxu1 %v14260_v24  ;;  %v14302_v24 = vld [vmem:[%s18563_s17 + $0x330] sm:$0xff]  }
 0x453   :  { %2227 = vmatprep.subr.bf16.mxu1 %v18508_v13 }
 0x454   :  { %1853 = vmatpush1.bf16.msra.mxu0 %v14261_v25  ;;  %v14303_v25 = vld [vmem:[%s18563_s17 + $0x218] sm:$0xff]  }
 0x455   :  { %1854 = vmatprep.subr.bf16.mxu0 %v18508_v13 }
 0x456   :  { %2228 = vmatpush1.bf16.msra.mxu1 %v14262_v26  ;;  %v14304_v26 = vld [vmem:[%s18563_s17 + $0x338] sm:$0xff]  }
 0x457   :  { %2229 = vmatprep.subr.bf16.mxu1 %v18508_v13 }
 0x458   :  { %1855 = vmatpush1.bf16.msra.mxu0 %v14263_v28  ;;  %v12242_v28 = vld [vmem:[#allocation11] ss:$0 sm:$0xff] }
 0x459   :  { %2082 = vmatprep.subr.bf16.mxu0 %v18508_v13 }
 0x45a   :  { %2230 = vmatpush1.bf16.msra.mxu1 %v14264_v31 }
 0x45b   :  { %1865 = vmatmul.mubr.bf16.vlgmr.msra.gmra.mrb[28].mxu0 %v1751_v35  ;;  %2457 = vmatprep.subr.bf16.mxu1 %v18508_v13  ;;  %v14307_v35 = vld [vmem:[%s18563_s17 + $0x228] sm:$0xff]  }
 0x45c   :  { %2083 = vmatpush1.bf16.msra.mxu0 %v14265_v33  ;;  %12345 = vmatprep.mubr.msk.bf16.mxu0 %vm529_vm1, %v2005_v36 }
 0x45d   :  { %2240 = vmatmul.mubr.bf16.vlgmr.msra.gmra.mrb[20].mxu1 %v2126_v38  ;;  %2084 = vmatprep.subr.bf16.mxu0 %v18508_v13 }
 0x45e   :  { %2458 = vmatpush1.bf16.msra.mxu1 %v14266_v37  ;;  %12386 = vmatprep.mubr.msk.bf16.mxu1 %vm529_vm1, %v2380_v39  ;;  %v14308_v39 = vld [vmem:[%s18563_s17 + $0x348] sm:$0xff]  }
 0x45f   :  { %2459 = vmatprep.subr.bf16.mxu1 %v18508_v13 }
 0x460   :  { %2085 = vmatpush1.bf16.msra.mxu0 %v14267_v40 }
 0x461   :  { %2086 = vmatprep.subr.bf16.mxu0 %v18508_v13 }
 0x462   :  { %2460 = vmatpush1.bf16.msra.mxu1 %v14268_v41  ;;  %v14309_v41 = vld [vmem:[%s18563_s17 + $0x230] sm:$0xff]  }
 0x463   :  { %2461 = vmatprep.subr.bf16.mxu1 %v18508_v13 }
 0x464   :  { %2087 = vmatpush1.bf16.msra.mxu0 %v14269_v42  ;;  %v14310_v42 = vld [vmem:[%s18563_s17 + $0x350] sm:$0xff]  }
 0x465   :  { %2088 = vmatprep.subr.bf16.mxu0 %v18508_v13 }
 0x466   :  { %2462 = vmatpush1.bf16.msra.mxu1 %v14270_v43  ;;  %v1229_v43 = vunpack.i.h.s16 %v16586_v30 }
 0x467   :  { %2463 = vmatprep.subr.bf16.mxu1 %v18508_v13 }
 0x468   :  { %2089 = vmatpush1.bf16.msra.mxu0 %v14271_v44 }
 0x469   :  { %2090 = vmatprep.subr.bf16.mxu0 %v18508_v13 }
 0x46a   :  { %2464 = vmatpush1.bf16.msra.mxu1 %v14272_v45 }
 0x46b   :  { %2465 = vmatprep.subr.bf16.mxu1 %v18508_v13 }
 0x46c   :  { %2091 = vmatpush1.bf16.msra.mxu0 %v14273_v47 }
 0x46d   :  { %2092 = vmatprep.subr.bf16.mxu0 %v18508_v13 }
 0x46e   :  { %2466 = vmatpush1.bf16.msra.mxu1 %v14274_v48  ;;  %v14311_v48 = vld [vmem:[%s18563_s17 + $0x238] sm:$0xff]  }
 0x46f   :  { %2467 = vmatprep.subr.bf16.mxu1 %v18508_v13 }
 0x470   :  { %2093 = vmatpush1.bf16.msra.mxu0 %v14275_v50 }
 0x471   :  { %2094 = vmatprep.subr.bf16.mxu0 %v18508_v13 }
 0x472   :  { %2468 = vmatpush1.bf16.msra.mxu1 %v14276_v51 }
 0x473   :  { %2469 = vmatprep.subr.bf16.mxu1 %v18508_v13 }
 0x474   :  { %2095 = vmatpush1.bf16.msra.mxu0 %v14277_v52 }
 0x475   :  { %2096 = vmatprep.subr.bf16.mxu0 %v18508_v13 }
 0x476   :  { %2470 = vmatpush1.bf16.msra.mxu1 %v14278_v54  ;;  %v14312_v54 = vld [vmem:[%s18563_s17 + $0x358] sm:$0xff]  }
 0x477   :  { %2471 = vmatprep.subr.bf16.mxu1 %v18508_v13 }
 0x478   :  { %2097 = vmatpush1.bf16.msra.mxu0 %v14279_v55  ;;  %v16730_v55 = vpack.i.b16 %v1229_v43, %v1229_v43 }
 0x479   :  { %2098 = vmatprep.subr.bf16.mxu0 %v18508_v13 }
 0x47a   :  { %2472 = vmatpush1.bf16.msra.mxu1 %v14280_v58  ;;  %v14313_v58 = vld [vmem:[%s18563_s17 + $0x2a0] sm:$0xff]  }
 0x47b   :  { %2473 = vmatprep.subr.bf16.mxu1 %v18508_v13 }
 0x47c   :  { %2099 = vmatpush1.bf16.msra.mxu0 %v14281_v59  ;;  %v16738_v59 = vpack.i.b16 %v16518_v57, %v16518_v57 }
 0x47d   :  { %2100 = vmatprep.subr.bf16.mxu0 %v18508_v13 }
 0x47e   :  { %2474 = vmatpush1.bf16.msra.mxu1 %v14282_v60  ;;  %v2251_v60 = vrot.slane %v16655_v5, %v16507_v46  ;;  %v14315_v5 = vld [vmem:[%s18563_s17 + $0x2a8] sm:$0xff]   ;;  %v2876_v43 = vrot.slane %v16738_v59, %v16507_v46 }
 0x47f   :  { %2475 = vmatprep.subr.bf16.mxu1 %v18508_v13 }
 0x480   :  { %2101 = vmatpush1.bf16.msra.mxu0 %v14283_v61  ;;  %v2505_v61 = vrot.slane %v16730_v55, %v16510_v49 }
 0x481   :  { %2102 = vmatprep.subr.bf16.mxu0 %v18508_v13 }
 0x482   :  { %2476 = vmatpush1.bf16.msra.mxu1 %v14284_v62  ;;  %v14314_v62 = vld [vmem:[%s18563_s17 + $0x3c0] sm:$0xff]  }
 0x483   :  { %2477 = vmatprep.subr.bf16.mxu1 %v18508_v13 }
 0x484   :  { %2103 = vmatpush1.bf16.msra.mxu0 %v14285_v63 }
 0x485   :  { %2104 = vmatprep.subr.bf16.mxu0 %v18508_v13 }
 0x486   :  { %2478 = vmatpush1.bf16.msra.mxu1 %v14286_v1  ;;  %v2626_v1 = vrot.slane %v16661_v7, %v16507_v46 }
 0x487   :  { %2479 = vmatprep.subr.bf16.mxu1 %v18508_v13 }
 0x488   :  { %2105 = vmatpush1.bf16.msra.mxu0 %v14287_v3 }
 0x489   :  { %2332 = vmatprep.subr.bf16.mxu0 %v18508_v13 }
 0x48a   :  { %2480 = vmatpush1.bf16.msra.mxu1 %v14288_v4  ;;  %v2880_v4 = vrot.slane %v16738_v59, %v16510_v49  ;;  %v14346_v59 = vld [vmem:[%s18563_s17 + $0x4a0] sm:$0xff]  }
 0x48b   :  { %2115 = vmatmul.mubr.bf16.vlgmr.msra.gmra.mrb[32].mxu0 %v2001_v56  ;;  %2707 = vmatprep.subr.bf16.mxu1 %v18508_v13 }
 0x48c   :  { %2333 = vmatpush1.bf16.msra.mxu0 %v14289_v6  ;;  %12372 = vmatprep.mubr.msk.bf16.mxu0 %vm529_vm1, %v2255_v8  ;;  %v14316_v8 = vld [vmem:[%s18563_s17 + $0x3c8] sm:$0xff]  }
 0x48d   :  { %2490 = vmatmul.mubr.bf16.vlgmr.msra.gmra.mrb[24].mxu1 %v2376_v10  ;;  %2334 = vmatprep.subr.bf16.mxu0 %v18508_v13  ;;  %v14317_v10 = vld [vmem:[%s18563_s17 + $0x2b0] sm:$0xff]  }
 0x48e   :  { %2708 = vmatpush1.bf16.msra.mxu1 %v14290_v9  ;;  %12413 = vmatprep.mubr.msk.bf16.mxu1 %vm529_vm1, %v2630_v11  ;;  %v14318_v11 = vld [vmem:[%s18563_s17 + $0x3d0] sm:$0xff]  }
 0x48f   :  { %2709 = vmatprep.subr.bf16.mxu1 %v18508_v13 }
 0x490   :  { %2335 = vmatpush1.bf16.msra.mxu0 %v14291_v12  ;;  %v14319_v12 = vld [vmem:[%s18563_s17 + $0x2b8] sm:$0xff]  }
 0x491   :  { %2336 = vmatprep.subr.bf16.mxu0 %v18508_v13 }
 0x492   :  { %2710 = vmatpush1.bf16.msra.mxu1 %v14292_v14  ;;  %v14320_v14 = vld [vmem:[%s18563_s17 + $0x3d8] sm:$0xff]  }
 0x493   :  { %2711 = vmatprep.subr.bf16.mxu1 %v18508_v13 }
 0x494   :  { %2337 = vmatpush1.bf16.msra.mxu0 %v14293_v15  ;;  %v14321_v15 = vld [vmem:[%s18563_s17 + $0x2c0] sm:$0xff]  }
 0x495   :  { %2338 = vmatprep.subr.bf16.mxu0 %v18508_v13 }
 0x496   :  { %2712 = vmatpush1.bf16.msra.mxu1 %v14294_v16  ;;  %v14322_v16 = vld [vmem:[%s18563_s17 + $0x3e0] sm:$0xff]  }
 0x497   :  { %2713 = vmatprep.subr.bf16.mxu1 %v18508_v13 }
 0x498   :  { %2339 = vmatpush1.bf16.msra.mxu0 %v14295_v17  ;;  %v14323_v17 = vld [vmem:[%s18563_s17 + $0x2c8] sm:$0xff]  }
 0x499   :  { %2340 = vmatprep.subr.bf16.mxu0 %v18508_v13 }
 0x49a   :  { %2714 = vmatpush1.bf16.msra.mxu1 %v14296_v18  ;;  %v14324_v18 = vld [vmem:[%s18563_s17 + $0x3e8] sm:$0xff]  }
 0x49b   :  { %2715 = vmatprep.subr.bf16.mxu1 %v18508_v13 }
 0x49c   :  { %2341 = vmatpush1.bf16.msra.mxu0 %v14297_v19  ;;  %v14325_v19 = vld [vmem:[%s18563_s17 + $0x2d0] sm:$0xff]  }
 0x49d   :  { %2342 = vmatprep.subr.bf16.mxu0 %v18508_v13 }
 0x49e   :  { %2716 = vmatpush1.bf16.msra.mxu1 %v14298_v20  ;;  %v14326_v20 = vld [vmem:[%s18563_s17 + $0x3f0] sm:$0xff]  }
 0x49f   :  { %2717 = vmatprep.subr.bf16.mxu1 %v18508_v13 }
 0x4a0   :  { %2343 = vmatpush1.bf16.msra.mxu0 %v14299_v21  ;;  %v14327_v21 = vld [vmem:[%s18563_s17 + $0x2d8] sm:$0xff]  }
 0x4a1   :  { %2344 = vmatprep.subr.bf16.mxu0 %v18508_v13 }
 0x4a2   :  { %2718 = vmatpush1.bf16.msra.mxu1 %v14300_v22  ;;  %v14328_v22 = vld [vmem:[%s18563_s17 + $0x3f8] sm:$0xff]  }
 0x4a3   :  { %2719 = vmatprep.subr.bf16.mxu1 %v18508_v13 }
 0x4a4   :  { %2345 = vmatpush1.bf16.msra.mxu0 %v14301_v23  ;;  %v14329_v23 = vld [vmem:[%s18563_s17 + $0x2e0] sm:$0xff]  }
 0x4a5   :  { %2346 = vmatprep.subr.bf16.mxu0 %v18508_v13 }
 0x4a6   :  { %2720 = vmatpush1.bf16.msra.mxu1 %v14302_v24  ;;  %v14330_v24 = vld [vmem:[%s18563_s17 + $0x400] sm:$0xff]  }
 0x4a7   :  { %2721 = vmatprep.subr.bf16.mxu1 %v18508_v13 }
 0x4a8   :  { %2347 = vmatpush1.bf16.msra.mxu0 %v14303_v25  ;;  %v14331_v25 = vld [vmem:[%s18563_s17 + $0x2e8] sm:$0xff]  }
 0x4a9   :  { %2348 = vmatprep.subr.bf16.mxu0 %v18508_v13 }
 0x4aa   :  { %2722 = vmatpush1.bf16.msra.mxu1 %v14304_v26  ;;  %v801_v31 = vpop.f32.mrb[12].mxu0  ;;  %v14332_v26 = vld [vmem:[%s18563_s17 + $0x408] sm:$0xff]  }
 0x4ab   :  { %v13640_v33 = vpop.f32.mrb[13].mxu0  ;;  %2723 = vmatprep.subr.bf16.mxu1 %v18508_v13  ;;  %v16709_v36 = vadd.f32 %v12242_v28, %v801_v31  ;;  %v1231_v31 = vunpack.i.h.s16 %v16514_v53 }
 0x4ac   :  { %2349 = vmatpush1.bf16.msra.mxu0 %v14305_v27  ;;  %v804_v34 = vpop.f32.mrb[14].mxu0  ;;  %v14333_v27 = vld [vmem:[%s18563_s17 + $0x2f0] sm:$0xff]   ;;  %v16803_v33 = vcombine.high %v16514_v53, %v16514_v53 }
 0x4ad   :  { %v16711_v37 = vadd.f32 %v12242_v28, %v804_v34  ;;  %v13641_v38 = vpop.f32.mrb[15].mxu0  ;;  %2350 = vmatprep.subr.bf16.mxu0 %v18508_v13  ;;  %v14336_v34 = vld [vmem:[%s18563_s17 + $0x418] sm:$0xff]  }
 0x4ae   :  { %2724 = vmatpush1.bf16.msra.mxu1 %v14306_v32  ;;  %v14335_v32 = vld [vmem:[%s18563_s17 + $0x2f8] sm:$0xff]   ;;  %v14337_v38 = vld [vmem:[%s18563_s17 + $0x360] sm:$0xff]  }
 0x4af   :  { %2725 = vmatprep.subr.bf16.mxu1 %v18508_v13  ;;  %v824_v40 = vpack.c.bf16 %v16711_v37, %v16709_v36  ;;  %v14538_v36 = vld [vmem:[#allocation25] ss:$24 sps:$4 sm:$0xff]   ;;  %v14543_v37 = vld [vmem:[#allocation25 + $0x34] ss:$24 sps:$4 sm:$0xff]  }
 0x4b0   :  { %2351 = vmatpush1.bf16.msra.mxu0 %v14307_v35  ;;  %v16807_v35 = vpack.i.b16 %v1231_v31, %v1231_v31 }
 0x4b1   :  { %2352 = vmatprep.subr.bf16.mxu0 %v18508_v13 }
 0x4b2   :  { %2726 = vmatpush1.bf16.msra.mxu1 %v14308_v39  ;;  %v809_v44 = vpop.f32.mrb[16].mxu0  ;;  %v16813_v39 = vpack.i.b16 %v16803_v33, %v16803_v33  ;;  %v2755_v53 = vrot.slane %v16807_v35, %v16510_v49 }
 0x4b3   :  { %2727 = vmatprep.subr.bf16.mxu1 %v18508_v13  ;;  %v16723_v45 = vadd.f32 %v12242_v28, %v809_v44  ;;  %v13644_v47 = vpop.f32.mrb[17].mxu0 }
 0x4b4   :  { %2353 = vmatpush1.bf16.msra.mxu0 %v14309_v41  ;;  %v812_v50 = vpop.f32.mrb[18].mxu0  ;;  %v2501_v41 = vrot.slane %v16730_v55, %v16507_v46  ;;  %v3130_v44 = vrot.slane %v16813_v39, %v16510_v49  ;;  %v14339_v47 = vld [vmem:[%s18563_s17 + $0x368] sm:$0xff]   ;;  %v14344_v55 = vld [vmem:[%s18563_s17 + $0x498] sm:$0xff]   ;;  %v3126_v31 = vrot.slane %v16813_v39, %v16507_v46  ;;  %v14366_v39 = vld [vmem:[%s18563_s17 + $0x550] sm:$0xff]  }
 0x4b5   :  { %2354 = vmatprep.subr.bf16.mxu0 %v18508_v13  ;;  %v16727_v51 = vadd.f32 %v12242_v28, %v812_v50  ;;  %v13645_v52 = vpop.f32.mrb[19].mxu0  ;;  %v14341_v50 = vld [vmem:[%s18563_s17 + $0x370] sm:$0xff]  }
 0x4b6   :  { %2728 = vmatpush1.bf16.msra.mxu1 %v14310_v42  ;;  %v14338_v42 = vld [vmem:[%s18563_s17 + $0x480] sm:$0xff]   ;;  %v14342_v52 = vld [vmem:[%s18563_s17 + $0x490] sm:$0xff]  }
 0x4b7   :  { %2729 = vmatprep.subr.bf16.mxu1 %v18508_v13  ;;  %v825_v30 = vpack.c.bf16 %v16727_v51, %v16723_v45  ;;  %v14534_v45 = vld [vmem:[%s18568_s15 + $0x8] sm:$0xff]  }
 0x4b8   :  { %2355 = vmatpush1.bf16.msra.mxu0 %v14311_v48  ;;  %v14340_v48 = vld [vmem:[%s18563_s17 + $0x488] sm:$0xff]  }
 0x4b9   :  { %2582 = vmatprep.subr.bf16.mxu0 %v18508_v13 }
 0x4ba   :  { %2730 = vmatpush1.bf16.msra.mxu1 %v14312_v54  ;;  %v817_v63 = vpop.f32.mrb[20].mxu0  ;;  %v14343_v54 = vld [vmem:[%s18563_s17 + $0x378] sm:$0xff]  }
 0x4bb   :  { %2365 = vmatmul.mubr.bf16.vlgmr.msra.gmra.mrb[36].mxu0 %v2251_v60  ;;  %2957 = vmatprep.subr.bf16.mxu1 %v18508_v13  ;;  %v16749_v2 = vadd.f32 %v12242_v28, %v817_v63  ;;  %v13648_v3 = vpop.f32.mrb[21].mxu0  ;;  %v14347_v60 = vld [vmem:[%s18563_s17 + $0x388] sm:$0xff]  }
 0x4bc   :  { %2583 = vmatpush1.bf16.msra.mxu0 %v14313_v58  ;;  %12399 = vmatprep.mubr.msk.bf16.mxu0 %vm529_vm1, %v2505_v61  ;;  %v820_v6 = vpop.f32.mrb[22].mxu0  ;;  %v14345_v58 = vld [vmem:[%s18563_s17 + $0x380] sm:$0xff]  }
 0x4bd   :  { %2740 = vmatmul.mubr.bf16.vlgmr.msra.gmra.mrb[28].mxu1 %v2626_v1  ;;  %2584 = vmatprep.subr.bf16.mxu0 %v18508_v13  ;;  %v16756_v7 = vadd.f32 %v12242_v28, %v820_v6  ;;  %v13649_v56 = vpop.f32.mrb[23].mxu0  ;;  %v14334_v28 = vld [vmem:[%s18563_s17 + $0x410] sm:$0xff]  }
 0x4be   :  { %2958 = vmatpush1.bf16.msra.mxu1 %v14314_v62  ;;  %12440 = vmatprep.mubr.msk.bf16.mxu1 %vm529_vm1, %v2880_v4  ;;  %v14348_v62 = vld [vmem:[%s18563_s17 + $0x4a8] sm:$0xff]   ;;  %v14349_v4 = vld [vmem:[%s18563_s17 + $0x390] sm:$0xff]  }
 0x4bf   :  { %2959 = vmatprep.subr.bf16.mxu1 %v18508_v13  ;;  %v826_v9 = vpack.c.bf16 %v16756_v7, %v16749_v2 }
 0x4c0   :  { %2585 = vmatpush1.bf16.msra.mxu0 %v14315_v5 }
 0x4c1   :  { %2586 = vmatprep.subr.bf16.mxu0 %v18508_v13 }
 0x4c2   :  { %2960 = vmatpush1.bf16.msra.mxu1 %v14316_v8  ;;  %v14350_v8 = vld [vmem:[%s18563_s17 + $0x4b0] sm:$0xff]  }
 0x4c3   :  { %2961 = vmatprep.subr.bf16.mxu1 %v18508_v13 }
 0x4c4   :  { %2587 = vmatpush1.bf16.msra.mxu0 %v14317_v10 }
 0x4c5   :  { %2588 = vmatprep.subr.bf16.mxu0 %v18508_v13 }
 0x4c6   :  { %2962 = vmatpush1.bf16.msra.mxu1 %v14318_v11  ;;  %v14351_v11 = vld [vmem:[%s18563_s17 + $0x398] sm:$0xff]  }
 0x4c7   :  { %2963 = vmatprep.subr.bf16.mxu1 %v18508_v13 }
 0x4c8   :  { %2589 = vmatpush1.bf16.msra.mxu0 %v14319_v12  ;;  %v14352_v12 = vld [vmem:[%s18563_s17 + $0x4b8] sm:$0xff]  }
 0x4c9   :  { %2590 = vmatprep.subr.bf16.mxu0 %v18508_v13 }
 0x4ca   :  { %2964 = vmatpush1.bf16.msra.mxu1 %v14320_v14  ;;  %v14353_v14 = vld [vmem:[%s18563_s17 + $0x3a0] sm:$0xff]  }
 0x4cb   :  { %2965 = vmatprep.subr.bf16.mxu1 %v18508_v13 }
 0x4cc   :  { %2591 = vmatpush1.bf16.msra.mxu0 %v14321_v15  ;;  %v14354_v15 = vld [vmem:[%s18563_s17 + $0x4c0] sm:$0xff]  }
 0x4cd   :  { %2592 = vmatprep.subr.bf16.mxu0 %v18508_v13 }
 0x4ce   :  { %2966 = vmatpush1.bf16.msra.mxu1 %v14322_v16  ;;  %v14355_v16 = vld [vmem:[%s18563_s17 + $0x3a8] sm:$0xff]  }
 0x4cf   :  { %2967 = vmatprep.subr.bf16.mxu1 %v18508_v13 }
 0x4d0   :  { %2593 = vmatpush1.bf16.msra.mxu0 %v14323_v17  ;;  %v14356_v17 = vld [vmem:[%s18563_s17 + $0x4c8] sm:$0xff]  }
 0x4d1   :  { %2594 = vmatprep.subr.bf16.mxu0 %v18508_v13 }
 0x4d2   :  { %2968 = vmatpush1.bf16.msra.mxu1 %v14324_v18  ;;  %v14357_v18 = vld [vmem:[%s18563_s17 + $0x3b0] sm:$0xff]  }
 0x4d3   :  { %2969 = vmatprep.subr.bf16.mxu1 %v18508_v13 }
 0x4d4   :  { %2595 = vmatpush1.bf16.msra.mxu0 %v14325_v19  ;;  %v14358_v19 = vld [vmem:[%s18563_s17 + $0x4d0] sm:$0xff]  }
 0x4d5   :  { %2596 = vmatprep.subr.bf16.mxu0 %v18508_v13 }
 0x4d6   :  { %2970 = vmatpush1.bf16.msra.mxu1 %v14326_v20  ;;  %v1233_v20 = vunpack.i.h.s16 %v16518_v57 }
 0x4d7   :  { %2971 = vmatprep.subr.bf16.mxu1 %v18508_v13 }
 0x4d8   :  { %2597 = vmatpush1.bf16.msra.mxu0 %v14327_v21  ;;  %v14359_v21 = vld [vmem:[%s18563_s17 + $0x3b8] sm:$0xff]  }
 0x4d9   :  { %2598 = vmatprep.subr.bf16.mxu0 %v18508_v13 }
 0x4da   :  { %2972 = vmatpush1.bf16.msra.mxu1 %v14328_v22  ;;  %v16876_v22 = vcombine.high %v16518_v57, %v16518_v57 }
 0x4db   :  { %2973 = vmatprep.subr.bf16.mxu1 %v18508_v13 }
 0x4dc   :  { %2599 = vmatpush1.bf16.msra.mxu0 %v14329_v23  ;;  %v14360_v23 = vld [vmem:[%s18563_s17 + $0x4d8] sm:$0xff]  }
 0x4dd   :  { %2600 = vmatprep.subr.bf16.mxu0 %v18508_v13 }
 0x4de   :  { %2974 = vmatpush1.bf16.msra.mxu1 %v14330_v24  ;;  %v16880_v24 = vpack.i.b16 %v1233_v20, %v1233_v20  ;;  %v14388_v20 = vld [vmem:[#allocation16 + $0x4] ss:$8 sps:$4 sm:$0xff]  }
 0x4df   :  { %2975 = vmatprep.subr.bf16.mxu1 %v18508_v13 }
 0x4e0   :  { %2601 = vmatpush1.bf16.msra.mxu0 %v14331_v25  ;;  %v14361_v25 = vld [vmem:[%s18563_s17 + $0x420] sm:$0xff]   ;;  %v3005_v57 = vrot.slane %v16880_v24, %v16510_v49 }
 0x4e1   :  { %2602 = vmatprep.subr.bf16.mxu0 %v18508_v13 }
 0x4e2   :  { %2976 = vmatpush1.bf16.msra.mxu1 %v14332_v26  ;;  %v16886_v26 = vpack.i.b16 %v16876_v22, %v16876_v22 }
 0x4e3   :  { %2977 = vmatprep.subr.bf16.mxu1 %v18508_v13 }
 0x4e4   :  { %2603 = vmatpush1.bf16.msra.mxu0 %v14333_v27  ;;  %v2751_v27 = vrot.slane %v16807_v35, %v16507_v46  ;;  %v14364_v35 = vld [vmem:[%s18563_s17 + $0x548] sm:$0xff]  }
 0x4e5   :  { %2604 = vmatprep.subr.bf16.mxu0 %v18508_v13 }
 0x4e6   :  { %2978 = vmatpush1.bf16.msra.mxu1 %v14334_v28  ;;  %v14362_v28 = vld [vmem:[%s18563_s17 + $0x540] sm:$0xff]  }
 0x4e7   :  { %2979 = vmatprep.subr.bf16.mxu1 %v18508_v13 }
 0x4e8   :  { %2605 = vmatpush1.bf16.msra.mxu0 %v14335_v32  ;;  %v3380_v32 = vrot.slane %v16886_v26, %v16510_v49 }
 0x4e9   :  { %2832 = vmatprep.subr.bf16.mxu0 %v18508_v13 }
 0x4ea   :  { %2980 = vmatpush1.bf16.msra.mxu1 %v14336_v34  ;;  %v14363_v34 = vld [vmem:[%s18563_s17 + $0x428] sm:$0xff]  }
 0x4eb   :  { %2615 = vmatmul.mubr.bf16.vlgmr.msra.gmra.mrb[40].mxu0 %v2501_v41  ;;  %3207 = vmatprep.subr.bf16.mxu1 %v18508_v13  ;;  %v14367_v41 = vld [vmem:[%s18563_s17 + $0x438] sm:$0xff]  }
 0x4ec   :  { %2833 = vmatpush1.bf16.msra.mxu0 %v14337_v38  ;;  %12426 = vmatprep.mubr.msk.bf16.mxu0 %vm529_vm1, %v2755_v53  ;;  %v14365_v38 = vld [vmem:[%s18563_s17 + $0x430] sm:$0xff]   ;;  %v14368_v53 = vld [vmem:[%s18563_s17 + $0x558] sm:$0xff]  }
 0x4ed   :  { %2990 = vmatmul.mubr.bf16.vlgmr.msra.gmra.mrb[32].mxu1 %v2876_v43  ;;  %2834 = vmatprep.subr.bf16.mxu0 %v18508_v13  ;;  %v14370_v43 = vld [vmem:[%s18563_s17 + $0x560] sm:$0xff]  }
 0x4ee   :  { %3208 = vmatpush1.bf16.msra.mxu1 %v14338_v42  ;;  %12467 = vmatprep.mubr.msk.bf16.mxu1 %vm529_vm1, %v3130_v44  ;;  %v14369_v42 = vld [vmem:[%s18563_s17 + $0x440] sm:$0xff]   ;;  %v14371_v44 = vld [vmem:[%s18563_s17 + $0x448] sm:$0xff]  }
 0x4ef   :  { %3209 = vmatprep.subr.bf16.mxu1 %v18508_v13 }
 0x4f0   :  { %2835 = vmatpush1.bf16.msra.mxu0 %v14339_v47 }
 0x4f1   :  { %2836 = vmatprep.subr.bf16.mxu0 %v18508_v13 }
 0x4f2   :  { %3210 = vmatpush1.bf16.msra.mxu1 %v14340_v48  ;;  %v14372_v48 = vld [vmem:[%s18563_s17 + $0x568] sm:$0xff]  }
 0x4f3   :  { %3211 = vmatprep.subr.bf16.mxu1 %v18508_v13 }
 0x4f4   :  { %2837 = vmatpush1.bf16.msra.mxu0 %v14341_v50 }
 0x4f5   :  { %2838 = vmatprep.subr.bf16.mxu0 %v18508_v13 }
 0x4f6   :  { %3212 = vmatpush1.bf16.msra.mxu1 %v14342_v52 }
 0x4f7   :  { %3213 = vmatprep.subr.bf16.mxu1 %v18508_v13 }
 0x4f8   :  { %2839 = vmatpush1.bf16.msra.mxu0 %v14343_v54 }
 0x4f9   :  { %2840 = vmatprep.subr.bf16.mxu0 %v18508_v13 }
 0x4fa   :  { %3214 = vmatpush1.bf16.msra.mxu1 %v14344_v55 }
 0x4fb   :  { %3215 = vmatprep.subr.bf16.mxu1 %v18508_v13 }
 0x4fc   :  { %2841 = vmatpush1.bf16.msra.mxu0 %v14345_v58 }
 0x4fd   :  { %2842 = vmatprep.subr.bf16.mxu0 %v18508_v13 }
 0x4fe   :  { %3216 = vmatpush1.bf16.msra.mxu1 %v14346_v59  ;;  %v16846_v61 = vpop.f32.mrb[24].mxu0 }
 0x4ff   :  { %v1743_v63 = vpop.f32.mrb[25].mxu0  ;;  %3217 = vmatprep.subr.bf16.mxu1 %v18508_v13  ;;  %v3623_v50 = vsel %vm3622_vm7, %v16846_v61, 0.0 }
 0x500   :  { %2843 = vmatpush1.bf16.msra.mxu0 %v14347_v60  ;;  %v1744_v1 = vpop.f32.mrb[26].mxu0  ;;  %v16850_v3 = vpop.f32.mrb[16].mxu1  ;;  %v14373_v60 = vld [vmem:[%s18563_s17 + $0x450] sm:$0xff]  }
 0x501   :  { %v1745_v5 = vpop.f32.mrb[27].mxu0  ;;  %v1993_v6 = vpop.f32.mrb[17].mxu1  ;;  %2844 = vmatprep.subr.bf16.mxu0 %v18508_v13 }
 0x502   :  { %3218 = vmatpush1.bf16.msra.mxu1 %v14348_v62  ;;  %v1994_v56 = vpop.f32.mrb[18].mxu1  ;;  %v3626_v62 = vsel %vm3622_vm7, %v16850_v3, 0.0  ;;  %v14376_v3 = vld [vmem:[%s18563_s17 + $0x578] sm:$0xff]  }
 0x503   :  { %v1995_v10 = vpop.f32.mrb[19].mxu1  ;;  %3219 = vmatprep.subr.bf16.mxu1 %v18508_v13  ;;  %v14375_v56 = vld [vmem:[%s18563_s17 + $0x458] sm:$0xff]  }
 0x504   :  { %2845 = vmatpush1.bf16.msra.mxu0 %v14349_v4  ;;  %v14374_v4 = vld [vmem:[%s18563_s17 + $0x570] sm:$0xff]   ;;  %v14378_v10 = vld [vmem:[%s18563_s17 + $0x580] sm:$0xff]  }
 0x505   :  { %2846 = vmatprep.subr.bf16.mxu0 %v18508_v13 }
 0x506   :  { %3220 = vmatpush1.bf16.msra.mxu1 %v14350_v8  ;;  %v14377_v8 = vld [vmem:[%s18563_s17 + $0x460] sm:$0xff]  }
 0x507   :  { %3221 = vmatprep.subr.bf16.mxu1 %v18508_v13 }
 0x508   :  { %2847 = vmatpush1.bf16.msra.mxu0 %v14351_v11  ;;  %v14379_v11 = vld [vmem:[%s18563_s17 + $0x468] sm:$0xff]  }
 0x509   :  { %2848 = vmatprep.subr.bf16.mxu0 %v18508_v13 }
 0x50a   :  { %3222 = vmatpush1.bf16.msra.mxu1 %v14352_v12  ;;  %v14380_v12 = vld [vmem:[%s18563_s17 + $0x588] sm:$0xff]  }
 0x50b   :  { %3223 = vmatprep.subr.bf16.mxu1 %v18508_v13 }
 0x50c   :  { %2849 = vmatpush1.bf16.msra.mxu0 %v14353_v14  ;;  %v14381_v14 = vld [vmem:[%s18563_s17 + $0x470] sm:$0xff]  }
 0x50d   :  { %2850 = vmatprep.subr.bf16.mxu0 %v18508_v13 }
 0x50e   :  { %3224 = vmatpush1.bf16.msra.mxu1 %v14354_v15  ;;  %v14382_v15 = vld [vmem:[%s18563_s17 + $0x590] sm:$0xff]  }
 0x50f   :  { %3225 = vmatprep.subr.bf16.mxu1 %v18508_v13 }
 0x510   :  { %2851 = vmatpush1.bf16.msra.mxu0 %v14355_v16  ;;  %v1235_v16 = vunpack.i.h.s16 %v16803_v33  ;;  %v3001_v33 = vrot.slane %v16880_v24, %v16507_v46  ;;  %v14389_v24 = vld [vmem:[%s18563_s17 + $0x4e8] sm:$0xff]  }
 0x511   :  { %2852 = vmatprep.subr.bf16.mxu0 %v18508_v13 }
 0x512   :  { %3226 = vmatpush1.bf16.msra.mxu1 %v14356_v17  ;;  %v14383_v17 = vld [vmem:[%s18563_s17 + $0x478] sm:$0xff]  }
 0x513   :  { %3227 = vmatprep.subr.bf16.mxu1 %v18508_v13 }
 0x514   :  { %2853 = vmatpush1.bf16.msra.mxu0 %v14357_v18  ;;  %v14384_v18 = vld [vmem:[%s18563_s17 + $0x598] sm:$0xff]  }
 0x515   :  { %2854 = vmatprep.subr.bf16.mxu0 %v18508_v13 }
 0x516   :  { %3228 = vmatpush1.bf16.msra.mxu1 %v14358_v19  ;;  %v16954_v19 = vpack.i.b16 %v1235_v16, %v1235_v16  ;;  %v14421_v16 = vld [vmem:[%s18563_s17 + $0x528] sm:$0xff]  }
 0x517   :  { %3229 = vmatprep.subr.bf16.mxu1 %v18508_v13 }
 0x518   :  { %2855 = vmatpush1.bf16.msra.mxu0 %v14359_v21  ;;  %v16958_v21 = vld.sshfl [vmem:[%s18566_s2] sm:$0x33 pattern:$0x76325410] }
 0x519   :  { %3082 = vmatprep.subr.bf16.mxu0 %v18508_v13 }
 0x51a   :  { %3230 = vmatpush1.bf16.msra.mxu1 %v14360_v23  ;;  %v14385_v23 = vld [vmem:[%s18563_s17 + $0x4e0] sm:$0xff]  }
 0x51b   :  { %2865 = vmatmul.mubr.bf16.vlgmr.msra.gmra.mrb[44].mxu0 %v2751_v27  ;;  %3457 = vmatprep.subr.bf16.mxu1 %v18508_v13  ;;  %v14386_v27 = vld [vmem:[#allocation16] ss:$8 sps:$4 sm:$0xff]  }
 0x51c   :  { %3083 = vmatpush1.bf16.msra.mxu0 %v14361_v25  ;;  %12453 = vmatprep.mubr.msk.bf16.mxu0 %vm529_vm1, %v3005_v57  ;;  %v3255_v25 = vrot.slane %v16954_v19, %v16510_v49  ;;  %v3709_v57 = vcombine.high %v16958_v21, %v16958_v21 }
 0x51d   :  { %3240 = vmatmul.mubr.bf16.vlgmr.msra.gmra.mrb[36].mxu1 %v3126_v31  ;;  %3084 = vmatprep.subr.bf16.mxu0 %v18508_v13  ;;  %v14392_v31 = vld [vmem:[#allocation16 + $0x14] ss:$8 sps:$4 sm:$0xff]  }
 0x51e   :  { %3458 = vmatpush1.bf16.msra.mxu1 %v14362_v28  ;;  %12494 = vmatprep.mubr.msk.bf16.mxu1 %vm529_vm1, %v3380_v32  ;;  %v3376_v28 = vrot.slane %v16886_v26, %v16507_v46  ;;  %v14390_v32 = vld [vmem:[#allocation16 + $0x10] ss:$8 sps:$4 sm:$0xff]   ;;  %v14394_v26 = vld [vmem:[#allocation16 + $0x20] ss:$8 sps:$4 sm:$0xff]  }
 0x51f   :  { %3459 = vmatprep.subr.bf16.mxu1 %v18508_v13 }
 0x520   :  { %3085 = vmatpush1.bf16.msra.mxu0 %v14363_v34  ;;  %v14396_v34 = vld [vmem:[#allocation16 + $0x24] ss:$8 sps:$4 sm:$0xff]  }
 0x521   :  { %3086 = vmatprep.subr.bf16.mxu0 %v18508_v13 }
 0x522   :  { %3460 = vmatpush1.bf16.msra.mxu1 %v14364_v35  ;;  %v14393_v35 = vld [vmem:[%s18563_s17 + $0x4f0] sm:$0xff]  }
 0x523   :  { %3461 = vmatprep.subr.bf16.mxu1 %v18508_v13 }
 0x524   :  { %3087 = vmatpush1.bf16.msra.mxu0 %v14365_v38  ;;  %v14400_v38 = vld [vmem:[#allocation16 + $0x34] ss:$8 sps:$4 sm:$0xff]  }
 0x525   :  { %3088 = vmatprep.subr.bf16.mxu0 %v18508_v13 }
 0x526   :  { %3462 = vmatpush1.bf16.msra.mxu1 %v14366_v39  ;;  %v14397_v39 = vld [vmem:[%s18563_s17 + $0x4f8] sm:$0xff]  }
 0x527   :  { %3463 = vmatprep.subr.bf16.mxu1 %v18508_v13 }
 0x528   :  { %3089 = vmatpush1.bf16.msra.mxu0 %v14367_v41  ;;  %v14398_v41 = vld [vmem:[#allocation16 + $0x30] ss:$8 sps:$4 sm:$0xff]  }
 0x529   :  { %3090 = vmatprep.subr.bf16.mxu0 %v18508_v13 }
 0x52a   :  { %3464 = vmatpush1.bf16.msra.mxu1 %v14368_v53  ;;  %v14404_v53 = vld [vmem:[#allocation16 + $0x44] ss:$8 sps:$4 sm:$0xff]  }
 0x52b   :  { %3465 = vmatprep.subr.bf16.mxu1 %v18508_v13 }
 0x52c   :  { %3091 = vmatpush1.bf16.msra.mxu0 %v14369_v42  ;;  %v14401_v42 = vld [vmem:[%s18563_s17 + $0x500] sm:$0xff]  }
 0x52d   :  { %3092 = vmatprep.subr.bf16.mxu0 %v18508_v13 }
 0x52e   :  { %v1866_v47 = vpop.f32.mrb[28].mxu0  ;;  %3466 = vmatpush1.bf16.msra.mxu1 %v14370_v43  ;;  %v14402_v43 = vld [vmem:[#allocation16 + $0x40] ss:$8 sps:$4 sm:$0xff]  }
 0x52f   :  { %v3624_v52 = vsel %vm3622_vm7, %v1866_v47, 0.0  ;;  %v1868_v54 = vpop.f32.mrb[29].mxu0  ;;  %3467 = vmatprep.subr.bf16.mxu1 %v18508_v13  ;;  %v14405_v47 = vld [vmem:[%s18563_s17 + $0x508] sm:$0xff]  }
 0x530   :  { %v3625_v55 = vadd.f32 %v3624_v52, %v3623_v50  ;;  %v1869_v58 = vpop.f32.mrb[30].mxu0  ;;  %v16924_v59 = vpop.f32.mrb[20].mxu1  ;;  %3093 = vmatpush1.bf16.msra.mxu0 %v14371_v44  ;;  %v14408_v44 = vld [vmem:[#allocation16 + $0x54] ss:$8 sps:$4 sm:$0xff]   ;;  %v14406_v50 = vld [vmem:[#allocation16 + $0x50] ss:$8 sps:$4 sm:$0xff]  }
 0x531   :  { %v1870_v63 = vpop.f32.mrb[31].mxu0  ;;  %v2243_v1 = vpop.f32.mrb[21].mxu1  ;;  %3094 = vmatprep.subr.bf16.mxu0 %v18508_v13 }
 0x532   :  { %v2244_v61 = vpop.f32.mrb[22].mxu1  ;;  %3468 = vmatpush1.bf16.msra.mxu1 %v14372_v48  ;;  %v16931_v5 = vadd.f32 %v3626_v62, %v3625_v55  ;;  %v14412_v55 = vld [vmem:[#allocation16 + $0x64] ss:$8 sps:$4 sm:$0xff]   ;;  %v14409_v63 = vld [vmem:[%s18563_s17 + $0x510] sm:$0xff]   ;;  %v3630_v1 = vsel %vm3622_vm7, %v16924_v59, 0.0 }
 0x533   :  { %v2245_v6 = vpop.f32.mrb[23].mxu1  ;;  %3469 = vmatprep.subr.bf16.mxu1 %v18508_v13  ;;  %v14414_v59 = vld [vmem:[#allocation16 + $0x70] ss:$8 sps:$4 sm:$0xff]  }
 0x534   :  { %3095 = vmatpush1.bf16.msra.mxu0 %v14373_v60 }
 0x535   :  { %3096 = vmatprep.subr.bf16.mxu0 %v18508_v13 }
 0x536   :  { %3470 = vmatpush1.bf16.msra.mxu1 %v14374_v4 }
 0x537   :  { %3471 = vmatprep.subr.bf16.mxu1 %v18508_v13 }
 0x538   :  { %3097 = vmatpush1.bf16.msra.mxu0 %v14375_v56  ;;  %v14410_v56 = vld [vmem:[#allocation16 + $0x60] ss:$8 sps:$4 sm:$0xff]  }
 0x539   :  { %3098 = vmatprep.subr.bf16.mxu0 %v18508_v13 }
 0x53a   :  { %3472 = vmatpush1.bf16.msra.mxu1 %v14376_v3 }
 0x53b   :  { %3473 = vmatprep.subr.bf16.mxu1 %v18508_v13 }
 0x53c   :  { %3099 = vmatpush1.bf16.msra.mxu0 %v14377_v8  ;;  %v14416_v8 = vld [vmem:[#allocation16 + $0x74] ss:$8 sps:$4 sm:$0xff]  }
 0x53d   :  { %3100 = vmatprep.subr.bf16.mxu0 %v18508_v13 }
 0x53e   :  { %3474 = vmatpush1.bf16.msra.mxu1 %v14378_v10  ;;  %v14413_v10 = vld [vmem:[%s18563_s17 + $0x518] sm:$0xff]  }
 0x53f   :  { %3475 = vmatprep.subr.bf16.mxu1 %v18508_v13 }
 0x540   :  { %3101 = vmatpush1.bf16.msra.mxu0 %v14379_v11  ;;  %v14420_v11 = vld [vmem:[#allocation16 + $0x84] ss:$8 sps:$4 sm:$0xff]  }
 0x541   :  { %3102 = vmatprep.subr.bf16.mxu0 %v18508_v13 }
 0x542   :  { %3476 = vmatpush1.bf16.msra.mxu1 %v14380_v12  ;;  %v14417_v12 = vld [vmem:[%s18563_s17 + $0x520] sm:$0xff]  }
 0x543   :  { %3477 = vmatprep.subr.bf16.mxu1 %v18508_v13 }
 0x544   :  { %3103 = vmatpush1.bf16.msra.mxu0 %v14381_v14  ;;  %v14418_v14 = vld [vmem:[#allocation16 + $0x80] ss:$8 sps:$4 sm:$0xff]  }
 0x545   :  { %3104 = vmatprep.subr.bf16.mxu0 %v18508_v13 }
 0x546   :  { %3478 = vmatpush1.bf16.msra.mxu1 %v14382_v15  ;;  %v14424_v15 = vld [vmem:[#allocation16 + $0x94] ss:$8 sps:$4 sm:$0xff]  }
 0x547   :  { %3479 = vmatprep.subr.bf16.mxu1 %v18508_v13 }
 0x548   :  { %3105 = vmatpush1.bf16.msra.mxu0 %v14383_v17  ;;  %v14422_v17 = vld [vmem:[#allocation16 + $0x90] ss:$8 sps:$4 sm:$0xff]  }
 0x549   :  { %3332 = vmatprep.subr.bf16.mxu0 %v18508_v13 }
 0x54a   :  { %3480 = vmatpush1.bf16.msra.mxu1 %v14384_v18  ;;  %v14428_v18 = vld [vmem:[#allocation16 + $0xa4] ss:$8 sps:$4 sm:$0xff]  }
 0x54b   :  { %3115 = vmatmul.mubr.bf16.vlgmr.msra.gmra.mrb[48].mxu0 %v3001_v33  ;;  %3872 = vmatprep.subr.bf16.mxu1 %v14388_v20  ;;  %v14425_v20 = vld [vmem:[%s18563_s17 + $0x530] sm:$0xff]   ;;  %v1237_v33 = vunpack.i.h.s16 %v16876_v22 }
 0x54c   :  { %3333 = vmatpush1.bf16.msra.mxu0 %v14385_v23  ;;  %12480 = vmatprep.mubr.msk.bf16.mxu0 %vm529_vm1, %v3255_v25  ;;  %v14426_v23 = vld [vmem:[#allocation16 + $0xa0] ss:$8 sps:$4 sm:$0xff]   ;;  %v14432_v25 = vld [vmem:[#allocation16 + $0xb4] ss:$8 sps:$4 sm:$0xff]  }
 0x54d   :  { %3490 = vmatmul.mubr.bf16.vlgmr.msra.gmra.mrb[40].mxu1 %v3376_v28  ;;  %3334 = vmatprep.subr.bf16.mxu0 %v18508_v13  ;;  %v17002_v28 = vpack.i.b16 %v1237_v33, %v1237_v33  ;;  %v14474_v33 = vld [vmem:[#allocation19 + $0x54] ss:$8 sps:$4 sm:$0xff]  }
 0x54e   :  { %3873 = vmatpush1.bf16.msra.mxu1 %v14386_v27  ;;  %3904 = vmatprep.mubr.bf16.mxu1 %v3709_v57  ;;  %v14429_v27 = vld [vmem:[%s18563_s17 + $0x538] sm:$0xff]   ;;  %v14430_v57 = vld [vmem:[#allocation16 + $0xb0] ss:$8 sps:$4 sm:$0xff]  }
 0x54f   :  { %3874 = vmatprep.subr.bf16.mxu1 %v14392_v31  ;;  %v14436_v31 = vld [vmem:[#allocation16 + $0xc4] ss:$8 sps:$4 sm:$0xff]   ;;  %v3505_v22 = vrot.slane %v17002_v28, %v16510_v49 }
 0x550   :  { %3335 = vmatpush1.bf16.msra.mxu0 %v14389_v24  ;;  %v14433_v24 = vld [vmem:[%s18563_s17 + $0x5a0] sm:$0xff]  }
 0x551   :  { %3336 = vmatprep.subr.bf16.mxu0 %v18508_v13 }
 0x552   :  { %3875 = vmatpush1.bf16.msra.mxu1 %v14390_v32  ;;  %v3251_v32 = vrot.slane %v16954_v19, %v16507_v46  ;;  %v14438_v19 = vld [vmem:[#allocation16 + $0xd0] ss:$8 sps:$4 sm:$0xff]  }
 0x553   :  { %3876 = vmatprep.subr.bf16.mxu1 %v14396_v34  ;;  %v14434_v34 = vld [vmem:[#allocation16 + $0xc0] ss:$8 sps:$4 sm:$0xff]  }
 0x554   :  { %3337 = vmatpush1.bf16.msra.mxu0 %v14393_v35  ;;  %v14440_v35 = vld [vmem:[#allocation16 + $0xd4] ss:$8 sps:$4 sm:$0xff]  }
 0x555   :  { %3338 = vmatprep.subr.bf16.mxu0 %v18508_v13 }
 0x556   :  { %3877 = vmatpush1.bf16.msra.mxu1 %v14394_v26  ;;  %v14437_v26 = vld [vmem:[%s18563_s17 + $0x5a8] sm:$0xff]  }
 0x557   :  { %3878 = vmatprep.subr.bf16.mxu1 %v14400_v38  ;;  %v14444_v38 = vld [vmem:[#allocation16 + $0xe4] ss:$8 sps:$4 sm:$0xff]  }
 0x558   :  { %3339 = vmatpush1.bf16.msra.mxu0 %v14397_v39  ;;  %v14441_v39 = vld [vmem:[%s18563_s17 + $0x5b0] sm:$0xff]  }
 0x559   :  { %3340 = vmatprep.subr.bf16.mxu0 %v18508_v13 }
 0x55a   :  { %3879 = vmatpush1.bf16.msra.mxu1 %v14398_v41  ;;  %v14442_v41 = vld [vmem:[#allocation16 + $0xe0] ss:$8 sps:$4 sm:$0xff]  }
 0x55b   :  { %3880 = vmatprep.subr.bf16.mxu1 %v14404_v53  ;;  %v14448_v53 = vld [vmem:[#allocation16 + $0xf4] ss:$8 sps:$4 sm:$0xff]  }
 0x55c   :  { %3341 = vmatpush1.bf16.msra.mxu0 %v14401_v42  ;;  %v14445_v42 = vld [vmem:[%s18563_s17 + $0x5b8] sm:$0xff]  }
 0x55d   :  { %3342 = vmatprep.subr.bf16.mxu0 %v18508_v13 }
 0x55e   :  { %v2116_v48 = vpop.f32.mrb[32].mxu0  ;;  %3881 = vmatpush1.bf16.msra.mxu1 %v14402_v43  ;;  %v14446_v43 = vld [vmem:[#allocation16 + $0xf0] ss:$8 sps:$4 sm:$0xff]  }
 0x55f   :  { %v3628_v52 = vsel %vm3622_vm7, %v2116_v48, 0.0  ;;  %v2118_v54 = vpop.f32.mrb[33].mxu0  ;;  %3882 = vmatprep.subr.bf16.mxu1 %v14408_v44  ;;  %v14449_v44 = vld [vmem:[%s18563_s17 + $0x5c0] sm:$0xff]  }
 0x560   :  { %v3629_v58 = vadd.f32 %v3628_v52, %v16931_v5  ;;  %v2119_v60 = vpop.f32.mrb[34].mxu0  ;;  %v16983_v62 = vpop.f32.mrb[24].mxu1  ;;  %3343 = vmatpush1.bf16.msra.mxu0 %v14405_v47  ;;  %v14450_v47 = vld [vmem:[%s18563_s17 + $0x5c8] sm:$0xff]  }
 0x561   :  { %v2120_v61 = vpop.f32.mrb[35].mxu0  ;;  %v2493_v4 = vpop.f32.mrb[25].mxu1  ;;  %3344 = vmatprep.subr.bf16.mxu0 %v18508_v13  ;;  %v14451_v60 = vld [vmem:[%s18563_s17 + $0x5d0] sm:$0xff]  }
 0x562   :  { %v2494_v6 = vpop.f32.mrb[26].mxu1  ;;  %3883 = vmatpush1.bf16.msra.mxu1 %v14406_v50  ;;  %v16989_v3 = vadd.f32 %v3630_v1, %v3629_v58 }
 0x563   :  { %v2495_v5 = vpop.f32.mrb[27].mxu1  ;;  %3884 = vmatprep.subr.bf16.mxu1 %v14412_v55 }
 0x564   :  { %3345 = vmatpush1.bf16.msra.mxu0 %v14409_v63  ;;  %v3634_v63 = vsel %vm3622_vm7, %v16983_v62, 0.0  ;;  %v14454_v5 = vld [vmem:[%s18563_s17 + $0x5e8] sm:$0xff]   ;;  %v14455_v62 = vld [vmem:[%s18563_s17 + $0x5f0] sm:$0xff]  }
 0x565   :  { %3346 = vmatprep.subr.bf16.mxu0 %v18508_v13 }
 0x566   :  { %3885 = vmatpush1.bf16.msra.mxu1 %v14410_v56  ;;  %v14452_v56 = vld [vmem:[%s18563_s17 + $0x5d8] sm:$0xff]  }
 0x567   :  { %3886 = vmatprep.subr.bf16.mxu1 %v14416_v8  ;;  %v14456_v8 = vld [vmem:[%s18563_s17 + $0x5f8] sm:$0xff]  }
 0x568   :  { %3347 = vmatpush1.bf16.msra.mxu0 %v14413_v10  ;;  %v14459_v10 = vld [vmem:[#allocation19 + $0x4] ss:$8 sps:$4 sm:$0xff]  }
 0x569   :  { %3348 = vmatprep.subr.bf16.mxu0 %v18508_v13 }
 0x56a   :  { %3887 = vmatpush1.bf16.msra.mxu1 %v14414_v59  ;;  %v14457_v59 = vld [vmem:[#allocation19] ss:$8 sps:$4 sm:$0xff]  }
 0x56b   :  { %3888 = vmatprep.subr.bf16.mxu1 %v14420_v11  ;;  %v3501_v11 = vrot.slane %v17002_v28, %v16507_v46 }
 0x56c   :  { %3349 = vmatpush1.bf16.msra.mxu0 %v14417_v12  ;;  %v14462_v12 = vld [vmem:[#allocation19 + $0x14] ss:$8 sps:$4 sm:$0xff]  }
 0x56d   :  { %3350 = vmatprep.subr.bf16.mxu0 %v18508_v13 }
 0x56e   :  { %3889 = vmatpush1.bf16.msra.mxu1 %v14418_v14  ;;  %v14460_v14 = vld [vmem:[#allocation19 + $0x10] ss:$8 sps:$4 sm:$0xff]  }
 0x56f   :  { %3890 = vmatprep.subr.bf16.mxu1 %v14424_v15  ;;  %v14465_v15 = vld [vmem:[#allocation19 + $0x24] ss:$8 sps:$4 sm:$0xff]  }
 0x570   :  { %3351 = vmatpush1.bf16.msra.mxu0 %v14421_v16  ;;  %v14463_v16 = vld [vmem:[#allocation19 + $0x20] ss:$8 sps:$4 sm:$0xff]  }
 0x571   :  { %3352 = vmatprep.subr.bf16.mxu0 %v18508_v13 }
 0x572   :  { %3891 = vmatpush1.bf16.msra.mxu1 %v14422_v17  ;;  %v14468_v17 = vld [vmem:[#allocation19 + $0x34] ss:$8 sps:$4 sm:$0xff]  }
 0x573   :  { %3892 = vmatprep.subr.bf16.mxu1 %v14428_v18  ;;  %v14466_v18 = vld [vmem:[#allocation19 + $0x30] ss:$8 sps:$4 sm:$0xff]  }
 0x574   :  { %3353 = vmatpush1.bf16.msra.mxu0 %v14425_v20  ;;  %v14471_v20 = vld [vmem:[#allocation19 + $0x44] ss:$8 sps:$4 sm:$0xff]  }
 0x575   :  { %3354 = vmatprep.subr.bf16.mxu0 %v18508_v13 }
 0x576   :  { %3893 = vmatpush1.bf16.msra.mxu1 %v14426_v23  ;;  %v14469_v23 = vld [vmem:[#allocation19 + $0x40] ss:$8 sps:$4 sm:$0xff]  }
 0x577   :  { %3894 = vmatprep.subr.bf16.mxu1 %v14432_v25  ;;  %v14472_v25 = vld [vmem:[#allocation19 + $0x50] ss:$8 sps:$4 sm:$0xff]  }
 0x578   :  { %3355 = vmatpush1.bf16.msra.mxu0 %v14429_v27  ;;  %v14477_v27 = vld [vmem:[#allocation19 + $0x64] ss:$8 sps:$4 sm:$0xff]  }
 0x579   :  { %3582 = vmatprep.subr.bf16.mxu0 %v18508_v13 }
 0x57a   :  { %3895 = vmatpush1.bf16.msra.mxu1 %v14430_v57 }
 0x57b   :  { %3365 = vmatmul.mubr.bf16.vlgmr.msra.gmra.mrb[52].mxu0 %v3251_v32  ;;  %3896 = vmatprep.subr.bf16.mxu1 %v14436_v31 }
 0x57c   :  { %3583 = vmatpush1.bf16.msra.mxu0 %v14433_v24  ;;  %12507 = vmatprep.mubr.msk.bf16.mxu0 %vm529_vm1, %v3505_v22 }
 0x57d   :  { %3584 = vmatprep.subr.bf16.mxu0 %v18508_v13 }
 0x57e   :  { %3897 = vmatpush1.bf16.msra.mxu1 %v14434_v34  ;;  %v14475_v34 = vld [vmem:[#allocation19 + $0x60] ss:$8 sps:$4 sm:$0xff]  }
 0x57f   :  { %3898 = vmatprep.subr.bf16.mxu1 %v14440_v35 }
 0x580   :  { %3585 = vmatpush1.bf16.msra.mxu0 %v14437_v26 }
 0x581   :  { %3586 = vmatprep.subr.bf16.mxu0 %v18508_v13 }
 0x582   :  { %3899 = vmatpush1.bf16.msra.mxu1 %v14438_v19 }
 0x583   :  { %3900 = vmatprep.subr.bf16.mxu1 %v14444_v38  ;;  %v14480_v38 = vld [vmem:[#allocation19 + $0x74] ss:$8 sps:$4 sm:$0xff]  }
 0x584   :  { %3587 = vmatpush1.bf16.msra.mxu0 %v14441_v39 }
 0x585   :  { %3588 = vmatprep.subr.bf16.mxu0 %v18508_v13 }
 0x586   :  { %3901 = vmatpush1.bf16.msra.mxu1 %v14442_v41 }
 0x587   :  { %3902 = vmatprep.subr.bf16.mxu1 %v14448_v53 }
 0x588   :  { %3589 = vmatpush1.bf16.msra.mxu0 %v14445_v42  ;;  %v14478_v42 = vld [vmem:[#allocation19 + $0x70] ss:$8 sps:$4 sm:$0xff]  }
 0x589   :  { %3590 = vmatprep.subr.bf16.mxu0 %v18508_v13 }
 0x58a   :  { %3903 = vmatpush1.bf16.msra.mxu1 %v14446_v43  ;;  %v14483_v43 = vld [vmem:[#allocation19 + $0x84] ss:$8 sps:$4 sm:$0xff]  }
 0x58c   :  { %3591 = vmatpush1.bf16.msra.mxu0 %v14449_v44  ;;  %v14481_v44 = vld [vmem:[#allocation19 + $0x80] ss:$8 sps:$4 sm:$0xff]  }
 0x58d   :  { %3905 = vmatmul.mubr.bf16.vlgmr.msra.gmra.mrb[44].mxu1 %v16958_v21  ;;  %3592 = vmatprep.subr.bf16.mxu0 %v18508_v13 }
 0x58e   :  { %v2366_v48 = vpop.f32.mrb[36].mxu0 }
 0x58f   :  { %v3632_v50 = vsel %vm3622_vm7, %v2366_v48, 0.0  ;;  %v2368_v52 = vpop.f32.mrb[37].mxu0  ;;  %v14484_v48 = vld [vmem:[#allocation19 + $0x90] ss:$8 sps:$4 sm:$0xff]  }
 0x590   :  { %v3633_v54 = vadd.f32 %v3632_v50, %v16989_v3  ;;  %v2369_v55 = vpop.f32.mrb[38].mxu0  ;;  %v2741_v58 = vpop.f32.mrb[28].mxu1  ;;  %3593 = vmatpush1.bf16.msra.mxu0 %v14450_v47  ;;  %v14453_v3 = vld [vmem:[%s18563_s17 + $0x5e0] sm:$0xff]   ;;  %v14486_v47 = vld [vmem:[#allocation19 + $0x94] ss:$8 sps:$4 sm:$0xff]  }
 0x591   :  { %v2370_v1 = vpop.f32.mrb[39].mxu0  ;;  %v2743_v21 = vpop.f32.mrb[29].mxu1  ;;  %3594 = vmatprep.subr.bf16.mxu0 %v18508_v13  ;;  %v3638_v35 = vsel %vm3622_vm7, %v2741_v58, 0.0  ;;  %v14487_v50 = vld [vmem:[#allocation19 + $0xa0] ss:$8 sps:$4 sm:$0xff]  }
 0x592   :  { %v2744_v61 = vpop.f32.mrb[30].mxu1  ;;  %v3635_v4 = vadd.f32 %v3634_v63, %v3633_v54  ;;  %v14489_v52 = vld [vmem:[#allocation19 + $0xa4] ss:$8 sps:$4 sm:$0xff]   ;;  %v14492_v54 = vld [vmem:[#allocation19 + $0xb4] ss:$8 sps:$4 sm:$0xff]  }
 0x593   :  { %v2745_v6 = vpop.f32.mrb[31].mxu1  ;;  %v14490_v55 = vld [vmem:[#allocation19 + $0xb0] ss:$8 sps:$4 sm:$0xff]   ;;  %v14495_v58 = vld [vmem:[#allocation19 + $0xc4] ss:$8 sps:$4 sm:$0xff]  }
 0x594   :  { %3595 = vmatpush1.bf16.msra.mxu0 %v14451_v60  ;;  %v14493_v60 = vld [vmem:[#allocation19 + $0xc0] ss:$8 sps:$4 sm:$0xff]   ;;  %v14498_v63 = vld [vmem:[#allocation19 + $0xd4] ss:$8 sps:$4 sm:$0xff]   ;;  %v14496_v1 = vld [vmem:[#allocation19 + $0xd0] ss:$8 sps:$4 sm:$0xff]  }
 0x595   :  { %3596 = vmatprep.subr.bf16.mxu0 %v18508_v13  ;;  %v14499_v21 = vld [vmem:[#allocation19 + $0xe0] ss:$8 sps:$4 sm:$0xff]   ;;  %v14501_v61 = vld [vmem:[#allocation19 + $0xe4] ss:$8 sps:$4 sm:$0xff]   ;;  %v14502_v6 = vld [vmem:[#allocation19 + $0xf0] ss:$8 sps:$4 sm:$0xff]  }
 0x598   :  { %3597 = vmatpush1.bf16.msra.mxu0 %v14452_v56 }
 0x599   :  { %3598 = vmatprep.subr.bf16.mxu0 %v18508_v13 }
 0x59c   :  { %3599 = vmatpush1.bf16.msra.mxu0 %v14453_v3 }
 0x59d   :  { %3600 = vmatprep.subr.bf16.mxu0 %v18508_v13 }
 0x5a0   :  { %3601 = vmatpush1.bf16.msra.mxu0 %v14454_v5 }
 0x5a1   :  { %3602 = vmatprep.subr.bf16.mxu0 %v18508_v13 }
 0x5a4   :  { %3603 = vmatpush1.bf16.msra.mxu0 %v14455_v62 }
 0x5a5   :  { %3604 = vmatprep.subr.bf16.mxu0 %v18508_v13 }
 0x5a8   :  { %3605 = vmatpush1.bf16.msra.mxu0 %v14456_v8 }
 0x5a9   :  { %4121 = vmatprep.subr.bf16.mxu0 %v14459_v10 }
 0x5ab   :  { %3615 = vmatmul.mubr.bf16.vlgmr.msra.gmra.mrb[56].mxu0 %v3501_v11 }
 0x5ac   :  { %4122 = vmatpush1.bf16.msra.mxu0 %v14457_v59 }
 0x5ad   :  { %4123 = vmatprep.subr.bf16.mxu0 %v14462_v12 }
 0x5b0   :  { %4124 = vmatpush1.bf16.msra.mxu0 %v14460_v14 }
 0x5b1   :  { %4125 = vmatprep.subr.bf16.mxu0 %v14465_v15 }
 0x5b4   :  { %4126 = vmatpush1.bf16.msra.mxu0 %v14463_v16 }
 0x5b5   :  { %4127 = vmatprep.subr.bf16.mxu0 %v14468_v17  ;;  %v14507_v17 = vld [vmem:[#allocation25 + $0xc] ss:$24 sps:$4 sm:$0xff]  }
 0x5b8   :  { %4128 = vmatpush1.bf16.msra.mxu0 %v14466_v18  ;;  %v14517_v18 = vld [vmem:[%s18567_s10 + $0x40] sm:$0xff]  }
 0x5b9   :  { %4129 = vmatprep.subr.bf16.mxu0 %v14471_v20  ;;  %v14518_v20 = vld [vmem:[%s18567_s10] sm:$0xff]   ;;  %13293 = vmatprep.subr.bf16.mxu1 %v14517_v18 }
 0x5ba   :  { %13294 = vmatpush3.bf16.msra.mxu1 %v14518_v20  ;;  %v3654_v20 = vld [vmem:[#allocation14] sm:$0x1] }
 0x5bc   :  { %4130 = vmatpush1.bf16.msra.mxu0 %v14469_v23  ;;  %v14519_v23 = vld [vmem:[%s18567_s10 + $0x48] sm:$0xff]  }
 0x5bd   :  { %4131 = vmatprep.subr.bf16.mxu0 %v14474_v33  ;;  %v14520_v33 = vld [vmem:[%s18567_s10 + $0x8] sm:$0xff]   ;;  %13295 = vmatprep.subr.bf16.mxu1 %v14519_v23 }
 0x5be   :  { %v2616_v57 = vpop.f32.mrb[40].mxu0  ;;  %13296 = vmatpush3.bf16.msra.mxu1 %v14520_v33 }
 0x5bf   :  { %v3636_v28 = vsel %vm3622_vm7, %v2616_v57, 0.0  ;;  %v2618_v31 = vpop.f32.mrb[41].mxu0  ;;  %v14523_v57 = vld [vmem:[%s18567_s10 + $0x58] sm:$0xff]  }
 0x5c0   :  { %v3637_v24 = vadd.f32 %v3636_v28, %v3635_v4  ;;  %v2619_v32 = vpop.f32.mrb[42].mxu0  ;;  %v2991_v22 = vpop.f32.mrb[32].mxu1  ;;  %4132 = vmatpush1.bf16.msra.mxu0 %v14472_v25  ;;  %v14504_v4 = vld [vmem:[#allocation19 + $0xf4] ss:$8 sps:$4 sm:$0xff]   ;;  %v14525_v31 = vld [vmem:[%s18567_s10 + $0x60] sm:$0xff]  }
 0x5c1   :  { %v2620_v26 = vpop.f32.mrb[43].mxu0  ;;  %v2993_v19 = vpop.f32.mrb[33].mxu1  ;;  %4133 = vmatprep.subr.bf16.mxu0 %v14477_v27  ;;  %v3642_v59 = vsel %vm3622_vm7, %v2991_v22, 0.0  ;;  %v14521_v25 = vld [vmem:[%s18567_s10 + $0x50] sm:$0xff]   ;;  %v14524_v28 = vld [vmem:[%s18567_s10 + $0x18] sm:$0xff]   ;;  %v14527_v22 = vld [vmem:[%s18567_s10 + $0x68] sm:$0xff]  }
 0x5c2   :  { %v2994_v39 = vpop.f32.mrb[34].mxu1  ;;  %v3639_v41 = vadd.f32 %v3638_v35, %v3637_v24  ;;  %v14522_v27 = vld [vmem:[%s18567_s10 + $0x10] sm:$0xff]   ;;  %13297 = vmatprep.subr.bf16.mxu1 %v14521_v25  ;;  %v14526_v24 = vld [vmem:[%s18567_s10 + $0x20] sm:$0xff]  }
 0x5c3   :  { %v2995_v53 = vpop.f32.mrb[35].mxu1  ;;  %13298 = vmatpush3.bf16.msra.mxu1 %v14522_v27 }
 0x5c4   :  { %4134 = vmatpush1.bf16.msra.mxu0 %v14475_v34  ;;  %13299 = vmatprep.subr.bf16.mxu1 %v14523_v57 }
 0x5c5   :  { %4135 = vmatprep.subr.bf16.mxu0 %v14480_v38 }
 0x5c7   :  { %13300 = vmatpush3.bf16.msra.mxu1 %v14524_v28  ;;  %v14511_v28 = vld [vmem:[#allocation25 + $0x10] ss:$24 sps:$4 sm:$0xff]  }
 0x5c8   :  { %4136 = vmatpush1.bf16.msra.mxu0 %v14478_v42  ;;  %13301 = vmatprep.subr.bf16.mxu1 %v14525_v31  ;;  %v14528_v42 = vld [vmem:[%s18567_s10 + $0x28] sm:$0xff]  }
 0x5c9   :  { %4137 = vmatprep.subr.bf16.mxu0 %v14483_v43 }
 0x5cb   :  { %13302 = vmatpush3.bf16.msra.mxu1 %v14526_v24  ;;  %v14516_v24 = vld [vmem:[#allocation25 + $0x44] ss:$24 sps:$4 sm:$0xff]  }
 0x5cc   :  { %4138 = vmatpush1.bf16.msra.mxu0 %v14481_v44  ;;  %13303 = vmatprep.subr.bf16.mxu1 %v14527_v22  ;;  %v14529_v22 = vld [vmem:[%s18567_s10 + $0x70] sm:$0xff]  }
 0x5cd   :  { %4139 = vmatprep.subr.bf16.mxu0 %v14486_v47 }
 0x5cf   :  { %13304 = vmatpush3.bf16.msra.mxu1 %v14528_v42 }
 0x5d0   :  { %4140 = vmatpush1.bf16.msra.mxu0 %v14484_v48  ;;  %13305 = vmatprep.subr.bf16.mxu1 %v14529_v22 }
 0x5d1   :  { %4141 = vmatprep.subr.bf16.mxu0 %v14489_v52 }
 0x5d4   :  { %4142 = vmatpush1.bf16.msra.mxu0 %v14487_v50 }
 0x5d5   :  { %4143 = vmatprep.subr.bf16.mxu0 %v14492_v54 }
 0x5d8   :  { %4144 = vmatpush1.bf16.msra.mxu0 %v14490_v55 }
 0x5d9   :  { %4145 = vmatprep.subr.bf16.mxu0 %v14495_v58 }
 0x5dc   :  { %4146 = vmatpush1.bf16.msra.mxu0 %v14493_v60 }
 0x5dd   :  { %4147 = vmatprep.subr.bf16.mxu0 %v14498_v63 }
 0x5e0   :  { %4148 = vmatpush1.bf16.msra.mxu0 %v14496_v1  ;;  %v3689_v1 = vld [vmem:[#allocation17] sm:$0x3] }
 0x5e1   :  { %4149 = vmatprep.subr.bf16.mxu0 %v14501_v61  ;;  %v3698_v61 = vrot.slane %v3689_v1, %v16510_v49 }
 0x5e4   :  { %4150 = vmatpush1.bf16.msra.mxu0 %v14499_v21  ;;  %v3694_v21 = vrot.slane %v3689_v1, %v16507_v46 }
 0x5e5   :  { %4151 = vmatprep.subr.bf16.mxu0 %v14504_v4 }
 0x5e8   :  { %4152 = vmatpush1.bf16.msra.mxu0 %v14502_v6 }
 0x5e9   :  { %4596 = vmatprep.subr.bf16.mxu0 %v14507_v17 }
 0x5ee   :  { %v2866_v56 = vpop.f32.mrb[44].mxu0 }
 0x5ef   :  { %v3640_v3 = vsel %vm3622_vm7, %v2866_v56, 0.0  ;;  %v2868_v5 = vpop.f32.mrb[45].mxu0 }
 0x5f0   :  { %v3641_v62 = vadd.f32 %v3640_v3, %v3639_v41  ;;  %v2869_v8 = vpop.f32.mrb[46].mxu0  ;;  %v3241_v10 = vpop.f32.mrb[36].mxu1 }
 0x5f1   :  { %v2870_v11 = vpop.f32.mrb[47].mxu0  ;;  %v3243_v12 = vpop.f32.mrb[37].mxu1  ;;  %v3646_v39 = vsel %vm3622_vm7, %v3241_v10, 0.0 }
 0x5f2   :  { %v3244_v14 = vpop.f32.mrb[38].mxu1  ;;  %v3643_v15 = vadd.f32 %v3642_v59, %v3641_v62  ;;  %v14505_v11 = vld [vmem:[#allocation25 + $0x8] ss:$24 sps:$4 sm:$0xff]  }
 0x5f3   :  { %v3245_v16 = vpop.f32.mrb[39].mxu1  ;;  %v14510_v14 = vld [vmem:[#allocation25 + $0x3c] ss:$24 sps:$4 sm:$0xff]  }
 0x5f4   :  { %v14513_v16 = vld [vmem:[#allocation25 + $0x14] ss:$24 sps:$4 sm:$0xff]  }
 0x61e   :  { %v3116_v32 = vpop.f32.mrb[48].mxu0 }
 0x61f   :  { %v3644_v34 = vsel %vm3622_vm7, %v3116_v32, 0.0  ;;  %v3118_v35 = vpop.f32.mrb[49].mxu0  ;;  %v14514_v32 = vld [vmem:[#allocation25 + $0x40] ss:$24 sps:$4 sm:$0xff]  }
 0x620   :  { %v3645_v26 = vadd.f32 %v3644_v34, %v3643_v15  ;;  %v3119_v19 = vpop.f32.mrb[50].mxu0  ;;  %v3491_v38 = vpop.f32.mrb[40].mxu1  ;;  %v14508_v15 = vld [vmem:[#allocation25 + $0x38] ss:$24 sps:$4 sm:$0xff]  }
 0x621   :  { %v3120_v41 = vpop.f32.mrb[51].mxu0  ;;  %v3493_v53 = vpop.f32.mrb[41].mxu1  ;;  %v3650_v58 = vsel %vm3622_vm7, %v3491_v38, 0.0  ;;  %v14530_v34 = vld [vmem:[%s18567_s10 + $0x30] sm:$0xff]   ;;  %v14531_v35 = vld [vmem:[%s18567_s10 + $0x78] sm:$0xff]  }
 0x622   :  { %v3494_v43 = vpop.f32.mrb[42].mxu1  ;;  %v3647_v44 = vadd.f32 %v3646_v39, %v3645_v26  ;;  %13306 = vmatpush3.bf16.msra.mxu1 %v14530_v34  ;;  %v14532_v26 = vld [vmem:[%s18567_s10 + $0x38] sm:$0xff]  }
 0x623   :  { %v3495_v47 = vpop.f32.mrb[43].mxu1  ;;  %13307 = vmatprep.subr.bf16.mxu1 %v14531_v35  ;;  %v3949_v19 = vld [vmem:[#allocation20] sm:$0x3] }
 0x624   :  { %v3954_v38 = vrot.slane %v3949_v19, %v16507_v46  ;;  %v3958_v39 = vrot.slane %v3949_v19, %v16510_v49 }
 0x626   :  { %13308 = vmatpush3.bf16.msra.mxu1 %v14532_v26 }
 0x627   :  { %13650 = vmatprep.subr.bf16.mxu1 %v18511_v0 }
 0x64e   :  { %v3366_v48 = vpop.f32.mrb[52].mxu0 }
 0x64f   :  { %v3648_v50 = vsel %vm3622_vm7, %v3366_v48, 0.0  ;;  %v3368_v52 = vpop.f32.mrb[53].mxu0 }
 0x650   :  { %v3649_v54 = vadd.f32 %v3648_v50, %v3647_v44  ;;  %v3369_v55 = vpop.f32.mrb[54].mxu0 }
 0x651   :  { %v3370_v60 = vpop.f32.mrb[55].mxu0  ;;  %v14540_v55 = vld [vmem:[#allocation25 + $0x4] ss:$24 sps:$4 sm:$0xff]  }
 0x652   :  { %v3651_v63 = vadd.f32 %v3650_v58, %v3649_v54  ;;  %v14533_v58 = vld [vmem:[%s18568_s15] sm:$0xff]  }
 0x660   :  { %v3906_v4 = vpop.f32.mrb[44].mxu1 }
 0x661   :  { %v3907_v6 = vadd.f32 %v3906_v4, %v3694_v21  ;;  %v3908_v56 = vpop.f32.mrb[45].mxu1  ;;  %v14537_v4 = vld [vmem:[%s18568_s15 + $0x20] ss:$0 sps:$4 sm:$0xff]  }
 0x662   :  { %v3909_v3 = vadd.f32 %v3908_v56, %v3698_v61  ;;  %v3910_v5 = vpop.f32.mrb[46].mxu1  ;;  %v14536_v61 = vld [vmem:[%s18568_s15 + $0x18] sm:$0xff]  }
 0x663   :  { %v3913_v62 = vmax.f32 %v3907_v6, 0.0  ;;  %v3911_v8 = vpop.f32.mrb[47].mxu1  ;;  %v14544_v6 = vld [vmem:[#allocation26] ss:$24 sps:$4 sm:$0xff]   ;;  %v14546_v56 = vld [vmem:[#allocation26 + $0x4] ss:$24 sps:$4 sm:$0xff]  }
 0x664   :  { %v3914_v10 = vmax.f32 %v3909_v3, 0.0  ;;  %v14547_v3 = vld [vmem:[#allocation26 + $0x8] ss:$24 sps:$4 sm:$0xff]   ;;  %v14549_v5 = vld [vmem:[#allocation26 + $0xc] ss:$24 sps:$4 sm:$0xff]  }
 0x665   :  { %v3915_v12 = vpack.c.bf16 %v3913_v62, %v3913_v62  ;;  %v14550_v62 = vld [vmem:[#allocation26 + $0x30] ss:$24 sps:$4 sm:$0xff]   ;;  %v14552_v8 = vld [vmem:[#allocation26 + $0x34] ss:$24 sps:$4 sm:$0xff]  }
 0x666   :  { %v3916_v59 = vpack.c.bf16 %v3914_v10, %v3914_v10  ;;  %v14553_v10 = vld [vmem:[#allocation26 + $0x38] ss:$24 sps:$4 sm:$0xff]  }
 0x668   :  { %4153 = vmatprep.mubr.bf16.mxu0 %v3916_v59  ;;  %v14555_v59 = vld [vmem:[#allocation26 + $0x3c] ss:$24 sps:$4 sm:$0xff]  }
 0x669   :  { %4154 = vmatmul.mubr.bf16.vlgmr.msra.gmra.mrb[60].mxu0 %v3915_v12 }
 0x66a   :  { %4597 = vmatpush1.bf16.msra.mxu0 %v14505_v11  ;;  %4628 = vmatprep.mubr.bf16.mxu0 %v18508_v13  ;;  %v14558_v11 = vld [vmem:[#allocation26 + $0x14] ss:$24 sps:$4 sm:$0xff]  }
 0x66b   :  { %4598 = vmatprep.subr.bf16.mxu0 %v14510_v14  ;;  %v12573_v14 = vld [vmem:[#allocation22] ss:$0 sm:$0xff] }
 0x66e   :  { %4599 = vmatpush1.bf16.msra.mxu0 %v14508_v15 }
 0x66f   :  { %4637 = vmatprep.subr.bf16.mxu0 %v14513_v16 }
 0x67e   :  { %v3616_v17 = vpop.f32.mrb[56].mxu0 }
 0x67f   :  { %v3652_v18 = vsel %vm3622_vm7, %v3616_v17, 0.0  ;;  %v3618_v23 = vpop.f32.mrb[57].mxu0 }
 0x680   :  { %v3653_v33 = vadd.f32 %v3652_v18, %v3651_v63  ;;  %v3619_v25 = vpop.f32.mrb[58].mxu0  ;;  %v14556_v23 = vld [vmem:[#allocation26 + $0x10] ss:$24 sps:$4 sm:$0xff]  }
 0x681   :  { %v3620_v27 = vpop.f32.mrb[59].mxu0  ;;  %v14561_v25 = vld [vmem:[#allocation26 + $0x44] ss:$24 sps:$4 sm:$0xff]  }
 0x682   :  { %v3655_v57 = vadd.f32 %v3654_v20, %v3653_v33  ;;  %v14559_v27 = vld [vmem:[#allocation26 + $0x40] ss:$24 sps:$4 sm:$0xff]  }
 0x684   :  { %v17064_v31 = vpack.c.bf16 %v3655_v57, %v3655_v57 }
 0x686   :  { %12613 = vmatmul.mubr.msk.bf16.vlgmr.msra.gmra.mrb[64].mxu0 %vm1074_vm6, %v17064_v31 }
 0x687   :  { %4638 = vmatpush1.bf16.msra.mxu0 %v14511_v28  ;;  %4669 = vmatprep.mubr.bf16.mxu0 %v18508_v13 }
 0x688   :  { %4639 = vmatprep.subr.bf16.mxu0 %v14516_v24 }
 0x68b   :  { %4640 = vmatpush1.bf16.msra.mxu0 %v14514_v32 }
 0x68c   :  { %4765 = vmatprep.subr.bf16.mxu0 %v14546_v56 }
 0x68e   :  { %12614 = vmatmul.mubr.msk.bf16.vlgmr.msra.gmra.mrb[68].mxu0 %vm1074_vm6, %v17064_v31 }
 0x68f   :  { %4797 = vmatprep.mubr.bf16.mxu0 %v18508_v13  ;;  %4766 = vmatpush1.bf16.msra.mxu0 %v14544_v6 }
 0x690   :  { %4767 = vmatprep.subr.bf16.mxu0 %v14552_v8 }
 0x693   :  { %4768 = vmatpush1.bf16.msra.mxu0 %v14550_v62 }
 0x694   :  { %4847 = vmatprep.subr.bf16.mxu0 %v14558_v11 }
 0x73c   :  { %v4155_v41 = vpop.f32.mrb[60].mxu0 }
 0x73d   :  { %v4156_v53 = vadd.f32 %v4155_v41, %v3954_v38  ;;  %v4157_v42 = vpop.f32.mrb[61].mxu0 }
 0x73e   :  { %v4158_v43 = vadd.f32 %v4157_v42, %v3958_v39  ;;  %v4159_v44 = vpop.f32.mrb[62].mxu0 }
 0x73f   :  { %v4162_v47 = vmax.f32 %v4156_v53, 0.0  ;;  %v4160_v48 = vpop.f32.mrb[63].mxu0 }
 0x740   :  { %v4163_v50 = vmax.f32 %v4158_v43, 0.0 }
 0x741   :  { %v4164_v54 = vpack.c.bf16 %v4162_v47, %v4162_v47 }
 0x742   :  { %v4165_v52 = vpack.c.bf16 %v4163_v50, %v4163_v50 }
 0x744   :  { %4333 = vmatprep.mubr.bf16.mxu1 %v4165_v52 }
 0x745   :  { %4334 = vmatmul.mubr.bf16.vlgmr.msra.gmra.mrb[48].mxu1 %v4164_v54 }
 0x746   :  { %13651 = vmatpush3.bf16.msra.mxu1 %v824_v40  ;;  %13656 = vmatprep.mubr.msk.bf16.mxu1 %vm16017_vm0, %v18511_v0  ;;  %v14541_v40 = vld [vmem:[#allocation25 + $0x30] ss:$24 sps:$4 sm:$0xff]  }
 0x747   :  { %13652 = vmatprep.subr.bf16.mxu1 %v18511_v0 }
 0x74a   :  { %13653 = vmatpush3.bf16.msra.mxu1 %v825_v30 }
 0x74b   :  { %13654 = vmatprep.subr.bf16.mxu1 %v18511_v0 }
 0x74e   :  { %13655 = vmatpush3.bf16.msra.mxu1 %v826_v9  ;;  %v14535_v9 = vld [vmem:[%s18568_s15 + $0x10] sm:$0xff]  }
 0x74f   :  { %4555 = vmatprep.subr.bf16.mxu1 %v14540_v55 }
 0x751   :  { %13657 = vmatmul.mubr.msk.bf16.vlgmr.msra.gmra.mrb[52].mxu1 %vm4373_vm8, %v14533_v58 }
 0x752   :  { %13660 = vmatprep.mubr.msk.bf16.mxu1 %vm16017_vm0, %v18511_v0  ;;  %4556 = vmatpush1.bf16.msra.mxu1 %v14538_v36 }
 0x753   :  { %4557 = vmatprep.subr.bf16.mxu1 %v14543_v37 }
 0x756   :  { %4558 = vmatpush1.bf16.msra.mxu1 %v14541_v40 }
 0x757   :  { %4806 = vmatprep.subr.bf16.mxu1 %v14549_v5 }
 0x759   :  { %13661 = vmatmul.mubr.msk.bf16.gmra.mrb[56].mxu1 %vm4373_vm8, %v14534_v45  ;;  %v17098_v51 = vpop.f32.mrb[64].mxu0 }
 0x75a   :  { %v17100_v30 = vpop.f32.mrb[65].mxu0  ;;  %13664 = vmatprep.mubr.msk.bf16.mxu1 %vm16017_vm0, %v18511_v0 }
 0x75b   :  { %v4634_v2 = vpop.f32.mrb[66].mxu0  ;;  %v4693_v56 = vrot.slane %v17100_v30, %v16507_v46 }
 0x75c   :  { %v4635_v7 = vpop.f32.mrb[67].mxu0 }
 0x761   :  { %13665 = vmatmul.mubr.msk.bf16.gmra.mrb[60].mxu1 %vm4373_vm8, %v14535_v9  ;;  %v17106_v60 = vpop.f32.mrb[68].mxu0 }
 0x762   :  { %v17108_v63 = vpop.f32.mrb[69].mxu0  ;;  %13668 = vmatprep.mubr.msk.bf16.mxu1 %vm16017_vm0, %v18511_v0 }
 0x763   :  { %v4675_v1 = vpop.f32.mrb[70].mxu0 }
 0x764   :  { %v4676_v21 = vpop.f32.mrb[71].mxu0  ;;  %v18510_v1 = vsub.s32 3, %v16503_v29 }
 0x765   :  { %v4888_v21 = vld [vmem:[%s18573_s29] sm:$0x3f] }
 0x766   :  { %v4897_v8 = vrot.slane %v4888_v21, %v16510_v49  ;;  %v4893_v11 = vrot.slane %v4888_v21, %v16507_v46  ;;  %v14742_v49 = vld [vmem:[%s18578_s25 + $0x480] ss:$24 sps:$4 sm:$0xff]  }
 0x769   :  { %13669 = vmatmul.mubr.msk.bf16.gmra.mrb[64].mxu1 %vm4373_vm8, %v14536_v61  ;;  %v17155_v61 = vsub.s32 2, %v16503_v29 }
 0x76a   :  { %13672 = vmatprep.mubr.msk.bf16.mxu1 %vm16017_vm0, %v18511_v0 }
 0x76b   :  { %18576 = vst [vmem:[#allocation89_spill] sm:$0xff] %v17155_v61 }
 0x771   :  { %13673 = vmatmul.mubr.msk.bf16.gmra.mrb[68].mxu1 %vm4373_vm8, %v14537_v4  ;;  %v4689_v4 = vrot.slane %v17098_v51, %v16507_v46  ;;  %v4901_v51 = vrot.slane %v4888_v21, %v17155_v61 }
 0x772   :  { %4587 = vmatprep.mubr.bf16.mxu1 %v18508_v13 }
 0x779   :  { %12612 = vmatmul.mubr.msk.bf16.vlgmr.msra.gmra.mrb[72].mxu1 %vm1074_vm6, %v17064_v31 }
 0x77a   :  { %4838 = vmatprep.mubr.bf16.mxu1 %v18508_v13  ;;  %4807 = vmatpush1.bf16.msra.mxu1 %v14547_v3 }
 0x77b   :  { %4808 = vmatprep.subr.bf16.mxu1 %v14555_v59 }
 0x77e   :  { %4809 = vmatpush1.bf16.msra.mxu1 %v14553_v10  ;;  %v4905_v10 = vrot.slane %v4888_v21, %v18510_v1 }
 0x818   :  { %v13309_v12 = vpop.f32.mrb[48].mxu1 }
 0x819   :  { %v13310_v15 = vpop.f32.mrb[49].mxu1 }
 0x81a   :  { %v13311_v16 = vadd.f32 %v13310_v15, %v13309_v12  ;;  %v13312_v17 = vpop.f32.mrb[50].mxu1 }
 0x81b   :  { %v13313_v18 = vpop.f32.mrb[51].mxu1 }
 0x81c   :  { %v4336_v20 = vadd.f32 %v13311_v16, %v12573_v14 }
 0x81e   :  { %v4466_v33 = vpack.c.bf16 %v4336_v20, %v4336_v20 }
 0x820   :  { %12627 = vmatmul.mubr.msk.bf16.vlgmr.msra.gmra.mrb[72].mxu0 %vm1074_vm6, %v4466_v33  ;;  %12628 = vmatmul.mubr.msk.bf16.vlgmr.msra.gmra.mrb[76].mxu1 %vm1074_vm6, %v4466_v33 }
 0x821   :  { %4848 = vmatpush1.bf16.msra.mxu0 %v14556_v23  ;;  %4879 = vmatprep.mubr.bf16.mxu0 %v18508_v13 }
 0x822   :  { %4849 = vmatprep.subr.bf16.mxu0 %v14561_v25  ;;  %5070 = vmatprep.mubr.f32.mxu1 %v18511_v0 }
 0x824   :  { %v4423_v57 = vpop.f32.mrb[52].mxu1 }
 0x825   :  { %4850 = vmatpush1.bf16.msra.mxu0 %v14559_v27  ;;  %v13658_v28 = vpop.f32.mrb[53].mxu1  ;;  %v18506_v27 = vsub.s32 5, %v16503_v29 }
 0x826   :  { %v4426_v31 = vpop.f32.mrb[54].mxu1 }
 0x827   :  { %v17126_v24 = vpack.c.bf16 %v4426_v31, %v4423_v57  ;;  %v13659_v32 = vpop.f32.mrb[55].mxu1  ;;  %v18507_v31 = vsub.s32 4, %v16503_v29 }
 0x828   :  { %12629 = vmatmul.mubr.msk.bf16.vlgmr.msra.gmra.mrb[76].mxu0 %vm1074_vm6, %v4466_v33  ;;  %v17171_v32 = vld [vmem:[%s18577_s24] sm:$0xff] }
 0x829   :  { %18569 = vst [vmem:[#allocation83_spill] sm:$0xff] %v17126_v24  ;;  %5189 = vmatprep.mubr.f32.mxu0 %v18511_v0 }
 0x82c   :  { %v17130_v22 = vpop.f32.mrb[56].mxu1 }
 0x82d   :  { %18570 = vst [vmem:[#allocation84_spill] sm:$0xff] %v17130_v22  ;;  %v13662_v34 = vpop.f32.mrb[57].mxu1 }
 0x82e   :  { %v17132_v35 = vpop.f32.mrb[58].mxu1  ;;  %v14564_v34 = vld [vmem:[#allocation23 + $0x4] ss:$24 sps:$4 sm:$0xff]  }
 0x82f   :  { %18571 = vst [vmem:[#allocation85_spill] sm:$0xff] %v17132_v35  ;;  %v17136_v26 = vpack.c.bf16 %v17132_v35, %v17130_v22  ;;  %v13663_v19 = vpop.f32.mrb[59].mxu1  ;;  %v14709_v35 = vld [vmem:[%s18578_s25 + $0x368] ss:$24 sps:$4 sm:$0xff]  }
 0x830   :  { %v4697_v19 = vrot.slane %v17106_v60, %v16507_v46  ;;  %v4909_v60 = vrot.slane %v4888_v21, %v18507_v31 }
 0x834   :  { %v17138_v38 = vpop.f32.mrb[60].mxu1 }
 0x835   :  { %18572 = vst [vmem:[#allocation86_spill] sm:$0xff] %v17138_v38  ;;  %v13666_v41 = vpop.f32.mrb[61].mxu1 }
 0x836   :  { %v4442_v53 = vpop.f32.mrb[62].mxu1  ;;  %v14562_v41 = vld [vmem:[#allocation23] ss:$24 sps:$4 sm:$0xff]  }
 0x837   :  { %v17143_v42 = vpack.c.bf16 %v4442_v53, %v17138_v38  ;;  %v13667_v43 = vpop.f32.mrb[63].mxu1  ;;  %v9239_v7 = vpack.c.bf16 %v4442_v53, %v4442_v53  ;;  %v4701_v53 = vrot.slane %v17108_v63, %v16507_v46  ;;  %v17192_v63 = vld [vmem:[%s18577_s24 + $0x8] sm:$0xff] }
 0x839   :  { %v17150_v9 = vsel %vm9266_vm9, %v9239_v7, 0  ;;  %v14570_v7 = vld [vmem:[#allocation23 + $0x64] ss:$24 sps:$4 sm:$0xff]  }
 0x83a   :  { %18575 = vst [vmem:[#allocation88_spill] sm:$0xff] %v17150_v9 }
 0x83c   :  { %v4447_v44 = vpop.f32.mrb[64].mxu1 }
 0x83d   :  { %v13670_v47 = vpop.f32.mrb[65].mxu1 }
 0x83e   :  { %v4450_v48 = vpop.f32.mrb[66].mxu1 }
 0x83f   :  { %v17145_v50 = vpack.c.bf16 %v4450_v48, %v4447_v44  ;;  %v13671_v52 = vpop.f32.mrb[67].mxu1  ;;  %v4913_v44 = vrot.slane %v4888_v21, %v18506_v27  ;;  %v14576_v21 = vld [vmem:[#allocation23 + $0xc] ss:$24 sps:$4 sm:$0xff]  }
 0x841   :  { %18574 = vst [vmem:[#allocation87_spill] sm:$0xff] %v17145_v50 }
 0x844   :  { %v17147_v54 = vpop.f32.mrb[68].mxu1 }
 0x845   :  { %v13674_v55 = vpop.f32.mrb[69].mxu1 }
 0x846   :  { %v4458_v58 = vpop.f32.mrb[70].mxu1 }
 0x847   :  { %v13675_v36 = vpop.f32.mrb[71].mxu1  ;;  %v14567_v58 = vld [vmem:[#allocation23 + $0x34] ss:$24 sps:$4 sm:$0xff]  }
 0x84c   :  { %v4589_v37 = vpop.f32.mrb[72].mxu1 }
 0x84d   :  { %v4591_v40 = vpop.f32.mrb[73].mxu1  ;;  %v4681_v6 = vrot.slane %v4589_v37, %v16507_v46  ;;  %v14565_v37 = vld [vmem:[#allocation23 + $0x30] ss:$24 sps:$4 sm:$0xff]  }
 0x84e   :  { %v4593_v45 = vpop.f32.mrb[74].mxu1  ;;  %v4685_v3 = vrot.slane %v4591_v40, %v16507_v46 }
 0x84f   :  { %v4594_v2 = vpop.f32.mrb[75].mxu1 }
 0x850   :  { %v17201_v2 = vld [vmem:[%s18577_s24 + $0x10] sm:$0xff] }
 0x8f3   :  { %v4799_v5 = vpop.f32.mrb[72].mxu0  ;;  %v4840_v62 = vpop.f32.mrb[76].mxu1 }
 0x8f4   :  { %v4800_v59 = vadd.f32 %v4799_v5, %v4681_v6  ;;  %v4841_v12 = vadd.f32 %v4840_v62, %v4689_v4  ;;  %v4801_v14 = vpop.f32.mrb[73].mxu0  ;;  %v4842_v15 = vpop.f32.mrb[77].mxu1  ;;  %v14568_v4 = vld [vmem:[#allocation23 + $0x60] ss:$24 sps:$4 sm:$0xff]   ;;  %v14582_v62 = vld [vmem:[#allocation23 + $0x14] ss:$24 sps:$4 sm:$0xff]  }
 0x8f5   :  { %v4802_v16 = vadd.f32 %v4801_v14, %v4685_v3  ;;  %v4843_v30 = vadd.f32 %v4842_v15, %v4693_v56  ;;  %v4803_v17 = vpop.f32.mrb[74].mxu0  ;;  %v4844_v18 = vpop.f32.mrb[78].mxu1  ;;  %v17212_v6 = vld [vmem:[%s18577_s24 + $0x18] sm:$0xff]  ;;  %v14573_v56 = vld [vmem:[#allocation23 + $0x94] ss:$24 sps:$4 sm:$0xff]   ;;  %v17221_v5 = vld [vmem:[%s18577_s24 + $0x20] sm:$0xff] }
 0x8f6   :  { %v4804_v20 = vpop.f32.mrb[75].mxu0  ;;  %v4845_v23 = vpop.f32.mrb[79].mxu1  ;;  %v4920_v57 = vadd.f32 %v4893_v11, %v4800_v59  ;;  %v4922_v28 = vadd.f32 %v4901_v51, %v4841_v12  ;;  %v14571_v3 = vld [vmem:[#allocation23 + $0x90] ss:$24 sps:$4 sm:$0xff]   ;;  %v17248_v59 = vld [vmem:[%s18577_s24 + $0x38] sm:$0xff] }
 0x8f7   :  { %v4921_v33 = vadd.f32 %v4897_v8, %v4802_v16  ;;  %v4923_v25 = vadd.f32 %v4905_v10, %v4843_v30  ;;  %v17230_v8 = vld [vmem:[%s18577_s24 + $0x28] sm:$0xff]  ;;  %v17239_v10 = vld [vmem:[%s18577_s24 + $0x30] sm:$0xff]  ;;  %v4958_v11 = vld [vmem:[%s18577_s24 + $0x40] sm:$0xff] }
 0x8f8   :  { %v14574_v12 = vld [vmem:[#allocation23 + $0x8] ss:$24 sps:$4 sm:$0xff]   ;;  %v14579_v14 = vld [vmem:[#allocation23 + $0x3c] ss:$24 sps:$4 sm:$0xff]   ;;  %v14577_v16 = vld [vmem:[#allocation23 + $0x38] ss:$24 sps:$4 sm:$0xff]  }
 0x8f9   :  { %12630 = vmatprep.subr.msk.mxu1 %vm4987_vm10, %v4921_v33  ;;  %12641 = vmatprep.subr.msk.mxu0 %vm4987_vm10, %v4923_v25  ;;  %v14580_v51 = vld [vmem:[#allocation23 + $0x10] ss:$24 sps:$4 sm:$0xff]   ;;  %v14588_v15 = vld [vmem:[#allocation23 + $0x44] ss:$24 sps:$4 sm:$0xff]   ;;  %v14586_v30 = vld [vmem:[#allocation23 + $0x40] ss:$24 sps:$4 sm:$0xff]  }
 0x8fa   :  { %12631 = vmatpush1.msk.msra.mxu1 %vm4987_vm10, %v4920_v57  ;;  %12642 = vmatpush1.msk.msra.mxu0 %vm4987_vm10, %v4922_v28  ;;  %v14585_v17 = vld [vmem:[#allocation23 + $0x6c] ss:$24 sps:$4 sm:$0xff]   ;;  %v14583_v20 = vld [vmem:[#allocation23 + $0x68] ss:$24 sps:$4 sm:$0xff]   ;;  %v14591_v33 = vld [vmem:[#allocation23 + $0x9c] ss:$24 sps:$4 sm:$0xff]  }
 0x8fb   :  { %v4881_v43 = vpop.f32.mrb[76].mxu0  ;;  %12632 = vmatmul.mubr.msk.f32.vlgmr.msra.gmra.mrb[80].mxu1 %vm4959_vm11, %v17171_v32  ;;  %12643 = vmatmul.mubr.msk.f32.vlgmr.msra.gmra.mrb[80].mxu0 %vm4959_vm11, %v17171_v32  ;;  %v14594_v18 = vld [vmem:[#allocation23 + $0x74] ss:$24 sps:$4 sm:$0xff]   ;;  %v14592_v23 = vld [vmem:[#allocation23 + $0x70] ss:$24 sps:$4 sm:$0xff]  }
 0x8fc   :  { %v4882_v47 = vadd.f32 %v4881_v43, %v4697_v19  ;;  %v4883_v48 = vpop.f32.mrb[77].mxu0  ;;  %5076 = vmatprep.mubr.f32.mxu1 %v18511_v0  ;;  %5195 = vmatprep.mubr.f32.mxu0 %v18511_v0  ;;  %v14597_v25 = vld [vmem:[#allocation23 + $0xa4] ss:$24 sps:$4 sm:$0xff]   ;;  %v14589_v57 = vld [vmem:[#allocation23 + $0x98] ss:$24 sps:$4 sm:$0xff]   ;;  %v17301_v19 = vpack.c.bf16 %v17147_v54, %v17147_v54 }
 0x8fd   :  { %v4884_v52 = vadd.f32 %v4883_v48, %v4701_v53  ;;  %v4885_v55 = vpop.f32.mrb[78].mxu0  ;;  %5498 = vmatprep.subr.bf16.mxu0 %v14564_v34  ;;  %v14595_v28 = vld [vmem:[#allocation23 + $0xa0] ss:$24 sps:$4 sm:$0xff]   ;;  %v14603_v34 = vld [vmem:[%s18578_s25 + $0xc] ss:$24 sps:$4 sm:$0xff]  }
 0x8fe   :  { %v4886_v36 = vpop.f32.mrb[79].mxu0  ;;  %5499 = vmatpush1.bf16.msra.mxu0 %v14562_v41  ;;  %v4924_v45 = vadd.f32 %v4909_v60, %v4882_v47  ;;  %18579 = vst [vmem:[#allocation90_spill] sm:$0xff] %v17301_v19  ;;  %v14598_v41 = vld [vmem:[%s18578_s25] ss:$24 sps:$4 sm:$0xff]   ;;  %v14606_v53 = vld [vmem:[%s18578_s25 + $0x34] ss:$24 sps:$4 sm:$0xff]  }
 0x8ff   :  { %v4925_v40 = vadd.f32 %v4913_v44, %v4884_v52  ;;  %12633 = vmatmul.mubr.msk.f32.gmra.mrb[82].mxu1 %vm4959_vm11, %v17192_v63  ;;  %12644 = vmatmul.mubr.msk.f32.gmra.mrb[82].mxu0 %vm4959_vm11, %v17192_v63  ;;  %v14601_v54 = vld [vmem:[%s18578_s25 + $0x8] ss:$24 sps:$4 sm:$0xff]   ;;  %v14609_v44 = vld [vmem:[%s18578_s25 + $0x3c] ss:$24 sps:$4 sm:$0xff]   ;;  %v14607_v60 = vld [vmem:[%s18578_s25 + $0x38] ss:$24 sps:$4 sm:$0xff]  }
 0x900   :  { %5082 = vmatprep.mubr.f32.mxu1 %v18511_v0  ;;  %5201 = vmatprep.mubr.f32.mxu0 %v18511_v0  ;;  %v14604_v43 = vld [vmem:[%s18578_s25 + $0x30] ss:$24 sps:$4 sm:$0xff]   ;;  %v14612_v47 = vld [vmem:[%s18578_s25 + $0x64] ss:$24 sps:$4 sm:$0xff]   ;;  %v14610_v48 = vld [vmem:[%s18578_s25 + $0x60] ss:$24 sps:$4 sm:$0xff]  }
 0x901   :  { %12652 = vmatprep.subr.msk.mxu1 %vm4987_vm10, %v4925_v40  ;;  %5500 = vmatprep.subr.bf16.mxu0 %v14567_v58  ;;  %v14618_v52 = vld [vmem:[%s18578_s25 + $0x94] ss:$24 sps:$4 sm:$0xff]   ;;  %v14613_v55 = vld [vmem:[%s18578_s25 + $0x68] ss:$24 sps:$4 sm:$0xff]   ;;  %v14619_v40 = vld [vmem:[%s18578_s25 + $0x98] ss:$24 sps:$4 sm:$0xff]  }
 0x902   :  { %12653 = vmatpush1.msk.msra.mxu1 %vm4987_vm10, %v4924_v45  ;;  %5501 = vmatpush1.bf16.msra.mxu0 %v14565_v37  ;;  %v14616_v58 = vld [vmem:[%s18578_s25 + $0x90] ss:$24 sps:$4 sm:$0xff]   ;;  %v14621_v36 = vld [vmem:[%s18578_s25 + $0x9c] ss:$24 sps:$4 sm:$0xff]   ;;  %v14622_v45 = vld [vmem:[%s18578_s25 + $0xc0] ss:$24 sps:$4 sm:$0xff]  }
 0x903   :  { %12634 = vmatmul.mubr.msk.f32.gmra.mrb[84].mxu1 %vm4959_vm11, %v17201_v2  ;;  %12645 = vmatmul.mubr.msk.f32.gmra.mrb[84].mxu0 %vm4959_vm11, %v17201_v2  ;;  %v14624_v37 = vld [vmem:[%s18578_s25 + $0xc4] ss:$24 sps:$4 sm:$0xff]  }
 0x904   :  { %5088 = vmatprep.mubr.f32.mxu1 %v18511_v0  ;;  %5207 = vmatprep.mubr.f32.mxu0 %v18511_v0 }
 0x905   :  { %5502 = vmatprep.subr.bf16.mxu0 %v14570_v7  ;;  %5579 = vmatprep.subr.bf16.mxu1 %v14576_v21  ;;  %v14630_v7 = vld [vmem:[%s18578_s25 + $0xf4] ss:$24 sps:$4 sm:$0xff]   ;;  %v14628_v21 = vld [vmem:[%s18578_s25 + $0xf0] ss:$24 sps:$4 sm:$0xff]  }
 0x906   :  { %5503 = vmatpush1.bf16.msra.mxu0 %v14568_v4  ;;  %v14633_v4 = vld [vmem:[%s18578_s25 + $0xfc] ss:$24 sps:$4 sm:$0xff]  }
 0x907   :  { %12635 = vmatmul.mubr.msk.f32.gmra.mrb[86].mxu1 %vm4959_vm11, %v17212_v6  ;;  %12646 = vmatmul.mubr.msk.f32.gmra.mrb[86].mxu0 %vm4959_vm11, %v17212_v6 }
 0x908   :  { %5094 = vmatprep.mubr.f32.mxu1 %v18511_v0  ;;  %5213 = vmatprep.mubr.f32.mxu0 %v18511_v0 }
 0x909   :  { %5504 = vmatprep.subr.bf16.mxu0 %v14573_v56  ;;  %v14631_v56 = vld [vmem:[%s18578_s25 + $0xf8] ss:$24 sps:$4 sm:$0xff]  }
 0x90a   :  { %5505 = vmatpush1.bf16.msra.mxu0 %v14571_v3  ;;  %v14634_v3 = vld [vmem:[%s18578_s25 + $0x120] ss:$24 sps:$4 sm:$0xff]  }
 0x90b   :  { %12636 = vmatmul.mubr.msk.f32.gmra.mrb[88].mxu1 %vm4959_vm11, %v17221_v5  ;;  %12647 = vmatmul.mubr.msk.f32.gmra.mrb[88].mxu0 %vm4959_vm11, %v17221_v5 }
 0x90c   :  { %5100 = vmatprep.mubr.f32.mxu1 %v18511_v0  ;;  %5219 = vmatprep.mubr.f32.mxu0 %v18511_v0 }
 0x90d   :  { %5660 = vmatprep.subr.bf16.mxu0 %v14582_v62  ;;  %v14642_v62 = vld [vmem:[%s18578_s25 + $0x154] ss:$24 sps:$4 sm:$0xff]  }
 0x90f   :  { %12637 = vmatmul.mubr.msk.f32.gmra.mrb[90].mxu1 %vm4959_vm11, %v17230_v8  ;;  %12648 = vmatmul.mubr.msk.f32.gmra.mrb[90].mxu0 %vm4959_vm11, %v17230_v8 }
 0x910   :  { %5106 = vmatprep.mubr.f32.mxu1 %v18511_v0  ;;  %5225 = vmatprep.mubr.f32.mxu0 %v18511_v0 }
 0x913   :  { %12638 = vmatmul.mubr.msk.f32.gmra.mrb[92].mxu1 %vm4959_vm11, %v17239_v10  ;;  %12649 = vmatmul.mubr.msk.f32.gmra.mrb[92].mxu0 %vm4959_vm11, %v17239_v10 }
 0x914   :  { %5112 = vmatprep.mubr.f32.mxu1 %v18511_v0  ;;  %5231 = vmatprep.mubr.f32.mxu0 %v18511_v0 }
 0x917   :  { %12639 = vmatmul.mubr.msk.f32.gmra.mrb[94].mxu1 %vm4959_vm11, %v17248_v59  ;;  %12650 = vmatmul.mubr.msk.f32.gmra.mrb[94].mxu0 %vm4959_vm11, %v17248_v59 }
 0x918   :  { %5118 = vmatprep.mubr.f32.mxu1 %v18511_v0  ;;  %5237 = vmatprep.mubr.f32.mxu0 %v18511_v0 }
 0x91b   :  { %12640 = vmatmul.mubr.msk.f32.gmra.mrb[96].mxu1 %vm4959_vm11, %v4958_v11  ;;  %12651 = vmatmul.mubr.msk.f32.gmra.mrb[96].mxu0 %vm4959_vm11, %v4958_v11 }
 0x91c   :  { %5308 = vmatprep.mubr.f32.mxu1 %v18511_v0  ;;  %5530 = vmatprep.mubr.bf16.mxu0 %v18508_v13 }
 0x91f   :  { %12654 = vmatmul.mubr.msk.f32.vlgmr.msra.gmra.mrb[98].mxu1 %vm4959_vm11, %v17171_v32  ;;  %12687 = vmatmul.mubr.msk.bf16.vlgmr.msra.gmra.mrb[100].mxu0 %vm529_vm1, %v17126_v24  ;;  %v14600_v32 = vld [vmem:[%s18578_s25 + $0x4] ss:$24 sps:$4 sm:$0xff]  }
 0x920   :  { %5314 = vmatprep.mubr.f32.mxu1 %v18511_v0  ;;  %5540 = vmatprep.mubr.bf16.mxu0 %v18508_v13 }
 0x921   :  { %5580 = vmatpush1.bf16.msra.mxu1 %v14574_v12  ;;  %5661 = vmatpush1.bf16.msra.mxu0 %v14580_v51  ;;  %v14646_v12 = vld [vmem:[%s18578_s25 + $0x180] ss:$24 sps:$4 sm:$0xff]   ;;  %v14651_v51 = vld [vmem:[%s18578_s25 + $0x18c] ss:$24 sps:$4 sm:$0xff]  }
 0x922   :  { %5581 = vmatprep.subr.bf16.mxu1 %v14579_v14  ;;  %5662 = vmatprep.subr.bf16.mxu0 %v14588_v15  ;;  %v14654_v14 = vld [vmem:[%s18578_s25 + $0x1b4] ss:$24 sps:$4 sm:$0xff]   ;;  %v14649_v15 = vld [vmem:[%s18578_s25 + $0x188] ss:$24 sps:$4 sm:$0xff]  }
 0x923   :  { %12655 = vmatmul.mubr.msk.f32.gmra.mrb[100].mxu1 %vm4959_vm11, %v17192_v63  ;;  %v14615_v63 = vld [vmem:[%s18578_s25 + $0x6c] ss:$24 sps:$4 sm:$0xff]  }
 0x924   :  { %5320 = vmatprep.mubr.f32.mxu1 %v18511_v0 }
 0x925   :  { %5582 = vmatpush1.bf16.msra.mxu1 %v14577_v16  ;;  %5663 = vmatpush1.bf16.msra.mxu0 %v14586_v30  ;;  %v14652_v16 = vld [vmem:[%s18578_s25 + $0x1b0] ss:$24 sps:$4 sm:$0xff]   ;;  %v14657_v30 = vld [vmem:[%s18578_s25 + $0x1bc] ss:$24 sps:$4 sm:$0xff]  }
 0x926   :  { %5583 = vmatprep.subr.bf16.mxu1 %v14585_v17  ;;  %5664 = vmatprep.subr.bf16.mxu0 %v14594_v18  ;;  %v14660_v17 = vld [vmem:[%s18578_s25 + $0x1e4] ss:$24 sps:$4 sm:$0xff]   ;;  %v14655_v18 = vld [vmem:[%s18578_s25 + $0x1b8] ss:$24 sps:$4 sm:$0xff]  }
 0x927   :  { %12656 = vmatmul.mubr.msk.f32.gmra.mrb[102].mxu1 %vm4959_vm11, %v17201_v2  ;;  %12688 = vmatmul.mubr.msk.bf16.gmra.mrb[104].mxu0 %vm529_vm1, %v17136_v26  ;;  %v14627_v2 = vld [vmem:[%s18578_s25 + $0xcc] ss:$24 sps:$4 sm:$0xff]  }
 0x928   :  { %5326 = vmatprep.mubr.f32.mxu1 %v18511_v0  ;;  %5550 = vmatprep.mubr.bf16.mxu0 %v18508_v13 }
 0x929   :  { %5584 = vmatpush1.bf16.msra.mxu1 %v14583_v20  ;;  %5665 = vmatpush1.bf16.msra.mxu0 %v14592_v23  ;;  %v14658_v20 = vld [vmem:[%s18578_s25 + $0x1e0] ss:$24 sps:$4 sm:$0xff]   ;;  %v14663_v23 = vld [vmem:[%s18578_s25 + $0x1ec] ss:$24 sps:$4 sm:$0xff]  }
 0x92a   :  { %5585 = vmatprep.subr.bf16.mxu1 %v14591_v33  ;;  %5666 = vmatprep.subr.bf16.mxu0 %v14597_v25  ;;  %v14666_v33 = vld [vmem:[%s18578_s25 + $0x214] ss:$24 sps:$4 sm:$0xff]   ;;  %v14661_v25 = vld [vmem:[%s18578_s25 + $0x1e8] ss:$24 sps:$4 sm:$0xff]  }
 0x92b   :  { %12657 = vmatmul.mubr.msk.f32.gmra.mrb[104].mxu1 %vm4959_vm11, %v17212_v6  ;;  %v14636_v6 = vld [vmem:[%s18578_s25 + $0x124] ss:$24 sps:$4 sm:$0xff]  }
 0x92c   :  { %5332 = vmatprep.mubr.f32.mxu1 %v18511_v0 }
 0x92d   :  { %5586 = vmatpush1.bf16.msra.mxu1 %v14589_v57  ;;  %5667 = vmatpush1.bf16.msra.mxu0 %v14595_v28  ;;  %v14664_v57 = vld [vmem:[%s18578_s25 + $0x210] ss:$24 sps:$4 sm:$0xff]   ;;  %v14669_v28 = vld [vmem:[%s18578_s25 + $0x21c] ss:$24 sps:$4 sm:$0xff]  }
 0x92e   :  { %7585 = vmatprep.subr.bf16.mxu1 %v14600_v32  ;;  %7828 = vmatprep.subr.bf16.mxu0 %v14603_v34  ;;  %v14672_v32 = vld [vmem:[%s18578_s25 + $0x244] ss:$24 sps:$4 sm:$0xff]   ;;  %v14667_v34 = vld [vmem:[%s18578_s25 + $0x218] ss:$24 sps:$4 sm:$0xff]  }
 0x92f   :  { %12658 = vmatmul.mubr.msk.f32.gmra.mrb[106].mxu1 %vm4959_vm11, %v17221_v5  ;;  %12689 = vmatmul.mubr.msk.bf16.gmra.mrb[108].mxu0 %vm529_vm1, %v17143_v42  ;;  %v14639_v5 = vld [vmem:[%s18578_s25 + $0x12c] ss:$24 sps:$4 sm:$0xff]  }
 0x930   :  { %5338 = vmatprep.mubr.f32.mxu1 %v18511_v0  ;;  %5560 = vmatprep.mubr.bf16.mxu0 %v18508_v13 }
 0x933   :  { %12659 = vmatmul.mubr.msk.f32.gmra.mrb[108].mxu1 %vm4959_vm11, %v17230_v8  ;;  %v14640_v8 = vld [vmem:[%s18578_s25 + $0x150] ss:$24 sps:$4 sm:$0xff]  }
 0x934   :  { %5344 = vmatprep.mubr.f32.mxu1 %v18511_v0 }
 0x937   :  { %12660 = vmatmul.mubr.msk.f32.gmra.mrb[110].mxu1 %vm4959_vm11, %v17239_v10  ;;  %12690 = vmatmul.mubr.msk.bf16.gmra.mrb[112].mxu0 %vm529_vm1, %v17145_v50  ;;  %v14645_v10 = vld [vmem:[%s18578_s25 + $0x15c] ss:$24 sps:$4 sm:$0xff]  }
 0x938   :  { %5350 = vmatprep.mubr.f32.mxu1 %v18511_v0  ;;  %5570 = vmatprep.mubr.bf16.mxu0 %v18508_v13 }
 0x93b   :  { %12661 = vmatmul.mubr.msk.f32.gmra.mrb[112].mxu1 %vm4959_vm11, %v17248_v59  ;;  %v14648_v59 = vld [vmem:[%s18578_s25 + $0x184] ss:$24 sps:$4 sm:$0xff]  }
 0x93c   :  { %5356 = vmatprep.mubr.f32.mxu1 %v18511_v0 }
 0x93f   :  { %12662 = vmatmul.mubr.msk.f32.gmra.mrb[114].mxu1 %vm4959_vm11, %v4958_v11  ;;  %12691 = vmatmul.mubr.msk.bf16.gmra.mrb[116].mxu0 %vm529_vm1, %v17301_v19  ;;  %v14643_v11 = vld [vmem:[%s18578_s25 + $0x158] ss:$24 sps:$4 sm:$0xff]  }
 0x940   :  { %5611 = vmatprep.mubr.bf16.mxu1 %v18508_v13  ;;  %5692 = vmatprep.mubr.bf16.mxu0 %v18508_v13 }
 0x943   :  { %12692 = vmatmul.mubr.msk.bf16.vlgmr.msra.gmra.mrb[116].mxu1 %vm529_vm1, %v17126_v24 }
 0x944   :  { %5621 = vmatprep.mubr.bf16.mxu1 %v18508_v13  ;;  %7586 = vmatpush1.bf16.msra.mxu1 %v14598_v41  ;;  %v14670_v41 = vld [vmem:[%s18578_s25 + $0x240] ss:$24 sps:$4 sm:$0xff]  }
 0x945   :  { %7587 = vmatprep.subr.bf16.mxu1 %v14606_v53  ;;  %v14675_v53 = vld [vmem:[%s18578_s25 + $0x24c] ss:$24 sps:$4 sm:$0xff]  }
 0x947   :  { %12697 = vmatmul.mubr.msk.bf16.vlgmr.msra.gmra.mrb[120].mxu0 %vm529_vm1, %v17126_v24  ;;  %v14721_v24 = vld [vmem:[%s18578_s25 + $0x3c8] ss:$24 sps:$4 sm:$0xff]  }
 0x948   :  { %5702 = vmatprep.mubr.bf16.mxu0 %v18508_v13  ;;  %7829 = vmatpush1.bf16.msra.mxu0 %v14601_v54  ;;  %v14678_v54 = vld [vmem:[%s18578_s25 + $0x274] ss:$24 sps:$4 sm:$0xff]  }
 0x949   :  { %7830 = vmatprep.subr.bf16.mxu0 %v14609_v44  ;;  %7588 = vmatpush1.bf16.msra.mxu1 %v14604_v43  ;;  %v14673_v43 = vld [vmem:[%s18578_s25 + $0x248] ss:$24 sps:$4 sm:$0xff]  }
 0x94a   :  { %7589 = vmatprep.subr.bf16.mxu1 %v14612_v47  ;;  %v14676_v44 = vld [vmem:[%s18578_s25 + $0x270] ss:$24 sps:$4 sm:$0xff]   ;;  %v14681_v47 = vld [vmem:[%s18578_s25 + $0x27c] ss:$24 sps:$4 sm:$0xff]  }
 0x94b   :  { %12693 = vmatmul.mubr.msk.bf16.gmra.mrb[120].mxu1 %vm529_vm1, %v17136_v26 }
 0x94c   :  { %5631 = vmatprep.mubr.bf16.mxu1 %v18508_v13  ;;  %7831 = vmatpush1.bf16.msra.mxu0 %v14607_v60  ;;  %v14679_v60 = vld [vmem:[%s18578_s25 + $0x278] ss:$24 sps:$4 sm:$0xff]  }
 0x94d   :  { %7832 = vmatprep.subr.bf16.mxu0 %v14615_v63  ;;  %7590 = vmatpush1.bf16.msra.mxu1 %v14610_v48  ;;  %v14682_v48 = vld [vmem:[%s18578_s25 + $0x2a0] ss:$24 sps:$4 sm:$0xff]   ;;  %v14684_v63 = vld [vmem:[%s18578_s25 + $0x2a4] ss:$24 sps:$4 sm:$0xff]  }
 0x94e   :  { %7591 = vmatprep.subr.bf16.mxu1 %v14618_v52  ;;  %v14687_v52 = vld [vmem:[%s18578_s25 + $0x2ac] ss:$24 sps:$4 sm:$0xff]  }
 0x94f   :  { %12698 = vmatmul.mubr.msk.bf16.gmra.mrb[124].mxu0 %vm529_vm1, %v17136_v26  ;;  %v14625_v26 = vld [vmem:[%s18578_s25 + $0xc8] ss:$24 sps:$4 sm:$0xff]  }
 0x950   :  { %5712 = vmatprep.mubr.bf16.mxu0 %v18508_v13  ;;  %7833 = vmatpush1.bf16.msra.mxu0 %v14613_v55  ;;  %v14690_v55 = vld [vmem:[%s18578_s25 + $0x2d4] ss:$24 sps:$4 sm:$0xff]  }
 0x951   :  { %7834 = vmatprep.subr.bf16.mxu0 %v14621_v36  ;;  %7592 = vmatpush1.bf16.msra.mxu1 %v14616_v58  ;;  %v14685_v58 = vld [vmem:[%s18578_s25 + $0x2a8] ss:$24 sps:$4 sm:$0xff]  }
 0x952   :  { %7593 = vmatprep.subr.bf16.mxu1 %v14624_v37  ;;  %v14688_v36 = vld [vmem:[%s18578_s25 + $0x2d0] ss:$24 sps:$4 sm:$0xff]   ;;  %v14693_v37 = vld [vmem:[%s18578_s25 + $0x2dc] ss:$24 sps:$4 sm:$0xff]  }
 0x953   :  { %12694 = vmatmul.mubr.msk.bf16.gmra.mrb[124].mxu1 %vm529_vm1, %v17143_v42 }
 0x954   :  { %5641 = vmatprep.mubr.bf16.mxu1 %v18508_v13  ;;  %7835 = vmatpush1.bf16.msra.mxu0 %v14619_v40  ;;  %v14691_v40 = vld [vmem:[%s18578_s25 + $0x2d8] ss:$24 sps:$4 sm:$0xff]  }
 0x955   :  { %7836 = vmatprep.subr.bf16.mxu0 %v14627_v2  ;;  %7594 = vmatpush1.bf16.msra.mxu1 %v14622_v45  ;;  %v14696_v45 = vld [vmem:[%s18578_s25 + $0x304] ss:$24 sps:$4 sm:$0xff]  }
 0x956   :  { %7595 = vmatprep.subr.bf16.mxu1 %v14630_v7  ;;  %v14699_v2 = vld [vmem:[%s18578_s25 + $0x30c] ss:$24 sps:$4 sm:$0xff]  }
 0x957   :  { %12699 = vmatmul.mubr.msk.bf16.gmra.mrb[128].mxu0 %vm529_vm1, %v17143_v42  ;;  %v14637_v42 = vld [vmem:[%s18578_s25 + $0x128] ss:$24 sps:$4 sm:$0xff]  }
 0x958   :  { %5722 = vmatprep.mubr.bf16.mxu0 %v18508_v13  ;;  %7837 = vmatpush1.bf16.msra.mxu0 %v14625_v26 }
 0x959   :  { %7838 = vmatprep.subr.bf16.mxu0 %v14633_v4  ;;  %7596 = vmatpush1.bf16.msra.mxu1 %v14628_v21 }
 0x95a   :  { %7597 = vmatprep.subr.bf16.mxu1 %v14636_v6 }
 0x95b   :  { %12695 = vmatmul.mubr.msk.bf16.gmra.mrb[128].mxu1 %vm529_vm1, %v17145_v50 }
 0x95c   :  { %5651 = vmatprep.mubr.bf16.mxu1 %v18508_v13  ;;  %7839 = vmatpush1.bf16.msra.mxu0 %v14631_v56 }
 0x95d   :  { %7840 = vmatprep.subr.bf16.mxu0 %v14639_v5  ;;  %7598 = vmatpush1.bf16.msra.mxu1 %v14634_v3 }
 0x95e   :  { %7599 = vmatprep.subr.bf16.mxu1 %v14642_v62 }
 0x95f   :  { %12700 = vmatmul.mubr.msk.bf16.gmra.mrb[132].mxu0 %vm529_vm1, %v17145_v50 }
 0x960   :  { %5732 = vmatprep.mubr.bf16.mxu0 %v18508_v13  ;;  %7841 = vmatpush1.bf16.msra.mxu0 %v14637_v42 }
 0x961   :  { %7842 = vmatprep.subr.bf16.mxu0 %v14645_v10  ;;  %7600 = vmatpush1.bf16.msra.mxu1 %v14640_v8 }
 0x962   :  { %7601 = vmatprep.subr.bf16.mxu1 %v14648_v59 }
 0x963   :  { %12696 = vmatmul.mubr.msk.bf16.gmra.mrb[132].mxu1 %vm529_vm1, %v17301_v19 }
 0x964   :  { %7843 = vmatpush1.bf16.msra.mxu0 %v14643_v11 }
 0x965   :  { %7844 = vmatprep.subr.bf16.mxu0 %v14651_v51  ;;  %7602 = vmatpush1.bf16.msra.mxu1 %v14646_v12 }
 0x966   :  { %7603 = vmatprep.subr.bf16.mxu1 %v14654_v14 }
 0x967   :  { %12701 = vmatmul.mubr.msk.bf16.gmra.mrb[136].mxu0 %vm529_vm1, %v17301_v19 }
 0x968   :  { %7845 = vmatpush1.bf16.msra.mxu0 %v14649_v15 }
 0x969   :  { %7846 = vmatprep.subr.bf16.mxu0 %v14657_v30  ;;  %7604 = vmatpush1.bf16.msra.mxu1 %v14652_v16 }
 0x96a   :  { %7605 = vmatprep.subr.bf16.mxu1 %v14660_v17 }
 0x96c   :  { %7847 = vmatpush1.bf16.msra.mxu0 %v14655_v18 }
 0x96d   :  { %7848 = vmatprep.subr.bf16.mxu0 %v14663_v23  ;;  %7606 = vmatpush1.bf16.msra.mxu1 %v14658_v20 }
 0x96e   :  { %7607 = vmatprep.subr.bf16.mxu1 %v14666_v33 }
 0x970   :  { %7849 = vmatpush1.bf16.msra.mxu0 %v14661_v25 }
 0x971   :  { %7850 = vmatprep.subr.bf16.mxu0 %v14669_v28  ;;  %7608 = vmatpush1.bf16.msra.mxu1 %v14664_v57 }
 0x972   :  { %7609 = vmatprep.subr.bf16.mxu1 %v14672_v32 }
 0x974   :  { %7851 = vmatpush1.bf16.msra.mxu0 %v14667_v34 }
 0x975   :  { %7852 = vmatprep.subr.bf16.mxu0 %v14675_v53  ;;  %7610 = vmatpush1.bf16.msra.mxu1 %v14670_v41 }
 0x976   :  { %7611 = vmatprep.subr.bf16.mxu1 %v14678_v54 }
 0x978   :  { %7853 = vmatpush1.bf16.msra.mxu0 %v14673_v43 }
 0x979   :  { %7854 = vmatprep.subr.bf16.mxu0 %v14681_v47  ;;  %7612 = vmatpush1.bf16.msra.mxu1 %v14676_v44 }
 0x97a   :  { %7613 = vmatprep.subr.bf16.mxu1 %v14684_v63 }
 0x97c   :  { %7855 = vmatpush1.bf16.msra.mxu0 %v14679_v60 }
 0x97d   :  { %7856 = vmatprep.subr.bf16.mxu0 %v14687_v52  ;;  %7614 = vmatpush1.bf16.msra.mxu1 %v14682_v48 }
 0x97e   :  { %7615 = vmatprep.subr.bf16.mxu1 %v14690_v55 }
 0x980   :  { %7857 = vmatpush1.bf16.msra.mxu0 %v14685_v58 }
 0x981   :  { %7858 = vmatprep.subr.bf16.mxu0 %v14693_v37  ;;  %7616 = vmatpush1.bf16.msra.mxu1 %v14688_v36 }
 0x982   :  { %7666 = vmatprep.subr.bf16.mxu1 %v14696_v45 }
 0x984   :  { %7859 = vmatpush1.bf16.msra.mxu0 %v14691_v40 }
 0x985   :  { %7909 = vmatprep.subr.bf16.mxu0 %v14699_v2 }
 0x9ce   :  { %v17400_v7 = vpop.f32.mrb[80].mxu0  ;;  %v5072_v26 = vpop.f32.mrb[80].mxu1 }
 0x9cf   :  { %v17402_v21 = vpop.f32.mrb[81].mxu0  ;;  %v5074_v4 = vpop.f32.mrb[81].mxu1 }
 0x9d2   :  { %v17404_v6 = vpop.f32.mrb[82].mxu0  ;;  %v5078_v56 = vpop.f32.mrb[82].mxu1 }
 0x9d3   :  { %v17406_v3 = vpop.f32.mrb[83].mxu0  ;;  %v5080_v5 = vpop.f32.mrb[83].mxu1 }
 0x9d6   :  { %v17408_v62 = vpop.f32.mrb[84].mxu0  ;;  %v5084_v42 = vpop.f32.mrb[84].mxu1 }
 0x9d7   :  { %v17410_v8 = vpop.f32.mrb[85].mxu0  ;;  %v5086_v10 = vpop.f32.mrb[85].mxu1 }
 0x9da   :  { %v17412_v59 = vpop.f32.mrb[86].mxu0  ;;  %v5090_v11 = vpop.f32.mrb[86].mxu1 }
 0x9db   :  { %v17414_v12 = vpop.f32.mrb[87].mxu0  ;;  %v5092_v51 = vpop.f32.mrb[87].mxu1 }
 0x9de   :  { %v17416_v14 = vpop.f32.mrb[88].mxu0  ;;  %v17418_v15 = vpop.f32.mrb[88].mxu1 }
 0x9df   :  { %v17420_v16 = vpop.f32.mrb[89].mxu0  ;;  %v17422_v30 = vpop.f32.mrb[89].mxu1 }
 0x9e2   :  { %v17424_v17 = vpop.f32.mrb[90].mxu0  ;;  %v17426_v18 = vpop.f32.mrb[90].mxu1 }
 0x9e3   :  { %v17428_v20 = vpop.f32.mrb[91].mxu0  ;;  %v17430_v23 = vpop.f32.mrb[91].mxu1 }
 0x9e6   :  { %v17432_v33 = vpop.f32.mrb[92].mxu0  ;;  %v17434_v25 = vpop.f32.mrb[92].mxu1 }
 0x9e7   :  { %v17436_v57 = vpop.f32.mrb[93].mxu0  ;;  %v17438_v28 = vpop.f32.mrb[93].mxu1 }
 0x9ea   :  { %v17440_v32 = vpop.f32.mrb[94].mxu0  ;;  %v17442_v34 = vpop.f32.mrb[94].mxu1 }
 0x9eb   :  { %v17444_v41 = vpop.f32.mrb[95].mxu0  ;;  %v17446_v53 = vpop.f32.mrb[95].mxu1 }
 0x9ee   :  { %v17448_v54 = vpop.f32.mrb[96].mxu0  ;;  %v17450_v43 = vpop.f32.mrb[96].mxu1 }
 0x9ef   :  { %v17452_v44 = vpop.f32.mrb[97].mxu0  ;;  %v17454_v47 = vpop.f32.mrb[97].mxu1 }
 0x9f2   :  { %v5532_v60 = vpop.f32.mrb[100].mxu0  ;;  %v17456_v48 = vpop.f32.mrb[98].mxu1 }
 0x9f3   :  { %v5533_v63 = vadd.f32 %v5532_v60, %v5072_v26  ;;  %v5534_v52 = vpop.f32.mrb[101].mxu0  ;;  %v17458_v55 = vpop.f32.mrb[99].mxu1 }
 0x9f4   :  { %v5535_v58 = vadd.f32 %v5534_v52, %v5074_v4  ;;  %v5536_v36 = vpop.f32.mrb[102].mxu0  ;;  %v14694_v4 = vld [vmem:[%s18578_s25 + $0x300] ss:$24 sps:$4 sm:$0xff]  }
 0x9f5   :  { %v5537_v37 = vadd.f32 %v5536_v36, %v5078_v56  ;;  %v5538_v40 = vpop.f32.mrb[103].mxu0  ;;  %v5741_v39 = vmax.f32 %v5533_v63, 0.0  ;;  %v14697_v56 = vld [vmem:[%s18578_s25 + $0x308] ss:$24 sps:$4 sm:$0xff]   ;;  %v14705_v63 = vld [vmem:[%s18578_s25 + $0x33c] ss:$24 sps:$4 sm:$0xff]  }
 0x9f6   :  { %v5539_v45 = vadd.f32 %v5538_v40, %v5080_v5  ;;  %v17460_v2 = vpop.f32.mrb[100].mxu1  ;;  %v5742_v13 = vmax.f32 %v5535_v58, 0.0  ;;  %v14702_v40 = vld [vmem:[%s18578_s25 + $0x334] ss:$24 sps:$4 sm:$0xff]  }
 0x9f7   :  { %v5747_v27 = vmax.f32 %v5537_v37, 0.0  ;;  %v17462_v31 = vpop.f32.mrb[101].mxu1 }
 0x9f8   :  { %v5748_v26 = vmax.f32 %v5539_v45, 0.0 }
 0x9f9   :  { %v17464_v60 = vpack.c.bf16 %v5747_v27, %v5741_v39 }
 0x9fa   :  { %v17466_v1 = vpack.c.bf16 %v5748_v26, %v5742_v13  ;;  %v5542_v0 = vpop.f32.mrb[104].mxu0  ;;  %v17470_v52 = vpop.f32.mrb[102].mxu1  ;;  %v14708_v26 = vld [vmem:[%s18578_s25 + $0x364] ss:$24 sps:$4 sm:$0xff]  }
 0x9fb   :  { %v5543_v5 = vadd.f32 %v5542_v0, %v5084_v42  ;;  %v5544_v36 = vpop.f32.mrb[105].mxu0  ;;  %v17474_v37 = vpop.f32.mrb[103].mxu1  ;;  %v14700_v0 = vld [vmem:[%s18578_s25 + $0x330] ss:$24 sps:$4 sm:$0xff]  }
 0x9fc   :  { %v5545_v58 = vadd.f32 %v5544_v36, %v5086_v10  ;;  %v5546_v45 = vpop.f32.mrb[106].mxu0  ;;  %7617 = vmatprep.mubr.bf16.mxu1 %v17466_v1  ;;  %7860 = vmatprep.mubr.bf16.mxu0 %v17466_v1  ;;  %v14703_v42 = vld [vmem:[%s18578_s25 + $0x338] ss:$24 sps:$4 sm:$0xff]  }
 0x9fd   :  { %v5547_v13 = vadd.f32 %v5546_v45, %v5090_v11  ;;  %v5548_v39 = vpop.f32.mrb[107].mxu0  ;;  %7618 = vmatmul.mubr.bf16.vlgmr.msra.gmra.mrb[136].mxu1 %v17464_v60  ;;  %7861 = vmatmul.mubr.bf16.vlgmr.msra.gmra.mrb[140].mxu0 %v17464_v60  ;;  %v5753_v36 = vmax.f32 %v5543_v5, 0.0  ;;  %v14711_v11 = vld [vmem:[%s18578_s25 + $0x36c] ss:$24 sps:$4 sm:$0xff]  }
 0x9fe   :  { %v5549_v27 = vadd.f32 %v5548_v39, %v5092_v51  ;;  %7667 = vmatpush1.bf16.msra.mxu1 %v14694_v4  ;;  %7910 = vmatpush1.bf16.msra.mxu0 %v14697_v56  ;;  %v17483_v10 = vpop.f32.mrb[104].mxu1  ;;  %v5754_v50 = vmax.f32 %v5545_v58, 0.0  ;;  %v14706_v39 = vld [vmem:[%s18578_s25 + $0x360] ss:$24 sps:$4 sm:$0xff]   ;;  %v14714_v58 = vld [vmem:[%s18578_s25 + $0x394] ss:$24 sps:$4 sm:$0xff]  }
 0x9ff   :  { %v5759_v19 = vmax.f32 %v5547_v13, 0.0  ;;  %7668 = vmatprep.subr.bf16.mxu1 %v14702_v40  ;;  %7911 = vmatprep.subr.bf16.mxu0 %v14705_v63  ;;  %v17486_v45 = vpop.f32.mrb[105].mxu1 }
 0xa00   :  { %v5760_v9 = vmax.f32 %v5549_v27, 0.0  ;;  %v14712_v27 = vld [vmem:[%s18578_s25 + $0x390] ss:$24 sps:$4 sm:$0xff]  }
 0xa01   :  { %v17488_v51 = vpack.c.bf16 %v5759_v19, %v5753_v36  ;;  %v14717_v19 = vld [vmem:[%s18578_s25 + $0x39c] ss:$24 sps:$4 sm:$0xff]  }
 0xa02   :  { %v17490_v4 = vpack.c.bf16 %v5760_v9, %v5754_v50  ;;  %7669 = vmatpush1.bf16.msra.mxu1 %v14700_v0  ;;  %7912 = vmatpush1.bf16.msra.mxu0 %v14703_v42  ;;  %v5552_v56 = vpop.f32.mrb[108].mxu0  ;;  %v17494_v5 = vpop.f32.mrb[106].mxu1 }
 0xa03   :  { %v5553_v40 = vadd.f32 %v5552_v56, %v17418_v15  ;;  %v5554_v63 = vpop.f32.mrb[109].mxu0  ;;  %7670 = vmatprep.subr.bf16.mxu1 %v14708_v26  ;;  %7913 = vmatprep.subr.bf16.mxu0 %v14711_v11  ;;  %v17499_v13 = vpop.f32.mrb[107].mxu1  ;;  %v14715_v26 = vld [vmem:[%s18578_s25 + $0x398] ss:$24 sps:$4 sm:$0xff]  }
 0xa04   :  { %v5555_v50 = vadd.f32 %v5554_v63, %v17422_v30  ;;  %v5556_v9 = vpop.f32.mrb[110].mxu0  ;;  %7627 = vmatprep.mubr.bf16.mxu1 %v17490_v4  ;;  %7870 = vmatprep.mubr.bf16.mxu0 %v17490_v4  ;;  %v14720_v30 = vld [vmem:[%s18578_s25 + $0x3c4] ss:$24 sps:$4 sm:$0xff]  }
 0xa05   :  { %v5557_v0 = vadd.f32 %v5556_v9, %v17426_v18  ;;  %v5558_v15 = vpop.f32.mrb[111].mxu0  ;;  %7628 = vmatmul.mubr.bf16.gmra.mrb[140].mxu1 %v17488_v51  ;;  %7871 = vmatmul.mubr.bf16.gmra.mrb[144].mxu0 %v17488_v51  ;;  %v5765_v11 = vmax.f32 %v5553_v40, 0.0  ;;  %v14723_v18 = vld [vmem:[%s18578_s25 + $0x3cc] ss:$24 sps:$4 sm:$0xff]  }
 0xa06   :  { %v5559_v42 = vadd.f32 %v5558_v15, %v17430_v23  ;;  %7671 = vmatpush1.bf16.msra.mxu1 %v14706_v39  ;;  %7914 = vmatpush1.bf16.msra.mxu0 %v14709_v35  ;;  %v17511_v36 = vpop.f32.mrb[108].mxu1  ;;  %v5766_v9 = vmax.f32 %v5555_v50, 0.0  ;;  %v14718_v15 = vld [vmem:[%s18578_s25 + $0x3c0] ss:$24 sps:$4 sm:$0xff]   ;;  %v14726_v50 = vld [vmem:[%s18578_s25 + $0x3f4] ss:$24 sps:$4 sm:$0xff]  }
 0xa07   :  { %v5771_v56 = vmax.f32 %v5557_v0, 0.0  ;;  %7672 = vmatprep.subr.bf16.mxu1 %v14714_v58  ;;  %7915 = vmatprep.subr.bf16.mxu0 %v14717_v19  ;;  %v17514_v63 = vpop.f32.mrb[109].mxu1  ;;  %v14729_v0 = vld [vmem:[%s18578_s25 + $0x3fc] ss:$24 sps:$4 sm:$0xff]  }
 0xa08   :  { %v5772_v38 = vmax.f32 %v5559_v42, 0.0 }
 0xa09   :  { %v17516_v23 = vpack.c.bf16 %v5771_v56, %v5765_v11  ;;  %v14727_v56 = vld [vmem:[%s18578_s25 + $0x3f8] ss:$24 sps:$4 sm:$0xff]  }
 0xa0a   :  { %v17518_v35 = vpack.c.bf16 %v5772_v38, %v5766_v9  ;;  %7673 = vmatpush1.bf16.msra.mxu1 %v14712_v27  ;;  %7916 = vmatpush1.bf16.msra.mxu0 %v14715_v26  ;;  %v5562_v39 = vpop.f32.mrb[112].mxu0  ;;  %v17522_v40 = vpop.f32.mrb[110].mxu1 }
 0xa0b   :  { %v5563_v58 = vadd.f32 %v5562_v39, %v17434_v25  ;;  %v5564_v19 = vpop.f32.mrb[113].mxu0  ;;  %7674 = vmatprep.subr.bf16.mxu1 %v14720_v30  ;;  %7917 = vmatprep.subr.bf16.mxu0 %v14723_v18  ;;  %v17527_v42 = vpop.f32.mrb[111].mxu1  ;;  %v14724_v30 = vld [vmem:[%s18578_s25 + $0x3f0] ss:$24 sps:$4 sm:$0xff]   ;;  %v14732_v18 = vld [vmem:[%s18578_s25 + $0x424] ss:$24 sps:$4 sm:$0xff]  }
 0xa0c   :  { %v5565_v38 = vadd.f32 %v5564_v19, %v17438_v28  ;;  %v5566_v27 = vpop.f32.mrb[114].mxu0  ;;  %7637 = vmatprep.mubr.bf16.mxu1 %v17518_v35  ;;  %7880 = vmatprep.mubr.bf16.mxu0 %v17518_v35  ;;  %v14735_v19 = vld [vmem:[%s18578_s25 + $0x42c] ss:$24 sps:$4 sm:$0xff]  }
 0xa0d   :  { %v5567_v26 = vadd.f32 %v5566_v27, %v17442_v34  ;;  %v5568_v25 = vpop.f32.mrb[115].mxu0  ;;  %7638 = vmatmul.mubr.bf16.gmra.mrb[144].mxu1 %v17516_v23  ;;  %7881 = vmatmul.mubr.bf16.gmra.mrb[148].mxu0 %v17516_v23  ;;  %v5777_v9 = vmax.f32 %v5563_v58, 0.0  ;;  %v14730_v58 = vld [vmem:[%s18578_s25 + $0x420] ss:$24 sps:$4 sm:$0xff]  }
 0xa0e   :  { %v5569_v11 = vadd.f32 %v5568_v25, %v17446_v53  ;;  %7675 = vmatpush1.bf16.msra.mxu1 %v14718_v15  ;;  %7918 = vmatpush1.bf16.msra.mxu0 %v14721_v24  ;;  %v17538_v28 = vpop.f32.mrb[112].mxu1  ;;  %v5778_v27 = vmax.f32 %v5565_v38, 0.0 }
 0xa0f   :  { %v5783_v39 = vmax.f32 %v5567_v26, 0.0  ;;  %7676 = vmatprep.subr.bf16.mxu1 %v14726_v50  ;;  %7919 = vmatprep.subr.bf16.mxu0 %v14729_v0  ;;  %v17541_v34 = vpop.f32.mrb[113].mxu1  ;;  %v14733_v26 = vld [vmem:[%s18578_s25 + $0x428] ss:$24 sps:$4 sm:$0xff]  }
 0xa10   :  { %v5784_v22 = vmax.f32 %v5569_v11, 0.0  ;;  %v14738_v11 = vld [vmem:[%s18578_s25 + $0x454] ss:$24 sps:$4 sm:$0xff]  }
 0xa11   :  { %v17544_v53 = vpack.c.bf16 %v5783_v39, %v5777_v9  ;;  %v14741_v9 = vld [vmem:[%s18578_s25 + $0x45c] ss:$24 sps:$4 sm:$0xff]   ;;  %v14736_v39 = vld [vmem:[%s18578_s25 + $0x450] ss:$24 sps:$4 sm:$0xff]  }
 0xa12   :  { %v17546_v24 = vpack.c.bf16 %v5784_v22, %v5778_v27  ;;  %7677 = vmatpush1.bf16.msra.mxu1 %v14724_v30  ;;  %7920 = vmatpush1.bf16.msra.mxu0 %v14727_v56  ;;  %v5572_v15 = vpop.f32.mrb[116].mxu0  ;;  %v17548_v25 = vpop.f32.mrb[114].mxu1 }
 0xa13   :  { %v5573_v50 = vadd.f32 %v5572_v15, %v17450_v43  ;;  %v5574_v0 = vpop.f32.mrb[117].mxu0  ;;  %7678 = vmatprep.subr.bf16.mxu1 %v14732_v18  ;;  %7921 = vmatprep.subr.bf16.mxu0 %v14735_v19  ;;  %v17553_v38 = vpop.f32.mrb[115].mxu1  ;;  %v14739_v19 = vld [vmem:[%s18578_s25 + $0x458] ss:$24 sps:$4 sm:$0xff]  }
 0xa14   :  { %v5575_v22 = vadd.f32 %v5574_v0, %v17454_v47  ;;  %v5576_v30 = vpop.f32.mrb[118].mxu0  ;;  %7647 = vmatprep.mubr.bf16.mxu1 %v17546_v24  ;;  %7890 = vmatprep.mubr.bf16.mxu0 %v17546_v24 }
 0xa15   :  { %v5577_v56 = vpop.f32.mrb[119].mxu0  ;;  %7648 = vmatmul.mubr.bf16.gmra.mrb[148].mxu1 %v17544_v53  ;;  %7891 = vmatmul.mubr.bf16.gmra.mrb[152].mxu0 %v17544_v53  ;;  %v5789_v47 = vmax.f32 %v5573_v50, 0.0 }
 0xa16   :  { %v5790_v43 = vmax.f32 %v5575_v22, 0.0  ;;  %7679 = vmatpush1.bf16.msra.mxu1 %v14730_v58  ;;  %7922 = vmatpush1.bf16.msra.mxu0 %v14733_v26  ;;  %v5613_v18 = vpop.f32.mrb[116].mxu1  ;;  %v14744_v22 = vld [vmem:[%s18578_s25 + $0x484] ss:$24 sps:$4 sm:$0xff]  }
 0xa17   :  { %v5614_v27 = vadd.f32 %v5613_v18, %v17400_v7  ;;  %v5615_v15 = vpop.f32.mrb[117].mxu1  ;;  %7680 = vmatprep.subr.bf16.mxu1 %v14738_v11  ;;  %7923 = vmatprep.subr.bf16.mxu0 %v14741_v9  ;;  %v14747_v58 = vld [vmem:[%s18578_s25 + $0x48c] ss:$24 sps:$4 sm:$0xff]   ;;  %v14745_v18 = vld [vmem:[%s18578_s25 + $0x488] ss:$24 sps:$4 sm:$0xff]   ;;  %v17575_v9 = vpack.c.bf16 %v5789_v47, %v5789_v47 }
 0xa18   :  { %v17565_v0 = vpack.c.bf16 %v5790_v43, %v5790_v43  ;;  %v5616_v30 = vadd.f32 %v5615_v15, %v17402_v21  ;;  %v5617_v56 = vpop.f32.mrb[118].mxu1  ;;  %v14750_v11 = vld [vmem:[%s18578_s25 + $0x4b4] ss:$24 sps:$4 sm:$0xff]  }
 0xa19   :  { %v5618_v26 = vadd.f32 %v5617_v56, %v17404_v6  ;;  %v5619_v29 = vpop.f32.mrb[119].mxu1  ;;  %v5743_v43 = vmax.f32 %v5614_v27, 0.0  ;;  %v14753_v15 = vld [vmem:[%s18578_s25 + $0x4bc] ss:$24 sps:$4 sm:$0xff]   ;;  %v14748_v27 = vld [vmem:[%s18578_s25 + $0x4b0] ss:$24 sps:$4 sm:$0xff]  }
 0xa1a   :  { %v5620_v50 = vadd.f32 %v5619_v29, %v17406_v3  ;;  %7681 = vmatpush1.bf16.msra.mxu1 %v14736_v39  ;;  %7924 = vmatpush1.bf16.msra.mxu0 %v14739_v19  ;;  %v5694_v7 = vpop.f32.mrb[120].mxu0  ;;  %v5744_v56 = vmax.f32 %v5616_v30, 0.0 }
 0xa1b   :  { %v5749_v61 = vmax.f32 %v5618_v26, 0.0  ;;  %v5695_v21 = vadd.f32 %v5694_v7, %v17456_v48  ;;  %7657 = vmatprep.mubr.bf16.mxu1 %v17565_v0  ;;  %7900 = vmatprep.mubr.bf16.mxu0 %v17565_v0  ;;  %v5696_v6 = vpop.f32.mrb[121].mxu0 }
 0xa1c   :  { %v5750_v29 = vmax.f32 %v5620_v50, 0.0  ;;  %v5697_v3 = vadd.f32 %v5696_v6, %v17458_v55  ;;  %v5698_v39 = vpop.f32.mrb[122].mxu0  ;;  %7682 = vmatprep.subr.bf16.mxu1 %v14744_v22  ;;  %7925 = vmatprep.subr.bf16.mxu0 %v14747_v58  ;;  %v14751_v22 = vld [vmem:[%s18578_s25 + $0x4b8] ss:$24 sps:$4 sm:$0xff]   ;;  %v14756_v58 = vld [vmem:[%s18578_s25 + $0x4e4] ss:$24 sps:$4 sm:$0xff]  }
 0xa1d   :  { %v17582_v19 = vpack.c.bf16 %v5749_v61, %v5743_v43  ;;  %v5699_v48 = vadd.f32 %v5698_v39, %v17460_v2  ;;  %v5700_v47 = vpop.f32.mrb[123].mxu0  ;;  %7658 = vmatmul.mubr.bf16.gmra.mrb[152].mxu1 %v17575_v9  ;;  %7901 = vmatmul.mubr.bf16.gmra.mrb[156].mxu0 %v17575_v9  ;;  %v5745_v61 = vmax.f32 %v5695_v21, 0.0  ;;  %v14759_v43 = vld [vmem:[%s18578_s25 + $0x4ec] ss:$24 sps:$4 sm:$0xff]  }
 0xa1e   :  { %v17588_v30 = vpack.c.bf16 %v5750_v29, %v5744_v56  ;;  %v5701_v26 = vadd.f32 %v5700_v47, %v17462_v31  ;;  %7683 = vmatpush1.bf16.msra.mxu1 %v14742_v49  ;;  %7926 = vmatpush1.bf16.msra.mxu0 %v14745_v18  ;;  %v5623_v55 = vpop.f32.mrb[120].mxu1  ;;  %v5746_v6 = vmax.f32 %v5697_v3, 0.0  ;;  %v14762_v39 = vld [vmem:[%s18578_s25 + $0x514] ss:$24 sps:$4 sm:$0xff]  }
 0xa1f   :  { %v5751_v50 = vmax.f32 %v5699_v48, 0.0  ;;  %v5624_v2 = vadd.f32 %v5623_v55, %v17408_v62  ;;  %v5625_v7 = vpop.f32.mrb[121].mxu1  ;;  %7684 = vmatprep.subr.bf16.mxu1 %v14750_v11  ;;  %7927 = vmatprep.subr.bf16.mxu0 %v14753_v15  ;;  %v14754_v11 = vld [vmem:[%s18578_s25 + $0x4e0] ss:$24 sps:$4 sm:$0xff]  }
 0xa20   :  { %v5752_v56 = vmax.f32 %v5701_v26, 0.0  ;;  %v5626_v31 = vadd.f32 %v5625_v7, %v17410_v8  ;;  %v5627_v49 = vpop.f32.mrb[122].mxu1  ;;  %7698 = vmatprep.mubr.bf16.mxu1 %v17588_v30  ;;  %7941 = vmatprep.mubr.bf16.mxu0 %v17588_v30  ;;  %v14757_v8 = vld [vmem:[%s18578_s25 + $0x4e8] ss:$24 sps:$4 sm:$0xff]  }
 0xa21   :  { %v17598_v18 = vpack.c.bf16 %v5751_v50, %v5745_v61  ;;  %v5628_v21 = vadd.f32 %v5627_v49, %v17412_v59  ;;  %v5629_v62 = vpop.f32.mrb[123].mxu1  ;;  %v5755_v48 = vmax.f32 %v5624_v2, 0.0  ;;  %v14765_v59 = vld [vmem:[%s18578_s25 + $0x51c] ss:$24 sps:$4 sm:$0xff]  }
 0xa22   :  { %v17602_v15 = vpack.c.bf16 %v5752_v56, %v5746_v6  ;;  %v5630_v29 = vadd.f32 %v5629_v62, %v17414_v12  ;;  %7685 = vmatpush1.bf16.msra.mxu1 %v14748_v27  ;;  %7928 = vmatpush1.bf16.msra.mxu0 %v14751_v22  ;;  %v5704_v3 = vpop.f32.mrb[124].mxu0  ;;  %v5756_v61 = vmax.f32 %v5626_v31, 0.0  ;;  %v14760_v6 = vld [vmem:[%s18578_s25 + $0x510] ss:$24 sps:$4 sm:$0xff]   ;;  %v14768_v31 = vld [vmem:[%s18578_s25 + $0x544] ss:$24 sps:$4 sm:$0xff]  }
 0xa23   :  { %v5761_v47 = vmax.f32 %v5628_v21, 0.0  ;;  %v5705_v26 = vadd.f32 %v5704_v3, %v17470_v52  ;;  %v5706_v55 = vpop.f32.mrb[125].mxu0  ;;  %7686 = vmatprep.subr.bf16.mxu1 %v14756_v58  ;;  %7929 = vmatprep.subr.bf16.mxu0 %v14759_v43  ;;  %v14763_v43 = vld [vmem:[%s18578_s25 + $0x518] ss:$24 sps:$4 sm:$0xff]  }
 0xa24   :  { %v5762_v50 = vmax.f32 %v5630_v29, 0.0  ;;  %v5707_v12 = vadd.f32 %v5706_v55, %v17474_v37  ;;  %v5708_v27 = vpop.f32.mrb[126].mxu0 }
 0xa25   :  { %v17610_v22 = vpack.c.bf16 %v5761_v47, %v5755_v48  ;;  %v5709_v7 = vadd.f32 %v5708_v27, %v17483_v10  ;;  %v5710_v2 = vpop.f32.mrb[127].mxu0  ;;  %v5757_v49 = vmax.f32 %v5705_v26, 0.0  ;;  %v14771_v10 = vld [vmem:[%s18578_s25 + $0x54c] ss:$24 sps:$4 sm:$0xff]   ;;  %v14766_v26 = vld [vmem:[%s18578_s25 + $0x540] ss:$24 sps:$4 sm:$0xff]  }
 0xa26   :  { %v17614_v56 = vpack.c.bf16 %v5762_v50, %v5756_v61  ;;  %v5711_v52 = vadd.f32 %v5710_v2, %v17486_v45  ;;  %7687 = vmatpush1.bf16.msra.mxu1 %v14754_v11  ;;  %7930 = vmatpush1.bf16.msra.mxu0 %v14757_v8  ;;  %v5633_v58 = vpop.f32.mrb[124].mxu1  ;;  %v5758_v29 = vmax.f32 %v5707_v12, 0.0  ;;  %v14774_v61 = vld [vmem:[%s18578_s25 + $0x574] ss:$24 sps:$4 sm:$0xff]  }
 0xa27   :  { %v5763_v37 = vmax.f32 %v5709_v7, 0.0  ;;  %v5634_v21 = vadd.f32 %v5633_v58, %v17416_v14  ;;  %v5635_v62 = vpop.f32.mrb[125].mxu1  ;;  %7688 = vmatprep.subr.bf16.mxu1 %v14762_v39  ;;  %7931 = vmatprep.subr.bf16.mxu0 %v14765_v59  ;;  %v14769_v59 = vld [vmem:[%s18578_s25 + $0x548] ss:$24 sps:$4 sm:$0xff]  }
 0xa28   :  { %v5764_v3 = vmax.f32 %v5711_v52, 0.0  ;;  %v5636_v45 = vadd.f32 %v5635_v62, %v17420_v16  ;;  %v5637_v11 = vpop.f32.mrb[126].mxu1  ;;  %v14780_v62 = vld [vmem:[%s18578_s25 + $0x5a4] ss:$24 sps:$4 sm:$0xff]  }
 0xa29   :  { %v17622_v8 = vpack.c.bf16 %v5763_v37, %v5757_v49  ;;  %v5638_v48 = vadd.f32 %v5637_v11, %v17424_v17  ;;  %v5639_v47 = vpop.f32.mrb[127].mxu1  ;;  %v5767_v50 = vmax.f32 %v5634_v21, 0.0  ;;  %v14777_v17 = vld [vmem:[%s18578_s25 + $0x57c] ss:$24 sps:$4 sm:$0xff]   ;;  %v14772_v49 = vld [vmem:[%s18578_s25 + $0x570] ss:$24 sps:$4 sm:$0xff]  }
 0xa2a   :  { %v17626_v55 = vpack.c.bf16 %v5764_v3, %v5758_v29  ;;  %v5640_v14 = vadd.f32 %v5639_v47, %v17428_v20  ;;  %7689 = vmatpush1.bf16.msra.mxu1 %v14760_v6  ;;  %7932 = vmatpush1.bf16.msra.mxu0 %v14763_v43  ;;  %v5714_v39 = vpop.f32.mrb[128].mxu0  ;;  %v5768_v7 = vmax.f32 %v5636_v45, 0.0  ;;  %v14775_v21 = vld [vmem:[%s18578_s25 + $0x578] ss:$24 sps:$4 sm:$0xff]  }
 0xa2b   :  { %v5773_v16 = vmax.f32 %v5638_v48, 0.0  ;;  %v5715_v12 = vadd.f32 %v5714_v39, %v17494_v5  ;;  %v5716_v27 = vpop.f32.mrb[129].mxu0  ;;  %7690 = vmatprep.subr.bf16.mxu1 %v14768_v31  ;;  %7933 = vmatprep.subr.bf16.mxu0 %v14771_v10  ;;  %v14778_v39 = vld [vmem:[%s18578_s25 + $0x5a0] ss:$24 sps:$4 sm:$0xff]  }
 0xa2c   :  { %v5774_v2 = vmax.f32 %v5640_v14, 0.0  ;;  %v5717_v20 = vadd.f32 %v5716_v27, %v17499_v13  ;;  %v5718_v6 = vpop.f32.mrb[130].mxu0 }
 0xa2d   :  { %v17634_v52 = vpack.c.bf16 %v5773_v16, %v5767_v50  ;;  %v5719_v58 = vadd.f32 %v5718_v6, %v17511_v36  ;;  %v5720_v43 = vpop.f32.mrb[131].mxu0  ;;  %v5769_v10 = vmax.f32 %v5715_v12, 0.0  ;;  %v14783_v36 = vld [vmem:[%s18578_s25 + $0x5ac] ss:$24 sps:$4 sm:$0xff]   ;;  %v14781_v50 = vld [vmem:[%s18578_s25 + $0x5a8] ss:$24 sps:$4 sm:$0xff]  }
 0xa2e   :  { %v17638_v37 = vpack.c.bf16 %v5774_v2, %v5768_v7  ;;  %v5721_v5 = vadd.f32 %v5720_v43, %v17514_v63  ;;  %7691 = vmatpush1.bf16.msra.mxu1 %v14766_v26  ;;  %7934 = vmatpush1.bf16.msra.mxu0 %v14769_v59  ;;  %v5643_v31 = vpop.f32.mrb[128].mxu1  ;;  %v5770_v45 = vmax.f32 %v5717_v20, 0.0  ;;  %v14786_v16 = vld [vmem:[%s18578_s25 + $0x5d4] ss:$24 sps:$4 sm:$0xff]  }
 0xa2f   :  { %v5775_v13 = vmax.f32 %v5719_v58, 0.0  ;;  %v5644_v29 = vadd.f32 %v5643_v31, %v17432_v33  ;;  %v5645_v3 = vpop.f32.mrb[129].mxu1  ;;  %7692 = vmatprep.subr.bf16.mxu1 %v14774_v61  ;;  %7935 = vmatprep.subr.bf16.mxu0 %v14777_v17 }
 0xa30   :  { %v5776_v11 = vmax.f32 %v5721_v5, 0.0  ;;  %v5646_v63 = vadd.f32 %v5645_v3, %v17436_v57  ;;  %v5647_v48 = vpop.f32.mrb[130].mxu1 }
 0xa31   :  { %v17646_v47 = vpack.c.bf16 %v5775_v13, %v5769_v10  ;;  %v5648_v26 = vadd.f32 %v5647_v48, %v17440_v32  ;;  %v5649_v14 = vpop.f32.mrb[131].mxu1  ;;  %v5779_v12 = vmax.f32 %v5644_v29, 0.0  ;;  %v14789_v32 = vld [vmem:[%s18578_s25 + $0x5dc] ss:$24 sps:$4 sm:$0xff]  }
 0xa32   :  { %v17650_v59 = vpack.c.bf16 %v5776_v11, %v5770_v45  ;;  %v5650_v33 = vadd.f32 %v5649_v14, %v17444_v41  ;;  %7693 = vmatpush1.bf16.msra.mxu1 %v14772_v49  ;;  %7936 = vmatpush1.bf16.msra.mxu0 %v14775_v21  ;;  %v5724_v61 = vpop.f32.mrb[132].mxu0  ;;  %v5780_v7 = vmax.f32 %v5646_v63, 0.0  ;;  %v14784_v49 = vld [vmem:[%s18578_s25 + $0x5d0] ss:$24 sps:$4 sm:$0xff]  }
 0xa33   :  { %v5785_v57 = vmax.f32 %v5648_v26, 0.0  ;;  %v5725_v27 = vadd.f32 %v5724_v61, %v17522_v40  ;;  %v5726_v17 = vpop.f32.mrb[133].mxu0  ;;  %7694 = vmatprep.subr.bf16.mxu1 %v14780_v62  ;;  %7937 = vmatprep.subr.bf16.mxu0 %v14783_v36  ;;  %v14787_v21 = vld [vmem:[%s18578_s25 + $0x5d8] ss:$24 sps:$4 sm:$0xff]   ;;  %v14792_v62 = vld [vmem:[%s18578_s25 + $0x604] ss:$24 sps:$4 sm:$0xff]  }
 0xa34   :  { %v5786_v2 = vmax.f32 %v5650_v33, 0.0  ;;  %v5727_v41 = vadd.f32 %v5726_v17, %v17527_v42  ;;  %v5728_v20 = vpop.f32.mrb[134].mxu0  ;;  %v14790_v26 = vld [vmem:[%s18578_s25 + $0x600] ss:$24 sps:$4 sm:$0xff]  }
 0xa35   :  { %v17658_v6 = vpack.c.bf16 %v5785_v57, %v5779_v12  ;;  %v5729_v58 = vadd.f32 %v5728_v20, %v17538_v28  ;;  %v5730_v43 = vpop.f32.mrb[135].mxu0  ;;  %v5781_v10 = vmax.f32 %v5725_v27, 0.0  ;;  %v14795_v28 = vld [vmem:[%s18578_s25 + $0x60c] ss:$24 sps:$4 sm:$0xff]   ;;  %v14796_v12 = vld [vmem:[%s18578_s25 + $0x630] ss:$24 sps:$4 sm:$0xff]  }
 0xa36   :  { %v17662_v5 = vpack.c.bf16 %v5786_v2, %v5780_v7  ;;  %v5731_v40 = vadd.f32 %v5730_v43, %v17541_v34  ;;  %7695 = vmatpush1.bf16.msra.mxu1 %v14778_v39  ;;  %7938 = vmatpush1.bf16.msra.mxu0 %v14781_v50  ;;  %v5653_v31 = vpop.f32.mrb[132].mxu1  ;;  %v5782_v3 = vmax.f32 %v5727_v41, 0.0  ;;  %v14798_v50 = vld [vmem:[%s18578_s25 + $0x634] ss:$24 sps:$4 sm:$0xff]   ;;  %v14804_v57 = vld [vmem:[%s18578_s25 + $0x664] ss:$24 sps:$4 sm:$0xff]  }
 0xa37   :  { %v5787_v13 = vmax.f32 %v5729_v58, 0.0  ;;  %v17668_v42 = vadd.f32 %v5653_v31, %v17448_v54  ;;  %v5655_v29 = vpop.f32.mrb[133].mxu1  ;;  %7696 = vmatprep.subr.bf16.mxu1 %v14786_v16  ;;  %7939 = vmatprep.subr.bf16.mxu0 %v14789_v32  ;;  %v14801_v16 = vld [vmem:[%s18578_s25 + $0x63c] ss:$24 sps:$4 sm:$0xff]   ;;  %v14807_v27 = vld [vmem:[%s18578_s25 + $0x66c] ss:$24 sps:$4 sm:$0xff]  }
 0xa38   :  { %v5788_v36 = vmax.f32 %v5731_v40, 0.0  ;;  %v17672_v34 = vadd.f32 %v5655_v29, %v17452_v44  ;;  %v5657_v45 = vpop.f32.mrb[134].mxu1  ;;  %v14793_v44 = vld [vmem:[%s18578_s25 + $0x608] ss:$24 sps:$4 sm:$0xff]   ;;  %v14810_v7 = vld [vmem:[%s18578_s25 + $0x694] ss:$24 sps:$4 sm:$0xff]  }
 0xa39   :  { %v17674_v11 = vpack.c.bf16 %v5787_v13, %v5781_v10  ;;  %v5658_v63 = vpop.f32.mrb[135].mxu1  ;;  %v14802_v17 = vld [vmem:[%s18578_s25 + $0x660] ss:$24 sps:$4 sm:$0xff]   ;;  %v14813_v2 = vld [vmem:[%s18578_s25 + $0x69c] ss:$24 sps:$4 sm:$0xff]  }
 0xa3a   :  { %v17676_v48 = vpack.c.bf16 %v5788_v36, %v5782_v3  ;;  %7697 = vmatpush1.bf16.msra.mxu1 %v14784_v49  ;;  %7940 = vmatpush1.bf16.msra.mxu0 %v14787_v21  ;;  %v5734_v54 = vpop.f32.mrb[136].mxu0  ;;  %v14805_v32 = vld [vmem:[%s18578_s25 + $0x668] ss:$24 sps:$4 sm:$0xff]   ;;  %v14811_v20 = vld [vmem:[%s18578_s25 + $0x698] ss:$24 sps:$4 sm:$0xff]   ;;  %v5792_v29 = vmax.f32 %v17672_v34, 0.0 }
 0xa3b   :  { %v17680_v14 = vadd.f32 %v5734_v54, %v17548_v25  ;;  %v5736_v39 = vpop.f32.mrb[137].mxu0  ;;  %7747 = vmatprep.subr.bf16.mxu1 %v14792_v62  ;;  %7990 = vmatprep.subr.bf16.mxu0 %v14795_v28  ;;  %v14808_v41 = vld [vmem:[%s18578_s25 + $0x690] ss:$24 sps:$4 sm:$0xff]   ;;  %v14816_v58 = vld [vmem:[%s18578_s25 + $0x6c4] ss:$24 sps:$4 sm:$0xff]  }
 0xa3c   :  { %v17684_v33 = vadd.f32 %v5736_v39, %v17553_v38  ;;  %v5738_v61 = vpop.f32.mrb[138].mxu0  ;;  %v14799_v38 = vld [vmem:[%s18578_s25 + $0x638] ss:$24 sps:$4 sm:$0xff]   ;;  %v14819_v43 = vld [vmem:[%s18578_s25 + $0x6cc] ss:$24 sps:$4 sm:$0xff]   ;;  %v17723_v45 = vpack.c.bf16 %v5792_v29, %v5792_v29 }
 0xa3d   :  { %7699 = vmatmul.mubr.bf16.vlgmr.msra.gmra.mrb[136].mxu1 %v17582_v19  ;;  %7942 = vmatmul.mubr.bf16.vlgmr.msra.gmra.mrb[140].mxu0 %v17582_v19  ;;  %v5739_v25 = vpop.f32.mrb[139].mxu0  ;;  %v14814_v49 = vld [vmem:[%s18578_s25 + $0x6c0] ss:$24 sps:$4 sm:$0xff]   ;;  %v14822_v31 = vld [vmem:[%s18578_s25 + $0x6f4] ss:$24 sps:$4 sm:$0xff]  }
 0xa3e   :  { %7708 = vmatprep.mubr.bf16.mxu1 %v17614_v56  ;;  %7748 = vmatpush1.bf16.msra.mxu1 %v14790_v26  ;;  %v14817_v40 = vld [vmem:[%s18578_s25 + $0x6c8] ss:$24 sps:$4 sm:$0xff]   ;;  %v14825_v21 = vld [vmem:[%s18578_s25 + $0x6fc] ss:$24 sps:$4 sm:$0xff]   ;;  %v14823_v10 = vld [vmem:[%s18578_s25 + $0x6f8] ss:$24 sps:$4 sm:$0xff]  }
 0xa3f   :  { %7951 = vmatprep.mubr.bf16.mxu0 %v17614_v56  ;;  %7991 = vmatpush1.bf16.msra.mxu0 %v14793_v44  ;;  %v14820_v62 = vld [vmem:[%s18578_s25 + $0x6f0] ss:$24 sps:$4 sm:$0xff]   ;;  %v14828_v13 = vld [vmem:[%s18578_s25 + $0x724] ss:$24 sps:$4 sm:$0xff]   ;;  %v14826_v3 = vld [vmem:[%s18578_s25 + $0x720] ss:$24 sps:$4 sm:$0xff]  }
 0xa40   :  { %7749 = vmatprep.subr.bf16.mxu1 %v14798_v50  ;;  %7992 = vmatprep.subr.bf16.mxu0 %v14801_v16  ;;  %v14831_v28 = vld [vmem:[%s18578_s25 + $0x72c] ss:$24 sps:$4 sm:$0xff]   ;;  %v14829_v36 = vld [vmem:[%s18578_s25 + $0x728] ss:$24 sps:$4 sm:$0xff]   ;;  %v14837_v54 = vld [vmem:[%s18578_s25 + $0x75c] ss:$24 sps:$4 sm:$0xff]  }
 0xa41   :  { %v14834_v63 = vld [vmem:[%s18578_s25 + $0x754] ss:$24 sps:$4 sm:$0xff]   ;;  %v14832_v34 = vld [vmem:[%s18578_s25 + $0x750] ss:$24 sps:$4 sm:$0xff]   ;;  %v5791_v26 = vmax.f32 %v17668_v42, 0.0 }
 0xa42   :  { %7750 = vmatpush1.bf16.msra.mxu1 %v14796_v12  ;;  %v14835_v39 = vld [vmem:[%s18578_s25 + $0x758] ss:$24 sps:$4 sm:$0xff]   ;;  %v14840_v44 = vld [vmem:[%s18578_s25 + $0x784] ss:$24 sps:$4 sm:$0xff]   ;;  %v14841_v42 = vld [vmem:[%s18578_s25 + $0x788] ss:$24 sps:$4 sm:$0xff]  }
 0xa43   :  { %7993 = vmatpush1.bf16.msra.mxu0 %v14799_v38  ;;  %7751 = vmatprep.subr.bf16.mxu1 %v14804_v57  ;;  %v14843_v61 = vld [vmem:[%s18578_s25 + $0x78c] ss:$24 sps:$4 sm:$0xff]   ;;  %v14838_v50 = vld [vmem:[%s18578_s25 + $0x780] ss:$24 sps:$4 sm:$0xff]   ;;  %v17737_v16 = vpack.c.bf16 %v5791_v26, %v5791_v26  ;;  %v14849_v12 = vld [vmem:[%s18578_s25 + $0x7bc] ss:$24 sps:$4 sm:$0xff]  }
 0xa44   :  { %7994 = vmatprep.subr.bf16.mxu0 %v14807_v27  ;;  %v14846_v25 = vld [vmem:[%s18578_s25 + $0x7b4] ss:$24 sps:$4 sm:$0xff]   ;;  %v14844_v38 = vld [vmem:[%s18578_s25 + $0x7b0] ss:$24 sps:$4 sm:$0xff]   ;;  %v14852_v27 = vld [vmem:[%s18578_s25 + $0x7e4] ss:$24 sps:$4 sm:$0xff]  }
 0xa45   :  { %7709 = vmatmul.mubr.bf16.gmra.mrb[140].mxu1 %v17610_v22  ;;  %7952 = vmatmul.mubr.bf16.gmra.mrb[144].mxu0 %v17610_v22  ;;  %v14847_v57 = vld [vmem:[%s18578_s25 + $0x7b8] ss:$24 sps:$4 sm:$0xff]   ;;  %v14876_v29 = vld [vmem:[%s18578_s25 + $0x8a4] ss:$24 sps:$4 sm:$0xff]  }
 0xa46   :  { %7718 = vmatprep.mubr.bf16.mxu1 %v17638_v37  ;;  %7752 = vmatpush1.bf16.msra.mxu1 %v14802_v17  ;;  %v14855_v17 = vld [vmem:[%s18578_s25 + $0x7ec] ss:$24 sps:$4 sm:$0xff]   ;;  %v14883_v26 = vld [vmem:[%s18578_s25 + $0x8d8] ss:$24 sps:$4 sm:$0xff]  }
 0xa47   :  { %7961 = vmatprep.mubr.bf16.mxu0 %v17638_v37  ;;  %7995 = vmatpush1.bf16.msra.mxu0 %v14805_v32  ;;  %v14850_v32 = vld [vmem:[%s18578_s25 + $0x7e0] ss:$24 sps:$4 sm:$0xff]  }
 0xa48   :  { %7753 = vmatprep.subr.bf16.mxu1 %v14810_v7  ;;  %7996 = vmatprep.subr.bf16.mxu0 %v14813_v2  ;;  %v14853_v7 = vld [vmem:[%s18578_s25 + $0x7e8] ss:$24 sps:$4 sm:$0xff]   ;;  %v14858_v2 = vld [vmem:[%s18578_s25 + $0x814] ss:$24 sps:$4 sm:$0xff]  }
 0xa4a   :  { %7754 = vmatpush1.bf16.msra.mxu1 %v14808_v41  ;;  %v14861_v41 = vld [vmem:[%s18578_s25 + $0x81c] ss:$24 sps:$4 sm:$0xff]  }
 0xa4b   :  { %7997 = vmatpush1.bf16.msra.mxu0 %v14811_v20  ;;  %7755 = vmatprep.subr.bf16.mxu1 %v14816_v58  ;;  %v14856_v20 = vld [vmem:[%s18578_s25 + $0x810] ss:$24 sps:$4 sm:$0xff]  }
 0xa4c   :  { %7998 = vmatprep.subr.bf16.mxu0 %v14819_v43  ;;  %v14859_v58 = vld [vmem:[%s18578_s25 + $0x818] ss:$24 sps:$4 sm:$0xff]   ;;  %v14864_v43 = vld [vmem:[%s18578_s25 + $0x844] ss:$24 sps:$4 sm:$0xff]  }
 0xa4d   :  { %7719 = vmatmul.mubr.bf16.gmra.mrb[144].mxu1 %v17634_v52  ;;  %7962 = vmatmul.mubr.bf16.gmra.mrb[148].mxu0 %v17634_v52 }
 0xa4e   :  { %7728 = vmatprep.mubr.bf16.mxu1 %v17662_v5  ;;  %7756 = vmatpush1.bf16.msra.mxu1 %v14814_v49  ;;  %v14867_v49 = vld [vmem:[%s18578_s25 + $0x84c] ss:$24 sps:$4 sm:$0xff]  }
 0xa4f   :  { %7971 = vmatprep.mubr.bf16.mxu0 %v17662_v5  ;;  %7999 = vmatpush1.bf16.msra.mxu0 %v14817_v40  ;;  %v14862_v40 = vld [vmem:[%s18578_s25 + $0x840] ss:$24 sps:$4 sm:$0xff]  }
 0xa50   :  { %7757 = vmatprep.subr.bf16.mxu1 %v14822_v31  ;;  %8000 = vmatprep.subr.bf16.mxu0 %v14825_v21  ;;  %v14865_v31 = vld [vmem:[%s18578_s25 + $0x848] ss:$24 sps:$4 sm:$0xff]   ;;  %v14870_v21 = vld [vmem:[%s18578_s25 + $0x874] ss:$24 sps:$4 sm:$0xff]  }
 0xa52   :  { %7758 = vmatpush1.bf16.msra.mxu1 %v14820_v62  ;;  %v14873_v62 = vld [vmem:[%s18578_s25 + $0x87c] ss:$24 sps:$4 sm:$0xff]  }
 0xa53   :  { %8001 = vmatpush1.bf16.msra.mxu0 %v14823_v10  ;;  %7759 = vmatprep.subr.bf16.mxu1 %v14828_v13  ;;  %v14868_v10 = vld [vmem:[%s18578_s25 + $0x870] ss:$24 sps:$4 sm:$0xff]  }
 0xa54   :  { %8002 = vmatprep.subr.bf16.mxu0 %v14831_v28  ;;  %v14871_v13 = vld [vmem:[%s18578_s25 + $0x878] ss:$24 sps:$4 sm:$0xff]   ;;  %v14879_v28 = vld [vmem:[%s18578_s25 + $0x8ac] ss:$24 sps:$4 sm:$0xff]  }
 0xa55   :  { %7729 = vmatmul.mubr.bf16.gmra.mrb[148].mxu1 %v17658_v6  ;;  %7972 = vmatmul.mubr.bf16.gmra.mrb[152].mxu0 %v17658_v6 }
 0xa56   :  { %7738 = vmatprep.mubr.bf16.mxu1 %v17723_v45  ;;  %7760 = vmatpush1.bf16.msra.mxu1 %v14826_v3  ;;  %v14874_v3 = vld [vmem:[%s18578_s25 + $0x8a0] ss:$24 sps:$4 sm:$0xff]  }
 0xa57   :  { %7981 = vmatprep.mubr.bf16.mxu0 %v17723_v45  ;;  %8003 = vmatpush1.bf16.msra.mxu0 %v14829_v36  ;;  %v14877_v36 = vld [vmem:[%s18578_s25 + $0x8a8] ss:$24 sps:$4 sm:$0xff]  }
 0xa58   :  { %7761 = vmatprep.subr.bf16.mxu1 %v14834_v63  ;;  %8004 = vmatprep.subr.bf16.mxu0 %v14837_v54  ;;  %v14882_v63 = vld [vmem:[%s18578_s25 + $0x8d4] ss:$24 sps:$4 sm:$0xff]  }
 0xa59   :  { %v14885_v54 = vld [vmem:[%s18578_s25 + $0x8dc] ss:$24 sps:$4 sm:$0xff]  }
 0xa5a   :  { %7762 = vmatpush1.bf16.msra.mxu1 %v14832_v34  ;;  %v14880_v34 = vld [vmem:[%s18578_s25 + $0x8d0] ss:$24 sps:$4 sm:$0xff]  }
 0xa5b   :  { %8005 = vmatpush1.bf16.msra.mxu0 %v14835_v39  ;;  %7763 = vmatprep.subr.bf16.mxu1 %v14840_v44  ;;  %v14888_v39 = vld [vmem:[%s18578_s25 + $0x14] ss:$24 sps:$4 sm:$0xff]   ;;  %v14886_v44 = vld [vmem:[%s18578_s25 + $0x10] ss:$24 sps:$4 sm:$0xff]  }
 0xa5c   :  { %8006 = vmatprep.subr.bf16.mxu0 %v14843_v61  ;;  %v14891_v61 = vld [vmem:[%s18578_s25 + $0x44] ss:$24 sps:$4 sm:$0xff]  }
 0xa5d   :  { %7739 = vmatmul.mubr.bf16.gmra.mrb[152].mxu1 %v17737_v16  ;;  %7982 = vmatmul.mubr.bf16.gmra.mrb[156].mxu0 %v17737_v16 }
 0xa5e   :  { %7764 = vmatpush1.bf16.msra.mxu1 %v14838_v50  ;;  %7779 = vmatprep.mubr.bf16.mxu1 %v17602_v15  ;;  %v14889_v50 = vld [vmem:[%s18578_s25 + $0x40] ss:$24 sps:$4 sm:$0xff]  }
 0xa5f   :  { %8007 = vmatpush1.bf16.msra.mxu0 %v14841_v42  ;;  %8022 = vmatprep.mubr.bf16.mxu0 %v17602_v15  ;;  %v14894_v42 = vld [vmem:[%s18578_s25 + $0x74] ss:$24 sps:$4 sm:$0xff]  }
 0xa60   :  { %7765 = vmatprep.subr.bf16.mxu1 %v14846_v25  ;;  %8008 = vmatprep.subr.bf16.mxu0 %v14849_v12  ;;  %v14892_v25 = vld [vmem:[%s18578_s25 + $0x70] ss:$24 sps:$4 sm:$0xff]   ;;  %v14897_v12 = vld [vmem:[%s18578_s25 + $0xa4] ss:$24 sps:$4 sm:$0xff]  }
 0xa62   :  { %7766 = vmatpush1.bf16.msra.mxu1 %v14844_v38  ;;  %v14895_v38 = vld [vmem:[%s18578_s25 + $0xa0] ss:$24 sps:$4 sm:$0xff]  }
 0xa63   :  { %8009 = vmatpush1.bf16.msra.mxu0 %v14847_v57  ;;  %7767 = vmatprep.subr.bf16.mxu1 %v14852_v27  ;;  %v14900_v57 = vld [vmem:[%s18578_s25 + $0xd4] ss:$24 sps:$4 sm:$0xff]   ;;  %v14898_v27 = vld [vmem:[%s18578_s25 + $0xd0] ss:$24 sps:$4 sm:$0xff]  }
 0xa64   :  { %8010 = vmatprep.subr.bf16.mxu0 %v14855_v17  ;;  %v14903_v17 = vld [vmem:[%s18578_s25 + $0x104] ss:$24 sps:$4 sm:$0xff]  }
 0xa66   :  { %7768 = vmatpush1.bf16.msra.mxu1 %v14850_v32  ;;  %v14901_v32 = vld [vmem:[%s18578_s25 + $0x100] ss:$24 sps:$4 sm:$0xff]  }
 0xa67   :  { %8011 = vmatpush1.bf16.msra.mxu0 %v14853_v7  ;;  %7769 = vmatprep.subr.bf16.mxu1 %v14858_v2  ;;  %v5794_v7 = vmax.f32 %v17684_v33, 0.0  ;;  %v14906_v2 = vld [vmem:[%s18578_s25 + $0x134] ss:$24 sps:$4 sm:$0xff]   ;;  %v5793_v33 = vmax.f32 %v17680_v14, 0.0  ;;  %v14913_v14 = vld [vmem:[%s18578_s25 + $0x1c0] ss:$24 sps:$4 sm:$0xff]  }
 0xa68   :  { %8012 = vmatprep.subr.bf16.mxu0 %v14861_v41  ;;  %v14904_v41 = vld [vmem:[%s18578_s25 + $0x130] ss:$24 sps:$4 sm:$0xff]  }
 0xa6a   :  { %7770 = vmatpush1.bf16.msra.mxu1 %v14856_v20  ;;  %v17799_v20 = vpack.c.bf16 %v5794_v7, %v5794_v7  ;;  %v15036_v7 = vld [vmem:[%s18580_s11 + $0x58] sm:$0xff]  }
 0xa6b   :  { %8013 = vmatpush1.bf16.msra.mxu0 %v14859_v58  ;;  %7771 = vmatprep.subr.bf16.mxu1 %v14864_v43  ;;  %v14909_v58 = vld [vmem:[%s18578_s25 + $0x164] ss:$24 sps:$4 sm:$0xff]   ;;  %v14907_v43 = vld [vmem:[%s18578_s25 + $0x160] ss:$24 sps:$4 sm:$0xff]  }
 0xa6c   :  { %8014 = vmatprep.subr.bf16.mxu0 %v14867_v49  ;;  %v14912_v49 = vld [vmem:[%s18578_s25 + $0x194] ss:$24 sps:$4 sm:$0xff]  }
 0xa6e   :  { %7772 = vmatpush1.bf16.msra.mxu1 %v14862_v40  ;;  %v17809_v40 = vpack.c.bf16 %v5793_v33, %v5793_v33  ;;  %v15039_v33 = vld [vmem:[%s18580_s11 + $0x20] sm:$0xff]  }
 0xa6f   :  { %8015 = vmatpush1.bf16.msra.mxu0 %v14865_v31  ;;  %7773 = vmatprep.subr.bf16.mxu1 %v14870_v21  ;;  %v14910_v31 = vld [vmem:[%s18578_s25 + $0x190] ss:$24 sps:$4 sm:$0xff]   ;;  %v14915_v21 = vld [vmem:[%s18578_s25 + $0x1c4] ss:$24 sps:$4 sm:$0xff]  }
 0xa70   :  { %8016 = vmatprep.subr.bf16.mxu0 %v14873_v62  ;;  %v14918_v62 = vld [vmem:[%s18578_s25 + $0x1f4] ss:$24 sps:$4 sm:$0xff]  }
 0xa72   :  { %7774 = vmatpush1.bf16.msra.mxu1 %v14868_v10  ;;  %v14916_v10 = vld [vmem:[%s18578_s25 + $0x1f0] ss:$24 sps:$4 sm:$0xff]  }
 0xa73   :  { %8017 = vmatpush1.bf16.msra.mxu0 %v14871_v13  ;;  %7775 = vmatprep.subr.bf16.mxu1 %v14876_v29  ;;  %v14921_v13 = vld [vmem:[%s18578_s25 + $0x224] ss:$24 sps:$4 sm:$0xff]   ;;  %v14919_v29 = vld [vmem:[%s18578_s25 + $0x220] ss:$24 sps:$4 sm:$0xff]  }
 0xa74   :  { %8018 = vmatprep.subr.bf16.mxu0 %v14879_v28  ;;  %v14924_v28 = vld [vmem:[%s18578_s25 + $0x254] ss:$24 sps:$4 sm:$0xff]  }
 0xa76   :  { %7776 = vmatpush1.bf16.msra.mxu1 %v14874_v3  ;;  %v14927_v3 = vld [vmem:[%s18578_s25 + $0x284] ss:$24 sps:$4 sm:$0xff]  }
 0xa77   :  { %8019 = vmatpush1.bf16.msra.mxu0 %v14877_v36  ;;  %7777 = vmatprep.subr.bf16.mxu1 %v14882_v63  ;;  %v14925_v36 = vld [vmem:[%s18578_s25 + $0x280] ss:$24 sps:$4 sm:$0xff]   ;;  %v14930_v63 = vld [vmem:[%s18578_s25 + $0x2b4] ss:$24 sps:$4 sm:$0xff]  }
 0xa78   :  { %8020 = vmatprep.subr.bf16.mxu0 %v14885_v54  ;;  %v14928_v54 = vld [vmem:[%s18578_s25 + $0x2b0] ss:$24 sps:$4 sm:$0xff]  }
 0xa7a   :  { %7778 = vmatpush1.bf16.msra.mxu1 %v14880_v34  ;;  %v14933_v34 = vld [vmem:[%s18578_s25 + $0x2e4] ss:$24 sps:$4 sm:$0xff]  }
 0xa7b   :  { %8021 = vmatpush1.bf16.msra.mxu0 %v14883_v26  ;;  %8071 = vmatprep.subr.bf16.mxu1 %v14888_v39  ;;  %v14931_v26 = vld [vmem:[%s18578_s25 + $0x2e0] ss:$24 sps:$4 sm:$0xff]   ;;  %v14936_v39 = vld [vmem:[%s18578_s25 + $0x314] ss:$24 sps:$4 sm:$0xff]  }
 0xa7d   :  { %7780 = vmatmul.mubr.bf16.vlgmr.msra.gmra.mrb[136].mxu1 %v17598_v18 }
 0xa7e   :  { %8023 = vmatmul.mubr.bf16.vlgmr.msra.gmra.mrb[140].mxu0 %v17598_v18  ;;  %7789 = vmatprep.mubr.bf16.mxu1 %v17626_v55 }
 0xa7f   :  { %8032 = vmatprep.mubr.bf16.mxu0 %v17626_v55  ;;  %8072 = vmatpush1.bf16.msra.mxu1 %v14886_v44  ;;  %v14934_v44 = vld [vmem:[%s18578_s25 + $0x310] ss:$24 sps:$4 sm:$0xff]  }
 0xa80   :  { %8073 = vmatprep.subr.bf16.mxu1 %v14891_v61  ;;  %v15030_v61 = vld [vmem:[%s18580_s11 + $0x40] sm:$0xff]  }
 0xa81   :  { %13323 = vmatprep.subr.bf16.mxu0 %v15030_v61  ;;  %v14976_v61 = vld [vmem:[%s18578_s25 + $0x5b0] ss:$24 sps:$4 sm:$0xff]  }
 0xa83   :  { %8074 = vmatpush1.bf16.msra.mxu1 %v14889_v50  ;;  %v15031_v50 = vld [vmem:[%s18580_s11] sm:$0xff]  }
 0xa84   :  { %8075 = vmatprep.subr.bf16.mxu1 %v14894_v42  ;;  %v14939_v42 = vld [vmem:[%s18578_s25 + $0x344] ss:$24 sps:$4 sm:$0xff]   ;;  %13324 = vmatpush3.bf16.msra.mxu0 %v15031_v50 }
 0xa85   :  { %7790 = vmatmul.mubr.bf16.gmra.mrb[140].mxu1 %v17622_v8  ;;  %v14981_v50 = vld [vmem:[%s18578_s25 + $0x5e4] ss:$24 sps:$4 sm:$0xff]  }
 0xa86   :  { %8033 = vmatmul.mubr.bf16.gmra.mrb[144].mxu0 %v17622_v8  ;;  %7799 = vmatprep.mubr.bf16.mxu1 %v17650_v59 }
 0xa87   :  { %8042 = vmatprep.mubr.bf16.mxu0 %v17650_v59  ;;  %8076 = vmatpush1.bf16.msra.mxu1 %v14892_v25  ;;  %v14937_v25 = vld [vmem:[%s18578_s25 + $0x340] ss:$24 sps:$4 sm:$0xff]  }
 0xa88   :  { %8077 = vmatprep.subr.bf16.mxu1 %v14897_v12  ;;  %v15032_v12 = vld [vmem:[%s18580_s11 + $0x48] sm:$0xff]  }
 0xa89   :  { %13325 = vmatprep.subr.bf16.mxu0 %v15032_v12  ;;  %v14982_v12 = vld [vmem:[%s18578_s25 + $0x610] ss:$24 sps:$4 sm:$0xff]  }
 0xa8b   :  { %8078 = vmatpush1.bf16.msra.mxu1 %v14895_v38  ;;  %v15033_v38 = vld [vmem:[%s18580_s11 + $0x8] sm:$0xff]  }
 0xa8c   :  { %8079 = vmatprep.subr.bf16.mxu1 %v14900_v57  ;;  %v15034_v57 = vld [vmem:[%s18580_s11 + $0x50] sm:$0xff]   ;;  %13326 = vmatpush3.bf16.msra.mxu0 %v15033_v38  ;;  %v14987_v38 = vld [vmem:[%s18578_s25 + $0x644] ss:$24 sps:$4 sm:$0xff]  }
 0xa8d   :  { %7800 = vmatmul.mubr.bf16.gmra.mrb[144].mxu1 %v17646_v47  ;;  %13327 = vmatprep.subr.bf16.mxu0 %v15034_v57  ;;  %v14985_v57 = vld [vmem:[%s18578_s25 + $0x640] ss:$24 sps:$4 sm:$0xff]  }
 0xa8e   :  { %8043 = vmatmul.mubr.bf16.gmra.mrb[148].mxu0 %v17646_v47  ;;  %7809 = vmatprep.mubr.bf16.mxu1 %v17676_v48 }
 0xa8f   :  { %8052 = vmatprep.mubr.bf16.mxu0 %v17676_v48  ;;  %8080 = vmatpush1.bf16.msra.mxu1 %v14898_v27  ;;  %v14942_v27 = vld [vmem:[%s18578_s25 + $0x374] ss:$24 sps:$4 sm:$0xff]  }
 0xa90   :  { %8081 = vmatprep.subr.bf16.mxu1 %v14903_v17  ;;  %v15035_v17 = vld [vmem:[%s18580_s11 + $0x10] sm:$0xff]  }
 0xa91   :  { %13328 = vmatpush3.bf16.msra.mxu0 %v15035_v17  ;;  %v14988_v17 = vld [vmem:[%s18578_s25 + $0x670] ss:$24 sps:$4 sm:$0xff]  }
 0xa92   :  { %13329 = vmatprep.subr.bf16.mxu0 %v15036_v7  ;;  %v15000_v7 = vld [vmem:[%s18578_s25 + $0x730] ss:$24 sps:$4 sm:$0xff]  }
 0xa93   :  { %8082 = vmatpush1.bf16.msra.mxu1 %v14901_v32  ;;  %v14943_v32 = vld [vmem:[%s18578_s25 + $0x3a0] ss:$24 sps:$4 sm:$0xff]  }
 0xa94   :  { %8083 = vmatprep.subr.bf16.mxu1 %v14906_v2  ;;  %v15037_v2 = vld [vmem:[%s18580_s11 + $0x18] sm:$0xff]  }
 0xa95   :  { %7810 = vmatmul.mubr.bf16.gmra.mrb[148].mxu1 %v17674_v11  ;;  %13330 = vmatpush3.bf16.msra.mxu0 %v15037_v2  ;;  %v15005_v2 = vld [vmem:[%s18578_s25 + $0x764] ss:$24 sps:$4 sm:$0xff]  }
 0xa96   :  { %8053 = vmatmul.mubr.bf16.gmra.mrb[152].mxu0 %v17674_v11  ;;  %7819 = vmatprep.mubr.bf16.mxu1 %v17799_v20 }
 0xa97   :  { %8062 = vmatprep.mubr.bf16.mxu0 %v17799_v20  ;;  %8084 = vmatpush1.bf16.msra.mxu1 %v14904_v41  ;;  %v15038_v41 = vld [vmem:[%s18580_s11 + $0x60] sm:$0xff]  }
 0xa98   :  { %8085 = vmatprep.subr.bf16.mxu1 %v14909_v58  ;;  %v14948_v58 = vld [vmem:[%s18578_s25 + $0x3d4] ss:$24 sps:$4 sm:$0xff]   ;;  %13331 = vmatprep.subr.bf16.mxu0 %v15038_v41  ;;  %v15006_v41 = vld [vmem:[%s18578_s25 + $0x790] ss:$24 sps:$4 sm:$0xff]  }
 0xa99   :  { %13332 = vmatpush3.bf16.msra.mxu0 %v15039_v33  ;;  %v15012_v33 = vld [vmem:[%s18578_s25 + $0x7f0] ss:$24 sps:$4 sm:$0xff]  }
 0xa9b   :  { %8086 = vmatpush1.bf16.msra.mxu1 %v14907_v43  ;;  %v14949_v43 = vld [vmem:[%s18578_s25 + $0x400] ss:$24 sps:$4 sm:$0xff]  }
 0xa9c   :  { %8087 = vmatprep.subr.bf16.mxu1 %v14912_v49  ;;  %v15040_v49 = vld [vmem:[%s18580_s11 + $0x68] sm:$0xff]  }
 0xa9d   :  { %7820 = vmatmul.mubr.bf16.gmra.mrb[152].mxu1 %v17809_v40  ;;  %13333 = vmatprep.subr.bf16.mxu0 %v15040_v49  ;;  %v15021_v49 = vld [vmem:[%s18578_s25 + $0x880] ss:$24 sps:$4 sm:$0xff]  }
 0xa9e   :  { %8063 = vmatmul.mubr.bf16.gmra.mrb[156].mxu0 %v17809_v40  ;;  %8103 = vmatprep.mubr.bf16.mxu1 %v17466_v1  ;;  %v14922_v1 = vld [vmem:[%s18578_s25 + $0x250] ss:$24 sps:$4 sm:$0xff]  }
 0xa9f   :  { %8088 = vmatpush1.bf16.msra.mxu1 %v14910_v31  ;;  %v14954_v31 = vld [vmem:[%s18578_s25 + $0x434] ss:$24 sps:$4 sm:$0xff]  }
 0xaa0   :  { %8089 = vmatprep.subr.bf16.mxu1 %v14915_v21  ;;  %v14952_v21 = vld [vmem:[%s18578_s25 + $0x430] ss:$24 sps:$4 sm:$0xff]  }
 0xaa3   :  { %8090 = vmatpush1.bf16.msra.mxu1 %v14913_v14  ;;  %v14957_v14 = vld [vmem:[%s18578_s25 + $0x464] ss:$24 sps:$4 sm:$0xff]  }
 0xaa4   :  { %8091 = vmatprep.subr.bf16.mxu1 %v14918_v62  ;;  %v14960_v62 = vld [vmem:[%s18578_s25 + $0x494] ss:$24 sps:$4 sm:$0xff]  }
 0xaa7   :  { %8092 = vmatpush1.bf16.msra.mxu1 %v14916_v10  ;;  %v15042_v10 = vld [vmem:[%s18580_s11 + $0x70] sm:$0xff]  }
 0xaa8   :  { %8093 = vmatprep.subr.bf16.mxu1 %v14921_v13  ;;  %v15043_v13 = vld [vmem:[%s18580_s11 + $0x30] sm:$0xff]  }
 0xaab   :  { %8094 = vmatpush1.bf16.msra.mxu1 %v14919_v29  ;;  %v15044_v29 = vld [vmem:[%s18580_s11 + $0x78] sm:$0xff]  }
 0xaac   :  { %8095 = vmatprep.subr.bf16.mxu1 %v14924_v28  ;;  %v14958_v28 = vld [vmem:[%s18578_s25 + $0x490] ss:$24 sps:$4 sm:$0xff]  }
 0xaaf   :  { %8096 = vmatpush1.bf16.msra.mxu1 %v14922_v1  ;;  %v15045_v1 = vld [vmem:[%s18580_s11 + $0x38] sm:$0xff]  }
 0xab0   :  { %8097 = vmatprep.subr.bf16.mxu1 %v14927_v3  ;;  %v14966_v3 = vld [vmem:[%s18578_s25 + $0x4f4] ss:$24 sps:$4 sm:$0xff]  }
 0xab3   :  { %8098 = vmatpush1.bf16.msra.mxu1 %v14925_v36  ;;  %v14964_v36 = vld [vmem:[%s18578_s25 + $0x4f0] ss:$24 sps:$4 sm:$0xff]  }
 0xab4   :  { %8099 = vmatprep.subr.bf16.mxu1 %v14930_v63  ;;  %v14969_v63 = vld [vmem:[%s18578_s25 + $0x524] ss:$24 sps:$4 sm:$0xff]  }
 0xab7   :  { %8100 = vmatpush1.bf16.msra.mxu1 %v14928_v54  ;;  %v14967_v54 = vld [vmem:[%s18578_s25 + $0x520] ss:$24 sps:$4 sm:$0xff]  }
 0xab8   :  { %8101 = vmatprep.subr.bf16.mxu1 %v14933_v34  ;;  %v15046_v34 = vld [vmem:[%s18580_s11 + $0xc0] sm:$0xff]  }
 0xabb   :  { %8102 = vmatpush1.bf16.msra.mxu1 %v14931_v26  ;;  %v14975_v26 = vld [vmem:[%s18578_s25 + $0x584] ss:$24 sps:$4 sm:$0xff]  }
 0xabc   :  { %8152 = vmatprep.subr.bf16.mxu1 %v14936_v39  ;;  %v14973_v39 = vld [vmem:[%s18578_s25 + $0x580] ss:$24 sps:$4 sm:$0xff]  }
 0xabe   :  { %8104 = vmatmul.mubr.bf16.vlgmr.msra.gmra.mrb[156].mxu1 %v17464_v60  ;;  %v14940_v60 = vld [vmem:[%s18578_s25 + $0x370] ss:$24 sps:$4 sm:$0xff]  }
 0xabf   :  { %8113 = vmatprep.mubr.bf16.mxu1 %v17490_v4  ;;  %8153 = vmatpush1.bf16.msra.mxu1 %v14934_v44  ;;  %v14945_v4 = vld [vmem:[%s18578_s25 + $0x3a4] ss:$24 sps:$4 sm:$0xff]   ;;  %v14978_v44 = vld [vmem:[%s18578_s25 + $0x5b4] ss:$24 sps:$4 sm:$0xff]  }
 0xac0   :  { %8154 = vmatprep.subr.bf16.mxu1 %v14939_v42  ;;  %v14979_v42 = vld [vmem:[%s18578_s25 + $0x5e0] ss:$24 sps:$4 sm:$0xff]  }
 0xac3   :  { %8155 = vmatpush1.bf16.msra.mxu1 %v14937_v25  ;;  %v14984_v25 = vld [vmem:[%s18578_s25 + $0x614] ss:$24 sps:$4 sm:$0xff]  }
 0xac4   :  { %8156 = vmatprep.subr.bf16.mxu1 %v14942_v27  ;;  %v14990_v27 = vld [vmem:[%s18578_s25 + $0x674] ss:$24 sps:$4 sm:$0xff]  }
 0xac6   :  { %8114 = vmatmul.mubr.bf16.gmra.mrb[160].mxu1 %v17488_v51  ;;  %v14946_v51 = vld [vmem:[%s18578_s25 + $0x3d0] ss:$24 sps:$4 sm:$0xff]  }
 0xac7   :  { %8123 = vmatprep.mubr.bf16.mxu1 %v17518_v35  ;;  %8157 = vmatpush1.bf16.msra.mxu1 %v14940_v60  ;;  %v14951_v35 = vld [vmem:[%s18578_s25 + $0x404] ss:$24 sps:$4 sm:$0xff]  }
 0xac8   :  { %8158 = vmatprep.subr.bf16.mxu1 %v14945_v4  ;;  %v14993_v60 = vld [vmem:[%s18578_s25 + $0x6a4] ss:$24 sps:$4 sm:$0xff]   ;;  %v14994_v4 = vld [vmem:[%s18578_s25 + $0x6d0] ss:$24 sps:$4 sm:$0xff]  }
 0xacb   :  { %8159 = vmatpush1.bf16.msra.mxu1 %v14943_v32  ;;  %v14999_v32 = vld [vmem:[%s18578_s25 + $0x704] ss:$24 sps:$4 sm:$0xff]  }
 0xacc   :  { %8160 = vmatprep.subr.bf16.mxu1 %v14948_v58  ;;  %v15011_v58 = vld [vmem:[%s18578_s25 + $0x7c4] ss:$24 sps:$4 sm:$0xff]  }
 0xace   :  { %8124 = vmatmul.mubr.bf16.gmra.mrb[164].mxu1 %v17516_v23  ;;  %v15041_v23 = vld [vmem:[%s18580_s11 + $0x28] sm:$0xff]  }
 0xacf   :  { %8133 = vmatprep.mubr.bf16.mxu1 %v17546_v24  ;;  %8161 = vmatpush1.bf16.msra.mxu1 %v14946_v51  ;;  %v14955_v24 = vld [vmem:[%s18578_s25 + $0x460] ss:$24 sps:$4 sm:$0xff]   ;;  %v15017_v51 = vld [vmem:[%s18578_s25 + $0x824] ss:$24 sps:$4 sm:$0xff]  }
 0xad0   :  { %8162 = vmatprep.subr.bf16.mxu1 %v14951_v35  ;;  %13334 = vmatpush3.bf16.msra.mxu0 %v15041_v23  ;;  %v15015_v35 = vld [vmem:[%s18578_s25 + $0x820] ss:$24 sps:$4 sm:$0xff]  }
 0xad1   :  { %13335 = vmatprep.subr.bf16.mxu0 %v15042_v10  ;;  %v15027_v23 = vld [vmem:[%s18578_s25 + $0x8e0] ss:$24 sps:$4 sm:$0xff]  }
 0xad3   :  { %8163 = vmatpush1.bf16.msra.mxu1 %v14949_v43  ;;  %v15018_v43 = vld [vmem:[%s18578_s25 + $0x850] ss:$24 sps:$4 sm:$0xff]  }
 0xad4   :  { %8164 = vmatprep.subr.bf16.mxu1 %v14954_v31  ;;  %13336 = vmatpush3.bf16.msra.mxu0 %v15043_v13  ;;  %v15026_v31 = vld [vmem:[%s18578_s25 + $0x8b4] ss:$24 sps:$4 sm:$0xff]  }
 0xad5   :  { %13337 = vmatprep.subr.bf16.mxu0 %v15044_v29  ;;  %v18583_v13 = vld [vmem:[#allocation89_spill] sm:$0xff] }
 0xad6   :  { %8134 = vmatmul.mubr.bf16.gmra.mrb[168].mxu1 %v17544_v53  ;;  %v14963_v53 = vld [vmem:[%s18578_s25 + $0x4c4] ss:$24 sps:$4 sm:$0xff]  }
 0xad7   :  { %8143 = vmatprep.mubr.bf16.mxu1 %v17565_v0  ;;  %8165 = vmatpush1.bf16.msra.mxu1 %v14952_v21  ;;  %v14961_v0 = vld [vmem:[%s18578_s25 + $0x4c0] ss:$24 sps:$4 sm:$0xff]   ;;  %v15024_v21 = vld [vmem:[%s18578_s25 + $0x8b0] ss:$24 sps:$4 sm:$0xff]  }
 0xad8   :  { %8166 = vmatprep.subr.bf16.mxu1 %v14957_v14  ;;  %13338 = vmatpush3.bf16.msra.mxu0 %v15045_v1  ;;  %v15029_v14 = vld [vmem:[%s18578_s25 + $0x8e4] ss:$24 sps:$4 sm:$0xff]  }
 0xad9   :  { %13369 = vmatprep.subr.bf16.mxu0 %v15046_v34 }
 0xadb   :  { %8167 = vmatpush1.bf16.msra.mxu1 %v14955_v24  ;;  %v18582_v24 = vmov 0.0  }
 0xadc   :  { %8168 = vmatprep.subr.bf16.mxu1 %v14960_v62  ;;  %v17936_v62 = vld [vmem:[%s18581_s16] sm:$0x3f] }
 0xadd   :  { %v17940_v10 = vrot.slane %v17936_v62, %v16507_v46  ;;  %v17944_v29 = vrot.slane %v17936_v62, %v18583_v13 }
 0xade   :  { %8144 = vmatmul.mubr.bf16.gmra.mrb[172].mxu1 %v17575_v9  ;;  %v14972_v9 = vld [vmem:[%s18578_s25 + $0x554] ss:$24 sps:$4 sm:$0xff]  }
 0xadf   :  { %8169 = vmatpush1.bf16.msra.mxu1 %v14958_v28  ;;  %8184 = vmatprep.mubr.bf16.mxu1 %v17588_v30  ;;  %v14970_v30 = vld [vmem:[%s18578_s25 + $0x550] ss:$24 sps:$4 sm:$0xff]  }
 0xae0   :  { %8170 = vmatprep.subr.bf16.mxu1 %v14963_v53  ;;  %v18584_v28 = vld [vmem:[#allocation82_spill] sm:$0xff] }
 0xae3   :  { %8171 = vmatpush1.bf16.msra.mxu1 %v14961_v0 }
 0xae4   :  { %8172 = vmatprep.subr.bf16.mxu1 %v14966_v3 }
 0xae7   :  { %8173 = vmatpush1.bf16.msra.mxu1 %v14964_v36 }
 0xae8   :  { %8174 = vmatprep.subr.bf16.mxu1 %v14969_v63 }
 0xaeb   :  { %8175 = vmatpush1.bf16.msra.mxu1 %v14967_v54 }
 0xaec   :  { %8176 = vmatprep.subr.bf16.mxu1 %v14972_v9 }
 0xaef   :  { %8177 = vmatpush1.bf16.msra.mxu1 %v14970_v30 }
 0xaf0   :  { %8178 = vmatprep.subr.bf16.mxu1 %v14975_v26 }
 0xaf3   :  { %8179 = vmatpush1.bf16.msra.mxu1 %v14973_v39 }
 0xaf4   :  { %8180 = vmatprep.subr.bf16.mxu1 %v14978_v44 }
 0xaf7   :  { %8181 = vmatpush1.bf16.msra.mxu1 %v14976_v61 }
 0xaf8   :  { %8182 = vmatprep.subr.bf16.mxu1 %v14981_v50 }
 0xafb   :  { %8183 = vmatpush1.bf16.msra.mxu1 %v14979_v42 }
 0xafc   :  { %8233 = vmatprep.subr.bf16.mxu1 %v14984_v25 }
 0xafe   :  { %8185 = vmatmul.mubr.bf16.vlgmr.msra.gmra.mrb[156].mxu1 %v17582_v19  ;;  %v14991_v19 = vld [vmem:[%s18578_s25 + $0x6a0] ss:$24 sps:$4 sm:$0xff]  }
 0xaff   :  { %8194 = vmatprep.mubr.bf16.mxu1 %v17614_v56  ;;  %8234 = vmatpush1.bf16.msra.mxu1 %v14982_v12  ;;  %v14996_v56 = vld [vmem:[%s18578_s25 + $0x6d4] ss:$24 sps:$4 sm:$0xff]  }
 0xb00   :  { %8235 = vmatprep.subr.bf16.mxu1 %v14987_v38 }
 0xb03   :  { %8236 = vmatpush1.bf16.msra.mxu1 %v14985_v57 }
 0xb04   :  { %8237 = vmatprep.subr.bf16.mxu1 %v14990_v27 }
 0xb06   :  { %8195 = vmatmul.mubr.bf16.gmra.mrb[160].mxu1 %v17610_v22  ;;  %v14997_v22 = vld [vmem:[%s18578_s25 + $0x700] ss:$24 sps:$4 sm:$0xff]  }
 0xb07   :  { %8204 = vmatprep.mubr.bf16.mxu1 %v17638_v37  ;;  %8238 = vmatpush1.bf16.msra.mxu1 %v14988_v17  ;;  %v15002_v37 = vld [vmem:[%s18578_s25 + $0x734] ss:$24 sps:$4 sm:$0xff]  }
 0xb08   :  { %8239 = vmatprep.subr.bf16.mxu1 %v14993_v60 }
 0xb0b   :  { %8240 = vmatpush1.bf16.msra.mxu1 %v14991_v19 }
 0xb0c   :  { %8241 = vmatprep.subr.bf16.mxu1 %v14996_v56 }
 0xb0e   :  { %8205 = vmatmul.mubr.bf16.gmra.mrb[164].mxu1 %v17634_v52  ;;  %v15003_v52 = vld [vmem:[%s18578_s25 + $0x760] ss:$24 sps:$4 sm:$0xff]  }
 0xb0f   :  { %8214 = vmatprep.mubr.bf16.mxu1 %v17662_v5  ;;  %8242 = vmatpush1.bf16.msra.mxu1 %v14994_v4  ;;  %v15008_v5 = vld [vmem:[%s18578_s25 + $0x794] ss:$24 sps:$4 sm:$0xff]  }
 0xb10   :  { %8243 = vmatprep.subr.bf16.mxu1 %v14999_v32  ;;  %v15047_v32 = vld [vmem:[%s18580_s11 + $0x80] sm:$0xff]  }
 0xb13   :  { %8244 = vmatpush1.bf16.msra.mxu1 %v14997_v22 }
 0xb14   :  { %8245 = vmatprep.subr.bf16.mxu1 %v15002_v37 }
 0xb16   :  { %8215 = vmatmul.mubr.bf16.gmra.mrb[168].mxu1 %v17658_v6  ;;  %v15009_v6 = vld [vmem:[%s18578_s25 + $0x7c0] ss:$24 sps:$4 sm:$0xff]  }
 0xb17   :  { %8224 = vmatprep.mubr.bf16.mxu1 %v17723_v45  ;;  %8246 = vmatpush1.bf16.msra.mxu1 %v15000_v7  ;;  %v15014_v45 = vld [vmem:[%s18578_s25 + $0x7f4] ss:$24 sps:$4 sm:$0xff]  }
 0xb18   :  { %8247 = vmatprep.subr.bf16.mxu1 %v15005_v2 }
 0xb1b   :  { %8248 = vmatpush1.bf16.msra.mxu1 %v15003_v52  ;;  %v15048_v52 = vld [vmem:[%s18580_s11 + $0xc8] sm:$0xff]  }
 0xb1c   :  { %8249 = vmatprep.subr.bf16.mxu1 %v15008_v5 }
 0xb1e   :  { %8225 = vmatmul.mubr.bf16.gmra.mrb[172].mxu1 %v17737_v16  ;;  %v15020_v16 = vld [vmem:[%s18578_s25 + $0x854] ss:$24 sps:$4 sm:$0xff]  }
 0xb1f   :  { %8250 = vmatpush1.bf16.msra.mxu1 %v15006_v41  ;;  %8265 = vmatprep.mubr.bf16.mxu1 %v17602_v15  ;;  %v15023_v15 = vld [vmem:[%s18578_s25 + $0x884] ss:$24 sps:$4 sm:$0xff]  }
 0xb20   :  { %8251 = vmatprep.subr.bf16.mxu1 %v15011_v58 }
 0xb23   :  { %8252 = vmatpush1.bf16.msra.mxu1 %v15009_v6 }
 0xb24   :  { %8253 = vmatprep.subr.bf16.mxu1 %v15014_v45 }
 0xb27   :  { %8254 = vmatpush1.bf16.msra.mxu1 %v15012_v33 }
 0xb28   :  { %8255 = vmatprep.subr.bf16.mxu1 %v15017_v51 }
 0xb2b   :  { %8256 = vmatpush1.bf16.msra.mxu1 %v15015_v35 }
 0xb2c   :  { %8257 = vmatprep.subr.bf16.mxu1 %v15020_v16 }
 0xb2f   :  { %8258 = vmatpush1.bf16.msra.mxu1 %v15018_v43  ;;  %v15049_v43 = vld [vmem:[%s18580_s11 + $0x88] sm:$0xff]  }
 0xb30   :  { %8259 = vmatprep.subr.bf16.mxu1 %v15023_v15 }
 0xb33   :  { %8260 = vmatpush1.bf16.msra.mxu1 %v15021_v49 }
 0xb34   :  { %8261 = vmatprep.subr.bf16.mxu1 %v15026_v31 }
 0xb37   :  { %8262 = vmatpush1.bf16.msra.mxu1 %v15024_v21  ;;  %v15050_v21 = vld [vmem:[%s18580_s11 + $0xd0] sm:$0xff]  }
 0xb38   :  { %8263 = vmatprep.subr.bf16.mxu1 %v15029_v14 }
 0xb3b   :  { %8264 = vmatpush1.bf16.msra.mxu1 %v15027_v23 }
 0xb3c   :  { %13712 = vmatprep.subr.bf16.mxu1 %v18582_v24 }
 0xb3e   :  { %8266 = vmatmul.mubr.bf16.vlgmr.msra.gmra.mrb[156].mxu1 %v17598_v18  ;;  %v17949_v18 = vrot.slane %v17936_v62, %v18584_v28 }
 0xb3f   :  { %8275 = vmatprep.mubr.bf16.mxu1 %v17626_v55  ;;  %v18585_v55 = vld [vmem:[#allocation81_spill] sm:$0xff] }
 0xb46   :  { %8276 = vmatmul.mubr.bf16.gmra.mrb[160].mxu1 %v17622_v8  ;;  %v18586_v8 = vsub.s32 3, %v18585_v55 }
 0xb47   :  { %8285 = vmatprep.mubr.bf16.mxu1 %v17650_v59 }
 0xb48   :  { %v17954_v59 = vrot.slane %v17936_v62, %v18586_v8 }
 0xb4e   :  { %8286 = vmatmul.mubr.bf16.gmra.mrb[164].mxu1 %v17646_v47 }
 0xb4f   :  { %8295 = vmatprep.mubr.bf16.mxu1 %v17676_v48 }
 0xb50   :  { %v7781_v53 = vpop.f32.mrb[136].mxu1 }
 0xb51   :  { %v13876_v1 = vadd.f32 %v7781_v53, %v17940_v10  ;;  %v8024_v0 = vpop.f32.mrb[140].mxu0  ;;  %v7783_v3 = vpop.f32.mrb[137].mxu1 }
 0xb52   :  { %v13894_v36 = vadd.f32 %v8024_v0, %v17944_v29  ;;  %v13877_v47 = vadd.f32 %v7783_v3, %v17949_v18  ;;  %v8026_v63 = vpop.f32.mrb[141].mxu0  ;;  %v7785_v54 = vpop.f32.mrb[138].mxu1 }
 0xb53   :  { %v13895_v9 = vadd.f32 %v8026_v63, %v17954_v59  ;;  %v13878_v34 = vadd.f32 %v7785_v54, %v17940_v10  ;;  %v8028_v30 = vpop.f32.mrb[142].mxu0  ;;  %v7787_v26 = vpop.f32.mrb[139].mxu1  ;;  %v8314_v61 = vmax.f32 %v13876_v1, 0.0  ;;  %v15051_v54 = vld [vmem:[%s18580_s11 + $0x90] sm:$0xff]  }
 0xb54   :  { %v13896_v39 = vadd.f32 %v8028_v30, %v17944_v29  ;;  %v13879_v48 = vadd.f32 %v7787_v26, %v17949_v18  ;;  %v8030_v44 = vpop.f32.mrb[143].mxu0  ;;  %v8316_v25 = vmax.f32 %v13894_v36, 0.0  ;;  %v8315_v12 = vmax.f32 %v13877_v47, 0.0 }
 0xb55   :  { %v8320_v50 = vmax.f32 %v13878_v34, 0.0  ;;  %v13897_v42 = vadd.f32 %v8030_v44, %v17954_v59  ;;  %v8317_v27 = vmax.f32 %v13895_v9, 0.0 }
 0xb56   :  { %v8322_v38 = vmax.f32 %v13896_v39, 0.0  ;;  %v8321_v57 = vmax.f32 %v13879_v48, 0.0  ;;  %8296 = vmatmul.mubr.bf16.gmra.mrb[168].mxu1 %v17674_v11 }
 0xb57   :  { %v8368_v17 = vpack.c.bf16 %v8320_v50, %v8314_v61  ;;  %v8323_v60 = vmax.f32 %v13897_v42, 0.0  ;;  %8305 = vmatprep.mubr.bf16.mxu1 %v17799_v20 }
 0xb58   :  { %v17967_v19 = vpack.c.bf16 %v8322_v38, %v8316_v25  ;;  %v8369_v56 = vpack.c.bf16 %v8321_v57, %v8315_v12  ;;  %v7791_v4 = vpop.f32.mrb[140].mxu1 }
 0xb59   :  { %v17970_v22 = vpack.c.bf16 %v8323_v60, %v8317_v27  ;;  %v13880_v37 = vadd.f32 %v7791_v4, %v17940_v10  ;;  %v8034_v7 = vpop.f32.mrb[144].mxu0  ;;  %v7793_v2 = vpop.f32.mrb[141].mxu1 }
 0xb5a   :  { %v13898_v11 = vadd.f32 %v8034_v7, %v17944_v29  ;;  %v13881_v5 = vadd.f32 %v7793_v2, %v17949_v18  ;;  %v8036_v41 = vpop.f32.mrb[145].mxu0  ;;  %v7795_v58 = vpop.f32.mrb[142].mxu1  ;;  %8821 = vmatprep.mubr.bf16.mxu0 %v8369_v56 }
 0xb5b   :  { %v13899_v20 = vadd.f32 %v8036_v41, %v17954_v59  ;;  %v13882_v6 = vadd.f32 %v7795_v58, %v17940_v10  ;;  %v8038_v45 = vpop.f32.mrb[146].mxu0  ;;  %v7797_v33 = vpop.f32.mrb[143].mxu1  ;;  %8822 = vmatmul.mubr.bf16.vlgmr.msra.gmra.mrb[160].mxu0 %v8368_v17  ;;  %v8326_v15 = vmax.f32 %v13880_v37, 0.0  ;;  %v15053_v17 = vld [vmem:[%s18580_s11 + $0x98] sm:$0xff]  }
 0xb5c   :  { %v13900_v51 = vadd.f32 %v8038_v45, %v17944_v29  ;;  %v13883_v35 = vadd.f32 %v7797_v33, %v17949_v18  ;;  %v8040_v16 = vpop.f32.mrb[147].mxu0  ;;  %13370 = vmatpush3.bf16.msra.mxu0 %v15047_v32  ;;  %v8328_v14 = vmax.f32 %v13898_v11, 0.0  ;;  %v8327_v23 = vmax.f32 %v13881_v5, 0.0  ;;  %v15054_v32 = vld [vmem:[%s18580_s11 + $0xe0] sm:$0xff]  }
 0xb5d   :  { %v8332_v49 = vmax.f32 %v13882_v6, 0.0  ;;  %v13901_v31 = vadd.f32 %v8040_v16, %v17954_v59  ;;  %13371 = vmatprep.subr.bf16.mxu0 %v15048_v52  ;;  %v8329_v1 = vmax.f32 %v13899_v20, 0.0  ;;  %v15055_v45 = vld [vmem:[%s18580_s11 + $0xa0] sm:$0xff]  }
 0xb5e   :  { %v8334_v8 = vmax.f32 %v13900_v51, 0.0  ;;  %v8333_v53 = vmax.f32 %v13883_v35, 0.0  ;;  %8306 = vmatmul.mubr.bf16.gmra.mrb[172].mxu1 %v17809_v40  ;;  %v15052_v40 = vld [vmem:[%s18580_s11 + $0xd8] sm:$0xff]  }
 0xb5f   :  { %v8374_v0 = vpack.c.bf16 %v8332_v49, %v8326_v15  ;;  %v8335_v3 = vmax.f32 %v13901_v31, 0.0  ;;  %13720 = vmatprep.mubr.msk.bf16.mxu1 %vm16017_vm0, %v18582_v24 }
 0xb60   :  { %v17986_v36 = vpack.c.bf16 %v8334_v8, %v8328_v14  ;;  %v8375_v47 = vpack.c.bf16 %v8333_v53, %v8327_v23  ;;  %v7801_v63 = vpop.f32.mrb[144].mxu1  ;;  %13372 = vmatpush3.bf16.msra.mxu0 %v15049_v43  ;;  %v15056_v43 = vld [vmem:[%s18580_s11 + $0xe8] sm:$0xff]  }
 0xb61   :  { %v17989_v9 = vpack.c.bf16 %v8335_v3, %v8329_v1  ;;  %v13884_v34 = vadd.f32 %v7801_v63, %v17940_v10  ;;  %v8044_v30 = vpop.f32.mrb[148].mxu0  ;;  %v7803_v26 = vpop.f32.mrb[145].mxu1  ;;  %13373 = vmatprep.subr.bf16.mxu0 %v15050_v21 }
 0xb62   :  { %v13902_v39 = vadd.f32 %v8044_v30, %v17944_v29  ;;  %v13885_v48 = vadd.f32 %v7803_v26, %v17949_v18  ;;  %v8046_v44 = vpop.f32.mrb[149].mxu0  ;;  %v7805_v61 = vpop.f32.mrb[146].mxu1  ;;  %8829 = vmatprep.mubr.bf16.mxu0 %v8375_v47  ;;  %v15057_v47 = vld [vmem:[%s18580_s11 + $0xa8] sm:$0xff]   ;;  %v15058_v30 = vld [vmem:[%s18580_s11 + $0xf0] sm:$0xff]  }
 0xb63   :  { %v13903_v50 = vadd.f32 %v8046_v44, %v17954_v59  ;;  %v13886_v42 = vadd.f32 %v7805_v61, %v17940_v10  ;;  %v8048_v25 = vpop.f32.mrb[150].mxu0  ;;  %v7807_v12 = vpop.f32.mrb[147].mxu1  ;;  %8830 = vmatmul.mubr.bf16.gmra.mrb[164].mxu0 %v8374_v0  ;;  %v8338_v60 = vmax.f32 %v13884_v34, 0.0 }
 0xb64   :  { %v13904_v38 = vadd.f32 %v8048_v25, %v17944_v29  ;;  %v13887_v57 = vadd.f32 %v7807_v12, %v17949_v18  ;;  %v8050_v27 = vpop.f32.mrb[151].mxu0  ;;  %13374 = vmatpush3.bf16.msra.mxu0 %v15051_v54  ;;  %v8340_v37 = vmax.f32 %v13902_v39, 0.0  ;;  %v8339_v7 = vmax.f32 %v13885_v48, 0.0 }
 0xb65   :  { %v8344_v56 = vmax.f32 %v13886_v42, 0.0  ;;  %v13905_v4 = vadd.f32 %v8050_v27, %v17954_v59  ;;  %13375 = vmatprep.subr.bf16.mxu0 %v15052_v40  ;;  %v8341_v11 = vmax.f32 %v13903_v50, 0.0 }
 0xb66   :  { %v8346_v2 = vmax.f32 %v13904_v38, 0.0  ;;  %v8345_v52 = vmax.f32 %v13887_v57, 0.0  ;;  %v15059_v38 = vld [vmem:[%s18580_s11 + $0xb0] sm:$0xff]  }
 0xb67   :  { %v8380_v5 = vpack.c.bf16 %v8344_v56, %v8338_v60  ;;  %v8347_v41 = vmax.f32 %v13905_v4, 0.0  ;;  %v15060_v56 = vld [vmem:[%s18580_s11 + $0xf8] sm:$0xff]  }
 0xb68   :  { %v18002_v58 = vpack.c.bf16 %v8346_v2, %v8340_v37  ;;  %v8381_v20 = vpack.c.bf16 %v8345_v52, %v8339_v7  ;;  %v7811_v6 = vpop.f32.mrb[148].mxu1  ;;  %13376 = vmatpush3.bf16.msra.mxu0 %v15053_v17 }
 0xb69   :  { %v18005_v33 = vpack.c.bf16 %v8347_v41, %v8341_v11  ;;  %v13888_v51 = vadd.f32 %v7811_v6, %v17940_v10  ;;  %v8054_v35 = vpop.f32.mrb[152].mxu0  ;;  %v7813_v16 = vpop.f32.mrb[149].mxu1  ;;  %13377 = vmatprep.subr.bf16.mxu0 %v15054_v32  ;;  %v15063_v6 = vld [vmem:[%s18580_s11 + $0x100] sm:$0xff]  }
 0xb6a   :  { %v13906_v15 = vadd.f32 %v8054_v35, %v17944_v29  ;;  %v13889_v49 = vadd.f32 %v7813_v16, %v17949_v18  ;;  %v8056_v31 = vpop.f32.mrb[153].mxu0  ;;  %v7815_v21 = vpop.f32.mrb[150].mxu1  ;;  %8837 = vmatprep.mubr.bf16.mxu0 %v8381_v20  ;;  %v15062_v20 = vld [vmem:[%s18580_s11 + $0x140] sm:$0xff]   ;;  %v15066_v35 = vld [vmem:[%s18580_s11 + $0x150] sm:$0xff]  }
 0xb6b   :  { %v13907_v14 = vadd.f32 %v8056_v31, %v17954_v59  ;;  %v13890_v23 = vadd.f32 %v7815_v21, %v17940_v10  ;;  %v8058_v8 = vpop.f32.mrb[154].mxu0  ;;  %v7817_v53 = vpop.f32.mrb[151].mxu1  ;;  %8838 = vmatmul.mubr.bf16.gmra.mrb[168].mxu0 %v8380_v5  ;;  %v8350_v63 = vmax.f32 %v13888_v51, 0.0  ;;  %v15061_v5 = vld [vmem:[%s18580_s11 + $0xb8] sm:$0xff]   ;;  %v15065_v51 = vld [vmem:[%s18580_s11 + $0x108] sm:$0xff]   ;;  %v15067_v16 = vld [vmem:[%s18580_s11 + $0x110] sm:$0xff]  }
 0xb6c   :  { %v13908_v1 = vadd.f32 %v8058_v8, %v17944_v29  ;;  %v13891_v0 = vadd.f32 %v7817_v53, %v17949_v18  ;;  %v8060_v3 = vpop.f32.mrb[155].mxu0  ;;  %13378 = vmatpush3.bf16.msra.mxu0 %v15055_v45  ;;  %v8352_v26 = vmax.f32 %v13906_v15, 0.0  ;;  %v8351_v40 = vmax.f32 %v13889_v49, 0.0  ;;  %v15064_v45 = vld [vmem:[%s18580_s11 + $0x148] sm:$0xff]   ;;  %v15075_v21 = vld [vmem:[%s18580_s11 + $0x130] sm:$0xff]  }
 0xb6d   :  { %v8356_v54 = vmax.f32 %v13890_v23, 0.0  ;;  %v13909_v34 = vadd.f32 %v8060_v3, %v17954_v59  ;;  %13379 = vmatprep.subr.bf16.mxu0 %v15056_v43  ;;  %v8353_v44 = vmax.f32 %v13907_v14, 0.0  ;;  %v15068_v43 = vld [vmem:[%s18580_s11 + $0x158] sm:$0xff]   ;;  %v15072_v15 = vld [vmem:[%s18580_s11 + $0x168] sm:$0xff]   ;;  %v9007_v3 = vld [vmem:[%s18562_s14 + $0x10] sm:$0xff] }
 0xb6e   :  { %v8358_v39 = vmax.f32 %v13908_v1, 0.0  ;;  %v8357_v48 = vmax.f32 %v13891_v0, 0.0  ;;  %v15073_v49 = vld [vmem:[%s18580_s11 + $0x128] sm:$0xff]   ;;  %v15076_v14 = vld [vmem:[%s18580_s11 + $0x178] sm:$0xff]   ;;  %v18587_v1 = vmov 0   ;;  %vm9016_vm13 = vcmp.gt.f32.partialorder %v9007_v3, 0.0 }
 0xb6f   :  { %v8386_v61 = vpack.c.bf16 %v8356_v54, %v8350_v63  ;;  %v8359_v50 = vmax.f32 %v13909_v34, 0.0  ;;  %v15362_v63 = vld [vmem:[%s18562_s14 + $0x18] sm:$0xff]  ;;  %v9009_v34 = vld [vmem:[%s18562_s14 + $0x20] sm:$0xff] }
 0xb70   :  { %v18018_v42 = vpack.c.bf16 %v8358_v39, %v8352_v26  ;;  %v8387_v25 = vpack.c.bf16 %v8357_v48, %v8351_v40  ;;  %v7821_v12 = vpop.f32.mrb[152].mxu1  ;;  %13380 = vmatpush3.bf16.msra.mxu0 %v15057_v47  ;;  %v9025_v47 = vsel %vm9016_vm13, 1, %v18587_v1  ;;  %vm9017_vm14 = vcmp.gt.f32.partialorder %v15362_v63, 0.0  ;;  %v9013_v26 = vld [vmem:[%s18562_s14 + $0x40] sm:$0xff]  ;;  %v15363_v39 = vld [vmem:[%s18562_s14 + $0x30] sm:$0xff] }
 0xb71   :  { %v8389_v57 = vpack.c.bf16 %v8359_v50, %v8353_v44  ;;  %v13892_v27 = vadd.f32 %v7821_v12, %v17940_v10  ;;  %v8064_v17 = vpop.f32.mrb[156].mxu0  ;;  %v7823_v60 = vpop.f32.mrb[153].mxu1  ;;  %13381 = vmatprep.subr.bf16.mxu0 %v15058_v30  ;;  %v9026_v54 = vsel %vm9017_vm14, 1, %v18587_v1  ;;  %vm9018_vm15 = vcmp.gt.f32.partialorder %v9009_v34, 0.0 }
 0xb72   :  { %v13893_v4 = vadd.f32 %v7823_v60, %v17949_v18  ;;  %v8066_v32 = vpop.f32.mrb[157].mxu0  ;;  %v7825_v37 = vpop.f32.mrb[154].mxu1  ;;  %8845 = vmatprep.mubr.bf16.mxu0 %v8387_v25  ;;  %v13910_v31 = vadd.f32 %v8064_v17, %v17944_v29  ;;  %v9005_v29 = vld [vmem:[%s18562_s14] sm:$0xff]  ;;  %v9027_v30 = vsel %vm9018_vm15, 1, %v18587_v1  ;;  %vm9022_vm2 = vcmp.gt.f32.partialorder %v9013_v26, 0.0 }
 0xb73   :  { %v13911_v7 = vadd.f32 %v8066_v32, %v17954_v59  ;;  %v8068_v2 = vpop.f32.mrb[158].mxu0  ;;  %v7826_v52 = vpop.f32.mrb[155].mxu1  ;;  %8846 = vmatmul.mubr.bf16.gmra.mrb[172].mxu0 %v8386_v61  ;;  %v8362_v41 = vmax.f32 %v13892_v27, 0.0  ;;  %vm9014_vm12 = vcmp.gt.f32.partialorder %v9005_v29, 0.0  ;;  %v9031_v40 = vsel %vm9022_vm2, 1, %v18587_v1 }
 0xb74   :  { %v8363_v11 = vmax.f32 %v13893_v4, 0.0  ;;  %v8069_v10 = vpop.f32.mrb[159].mxu0  ;;  %13382 = vmatpush3.bf16.msra.mxu0 %v15059_v38  ;;  %v8364_v8 = vmax.f32 %v13910_v31, 0.0  ;;  %v9023_v0 = vsel %vm9014_vm12, 1, %v18587_v1  ;;  %v18588_v48 = vsub.s32 4, %v18585_v55 }
 0xb75   :  { %13383 = vmatprep.subr.bf16.mxu0 %v15060_v56  ;;  %v8392_v59 = vpack.c.bf16 %v8362_v41, %v8362_v41  ;;  %9033 = vperm.xlu1 %14143, %v9023_v0   ;;  %v18589_v61 = vsub.s32 5, %v18585_v55  ;;  %v18590_v41 = vld [vmem:[#allocation84_spill] sm:$0xff]  ;;  %vm9262_vm15 = vcmask 195584  }
 0xb76   :  { %v8393_v18 = vpack.c.bf16 %v8363_v11, %v8363_v11  ;;  %v8394_v53 = vpack.c.bf16 %v8364_v8, %v8364_v8  ;;  %v18065_v44 = vrot.slane %v17936_v62, %v18588_v48 }
 0xb77   :  { %v18070_v50 = vrot.slane %v17936_v62, %v18589_v61 }
 0xb78   :  { %8853 = vmatprep.mubr.bf16.mxu0 %v8393_v18  ;;  %13384 = vmatpush3.bf16.msra.mxu0 %v15061_v5 }
 0xb79   :  { %13415 = vmatprep.subr.bf16.mxu0 %v15062_v20  ;;  %9039 = vperm.xlu1 %14143, %v9025_v47   ;;  %v9237_v20 = vpack.c.bf16 %v18590_v41, %v18590_v41 }
 0xb7b   :  { %8854 = vmatmul.mubr.bf16.gmra.mrb[176].mxu0 %v8392_v59 }
 0xb7c   :  { %8893 = vmatprep.mubr.bf16.mxu0 %v17970_v22  ;;  %v15070_v22 = vld [vmem:[%s18580_s11 + $0x160] sm:$0xff]  }
 0xb7d   :  { %9042 = vperm.xlu1 %14143, %v9026_v54  }
 0xb81   :  { %9045 = vperm.xlu1 %14143, %v9027_v30  }
 0xb83   :  { %8894 = vmatmul.mubr.bf16.vlgmr.msra.gmra.mrb[180].mxu0 %v17967_v19  ;;  %v15069_v19 = vld [vmem:[%s18580_s11 + $0x118] sm:$0xff]  }
 0xb84   :  { %8901 = vmatprep.mubr.bf16.mxu0 %v17989_v9  ;;  %13416 = vmatpush3.bf16.msra.mxu0 %v15063_v6  ;;  %v15071_v9 = vld [vmem:[%s18580_s11 + $0x120] sm:$0xff]  }
 0xb85   :  { %13417 = vmatprep.subr.bf16.mxu0 %v15064_v45  ;;  %9057 = vperm.xlu1 %14143, %v9031_v40   ;;  %v18591_v45 = vld [vmem:[#allocation83_spill] sm:$0xff] }
 0xb88   :  { %13418 = vmatpush3.bf16.msra.mxu0 %v15065_v51 }
 0xb89   :  { %13419 = vmatprep.subr.bf16.mxu0 %v15066_v35  ;;  %9140 = vperm.xlu1 %14143, %v9005_v29  }
 0xb8b   :  { %8902 = vmatmul.mubr.bf16.gmra.mrb[184].mxu0 %v17986_v36  ;;  %v8365_v36 = vmax.f32 %v13911_v7, 0.0 }
 0xb8c   :  { %8909 = vmatprep.mubr.bf16.mxu0 %v18005_v33  ;;  %13420 = vmatpush3.bf16.msra.mxu0 %v15067_v16  ;;  %v15074_v33 = vld [vmem:[%s18580_s11 + $0x170] sm:$0xff]  }
 0xb8d   :  { %13421 = vmatprep.subr.bf16.mxu0 %v15068_v43  ;;  %v8395_v23 = vpack.c.bf16 %v8365_v36, %v8365_v36  ;;  %9150 = vperm.xlu1 %14143, %v9007_v3  }
 0xb90   :  { %13422 = vmatpush3.bf16.msra.mxu0 %v15069_v19 }
 0xb91   :  { %13423 = vmatprep.subr.bf16.mxu0 %v15070_v22  ;;  %9160 = vperm.xlu1 %14143, %v9009_v34   ;;  %v9268_v22 = vsel %vm9266_vm9, %v9237_v20, 0 }
 0xb93   :  { %8910 = vmatmul.mubr.bf16.gmra.mrb[188].mxu0 %v18002_v58  ;;  %v15077_v58 = vld [vmem:[%s18580_s11 + $0x138] sm:$0xff]  }
 0xb94   :  { %8917 = vmatprep.mubr.bf16.mxu0 %v8389_v57  ;;  %13424 = vmatpush3.bf16.msra.mxu0 %v15071_v9 }
 0xb95   :  { %13425 = vmatprep.subr.bf16.mxu0 %v15072_v15  ;;  %9170 = vperm.xlu1 %14143, %v15363_v39  }
 0xb98   :  { %13426 = vmatpush3.bf16.msra.mxu0 %v15073_v49 }
 0xb99   :  { %13427 = vmatprep.subr.bf16.mxu0 %v15074_v33  ;;  %9180 = vperm.xlu1 %14143, %v9013_v26  }
 0xb9b   :  { %8918 = vmatmul.mubr.bf16.gmra.mrb[192].mxu0 %v18018_v42 }
 0xb9c   :  { %8925 = vmatprep.mubr.bf16.mxu0 %v8395_v23  ;;  %13428 = vmatpush3.bf16.msra.mxu0 %v15075_v21 }
 0xb9d   :  { %13429 = vmatprep.subr.bf16.mxu0 %v15076_v14 }
 0xba0   :  { %13430 = vmatpush3.bf16.msra.mxu0 %v15077_v58 }
 0xba1   :  { %13676 = vmatprep.subr.bf16.mxu0 %v18582_v24 }
 0xba3   :  { %8926 = vmatmul.mubr.bf16.gmra.mrb[196].mxu0 %v8394_v53 }
 0xc11   :  { %v8267_v42 = vpop.f32.mrb[156].mxu1 }
 0xc12   :  { %v13912_v25 = vadd.f32 %v8267_v42, %v18065_v44  ;;  %v8269_v12 = vpop.f32.mrb[157].mxu1 }
 0xc13   :  { %v13913_v38 = vadd.f32 %v8269_v12, %v18070_v50  ;;  %v8271_v57 = vpop.f32.mrb[158].mxu1 }
 0xc14   :  { %v13914_v27 = vadd.f32 %v8271_v57, %v18065_v44  ;;  %v8273_v17 = vpop.f32.mrb[159].mxu1  ;;  %v8318_v56 = vmax.f32 %v13912_v25, 0.0 }
 0xc15   :  { %v13915_v60 = vadd.f32 %v8273_v17, %v18070_v50  ;;  %v8319_v32 = vmax.f32 %v13913_v38, 0.0 }
 0xc16   :  { %v8324_v4 = vmax.f32 %v13914_v27, 0.0 }
 0xc17   :  { %v8325_v37 = vmax.f32 %v13915_v60, 0.0 }
 0xc18   :  { %v8372_v7 = vpack.c.bf16 %v8324_v4, %v8318_v56 }
 0xc19   :  { %v8373_v2 = vpack.c.bf16 %v8325_v37, %v8319_v32  ;;  %v8277_v62 = vpop.f32.mrb[160].mxu1 }
 0xc1a   :  { %v13916_v52 = vadd.f32 %v8277_v62, %v18065_v44  ;;  %v8279_v11 = vpop.f32.mrb[161].mxu1 }
 0xc1b   :  { %v13917_v10 = vadd.f32 %v8279_v11, %v18070_v50  ;;  %v8281_v5 = vpop.f32.mrb[162].mxu1  ;;  %8965 = vmatprep.mubr.bf16.mxu0 %v8373_v2 }
 0xc1c   :  { %v13918_v18 = vadd.f32 %v8281_v5, %v18065_v44  ;;  %v8283_v59 = vpop.f32.mrb[163].mxu1  ;;  %8966 = vmatmul.mubr.bf16.vlgmr.msra.gmra.mrb[200].mxu0 %v8372_v7  ;;  %v8330_v51 = vmax.f32 %v13916_v52, 0.0 }
 0xc1d   :  { %v13919_v6 = vadd.f32 %v8283_v59, %v18070_v50  ;;  %13677 = vmatpush3.bf16.msra.mxu0 %v18591_v45  ;;  %v8331_v16 = vmax.f32 %v13917_v10, 0.0 }
 0xc1e   :  { %v8336_v35 = vmax.f32 %v13918_v18, 0.0  ;;  %13678 = vmatprep.subr.bf16.mxu0 %v18582_v24 }
 0xc1f   :  { %v8337_v43 = vmax.f32 %v13919_v6, 0.0 }
 0xc20   :  { %v8378_v19 = vpack.c.bf16 %v8336_v35, %v8330_v51 }
 0xc21   :  { %v8379_v9 = vpack.c.bf16 %v8337_v43, %v8331_v16  ;;  %13679 = vmatpush3.bf16.msra.mxu0 %v9268_v22  ;;  %v8287_v15 = vpop.f32.mrb[164].mxu1 }
 0xc22   :  { %v13920_v49 = vadd.f32 %v8287_v15, %v18065_v44  ;;  %v8289_v36 = vpop.f32.mrb[165].mxu1  ;;  %13684 = vmatprep.subr.bf16.mxu0 %v18582_v24 }
 0xc23   :  { %v13921_v33 = vadd.f32 %v8289_v36, %v18070_v50  ;;  %v8291_v31 = vpop.f32.mrb[166].mxu1  ;;  %8973 = vmatprep.mubr.bf16.mxu0 %v8379_v9 }
 0xc24   :  { %v13922_v21 = vadd.f32 %v8291_v31, %v18065_v44  ;;  %v8293_v14 = vpop.f32.mrb[167].mxu1  ;;  %8974 = vmatmul.mubr.bf16.gmra.mrb[204].mxu0 %v8378_v19  ;;  %v8342_v58 = vmax.f32 %v13920_v49, 0.0 }
 0xc25   :  { %v13923_v23 = vadd.f32 %v8293_v14, %v18070_v50  ;;  %v8343_v53 = vmax.f32 %v13921_v33, 0.0 }
 0xc26   :  { %v8348_v8 = vmax.f32 %v13922_v21, 0.0 }
 0xc27   :  { %v8349_v29 = vmax.f32 %v13923_v23, 0.0 }
 0xc28   :  { %v8384_v0 = vpack.c.bf16 %v8348_v8, %v8342_v58  ;;  %v12990_v8 = vld [vmem:[#allocation28] ss:$0 sm:$0xff] }
 0xc29   :  { %v8385_v3 = vpack.c.bf16 %v8349_v29, %v8343_v53  ;;  %v8297_v47 = vpop.f32.mrb[168].mxu1 }
 0xc2a   :  { %v13924_v63 = vadd.f32 %v8297_v47, %v18065_v44  ;;  %v8299_v54 = vpop.f32.mrb[169].mxu1 }
 0xc2b   :  { %v13925_v34 = vadd.f32 %v8299_v54, %v18070_v50  ;;  %v8301_v30 = vpop.f32.mrb[170].mxu1  ;;  %8981 = vmatprep.mubr.bf16.mxu0 %v8385_v3 }
 0xc2c   :  { %v13926_v26 = vadd.f32 %v8301_v30, %v18065_v44  ;;  %v8303_v40 = vpop.f32.mrb[171].mxu1  ;;  %8982 = vmatmul.mubr.bf16.gmra.mrb[208].mxu0 %v8384_v0  ;;  %v8354_v48 = vmax.f32 %v13924_v63, 0.0 }
 0xc2d   :  { %v13927_v39 = vadd.f32 %v8303_v40, %v18070_v50  ;;  %v8355_v25 = vmax.f32 %v13925_v34, 0.0 }
 0xc2e   :  { %v8360_v61 = vmax.f32 %v13926_v26, 0.0  ;;  %v13339_v42 = vpop.f32.mrb[160].mxu0 }
 0xc2f   :  { %v8361_v12 = vmax.f32 %v13927_v39, 0.0  ;;  %v13340_v38 = vpop.f32.mrb[161].mxu0 }
 0xc30   :  { %v8390_v57 = vpack.c.bf16 %v8360_v61, %v8354_v48  ;;  %v13341_v27 = vadd.f32 %v13340_v38, %v13339_v42  ;;  %v13342_v17 = vpop.f32.mrb[162].mxu0 }
 0xc31   :  { %v8391_v60 = vpack.c.bf16 %v8361_v12, %v8355_v25  ;;  %v8307_v56 = vpop.f32.mrb[172].mxu1  ;;  %v13343_v4 = vpop.f32.mrb[163].mxu0 }
 0xc32   :  { %v13928_v32 = vadd.f32 %v8307_v56, %v18065_v44  ;;  %v8309_v37 = vpop.f32.mrb[173].mxu1  ;;  %v13344_v7 = vadd.f32 %v13343_v4, %v13342_v17  ;;  %v8824_v0 = vadd.f32 %v13341_v27, %v12990_v8 }
 0xc33   :  { %v13929_v2 = vadd.f32 %v8309_v37, %v18070_v50  ;;  %v8311_v62 = vpop.f32.mrb[174].mxu1  ;;  %8989 = vmatprep.mubr.bf16.mxu0 %v8391_v60 }
 0xc34   :  { %v8312_v52 = vpop.f32.mrb[175].mxu1  ;;  %8990 = vmatmul.mubr.bf16.gmra.mrb[212].mxu0 %v8390_v57  ;;  %v8366_v10 = vmax.f32 %v13928_v32, 0.0  ;;  %v8827_v54 = vadd.f32 %v13344_v7, %v12990_v8 }
 0xc35   :  { %v8367_v11 = vmax.f32 %v13929_v2, 0.0 }
 0xc36   :  { %v13345_v5 = vpop.f32.mrb[164].mxu0  ;;  %v8396_v45 = vpack.c.bf16 %v8366_v10, %v8366_v10 }
 0xc37   :  { %v8397_v41 = vpack.c.bf16 %v8367_v11, %v8367_v11  ;;  %v13346_v20 = vpop.f32.mrb[165].mxu0 }
 0xc38   :  { %v13347_v18 = vadd.f32 %v13346_v20, %v13345_v5  ;;  %v13348_v59 = vpop.f32.mrb[166].mxu0 }
 0xc39   :  { %8997 = vmatprep.mubr.bf16.mxu0 %v8397_v41  ;;  %v13349_v6 = vpop.f32.mrb[167].mxu0 }
 0xc3a   :  { %v13350_v51 = vadd.f32 %v13349_v6, %v13348_v59  ;;  %v8832_v48 = vadd.f32 %v13347_v18, %v12990_v8 }
 0xc3c   :  { %8998 = vmatmul.mubr.bf16.gmra.mrb[216].mxu0 %v8396_v45  ;;  %v8835_v12 = vadd.f32 %v13350_v51, %v12990_v8 }
 0xc3d   :  { %13680 = vmatprep.mubr.msk.bf16.mxu0 %vm16017_vm0, %v18582_v24 }
 0xc3e   :  { %v13351_v44 = vpop.f32.mrb[168].mxu0 }
 0xc3f   :  { %v13352_v50 = vpop.f32.mrb[169].mxu0 }
 0xc40   :  { %v13353_v35 = vadd.f32 %v13352_v50, %v13351_v44  ;;  %v13354_v16 = vpop.f32.mrb[170].mxu0 }
 0xc41   :  { %v13355_v43 = vpop.f32.mrb[171].mxu0 }
 0xc42   :  { %v13356_v19 = vadd.f32 %v13355_v43, %v13354_v16  ;;  %v8840_v27 = vadd.f32 %v13353_v35, %v12990_v8 }
 0xc44   :  { %v8843_v7 = vadd.f32 %v13356_v19, %v12990_v8 }
 0xc46   :  { %v13357_v22 = vpop.f32.mrb[172].mxu0 }
 0xc47   :  { %v13358_v9 = vpop.f32.mrb[173].mxu0 }
 0xc48   :  { %v13359_v15 = vadd.f32 %v13358_v9, %v13357_v22  ;;  %v13360_v49 = vpop.f32.mrb[174].mxu0 }
 0xc49   :  { %v13361_v36 = vpop.f32.mrb[175].mxu0 }
 0xc4a   :  { %v13362_v33 = vadd.f32 %v13361_v36, %v13360_v49  ;;  %v8848_v5 = vadd.f32 %v13359_v15, %v12990_v8 }
 0xc4c   :  { %v8851_v59 = vadd.f32 %v13362_v33, %v12990_v8 }
 0xc4e   :  { %v13363_v31 = vpop.f32.mrb[176].mxu0 }
 0xc4f   :  { %v13364_v21 = vpop.f32.mrb[177].mxu0 }
 0xc50   :  { %v13365_v14 = vadd.f32 %v13364_v21, %v13363_v31  ;;  %v13366_v23 = vpop.f32.mrb[178].mxu0  ;;  %v9034_v21 = vpop.permute.xlu1 %9033 }
 0xc51   :  { %v13367_v58 = vpop.f32.mrb[179].mxu0  ;;  %vm9059_vm3 = vcmp.eq.s32.totalorder %v9034_v21, 1 }
 0xc52   :  { %v8856_v35 = vadd.f32 %v13365_v14, %v12990_v8 }
 0xc56   :  { %v13385_v53 = vpop.f32.mrb[180].mxu0 }
 0xc57   :  { %v13386_v29 = vpop.f32.mrb[181].mxu0 }
 0xc58   :  { %v13387_v3 = vadd.f32 %v13386_v29, %v13385_v53  ;;  %v13388_v47 = vpop.f32.mrb[182].mxu0 }
 0xc59   :  { %v13389_v63 = vpop.f32.mrb[183].mxu0 }
 0xc5a   :  { %v8896_v34 = vadd.f32 %v13387_v3, %v8824_v0  ;;  %v13390_v30 = vadd.f32 %v13389_v63, %v13388_v47  ;;  %v9040_v0 = vpop.permute.xlu1 %9039  ;;  %v9037_v47 = vpop.permute.xlu0 %9036 }
 0xc5b   :  { %vm9061_vm4 = vcmp.eq.s32.totalorder %v9040_v0, 1  ;;  %vm9060_vm6 = vcmp.eq.s32.totalorder %v9037_v47, 1 }
 0xc5c   :  { %v8899_v26 = vadd.f32 %v13390_v30, %v8827_v54 }
 0xc5e   :  { %v13391_v40 = vpop.f32.mrb[184].mxu0 }
 0xc5f   :  { %v13392_v39 = vpop.f32.mrb[185].mxu0 }
 0xc60   :  { %v13393_v61 = vadd.f32 %v13392_v39, %v13391_v40  ;;  %v13394_v42 = vpop.f32.mrb[186].mxu0 }
 0xc61   :  { %v13395_v25 = vpop.f32.mrb[187].mxu0 }
 0xc62   :  { %v8904_v38 = vadd.f32 %v13393_v61, %v8832_v48  ;;  %v13396_v57 = vadd.f32 %v13395_v25, %v13394_v42  ;;  %v9043_v61 = vpop.permute.xlu1 %9042 }
 0xc63   :  { %vm9062_vm7 = vcmp.eq.s32.totalorder %v9043_v61, 1 }
 0xc64   :  { %v8907_v17 = vadd.f32 %v13396_v57, %v8835_v12 }
 0xc66   :  { %v13397_v60 = vpop.f32.mrb[188].mxu0 }
 0xc67   :  { %v13398_v56 = vpop.f32.mrb[189].mxu0 }
 0xc68   :  { %v13399_v4 = vadd.f32 %v13398_v56, %v13397_v60  ;;  %v13400_v32 = vpop.f32.mrb[190].mxu0 }
 0xc69   :  { %v13401_v37 = vpop.f32.mrb[191].mxu0 }
 0xc6a   :  { %v8912_v2 = vadd.f32 %v13399_v4, %v8840_v27  ;;  %v13402_v62 = vadd.f32 %v13401_v37, %v13400_v32 }
 0xc6c   :  { %v18098_v52 = vadd.f32 %v13402_v62, %v8843_v7  ;;  %v9049_v7 = vpop.permute.xlu0 %9048 }
 0xc6d   :  { %vm9064_vm8 = vcmp.eq.s32.totalorder %v9049_v7, 1 }
 0xc6e   :  { %v13403_v11 = vpop.f32.mrb[192].mxu0 }
 0xc6f   :  { %v13404_v10 = vpop.f32.mrb[193].mxu0 }
 0xc70   :  { %v13405_v41 = vadd.f32 %v13404_v10, %v13403_v11  ;;  %v13406_v20 = vpop.f32.mrb[194].mxu0 }
 0xc71   :  { %v13407_v18 = vpop.f32.mrb[195].mxu0 }
 0xc72   :  { %v18100_v6 = vadd.f32 %v13405_v41, %v8848_v5  ;;  %v13408_v45 = vadd.f32 %v13407_v18, %v13406_v20 }
 0xc74   :  { %v18102_v51 = vadd.f32 %v13408_v45, %v8851_v59 }
 0xc76   :  { %v13409_v44 = vpop.f32.mrb[196].mxu0 }
 0xc77   :  { %v13410_v50 = vpop.f32.mrb[197].mxu0 }
 0xc78   :  { %v13411_v16 = vadd.f32 %v13410_v50, %v13409_v44  ;;  %v13412_v43 = vpop.f32.mrb[198].mxu0 }
 0xc79   :  { %v13413_v19 = vpop.f32.mrb[199].mxu0 }
 0xc7a   :  { %v18104_v22 = vadd.f32 %v13411_v16, %v8856_v35 }
 0xcef   :  { %v13431_v9 = vpop.f32.mrb[200].mxu0 }
 0xcf0   :  { %v13432_v49 = vpop.f32.mrb[201].mxu0 }
 0xcf1   :  { %v13433_v15 = vadd.f32 %v13432_v49, %v13431_v9  ;;  %v13434_v36 = vpop.f32.mrb[202].mxu0 }
 0xcf2   :  { %v13435_v31 = vpop.f32.mrb[203].mxu0 }
 0xcf3   :  { %v8968_v33 = vadd.f32 %v13433_v15, %v8896_v34  ;;  %v13436_v23 = vadd.f32 %v13435_v31, %v13434_v36  ;;  %v9052_v36 = vpop.permute.xlu0 %9051 }
 0xcf4   :  { %vm9065_vm12 = vcmp.eq.s32.totalorder %v9052_v36, 1 }
 0xcf5   :  { %v8971_v58 = vadd.f32 %v13436_v23, %v8899_v26  ;;  %v9068_v63 = vsel %vm9059_vm3, %v8968_v33, -1e+30 }
 0xcf6   :  { %v9078_v34 = vsel %vm9077_vm5, %v9068_v63, -inf }
 0xcf7   :  { %v13437_v53 = vpop.f32.mrb[204].mxu0  ;;  %v9069_v40 = vsel %vm9060_vm6, %v8971_v58, -1e+30 }
 0xcf8   :  { %v13438_v29 = vpop.f32.mrb[205].mxu0  ;;  %v9079_v12 = vsel %vm9077_vm5, %v9069_v40, -inf }
 0xcf9   :  { %v13439_v3 = vadd.f32 %v13438_v29, %v13437_v53  ;;  %v13440_v14 = vpop.f32.mrb[206].mxu0 }
 0xcfa   :  { %v13441_v8 = vpop.f32.mrb[207].mxu0 }
 0xcfb   :  { %v8976_v54 = vadd.f32 %v13439_v3, %v8904_v38  ;;  %v13442_v30 = vadd.f32 %v13441_v8, %v13440_v14 }
 0xcfd   :  { %v9070_v39 = vsel %vm9061_vm4, %v8976_v54, -1e+30  ;;  %v8979_v48 = vadd.f32 %v13442_v30, %v8907_v17  ;;  %v9046_v17 = vpop.permute.xlu1 %9045  ;;  %v9055_v30 = vpop.permute.xlu0 %9054 }
 0xcfe   :  { %v9080_v26 = vsel %vm9077_vm5, %v9070_v39, -inf  ;;  %vm9063_vm11 = vcmp.eq.s32.totalorder %v9046_v17, 1  ;;  %vm9066_vm13 = vcmp.eq.s32.totalorder %v9055_v30, 1 }
 0xcff   :  { %v9081_v42 = vmax.f32 %v9078_v34, %v9080_v26  ;;  %v13443_v25 = vpop.f32.mrb[208].mxu0  ;;  %v18109_v11 = vsel %vm9062_vm7, %v8979_v48, -1e+30 }
 0xd00   :  { %v13444_v57 = vpop.f32.mrb[209].mxu0  ;;  %v9089_v59 = vsel %vm9077_vm5, %v18109_v11, -inf }
 0xd01   :  { %v9082_v60 = vmax.f32 %v9081_v42, %v9079_v12  ;;  %v13445_v56 = vadd.f32 %v13444_v57, %v13443_v25  ;;  %v13446_v27 = vpop.f32.mrb[210].mxu0  ;;  %v9058_v34 = vpop.permute.xlu1 %9057 }
 0xd02   :  { %v13447_v38 = vpop.f32.mrb[211].mxu0  ;;  %vm9067_vm14 = vcmp.eq.s32.totalorder %v9058_v34, 1 }
 0xd03   :  { %v9083_v4 = vrot.slane %v9082_v60, 4  ;;  %v8984_v32 = vadd.f32 %v13445_v56, %v8912_v2  ;;  %v13448_v37 = vadd.f32 %v13447_v38, %v13446_v27 }
 0xd05   :  { %v9084_v62 = vmax.f32 %v9082_v60, %v9083_v4  ;;  %v8987_v10 = vadd.f32 %v13448_v37, %v18098_v52  ;;  %v9072_v41 = vsel %vm9063_vm11, %v8984_v32, -1e+30  ;;  %v9141_v27 = vpop.permute.xlu1 %9140 }
 0xd06   :  { %v9090_v43 = vsel %vm9077_vm5, %v9072_v41, -inf }
 0xd07   :  { %v9085_v5 = vrot.slane %v9084_v62, 2  ;;  %v9073_v20 = vsel %vm9064_vm8, %v8987_v10, -1e+30  ;;  %v13449_v18 = vpop.f32.mrb[212].mxu0 }
 0xd08   :  { %v9091_v45 = vsel %vm9077_vm5, %v9073_v20, -inf  ;;  %v13450_v2 = vpop.f32.mrb[213].mxu0 }
 0xd09   :  { %v9086_v44 = vmax.f32 %v9084_v62, %v9085_v5  ;;  %v9092_v50 = vmax.f32 %v9089_v59, %v9091_v45  ;;  %v13451_v35 = vadd.f32 %v13450_v2, %v13449_v18  ;;  %v13452_v16 = vpop.f32.mrb[214].mxu0  ;;  %v9146_v59 = vpop.permute.xlu0 %9145 }
 0xd0a   :  { %v13453_v19 = vpop.f32.mrb[215].mxu0 }
 0xd0b   :  { %v9087_v52 = vrot.slane %v9086_v44, 1  ;;  %v9093_v9 = vmax.f32 %v9092_v50, %v9090_v43  ;;  %v8992_v49 = vadd.f32 %v13451_v35, %v18100_v6  ;;  %v13454_v15 = vadd.f32 %v13453_v19, %v13452_v16 }
 0xd0d   :  { %v9088_v31 = vmax.f32 %v9086_v44, %v9087_v52  ;;  %v9094_v21 = vrot.slane %v9093_v9, 4  ;;  %v8995_v33 = vadd.f32 %v13454_v15, %v18102_v51  ;;  %v9074_v26 = vsel %vm9065_vm12, %v8992_v49, -1e+30  ;;  %v9151_v44 = vpop.permute.xlu1 %9150 }
 0xd0e   :  { %v9100_v25 = vsel %vm9077_vm5, %v9074_v26, -inf }
 0xd0f   :  { %v9111_v23 = vsub.f32 %v9068_v63, %v9088_v31  ;;  %v9112_v58 = vsub.f32 %v9069_v40, %v9088_v31  ;;  %v9113_v53 = vsub.f32 %v9070_v39, %v9088_v31  ;;  %v9095_v29 = vmax.f32 %v9093_v9, %v9094_v21  ;;  %v13455_v0 = vpop.f32.mrb[216].mxu0  ;;  %v9156_v9 = vpop.permute.xlu0 %9155 }
 0xd10   :  { %v13456_v3 = vpop.f32.mrb[217].mxu0  ;;  %v9075_v40 = vsel %vm9066_vm13, %v8995_v33, -1e+30 }
 0xd11   :  { %v9120_v14 = vmul.f32 1.442695, %v9111_v23  ;;  %v9122_v8 = vmul.f32 1.442695, %v9112_v58  ;;  %v9124_v47 = vmul.f32 1.442695, %v9113_v53  ;;  %v13457_v54 = vadd.f32 %v13456_v3, %v13455_v0 }
 0xd12   :  { %v9096_v48 = vrot.slane %v9095_v29, 2  ;;  %v13458_v6 = vpop.f32.mrb[218].mxu0  ;;  %v9101_v56 = vsel %vm9077_vm5, %v9075_v40, -inf }
 0xd13   :  { %15338 = vpow2.f32 %v9120_v14  ;;  %v9000_v61 = vadd.f32 %v13457_v54, %v18104_v22  ;;  %v13459_v51 = vpop.f32.mrb[219].mxu0  ;;  %v9166_v54 = vpop.permute.xlu0 %9165 }
 0xd14   :  { %15340 = vpow2.f32 %v9122_v8  ;;  %v9097_v63 = vmax.f32 %v9095_v29, %v9096_v48  ;;  %v9161_v29 = vpop.permute.xlu1 %9160 }
 0xd15   :  { %15342 = vpow2.f32 %v9124_v47  ;;  %v9076_v39 = vsel %vm9067_vm14, %v9000_v61, -1e+30 }
 0xd16   :  { %v9098_v42 = vrot.slane %v9097_v63, 1  ;;  %v9102_v12 = vsel %vm9077_vm5, %v9076_v39, -inf }
 0xd17   :  { %v9103_v57 = vmax.f32 %v9100_v25, %v9102_v12 }
 0xd18   :  { %v9099_v60 = vmax.f32 %v9097_v63, %v9098_v42  ;;  %v9171_v25 = vpop.permute.xlu1 %9170 }
 0xd19   :  { %v9104_v38 = vmax.f32 %v9103_v57, %v9101_v56 }
 0xd1a   :  { %v9114_v22 = vsub.f32 %v18109_v11, %v9099_v60  ;;  %v9115_v4 = vsub.f32 %v9072_v41, %v9099_v60  ;;  %v9116_v32 = vsub.f32 %v9073_v20, %v9099_v60 }
 0xd1b   :  { %v9105_v37 = vrot.slane %v9104_v38, 4 }
 0xd1c   :  { %v9126_v7 = vmul.f32 1.442695, %v9114_v22  ;;  %v9128_v17 = vmul.f32 1.442695, %v9115_v4  ;;  %v9130_v62 = vmul.f32 1.442695, %v9116_v32  ;;  %v9181_v32 = vpop.permute.xlu1 %9180 }
 0xd1d   :  { %v15339_v10 = vpop.eup %15338  ;;  %v9106_v5 = vmax.f32 %v9104_v38, %v9105_v37  ;;  %v9176_v38 = vpop.permute.xlu0 %9175 }
 0xd1e   :  { %v15341_v18 = vpop.eup %15340  ;;  %v18123_v45 = vmul.f32 %v15339_v10, %v9141_v27  ;;  %15344 = vpow2.f32 %v9126_v7 }
 0xd1f   :  { %v15343_v2 = vpop.eup %15342  ;;  %v18125_v50 = vmul.f32 %v15341_v18, %v9146_v59  ;;  %15346 = vpow2.f32 %v9128_v17  ;;  %v9107_v35 = vrot.slane %v9106_v5, 2 }
 0xd20   :  { %v9185_v11 = vmul.f32 %v15343_v2, %v9151_v44  ;;  %v9192_v41 = vsel %vm9077_vm5, %v18123_v45, 0.0  ;;  %15348 = vpow2.f32 %v9130_v62 }
 0xd21   :  { %v9193_v20 = vsel %vm9077_vm5, %v18125_v50, 0.0  ;;  %v9108_v16 = vmax.f32 %v9106_v5, %v9107_v35 }
 0xd22   :  { %v9194_v43 = vadd.f32 %v9193_v20, %v9192_v41  ;;  %v9195_v19 = vsel %vm9077_vm5, %v9185_v11, 0.0 }
 0xd23   :  { %v9109_v52 = vrot.slane %v9108_v16, 1 }
 0xd24   :  { %v9196_v49 = vadd.f32 %v9195_v19, %v9194_v43 }
 0xd25   :  { %v9110_v15 = vmax.f32 %v9108_v16, %v9109_v52 }
 0xd26   :  { %v9197_v36 = vrot.slane %v9196_v49, 4 }
 0xd27   :  { %v9117_v31 = vsub.f32 %v9074_v26, %v9110_v15  ;;  %v9118_v21 = vsub.f32 %v9075_v40, %v9110_v15  ;;  %v9119_v33 = vsub.f32 %v9076_v39, %v9110_v15 }
 0xd28   :  { %v15345_v23 = vpop.eup %15344  ;;  %v9198_v58 = vadd.f32 %v9197_v36, %v9196_v49 }
 0xd29   :  { %v15347_v53 = vpop.eup %15346  ;;  %v9132_v0 = vmul.f32 1.442695, %v9117_v31  ;;  %v9134_v3 = vmul.f32 1.442695, %v9118_v21  ;;  %v9136_v14 = vmul.f32 1.442695, %v9119_v33  ;;  %v9186_v8 = vmul.f32 %v15345_v23, %v9156_v9 }
 0xd2a   :  { %v15349_v47 = vpop.eup %15348  ;;  %v9199_v30 = vrot.slane %v9198_v58, 2  ;;  %v9187_v48 = vmul.f32 %v15347_v53, %v9161_v29 }
 0xd2b   :  { %15350 = vpow2.f32 %v9132_v0  ;;  %v9188_v6 = vmul.f32 %v15349_v47, %v9166_v54  ;;  %v9203_v34 = vsel %vm9077_vm5, %v9186_v8, 0.0  ;;  %v18593_v54 = vld [vmem:[#allocation85_spill] sm:$0xff] }
 0xd2c   :  { %v9200_v61 = vadd.f32 %v9199_v30, %v9198_v58  ;;  %15352 = vpow2.f32 %v9134_v3  ;;  %v9204_v26 = vsel %vm9077_vm5, %v9187_v48, 0.0 }
 0xd2d   :  { %15354 = vpow2.f32 %v9136_v14  ;;  %v9205_v51 = vadd.f32 %v9204_v26, %v9203_v34  ;;  %v9206_v40 = vsel %vm9077_vm5, %v9188_v6, 0.0  ;;  %v18597_v34 = vld [vmem:[#allocation87_spill] sm:$0xff] }
 0xd2e   :  { %v9201_v63 = vrot.slane %v9200_v61, 1 }
 0xd2f   :  { %v9207_v39 = vadd.f32 %v9206_v40, %v9205_v51  ;;  %v15080_v40 = vld [vmem:[%s18595_s23 + $0x4] ss:$12 sps:$4 sm:$0xff]  }
 0xd30   :  { %v9202_v42 = vadd.f32 %v9201_v63, %v9200_v61  ;;  %v18598_v61 = vld [vmem:[#allocation90_spill] sm:$0xff] }
 0xd31   :  { %v9208_v12 = vrot.slane %v9207_v39, 4  ;;  %v9391_v26 = vsel %vm9266_vm9, %v18598_v61, 0  ;;  %v15078_v63 = vld [vmem:[%s18595_s23] ss:$12 sps:$4 sm:$0xff]  }
 0xd32   :  { %15356 = vrcp.f32 %v9202_v42  ;;  %v15084_v42 = vld [vmem:[%s18595_s23 + $0x1c] ss:$12 sps:$4 sm:$0xff]  }
 0xd33   :  { %v9209_v57 = vadd.f32 %v9208_v12, %v9207_v39  ;;  %v15081_v39 = vld [vmem:[%s18595_s23 + $0x68] ss:$12 sps:$4 sm:$0xff]   ;;  %v15085_v12 = vld [vmem:[%s18595_s23 + $0x80] ss:$12 sps:$4 sm:$0xff]  }
 0xd34   :  { %13713 = vmatpush3.bf16.msra.mxu1 %v15081_v39 }
 0xd35   :  { %v15351_v60 = vpop.eup %15350  ;;  %v9210_v56 = vrot.slane %v9209_v57, 2  ;;  %13714 = vmatprep.subr.bf16.mxu1 %v18582_v24 }
 0xd36   :  { %v15353_v27 = vpop.eup %15352  ;;  %v9189_v22 = vmul.f32 %v15351_v60, %v9171_v25  ;;  %v15082_v25 = vld [vmem:[%s18595_s23 + $0x18] ss:$12 sps:$4 sm:$0xff]   ;;  %v15086_v60 = vld [vmem:[%s18595_s23 + $0x30] ss:$12 sps:$4 sm:$0xff]  }
 0xd37   :  { %v15355_v4 = vpop.eup %15354  ;;  %v9211_v37 = vadd.f32 %v9210_v56, %v9209_v57  ;;  %v9190_v7 = vmul.f32 %v15353_v27, %v9176_v38  ;;  %v15088_v57 = vld [vmem:[%s18595_s23 + $0x34] ss:$12 sps:$4 sm:$0xff]   ;;  %v15089_v56 = vld [vmem:[%s18595_s23 + $0x98] ss:$12 sps:$4 sm:$0xff]  }
 0xd38   :  { %v9191_v17 = vmul.f32 %v15355_v4, %v9181_v32  ;;  %v9214_v62 = vsel %vm9077_vm5, %v9189_v22, 0.0  ;;  %13715 = vmatpush3.bf16.msra.mxu1 %v15085_v12  ;;  %v15092_v27 = vld [vmem:[%s18595_s23 + $0x4c] ss:$12 sps:$4 sm:$0xff]   ;;  %v15090_v38 = vld [vmem:[%s18595_s23 + $0x48] ss:$12 sps:$4 sm:$0xff]  }
 0xd39   :  { %v9212_v10 = vrot.slane %v9211_v37, 1  ;;  %v9215_v5 = vsel %vm9077_vm5, %v9190_v7, 0.0  ;;  %13716 = vmatprep.subr.bf16.mxu1 %v18582_v24  ;;  %v15096_v12 = vld [vmem:[%s18595_s23 + $0x20] ss:$12 sps:$4 sm:$0xff]  }
 0xd3a   :  { %v9216_v18 = vadd.f32 %v9215_v5, %v9214_v62  ;;  %v9217_v2 = vsel %vm9077_vm5, %v9191_v17, 0.0 }
 0xd3b   :  { %v9213_v59 = vadd.f32 %v9212_v10, %v9211_v37 }
 0xd3c   :  { %v15357_v44 = vpop.eup %15356  ;;  %v9218_v35 = vadd.f32 %v9217_v2, %v9216_v18  ;;  %13717 = vmatpush3.bf16.msra.mxu1 %v15089_v56  ;;  %v16021_v18 = vmov 1934713408  }
 0xd3d   :  { %v9230_v41 = vmul.f32 %v15357_v44, %v9185_v11  ;;  %v9228_v20 = vmul.f32 %v15357_v44, %v18123_v45  ;;  %v9229_v16 = vmul.f32 %v15357_v44, %v18125_v50  ;;  %15358 = vrcp.f32 %v9213_v59  ;;  %13718 = vmatprep.subr.bf16.mxu1 %v18582_v24 }
 0xd3e   :  { %v9219_v43 = vrot.slane %v9218_v35, 4  ;;  %v9580_v59 = vunpack.c.l.s4 %v16021_v18  ;;  %v15105_v18 = vld [vmem:[%s18595_s23 + $0x128] ss:$12 sps:$4 sm:$0xff]  }
 0xd3f   :  { %v9240_v19 = vpack.c.bf16 %v9229_v16, %v9228_v20  ;;  %v9241_v49 = vpack.c.bf16 %v9230_v41, %v9230_v41 }
 0xd40   :  { %v9220_v52 = vadd.f32 %v9219_v43, %v9218_v35  ;;  %v9581_v43 = vunpack.c.0.s8 %v9580_v59  ;;  %v15106_v59 = vld [vmem:[%s18595_s23 + $0x78] ss:$12 sps:$4 sm:$0xff]  }
 0xd41   :  { %9246 = vxpose.xlu0.c.b16.start [1/2] (short) (narrow) %v9240_v19, 16 }
 0xd42   :  { %v9221_v9 = vrot.slane %v9220_v52, 2 }
 0xd44   :  { %v9222_v15 = vadd.f32 %v9221_v9, %v9220_v52  ;;  %v9584_v52 = vsub.s32 %v9581_v43, %v18585_v55  ;;  %v15114_v43 = vld [vmem:[%s18595_s23 + $0xa8] ss:$12 sps:$4 sm:$0xff]  }
 0xd45   :  { %9247 = vxpose.xlu0.c.b16.end [2/2] (short) (narrow) %v9241_v49, 16 }
 0xd46   :  { %v9223_v36 = vrot.slane %v9222_v15, 1 }
 0xd47   :  { %v15359_v31 = vpop.eup %15358 }
 0xd48   :  { %v9231_v21 = vmul.f32 %v15359_v31, %v9186_v8  ;;  %v9232_v33 = vmul.f32 %v15359_v31, %v9187_v48  ;;  %v9233_v23 = vmul.f32 %v15359_v31, %v9188_v6  ;;  %v9224_v58 = vadd.f32 %v9223_v36, %v9222_v15  ;;  %v18592_v8 = vld [vmem:[#allocation86_spill] sm:$0xff]  ;;  %v18596_v48 = vld [vmem:[#allocation88_spill] sm:$0xff] }
 0xd49   :  { %v18594_v30 = vpack.c.bf16 %v18592_v8, %v18593_v54  ;;  %v15094_v8 = vld [vmem:[%s18595_s23 + $0x8] ss:$12 sps:$4 sm:$0xff]  }
 0xd4a   :  { %v9242_v11 = vpack.c.bf16 %v9232_v33, %v9231_v21  ;;  %15360 = vrcp.f32 %v9224_v58  ;;  %v9243_v45 = vpack.c.bf16 %v9233_v23, %v9233_v23 }
 0xd4c   :  { %9310 = vxpose.xlu1.c.b16.start [1/2] (short) (narrow) %v9242_v11, 16 }
 0xd50   :  { %9311 = vxpose.xlu1.c.b16.end [2/2] (short) (narrow) %v9243_v45, 16 }
 0xd54   :  { %v15361_v50 = vpop.eup %15360 }
 0xd55   :  { %v9234_v53 = vmul.f32 %v15361_v50, %v9189_v22  ;;  %v9235_v29 = vmul.f32 %v15361_v50, %v9190_v7  ;;  %v9236_v0 = vmul.f32 %v15361_v50, %v9191_v17  ;;  %v15093_v22 = vld [vmem:[%s18595_s23 + $0xb0] ss:$12 sps:$4 sm:$0xff]   ;;  %v16020_v17 = vmov 1983009808  }
 0xd56   :  { %13719 = vmatpush3.bf16.msra.mxu1 %v15093_v22  ;;  %v9563_v62 = vunpack.c.l.s4 %v16020_v17  ;;  %v15098_v22 = vld [vmem:[%s18595_s23 + $0x38] ss:$12 sps:$4 sm:$0xff]   ;;  %v15101_v17 = vld [vmem:[%s18595_s23 + $0x110] ss:$12 sps:$4 sm:$0xff]  }
 0xd57   :  { %v9244_v3 = vpack.c.bf16 %v9235_v29, %v9234_v53  ;;  %v9245_v14 = vpack.c.bf16 %v9236_v0, %v9236_v0  ;;  %13724 = vmatprep.subr.bf16.mxu1 %v18582_v24 }
 0xd58   :  { %v9564_v5 = vunpack.c.0.s8 %v9563_v62  ;;  %v15102_v62 = vld [vmem:[%s18595_s23 + $0x60] ss:$12 sps:$4 sm:$0xff]  }
 0xd59   :  { %9372 = vxpose.xlu0.c.b16.start [1/2] (short) (narrow) %v9244_v3, 16 }
 0xd5a   :  { %v9567_v16 = vsub.s32 %v9564_v5, %v18585_v55  ;;  %v15108_v5 = vld [vmem:[%s18595_s23 + $0x7c] ss:$12 sps:$4 sm:$0xff]  }
 0xd5d   :  { %9373 = vxpose.xlu0.c.b16.end [2/2] (short) (narrow) %v9245_v14, 16 }
 0xda7   :  { %v9254_v47 = vpop.trf.xlu0 }
 0xda8   :  { %13681 = vmatmul.mubr.msk.bf16.vlgmr.msra.gmra.mrb[220].mxu0 %vm9262_vm15, %v9254_v47 }
 0xda9   :  { %13685 = vmatpush3.bf16.msra.mxu0 %v18594_v30  ;;  %13688 = vmatprep.mubr.msk.bf16.mxu0 %vm16017_vm0, %v18582_v24 }
 0xdaa   :  { %13686 = vmatprep.subr.bf16.mxu0 %v18582_v24 }
 0xdad   :  { %13687 = vmatpush3.bf16.msra.mxu0 %v18596_v48 }
 0xdae   :  { %13692 = vmatprep.subr.bf16.mxu0 %v18582_v24 }
 0xdb2   :  { %v9318_v6 = vpop.trf.xlu1 }
 0xdb3   :  { %13689 = vmatmul.mubr.msk.bf16.vlgmr.msra.gmra.mrb[224].mxu0 %vm9262_vm15, %v9318_v6 }
 0xdb4   :  { %13693 = vmatpush3.bf16.msra.mxu0 %v18597_v34  ;;  %13696 = vmatprep.mubr.msk.bf16.mxu0 %vm16017_vm0, %v18582_v24 }
 0xdb5   :  { %13694 = vmatprep.subr.bf16.mxu0 %v18582_v24 }
 0xdb8   :  { %13695 = vmatpush3.bf16.msra.mxu0 %v9391_v26 }
 0xdb9   :  { %9711 = vmatprep.subr.bf16.mxu0 %v15080_v40 }
 0xdbf   :  { %v9380_v51 = vpop.trf.xlu0 }
 0xdc0   :  { %13697 = vmatmul.mubr.msk.bf16.vlgmr.msra.gmra.mrb[228].mxu0 %vm9262_vm15, %v9380_v51  ;;  %v15095_v51 = vld [vmem:[%s18595_s23 + $0xc8] ss:$12 sps:$4 sm:$0xff]  }
 0xdc1   :  { %9743 = vmatprep.mubr.bf16.mxu0 %v18587_v1  ;;  %9712 = vmatpush1.bf16.msra.mxu0 %v15078_v63 }
 0xdc2   :  { %9713 = vmatprep.subr.bf16.mxu0 %v15084_v42 }
 0xdc5   :  { %9714 = vmatpush1.bf16.msra.mxu0 %v15082_v25 }
 0xdc6   :  { %9715 = vmatprep.subr.bf16.mxu0 %v15088_v57 }
 0xdc9   :  { %9716 = vmatpush1.bf16.msra.mxu0 %v15086_v60 }
 0xdca   :  { %9717 = vmatprep.subr.bf16.mxu0 %v15092_v27 }
 0xdcd   :  { %9718 = vmatpush1.bf16.msra.mxu0 %v15090_v38  ;;  %v15097_v38 = vld [vmem:[%s18595_s23 + $0xe0] ss:$12 sps:$4 sm:$0xff]  }
 0xdce   :  { %13700 = vmatprep.subr.bf16.mxu0 %v18582_v24 }
 0xe7b   :  { %v18175_v4 = vpop.f32.mrb[220].mxu0 }
 0xe7c   :  { %v13682_v32 = vpop.f32.mrb[221].mxu0  ;;  %v9561_v49 = vpack.c.bf16 %v18175_v4, %v18175_v4 }
 0xe7d   :  { %v9307_v37 = vpop.f32.mrb[222].mxu0  ;;  %v15099_v32 = vld [vmem:[%s18595_s23 + $0xf8] ss:$12 sps:$4 sm:$0xff]  }
 0xe7e   :  { %v13683_v7 = vpop.f32.mrb[223].mxu0  ;;  %v9568_v58 = vrot.slane %v9561_v49, %v9567_v16  ;;  %v15100_v37 = vld [vmem:[%s18595_s23 + $0x50] ss:$12 sps:$4 sm:$0xff]  }
 0xe7f   :  { %v15104_v7 = vld [vmem:[%s18595_s23 + $0x64] ss:$12 sps:$4 sm:$0xff]   ;;  %v15124_v49 = vld [vmem:[%s18595_s23 + $0xdc] ss:$12 sps:$4 sm:$0xff]  }
 0xe86   :  { %v18177_v10 = vpop.f32.mrb[224].mxu0 }
 0xe87   :  { %v11845_v2 = vpack.c.bf16 %v18177_v10, %v18175_v4  ;;  %v13690_v44 = vpop.f32.mrb[225].mxu0  ;;  %v9595_v41 = vpack.c.bf16 %v18177_v10, %v18177_v10  ;;  %v15332_v4 = vld [vmem:[#allocation35 + $0x10] sm:$0xff]   ;;  %v15333_v10 = vld [vmem:[#allocation35 + $0x18] sm:$0xff]  }
 0xe88   :  { %v9369_v35 = vpop.f32.mrb[226].mxu0  ;;  %v15112_v44 = vld [vmem:[%s18595_s23 + $0x94] ss:$12 sps:$4 sm:$0xff]  }
 0xe89   :  { %v13691_v20 = vpop.f32.mrb[227].mxu0  ;;  %v9602_v19 = vrot.slane %v9595_v41, %v9567_v16  ;;  %v15109_v35 = vld [vmem:[%s18595_s23 + $0x140] ss:$12 sps:$4 sm:$0xff]   ;;  %v15110_v41 = vld [vmem:[%s18595_s23 + $0x90] ss:$12 sps:$4 sm:$0xff]  }
 0xe8a   :  { %v15116_v20 = vld [vmem:[%s18595_s23 + $0xac] ss:$12 sps:$4 sm:$0xff]  }
 0xe8b   :  { %v9603_v9 = vcombine.high %v9602_v19, %v18587_v1  ;;  %v9610_v15 = vrot.slane %v9602_v19, %v9584_v52  ;;  %v15120_v19 = vld [vmem:[%s18595_s23 + $0xc4] ss:$12 sps:$4 sm:$0xff]  }
 0xe8d   :  { %v9617_v33 = vrot.slane %v9603_v9, %v9584_v52  ;;  %v9618_v50 = vcombine.high %v9610_v15, %v18587_v1  ;;  %v9624_v14 = vshrl.u32 %v9610_v15, 16  ;;  %v15118_v9 = vld [vmem:[%s18595_s23 + $0xc0] ss:$12 sps:$4 sm:$0xff]  }
 0xe8f   :  { %v9619_v29 = vcombine.high %v9617_v33, %v18587_v1  ;;  %v9630_v47 = vshrl.u32 %v9618_v50, 16  ;;  %v9636_v34 = vshrl.u32 %v9617_v33, 16 }
 0xe91   :  { %v9642_v63 = vshrl.u32 %v9619_v29, 16 }
 0xe93   :  { %v9427_v36 = vpop.f32.mrb[228].mxu0 }
 0xe94   :  { %v18188_v31 = vpack.c.bf16 %v9427_v36, %v9427_v36  ;;  %v13698_v21 = vpop.f32.mrb[229].mxu0  ;;  %v15122_v36 = vld [vmem:[%s18595_s23 + $0xd8] ss:$12 sps:$4 sm:$0xff]  }
 0xe95   :  { %v9430_v23 = vpop.f32.mrb[230].mxu0  ;;  %v15128_v21 = vld [vmem:[%s18595_s23 + $0xf4] ss:$12 sps:$4 sm:$0xff]  }
 0xe96   :  { %v9576_v11 = vrot.slane %v18188_v31, %v9567_v16  ;;  %v13699_v45 = vpop.f32.mrb[231].mxu0  ;;  %v15113_v16 = vld [vmem:[%s18595_s23 + $0x158] ss:$12 sps:$4 sm:$0xff]   ;;  %v15126_v23 = vld [vmem:[%s18595_s23 + $0xf0] ss:$12 sps:$4 sm:$0xff]  }
 0xe97   :  { %v15130_v45 = vld [vmem:[%s18595_s23 + $0x108] ss:$12 sps:$4 sm:$0xff]  }
 0xe98   :  { %v9577_v55 = vcombine.low %v9568_v58, %v9576_v11  ;;  %v9578_v53 = vcombine.high %v9568_v58, %v9576_v11  ;;  %v15132_v58 = vld [vmem:[%s18595_s23 + $0x10c] ss:$12 sps:$4 sm:$0xff]  }
 0xe99   :  { %v15129_v11 = vld [vmem:[%s18595_s23 + $0x1b8] ss:$12 sps:$4 sm:$0xff]  }
 0xe9a   :  { %v9585_v0 = vrot.slane %v9577_v55, %v9584_v52  ;;  %v9592_v3 = vrot.slane %v9578_v53, %v9584_v52  ;;  %v15117_v52 = vld [vmem:[%s18595_s23 + $0x170] ss:$12 sps:$4 sm:$0xff]   ;;  %v15134_v53 = vld [vmem:[%s18595_s23 + $0x120] ss:$12 sps:$4 sm:$0xff]  }
 0xe9b   :  { %v15133_v55 = vld [vmem:[%s18595_s23 + $0x1d0] ss:$12 sps:$4 sm:$0xff]  }
 0xe9c   :  { %v9593_v54 = vcombine.high %v9585_v0, %v18587_v1  ;;  %v9594_v30 = vcombine.high %v9592_v3, %v18587_v1  ;;  %v9622_v48 = vpack.i.b16 %v9610_v15, %v9585_v0  ;;  %v9623_v6 = vshrl.u32 %v9585_v0, 16  ;;  %v15121_v15 = vld [vmem:[%s18595_s23 + $0x188] ss:$12 sps:$4 sm:$0xff]  }
 0xe9d   :  { %v18196_v61 = vpack.i.b16 %v9617_v33, %v9592_v3  ;;  %v9635_v26 = vshrl.u32 %v9592_v3, 16  ;;  %v15125_v33 = vld [vmem:[%s18595_s23 + $0x1a0] ss:$12 sps:$4 sm:$0xff]   ;;  %v15137_v0 = vld [vmem:[%s18595_s23 + $0x1e8] ss:$12 sps:$4 sm:$0xff]  }
 0xe9e   :  { %v18199_v40 = vpack.i.b16 %v9624_v14, %v9623_v6  ;;  %v9629_v39 = vshrl.u32 %v9593_v54, 16  ;;  %v9641_v42 = vshrl.u32 %v9594_v30, 16  ;;  %13054 = vmatmul.mubr.msk.bf16.vlgmr.msra.gmra.mrb[232].mxu0 %vm529_vm1, %v9622_v48  ;;  %v18202_v25 = vpack.i.b16 %v9618_v50, %v9593_v54  ;;  %v15136_v50 = vld [vmem:[%s18595_s23 + $0x124] ss:$12 sps:$4 sm:$0xff]   ;;  %v15144_v14 = vld [vmem:[%s18595_s23 + $0x154] ss:$12 sps:$4 sm:$0xff]  }
 0xe9f   :  { %13701 = vmatpush3.bf16.msra.mxu0 %v15094_v8  ;;  %13708 = vmatprep.mubr.msk.bf16.mxu0 %vm16017_vm0, %v18582_v24  ;;  %v18207_v57 = vpack.i.b16 %v9636_v34, %v9635_v26  ;;  %v18209_v60 = vpack.i.b16 %v9619_v29, %v9594_v30  ;;  %v15140_v29 = vld [vmem:[%s18595_s23 + $0x13c] ss:$12 sps:$4 sm:$0xff]   ;;  %v15138_v3 = vld [vmem:[%s18595_s23 + $0x138] ss:$12 sps:$4 sm:$0xff]   ;;  %v15150_v26 = vld [vmem:[%s18595_s23 + $0x180] ss:$12 sps:$4 sm:$0xff]  }
 0xea0   :  { %13721 = vmatmul.mubr.msk.bf16.vlgmr.msra.gmra.mrb[176].mxu1 %vm529_vm1, %v18199_v40  ;;  %13702 = vmatprep.subr.bf16.mxu0 %v18582_v24  ;;  %v18214_v56 = vpack.i.b16 %v9630_v47, %v9629_v39  ;;  %v18216_v27 = vpack.i.b16 %v9642_v63, %v9641_v42  ;;  %v15141_v47 = vld [vmem:[%s18595_s23 + $0x200] ss:$12 sps:$4 sm:$0xff]   ;;  %v15142_v8 = vld [vmem:[%s18595_s23 + $0x150] ss:$12 sps:$4 sm:$0xff]   ;;  %v15145_v30 = vld [vmem:[%s18595_s23 + $0x218] ss:$12 sps:$4 sm:$0xff]  }
 0xea1   :  { %13725 = vmatpush3.bf16.msra.mxu1 %v15095_v51  ;;  %13732 = vmatprep.mubr.msk.bf16.mxu1 %vm16017_vm0, %v18582_v24  ;;  %v15148_v54 = vld [vmem:[%s18595_s23 + $0x16c] ss:$12 sps:$4 sm:$0xff]   ;;  %v15152_v6 = vld [vmem:[%s18595_s23 + $0x184] ss:$12 sps:$4 sm:$0xff]   ;;  %v15156_v51 = vld [vmem:[%s18595_s23 + $0x19c] ss:$12 sps:$4 sm:$0xff]  }
 0xea2   :  { %13726 = vmatprep.subr.bf16.mxu1 %v18582_v24  ;;  %v15149_v34 = vld [vmem:[%s18595_s23 + $0x230] ss:$12 sps:$4 sm:$0xff]   ;;  %v15153_v63 = vld [vmem:[%s18595_s23 + $0x248] ss:$12 sps:$4 sm:$0xff]   ;;  %v15157_v42 = vld [vmem:[%s18595_s23 + $0x260] ss:$12 sps:$4 sm:$0xff]  }
 0xea3   :  { %13703 = vmatpush3.bf16.msra.mxu0 %v15096_v12  ;;  %v15160_v39 = vld [vmem:[%s18595_s23 + $0x1b4] ss:$12 sps:$4 sm:$0xff]   ;;  %v15164_v12 = vld [vmem:[%s18595_s23 + $0x1cc] ss:$12 sps:$4 sm:$0xff]  }
 0xea4   :  { %13704 = vmatprep.subr.bf16.mxu0 %v18582_v24 }
 0xea5   :  { %13727 = vmatpush3.bf16.msra.mxu1 %v15097_v38  ;;  %v15162_v38 = vld [vmem:[%s18595_s23 + $0x1c8] ss:$12 sps:$4 sm:$0xff]  }
 0xea6   :  { %13728 = vmatprep.subr.bf16.mxu1 %v18582_v24 }
 0xea7   :  { %13705 = vmatpush3.bf16.msra.mxu0 %v15098_v22  ;;  %v15168_v22 = vld [vmem:[%s18595_s23 + $0x1e4] ss:$12 sps:$4 sm:$0xff]  }
 0xea8   :  { %13706 = vmatprep.subr.bf16.mxu0 %v18582_v24 }
 0xea9   :  { %13729 = vmatpush3.bf16.msra.mxu1 %v15099_v32  ;;  %v15165_v32 = vld [vmem:[%s18595_s23 + $0x290] ss:$12 sps:$4 sm:$0xff]  }
 0xeaa   :  { %13730 = vmatprep.subr.bf16.mxu1 %v18582_v24 }
 0xeab   :  { %13707 = vmatpush3.bf16.msra.mxu0 %v15100_v37  ;;  %v15166_v37 = vld [vmem:[%s18595_s23 + $0x1e0] ss:$12 sps:$4 sm:$0xff]  }
 0xeac   :  { %9859 = vmatprep.subr.bf16.mxu0 %v15104_v7  ;;  %v15172_v7 = vld [vmem:[%s18595_s23 + $0x1fc] ss:$12 sps:$4 sm:$0xff]  }
 0xead   :  { %13731 = vmatpush3.bf16.msra.mxu1 %v15101_v17  ;;  %v15169_v17 = vld [vmem:[%s18595_s23 + $0x2a8] ss:$12 sps:$4 sm:$0xff]  }
 0xeae   :  { %13709 = vmatmul.mubr.msk.bf16.vlgmr.msra.gmra.mrb[236].mxu0 %vm529_vm1, %v9622_v48  ;;  %13736 = vmatprep.subr.bf16.mxu1 %v18582_v24  ;;  %v15146_v48 = vld [vmem:[%s18595_s23 + $0x168] ss:$12 sps:$4 sm:$0xff]  }
 0xeaf   :  { %9860 = vmatpush1.bf16.msra.mxu0 %v15102_v62  ;;  %9891 = vmatprep.mubr.bf16.mxu0 %v18587_v1  ;;  %v15170_v62 = vld [vmem:[%s18595_s23 + $0x1f8] ss:$12 sps:$4 sm:$0xff]  }
 0xeb0   :  { %13733 = vmatmul.mubr.msk.bf16.vlgmr.msra.gmra.mrb[180].mxu1 %vm529_vm1, %v18202_v25  ;;  %9861 = vmatprep.subr.bf16.mxu0 %v15108_v5  ;;  %v15176_v5 = vld [vmem:[%s18595_s23 + $0x214] ss:$12 sps:$4 sm:$0xff]  }
 0xeb1   :  { %13737 = vmatpush3.bf16.msra.mxu1 %v15105_v18  ;;  %13744 = vmatprep.mubr.msk.bf16.mxu1 %vm16017_vm0, %v18582_v24  ;;  %v15173_v18 = vld [vmem:[%s18595_s23 + $0x2c0] ss:$12 sps:$4 sm:$0xff]  }
 0xeb2   :  { %13738 = vmatprep.subr.bf16.mxu1 %v18582_v24 }
 0xeb3   :  { %9862 = vmatpush1.bf16.msra.mxu0 %v15106_v59  ;;  %v15180_v59 = vld [vmem:[%s18595_s23 + $0x22c] ss:$12 sps:$4 sm:$0xff]  }
 0xeb4   :  { %9863 = vmatprep.subr.bf16.mxu0 %v15112_v44  ;;  %v15177_v44 = vld [vmem:[%s18595_s23 + $0x2d8] ss:$12 sps:$4 sm:$0xff]  }
 0xeb5   :  { %13739 = vmatpush3.bf16.msra.mxu1 %v15109_v35  ;;  %v15178_v35 = vld [vmem:[%s18595_s23 + $0x228] ss:$12 sps:$4 sm:$0xff]  }
 0xeb6   :  { %13740 = vmatprep.subr.bf16.mxu1 %v18582_v24 }
 0xeb7   :  { %9864 = vmatpush1.bf16.msra.mxu0 %v15110_v41  ;;  %v15184_v41 = vld [vmem:[%s18595_s23 + $0x244] ss:$12 sps:$4 sm:$0xff]  }
 0xeb8   :  { %9865 = vmatprep.subr.bf16.mxu0 %v15116_v20  ;;  %v15181_v20 = vld [vmem:[%s18595_s23 + $0x2f0] ss:$12 sps:$4 sm:$0xff]  }
 0xeb9   :  { %13741 = vmatpush3.bf16.msra.mxu1 %v15113_v16  ;;  %v15182_v16 = vld [vmem:[%s18595_s23 + $0x240] ss:$12 sps:$4 sm:$0xff]  }
 0xeba   :  { %13742 = vmatprep.subr.bf16.mxu1 %v18582_v24 }
 0xebb   :  { %9866 = vmatpush1.bf16.msra.mxu0 %v15114_v43  ;;  %v15187_v43 = vld [vmem:[%s18595_s23 + $0x25c] ss:$12 sps:$4 sm:$0xff]  }
 0xebc   :  { %10007 = vmatprep.subr.bf16.mxu0 %v15120_v19  ;;  %v15185_v19 = vld [vmem:[%s18595_s23 + $0x258] ss:$12 sps:$4 sm:$0xff]  }
 0xebd   :  { %13743 = vmatpush3.bf16.msra.mxu1 %v15117_v52  ;;  %v15190_v52 = vld [vmem:[%s18595_s23 + $0x274] ss:$12 sps:$4 sm:$0xff]  }
 0xebe   :  { %13068 = vmatmul.mubr.msk.bf16.vlgmr.msra.gmra.mrb[240].mxu0 %vm529_vm1, %v18199_v40  ;;  %13748 = vmatprep.subr.bf16.mxu1 %v18582_v24  ;;  %v15154_v40 = vld [vmem:[%s18595_s23 + $0x198] ss:$12 sps:$4 sm:$0xff]  }
 0xebf   :  { %10008 = vmatpush1.bf16.msra.mxu0 %v15118_v9  ;;  %10039 = vmatprep.mubr.bf16.mxu0 %v18587_v1  ;;  %v15188_v9 = vld [vmem:[%s18595_s23 + $0x270] ss:$12 sps:$4 sm:$0xff]  }
 0xec0   :  { %13745 = vmatmul.mubr.msk.bf16.vlgmr.msra.gmra.mrb[184].mxu1 %vm529_vm1, %v18214_v56  ;;  %10009 = vmatprep.subr.bf16.mxu0 %v15124_v49  ;;  %v15193_v49 = vld [vmem:[%s18595_s23 + $0x28c] ss:$12 sps:$4 sm:$0xff]  }
 0xec1   :  { %13749 = vmatpush3.bf16.msra.mxu1 %v15121_v15  ;;  %13756 = vmatprep.mubr.msk.bf16.mxu1 %vm16017_vm0, %v18582_v24  ;;  %v15196_v15 = vld [vmem:[%s18595_s23 + $0x2a4] ss:$12 sps:$4 sm:$0xff]  }
 0xec2   :  { %13750 = vmatprep.subr.bf16.mxu1 %v18582_v24 }
 0xec3   :  { %10010 = vmatpush1.bf16.msra.mxu0 %v15122_v36  ;;  %v15194_v36 = vld [vmem:[%s18595_s23 + $0x2a0] ss:$12 sps:$4 sm:$0xff]  }
 0xec4   :  { %10011 = vmatprep.subr.bf16.mxu0 %v15128_v21  ;;  %v15199_v21 = vld [vmem:[%s18595_s23 + $0x2bc] ss:$12 sps:$4 sm:$0xff]  }
 0xec5   :  { %13751 = vmatpush3.bf16.msra.mxu1 %v15125_v33  ;;  %v15197_v33 = vld [vmem:[%s18595_s23 + $0x2b8] ss:$12 sps:$4 sm:$0xff]  }
 0xec6   :  { %13752 = vmatprep.subr.bf16.mxu1 %v18582_v24 }
 0xec7   :  { %10012 = vmatpush1.bf16.msra.mxu0 %v15126_v23  ;;  %v15202_v23 = vld [vmem:[%s18595_s23 + $0x2d4] ss:$12 sps:$4 sm:$0xff]  }
 0xec8   :  { %10013 = vmatprep.subr.bf16.mxu0 %v15132_v58  ;;  %v15200_v58 = vld [vmem:[%s18595_s23 + $0x2d0] ss:$12 sps:$4 sm:$0xff]  }
 0xec9   :  { %13753 = vmatpush3.bf16.msra.mxu1 %v15129_v11  ;;  %v15205_v11 = vld [vmem:[%s18595_s23 + $0x2ec] ss:$12 sps:$4 sm:$0xff]  }
 0xeca   :  { %13754 = vmatprep.subr.bf16.mxu1 %v18582_v24 }
 0xecb   :  { %10014 = vmatpush1.bf16.msra.mxu0 %v15130_v45  ;;  %v15203_v45 = vld [vmem:[%s18595_s23 + $0x2e8] ss:$12 sps:$4 sm:$0xff]  }
 0xecc   :  { %10155 = vmatprep.subr.bf16.mxu0 %v15136_v50  ;;  %v15206_v50 = vld [vmem:[#allocation31] ss:$12 sps:$4 sm:$0xff]  }
 0xecd   :  { %13755 = vmatpush3.bf16.msra.mxu1 %v15133_v55  ;;  %v15208_v55 = vld [vmem:[#allocation31 + $0x4] ss:$12 sps:$4 sm:$0xff]  }
 0xece   :  { %13082 = vmatmul.mubr.msk.bf16.vlgmr.msra.gmra.mrb[244].mxu0 %vm529_vm1, %v18202_v25  ;;  %13760 = vmatprep.subr.bf16.mxu1 %v18582_v24  ;;  %v15158_v25 = vld [vmem:[%s18595_s23 + $0x1b0] ss:$12 sps:$4 sm:$0xff]  }
 0xecf   :  { %10156 = vmatpush1.bf16.msra.mxu0 %v15134_v53  ;;  %10187 = vmatprep.mubr.bf16.mxu0 %v18587_v1  ;;  %v15209_v53 = vld [vmem:[#allocation31 + $0x18] ss:$12 sps:$4 sm:$0xff]  }
 0xed0   :  { %13757 = vmatmul.mubr.msk.bf16.vlgmr.msra.gmra.mrb[188].mxu1 %vm529_vm1, %v18196_v61  ;;  %10157 = vmatprep.subr.bf16.mxu0 %v15140_v29  ;;  %v15212_v29 = vld [vmem:[#allocation31 + $0x30] ss:$12 sps:$4 sm:$0xff]  }
 0xed1   :  { %13761 = vmatpush3.bf16.msra.mxu1 %v15137_v0  ;;  %13768 = vmatprep.mubr.msk.bf16.mxu1 %vm16017_vm0, %v18582_v24  ;;  %v15214_v0 = vld [vmem:[#allocation31 + $0x34] ss:$12 sps:$4 sm:$0xff]  }
 0xed2   :  { %13762 = vmatprep.subr.bf16.mxu1 %v18582_v24 }
 0xed3   :  { %10158 = vmatpush1.bf16.msra.mxu0 %v15138_v3  ;;  %v15217_v3 = vld [vmem:[#allocation31 + $0x4c] ss:$12 sps:$4 sm:$0xff]  }
 0xed4   :  { %10159 = vmatprep.subr.bf16.mxu0 %v15144_v14  ;;  %v15215_v14 = vld [vmem:[#allocation31 + $0x48] ss:$12 sps:$4 sm:$0xff]  }
 0xed5   :  { %13763 = vmatpush3.bf16.msra.mxu1 %v15141_v47  ;;  %v15220_v47 = vld [vmem:[#allocation31 + $0x64] ss:$12 sps:$4 sm:$0xff]  }
 0xed6   :  { %13764 = vmatprep.subr.bf16.mxu1 %v18582_v24 }
 0xed7   :  { %10160 = vmatpush1.bf16.msra.mxu0 %v15142_v8  ;;  %v15218_v8 = vld [vmem:[#allocation31 + $0x60] ss:$12 sps:$4 sm:$0xff]  }
 0xed8   :  { %10161 = vmatprep.subr.bf16.mxu0 %v15148_v54  ;;  %v15221_v54 = vld [vmem:[#allocation31 + $0x78] ss:$12 sps:$4 sm:$0xff]  }
 0xed9   :  { %13765 = vmatpush3.bf16.msra.mxu1 %v15145_v30  ;;  %v15226_v30 = vld [vmem:[#allocation31 + $0x94] ss:$12 sps:$4 sm:$0xff]  }
 0xeda   :  { %13766 = vmatprep.subr.bf16.mxu1 %v18582_v24 }
 0xedb   :  { %10162 = vmatpush1.bf16.msra.mxu0 %v15146_v48  ;;  %v15224_v48 = vld [vmem:[#allocation31 + $0x90] ss:$12 sps:$4 sm:$0xff]  }
 0xedc   :  { %10303 = vmatprep.subr.bf16.mxu0 %v15152_v6  ;;  %v15227_v6 = vld [vmem:[#allocation31 + $0xa8] ss:$12 sps:$4 sm:$0xff]  }
 0xedd   :  { %13767 = vmatpush3.bf16.msra.mxu1 %v15149_v34  ;;  %v15229_v34 = vld [vmem:[#allocation31 + $0xac] ss:$12 sps:$4 sm:$0xff]  }
 0xede   :  { %13096 = vmatmul.mubr.msk.bf16.vlgmr.msra.gmra.mrb[248].mxu0 %vm529_vm1, %v18214_v56  ;;  %13772 = vmatprep.subr.bf16.mxu1 %v18582_v24  ;;  %v15161_v56 = vld [vmem:[%s18595_s23 + $0x278] ss:$12 sps:$4 sm:$0xff]  }
 0xedf   :  { %10304 = vmatpush1.bf16.msra.mxu0 %v15150_v26  ;;  %10335 = vmatprep.mubr.bf16.mxu0 %v18587_v1  ;;  %v15232_v26 = vld [vmem:[#allocation31 + $0xc4] ss:$12 sps:$4 sm:$0xff]  }
 0xee0   :  { %13769 = vmatmul.mubr.msk.bf16.vlgmr.msra.gmra.mrb[192].mxu1 %vm529_vm1, %v18207_v57  ;;  %10305 = vmatprep.subr.bf16.mxu0 %v15156_v51  ;;  %v15233_v51 = vld [vmem:[#allocation31 + $0xc8] ss:$12 sps:$4 sm:$0xff]  }
 0xee1   :  { %13773 = vmatpush3.bf16.msra.mxu1 %v15153_v63  ;;  %13780 = vmatprep.mubr.msk.bf16.mxu1 %vm16017_vm0, %v18582_v24  ;;  %v15234_v63 = vld [vmem:[#allocation31 + $0x8] ss:$12 sps:$4 sm:$0xff]  }
 0xee2   :  { %13774 = vmatprep.subr.bf16.mxu1 %v18582_v24 }
 0xee3   :  { %10306 = vmatpush1.bf16.msra.mxu0 %v15154_v40  ;;  %v15238_v40 = vld [vmem:[#allocation31 + $0xe0] ss:$12 sps:$4 sm:$0xff]  }
 0xee4   :  { %10307 = vmatprep.subr.bf16.mxu0 %v15160_v39  ;;  %v15230_v39 = vld [vmem:[#allocation31 + $0xc0] ss:$12 sps:$4 sm:$0xff]  }
 0xee5   :  { %13775 = vmatpush3.bf16.msra.mxu1 %v15157_v42  ;;  %v15237_v42 = vld [vmem:[#allocation31 + $0xdc] ss:$12 sps:$4 sm:$0xff]  }
 0xee6   :  { %13776 = vmatprep.subr.bf16.mxu1 %v18582_v24 }
 0xee7   :  { %10308 = vmatpush1.bf16.msra.mxu0 %v15158_v25  ;;  %v15235_v25 = vld [vmem:[#allocation31 + $0xd8] ss:$12 sps:$4 sm:$0xff]  }
 0xee8   :  { %10309 = vmatprep.subr.bf16.mxu0 %v15164_v12  ;;  %v15239_v12 = vld [vmem:[#allocation31 + $0x20] ss:$12 sps:$4 sm:$0xff]  }
 0xee9   :  { %13777 = vmatpush3.bf16.msra.mxu1 %v15161_v56  ;;  %v15242_v56 = vld [vmem:[#allocation31 + $0xf4] ss:$12 sps:$4 sm:$0xff]  }
 0xeea   :  { %13778 = vmatprep.subr.bf16.mxu1 %v18582_v24 }
 0xeeb   :  { %10310 = vmatpush1.bf16.msra.mxu0 %v15162_v38  ;;  %v15243_v38 = vld [vmem:[#allocation31 + $0xf8] ss:$12 sps:$4 sm:$0xff]  }
 0xeec   :  { %10451 = vmatprep.subr.bf16.mxu0 %v15168_v22  ;;  %v15244_v22 = vld [vmem:[#allocation31 + $0x38] ss:$12 sps:$4 sm:$0xff]  }
 0xeed   :  { %13779 = vmatpush3.bf16.msra.mxu1 %v15165_v32  ;;  %v15240_v32 = vld [vmem:[#allocation31 + $0xf0] ss:$12 sps:$4 sm:$0xff]  }
 0xeee   :  { %13110 = vmatmul.mubr.msk.bf16.vlgmr.msra.gmra.mrb[252].mxu0 %vm529_vm1, %v18196_v61  ;;  %13784 = vmatprep.subr.bf16.mxu1 %v18582_v24  ;;  %v15174_v61 = vld [vmem:[%s18595_s23 + $0x210] ss:$12 sps:$4 sm:$0xff]  }
 0xeef   :  { %10452 = vmatpush1.bf16.msra.mxu0 %v15166_v37  ;;  %10483 = vmatprep.mubr.bf16.mxu0 %v18587_v1  ;;  %v15248_v37 = vld [vmem:[#allocation31 + $0x110] ss:$12 sps:$4 sm:$0xff]  }
 0xef0   :  { %13781 = vmatmul.mubr.msk.bf16.vlgmr.msra.gmra.mrb[196].mxu1 %vm529_vm1, %v18209_v60  ;;  %10453 = vmatprep.subr.bf16.mxu0 %v15172_v7  ;;  %v15247_v7 = vld [vmem:[#allocation31 + $0x10c] ss:$12 sps:$4 sm:$0xff]  }
 0xef1   :  { %13785 = vmatpush3.bf16.msra.mxu1 %v15169_v17  ;;  %13792 = vmatprep.mubr.msk.bf16.mxu1 %vm16017_vm0, %v18582_v24  ;;  %v15249_v17 = vld [vmem:[#allocation31 + $0x50] ss:$12 sps:$4 sm:$0xff]  }
 0xef2   :  { %13786 = vmatprep.subr.bf16.mxu1 %v18582_v24 }
 0xef3   :  { %10454 = vmatpush1.bf16.msra.mxu0 %v15170_v62  ;;  %v15245_v62 = vld [vmem:[#allocation31 + $0x108] ss:$12 sps:$4 sm:$0xff]  }
 0xef4   :  { %10455 = vmatprep.subr.bf16.mxu0 %v15176_v5  ;;  %v15253_v5 = vld [vmem:[#allocation31 + $0x128] ss:$12 sps:$4 sm:$0xff]  }
 0xef5   :  { %13787 = vmatpush3.bf16.msra.mxu1 %v15173_v18  ;;  %v15252_v18 = vld [vmem:[#allocation31 + $0x124] ss:$12 sps:$4 sm:$0xff]  }
 0xef6   :  { %13788 = vmatprep.subr.bf16.mxu1 %v18582_v24 }
 0xef7   :  { %10456 = vmatpush1.bf16.msra.mxu0 %v15174_v61  ;;  %v15254_v61 = vld [vmem:[#allocation31 + $0x68] ss:$12 sps:$4 sm:$0xff]  }
 0xef8   :  { %10457 = vmatprep.subr.bf16.mxu0 %v15180_v59  ;;  %v15250_v59 = vld [vmem:[#allocation31 + $0x120] ss:$12 sps:$4 sm:$0xff]  }
 0xef9   :  { %13789 = vmatpush3.bf16.msra.mxu1 %v15177_v44  ;;  %v15258_v44 = vld [vmem:[#allocation31 + $0x140] ss:$12 sps:$4 sm:$0xff]  }
 0xefa   :  { %13790 = vmatprep.subr.bf16.mxu1 %v18582_v24 }
 0xefb   :  { %10458 = vmatpush1.bf16.msra.mxu0 %v15178_v35  ;;  %v15257_v35 = vld [vmem:[#allocation31 + $0x13c] ss:$12 sps:$4 sm:$0xff]  }
 0xefc   :  { %10599 = vmatprep.subr.bf16.mxu0 %v15184_v41 }
 0xefd   :  { %13791 = vmatpush3.bf16.msra.mxu1 %v15181_v20 }
 0xefe   :  { %13124 = vmatmul.mubr.msk.bf16.vlgmr.msra.gmra.mrb[0].mxu0 %vm529_vm1, %v18207_v57  ;;  %v15191_v57 = vld [vmem:[%s18595_s23 + $0x288] ss:$12 sps:$4 sm:$0xff]   ;;  %13510 = vmatprep.subr.bf16.mxu1 %v15233_v51 }
 0xeff   :  { %10600 = vmatpush1.bf16.msra.mxu0 %v15182_v16  ;;  %10631 = vmatprep.mubr.bf16.mxu0 %v18587_v1  ;;  %v15255_v16 = vld [vmem:[#allocation31 + $0x138] ss:$12 sps:$4 sm:$0xff]  }
 0xf00   :  { %13793 = vmatmul.mubr.msk.bf16.vlgmr.msra.gmra.mrb[200].mxu1 %vm529_vm1, %v18216_v27  ;;  %10601 = vmatprep.subr.bf16.mxu0 %v15187_v43 }
 0xf01   :  { %13511 = vmatpush3.bf16.msra.mxu1 %v15234_v63 }
 0xf02   :  { %13512 = vmatprep.subr.bf16.mxu1 %v15238_v40 }
 0xf03   :  { %10602 = vmatpush1.bf16.msra.mxu0 %v15185_v19 }
 0xf04   :  { %10603 = vmatprep.subr.bf16.mxu0 %v15190_v52 }
 0xf05   :  { %13513 = vmatpush3.bf16.msra.mxu1 %v15239_v12 }
 0xf06   :  { %13514 = vmatprep.subr.bf16.mxu1 %v15243_v38 }
 0xf07   :  { %10604 = vmatpush1.bf16.msra.mxu0 %v15188_v9 }
 0xf08   :  { %10605 = vmatprep.subr.bf16.mxu0 %v15193_v49  ;;  %v15259_v49 = vld [vmem:[#allocation31 + $0x80] ss:$12 sps:$4 sm:$0xff]  }
 0xf09   :  { %13515 = vmatpush3.bf16.msra.mxu1 %v15244_v22 }
 0xf0a   :  { %13516 = vmatprep.subr.bf16.mxu1 %v15248_v37 }
 0xf0b   :  { %10606 = vmatpush1.bf16.msra.mxu0 %v15191_v57 }
 0xf0c   :  { %10747 = vmatprep.subr.bf16.mxu0 %v15196_v15 }
 0xf0d   :  { %13517 = vmatpush3.bf16.msra.mxu1 %v15249_v17 }
 0xf0e   :  { %13138 = vmatmul.mubr.msk.bf16.vlgmr.msra.gmra.mrb[4].mxu0 %vm529_vm1, %v18209_v60  ;;  %v15211_v60 = vld [vmem:[#allocation31 + $0x1c] ss:$12 sps:$4 sm:$0xff]   ;;  %13518 = vmatprep.subr.bf16.mxu1 %v15253_v5 }
 0xf0f   :  { %10748 = vmatpush1.bf16.msra.mxu0 %v15194_v36  ;;  %10779 = vmatprep.mubr.bf16.mxu0 %v18587_v1  ;;  %v15262_v36 = vld [vmem:[#allocation31 + $0x154] ss:$12 sps:$4 sm:$0xff]  }
 0xf10   :  { %10749 = vmatprep.subr.bf16.mxu0 %v15199_v21  ;;  %v15263_v21 = vld [vmem:[#allocation31 + $0x158] ss:$12 sps:$4 sm:$0xff]  }
 0xf11   :  { %13519 = vmatpush3.bf16.msra.mxu1 %v15254_v61 }
 0xf12   :  { %13520 = vmatprep.subr.bf16.mxu1 %v15258_v44 }
 0xf13   :  { %10750 = vmatpush1.bf16.msra.mxu0 %v15197_v33  ;;  %v15260_v33 = vld [vmem:[#allocation31 + $0x150] ss:$12 sps:$4 sm:$0xff]  }
 0xf14   :  { %10751 = vmatprep.subr.bf16.mxu0 %v15202_v23  ;;  %v15264_v23 = vld [vmem:[#allocation31 + $0x98] ss:$12 sps:$4 sm:$0xff]  }
 0xf15   :  { %13521 = vmatpush3.bf16.msra.mxu1 %v15259_v49 }
 0xf16   :  { %13522 = vmatprep.subr.bf16.mxu1 %v15263_v21 }
 0xf17   :  { %10752 = vmatpush1.bf16.msra.mxu0 %v15200_v58  ;;  %v15267_v58 = vld [vmem:[#allocation31 + $0x16c] ss:$12 sps:$4 sm:$0xff]  }
 0xf18   :  { %10753 = vmatprep.subr.bf16.mxu0 %v15205_v11  ;;  %v15268_v11 = vld [vmem:[#allocation31 + $0x170] ss:$12 sps:$4 sm:$0xff]  }
 0xf19   :  { %13523 = vmatpush3.bf16.msra.mxu1 %v15264_v23 }
 0xf1a   :  { %13524 = vmatprep.subr.bf16.mxu1 %v15268_v11 }
 0xf1b   :  { %10754 = vmatpush1.bf16.msra.mxu0 %v15203_v45  ;;  %v15265_v45 = vld [vmem:[#allocation31 + $0x168] ss:$12 sps:$4 sm:$0xff]  }
 0xf1c   :  { %11396 = vmatprep.subr.bf16.mxu0 %v15208_v55  ;;  %v15272_v55 = vld [vmem:[#allocation31 + $0x184] ss:$12 sps:$4 sm:$0xff]  }
 0xf1e   :  { %13152 = vmatmul.mubr.msk.bf16.vlgmr.msra.gmra.mrb[8].mxu0 %vm529_vm1, %v18216_v27  ;;  %v15223_v27 = vld [vmem:[#allocation31 + $0x7c] ss:$12 sps:$4 sm:$0xff]  }
 0xf1f   :  { %11397 = vmatpush1.bf16.msra.mxu0 %v15206_v50  ;;  %v15269_v50 = vld [vmem:[#allocation31 + $0xb0] ss:$12 sps:$4 sm:$0xff]  }
 0xf20   :  { %11398 = vmatprep.subr.bf16.mxu0 %v15211_v60  ;;  %13525 = vmatpush3.bf16.msra.mxu1 %v15269_v50 }
 0xf21   :  { %13796 = vmatprep.subr.bf16.mxu1 %v18582_v24 }
 0xf23   :  { %11399 = vmatpush1.bf16.msra.mxu0 %v15209_v53 }
 0xf24   :  { %11400 = vmatprep.subr.bf16.mxu0 %v15214_v0 }
 0xf27   :  { %11401 = vmatpush1.bf16.msra.mxu0 %v15212_v29 }
 0xf28   :  { %11402 = vmatprep.subr.bf16.mxu0 %v15217_v3 }
 0xf2b   :  { %11403 = vmatpush1.bf16.msra.mxu0 %v15215_v14 }
 0xf2c   :  { %11404 = vmatprep.subr.bf16.mxu0 %v15220_v47 }
 0xf2f   :  { %11405 = vmatpush1.bf16.msra.mxu0 %v15218_v8 }
 0xf30   :  { %11406 = vmatprep.subr.bf16.mxu0 %v15223_v27 }
 0xf33   :  { %11407 = vmatpush1.bf16.msra.mxu0 %v15221_v54 }
 0xf34   :  { %11408 = vmatprep.subr.bf16.mxu0 %v15226_v30 }
 0xf37   :  { %11409 = vmatpush1.bf16.msra.mxu0 %v15224_v48 }
 0xf38   :  { %11410 = vmatprep.subr.bf16.mxu0 %v15229_v34 }
 0xf3b   :  { %11411 = vmatpush1.bf16.msra.mxu0 %v15227_v6 }
 0xf3c   :  { %11412 = vmatprep.subr.bf16.mxu0 %v15232_v26 }
 0xf3f   :  { %11413 = vmatpush1.bf16.msra.mxu0 %v15230_v39 }
 0xf40   :  { %11414 = vmatprep.subr.bf16.mxu0 %v15237_v42 }
 0xf43   :  { %11415 = vmatpush1.bf16.msra.mxu0 %v15235_v25 }
 0xf44   :  { %11416 = vmatprep.subr.bf16.mxu0 %v15242_v56 }
 0xf47   :  { %11417 = vmatpush1.bf16.msra.mxu0 %v15240_v32 }
 0xf48   :  { %11418 = vmatprep.subr.bf16.mxu0 %v15247_v7 }
 0xf4b   :  { %11419 = vmatpush1.bf16.msra.mxu0 %v15245_v62 }
 0xf4c   :  { %11420 = vmatprep.subr.bf16.mxu0 %v15252_v18 }
 0xf4f   :  { %11421 = vmatpush1.bf16.msra.mxu0 %v15250_v59 }
 0xf50   :  { %11422 = vmatprep.subr.bf16.mxu0 %v15257_v35 }
 0xf53   :  { %11423 = vmatpush1.bf16.msra.mxu0 %v15255_v16 }
 0xf54   :  { %11424 = vmatprep.subr.bf16.mxu0 %v15262_v36 }
 0xf57   :  { %11425 = vmatpush1.bf16.msra.mxu0 %v15260_v33 }
 0xf58   :  { %11426 = vmatprep.subr.bf16.mxu0 %v15267_v58 }
 0xf5b   :  { %11427 = vmatpush1.bf16.msra.mxu0 %v15265_v45 }
 0xf5c   :  { %11437 = vmatprep.subr.bf16.mxu0 %v15272_v55 }
 0xf71   :  { %v9745_v41 = vpop.f32.mrb[232].mxu0 }
 0xf72   :  { %v9747_v20 = vpop.f32.mrb[233].mxu0  ;;  %v10828_v26 = vsel %vm4987_vm10, %v9745_v41, 0.0 }
 0xf73   :  { %v9749_v43 = vpop.f32.mrb[234].mxu0  ;;  %v9934_v19 = vpop.f32.mrb[176].mxu1  ;;  %v10843_v40 = vsel %vm4987_vm10, %v9747_v20, 0.0 }
 0xf74   :  { %v9750_v52 = vpop.f32.mrb[235].mxu0  ;;  %v13722_v9 = vpop.f32.mrb[177].mxu1  ;;  %v10859_v53 = vsel %vm4987_vm10, %v9934_v19, 0.0 }
 0xf75   :  { %v9937_v57 = vpop.f32.mrb[178].mxu1 }
 0xf76   :  { %v13723_v15 = vpop.f32.mrb[179].mxu1 }
 0xf81   :  { %v9786_v60 = vpop.f32.mrb[236].mxu0 }
 0xf82   :  { %v10858_v29 = vsel %vm4987_vm10, %v9786_v60, 0.0  ;;  %v13710_v0 = vpop.f32.mrb[237].mxu0 }
 0xf83   :  { %v10860_v3 = vadd.f32 %v10859_v53, %v10858_v29  ;;  %v9789_v14 = vpop.f32.mrb[238].mxu0  ;;  %v10082_v47 = vpop.f32.mrb[180].mxu1 }
 0xf84   :  { %v10861_v8 = vsel %vm4987_vm10, %v10082_v47, 0.0  ;;  %v13711_v27 = vpop.f32.mrb[239].mxu0  ;;  %v13734_v54 = vpop.f32.mrb[181].mxu1 }
 0xf85   :  { %v10862_v30 = vadd.f32 %v10861_v8, %v10860_v3  ;;  %v10085_v48 = vpop.f32.mrb[182].mxu1 }
 0xf86   :  { %v13735_v6 = vpop.f32.mrb[183].mxu1 }
 0xf91   :  { %v9893_v34 = vpop.f32.mrb[240].mxu0 }
 0xf92   :  { %v10829_v51 = vsel %vm4987_vm10, %v9893_v34, 0.0  ;;  %v9895_v63 = vpop.f32.mrb[241].mxu0 }
 0xf93   :  { %v10830_v39 = vadd.f32 %v10829_v51, %v10828_v26  ;;  %v10844_v42 = vsel %vm4987_vm10, %v9895_v63, 0.0  ;;  %v9897_v25 = vpop.f32.mrb[242].mxu0  ;;  %v10230_v12 = vpop.f32.mrb[184].mxu1 }
 0xf94   :  { %v10845_v56 = vadd.f32 %v10844_v42, %v10843_v40  ;;  %v10863_v38 = vsel %vm4987_vm10, %v10230_v12, 0.0  ;;  %v9898_v22 = vpop.f32.mrb[243].mxu0  ;;  %v13746_v32 = vpop.f32.mrb[185].mxu1 }
 0xf95   :  { %v10864_v37 = vadd.f32 %v10863_v38, %v10862_v30  ;;  %v10233_v7 = vpop.f32.mrb[186].mxu1 }
 0xf96   :  { %v13747_v17 = vpop.f32.mrb[187].mxu1 }
 0xfa1   :  { %v10041_v62 = vpop.f32.mrb[244].mxu0 }
 0xfa2   :  { %v10831_v5 = vsel %vm4987_vm10, %v10041_v62, 0.0  ;;  %v10043_v18 = vpop.f32.mrb[245].mxu0 }
 0xfa3   :  { %v10832_v61 = vadd.f32 %v10831_v5, %v10830_v39  ;;  %v10846_v59 = vsel %vm4987_vm10, %v10043_v18, 0.0  ;;  %v10045_v44 = vpop.f32.mrb[246].mxu0  ;;  %v10378_v35 = vpop.f32.mrb[188].mxu1 }
 0xfa4   :  { %v10847_v41 = vadd.f32 %v10846_v59, %v10845_v56  ;;  %v10865_v20 = vsel %vm4987_vm10, %v10378_v35, 0.0  ;;  %v10046_v16 = vpop.f32.mrb[247].mxu0  ;;  %v13758_v43 = vpop.f32.mrb[189].mxu1 }
 0xfa5   :  { %v10866_v19 = vadd.f32 %v10865_v20, %v10864_v37  ;;  %v10381_v52 = vpop.f32.mrb[190].mxu1  ;;  %v18395_v16 = vld [vmem:[#allocation29] sm:$0x7] }
 0xfa6   :  { %v13759_v9 = vpop.f32.mrb[191].mxu1 }
 0xfb1   :  { %v10189_v49 = vpop.f32.mrb[248].mxu0 }
 0xfb2   :  { %v10833_v57 = vsel %vm4987_vm10, %v10189_v49, 0.0  ;;  %v10191_v15 = vpop.f32.mrb[249].mxu0  ;;  %v10882_v49 = vrot.slane %v18395_v16, %v18584_v28 }
 0xfb3   :  { %v10834_v36 = vadd.f32 %v10833_v57, %v10832_v61  ;;  %v10848_v21 = vsel %vm4987_vm10, %v10191_v15, 0.0  ;;  %v10193_v33 = vpop.f32.mrb[250].mxu0  ;;  %v10526_v23 = vpop.f32.mrb[192].mxu1 }
 0xfb4   :  { %v10849_v58 = vadd.f32 %v10848_v21, %v10847_v41  ;;  %v10867_v11 = vsel %vm4987_vm10, %v10526_v23, 0.0  ;;  %v10194_v45 = vpop.f32.mrb[251].mxu0  ;;  %v13770_v50 = vpop.f32.mrb[193].mxu1 }
 0xfb5   :  { %v10868_v55 = vadd.f32 %v10867_v11, %v10866_v19  ;;  %v10529_v60 = vpop.f32.mrb[194].mxu1  ;;  %v10878_v19 = vrot.slane %v18395_v16, %v16507_v46 }
 0xfb6   :  { %v13771_v53 = vpop.f32.mrb[195].mxu1  ;;  %v15273_v60 = vld [vmem:[#allocation31 + $0x188] ss:$12 sps:$4 sm:$0xff]  }
 0xfc1   :  { %v10337_v29 = vpop.f32.mrb[252].mxu0 }
 0xfc2   :  { %v10835_v0 = vsel %vm4987_vm10, %v10337_v29, 0.0  ;;  %v10339_v3 = vpop.f32.mrb[253].mxu0  ;;  %v15276_v29 = vld [vmem:[#allocation31 + $0x19c] ss:$12 sps:$4 sm:$0xff]  }
 0xfc3   :  { %v10836_v14 = vadd.f32 %v10835_v0, %v10834_v36  ;;  %v10850_v47 = vsel %vm4987_vm10, %v10339_v3, 0.0  ;;  %v10341_v8 = vpop.f32.mrb[254].mxu0  ;;  %v10674_v27 = vpop.f32.mrb[196].mxu1  ;;  %v15274_v0 = vld [vmem:[#allocation31 + $0x198] ss:$12 sps:$4 sm:$0xff]  }
 0xfc4   :  { %v10851_v54 = vadd.f32 %v10850_v47, %v10849_v58  ;;  %v10869_v30 = vsel %vm4987_vm10, %v10674_v27, 0.0  ;;  %v10342_v48 = vpop.f32.mrb[255].mxu0  ;;  %v13782_v6 = vpop.f32.mrb[197].mxu1  ;;  %v15277_v3 = vld [vmem:[#allocation31 + $0x1a0] ss:$12 sps:$4 sm:$0xff]  }
 0xfc5   :  { %v10870_v34 = vadd.f32 %v10869_v30, %v10868_v55  ;;  %v10677_v26 = vpop.f32.mrb[198].mxu1  ;;  %v15270_v55 = vld [vmem:[#allocation31 + $0x180] ss:$12 sps:$4 sm:$0xff]   ;;  %v15278_v47 = vld [vmem:[#allocation31 + $0x1b0] ss:$12 sps:$4 sm:$0xff]  }
 0xfc6   :  { %v13783_v51 = vpop.f32.mrb[199].mxu1  ;;  %v15281_v8 = vld [vmem:[#allocation31 + $0x1b8] ss:$12 sps:$4 sm:$0xff]   ;;  %v15285_v30 = vld [vmem:[#allocation31 + $0x1d0] ss:$12 sps:$4 sm:$0xff]  }
 0xfc7   :  { %v15284_v27 = vld [vmem:[#allocation31 + $0x1cc] ss:$12 sps:$4 sm:$0xff]   ;;  %v15288_v48 = vld [vmem:[#allocation31 + $0x1e4] ss:$12 sps:$4 sm:$0xff]   ;;  %v15289_v6 = vld [vmem:[#allocation31 + $0x1e8] ss:$12 sps:$4 sm:$0xff]  }
 0xfc8   :  { %v15290_v26 = vld [vmem:[#allocation31 + $0x1f8] ss:$12 sps:$4 sm:$0xff]   ;;  %v15293_v51 = vld [vmem:[#allocation31 + $0x200] ss:$12 sps:$4 sm:$0xff]  }
 0xfd1   :  { %v10485_v63 = vpop.f32.mrb[0].mxu0 }
 0xfd2   :  { %v10837_v40 = vsel %vm4987_vm10, %v10485_v63, 0.0  ;;  %v10487_v39 = vpop.f32.mrb[1].mxu0  ;;  %v10886_v63 = vrot.slane %v18395_v16, %v18583_v13  ;;  %v15314_v16 = vld [vmem:[%s18599_s26 + $0x60] sm:$0xff]  }
 0xfd3   :  { %v10838_v42 = vadd.f32 %v10837_v40, %v10836_v14  ;;  %v10852_v25 = vsel %vm4987_vm10, %v10487_v39, 0.0  ;;  %v10489_v12 = vpop.f32.mrb[2].mxu0  ;;  %v10822_v56 = vpop.f32.mrb[200].mxu1  ;;  %v15280_v14 = vld [vmem:[#allocation31 + $0x1b4] ss:$12 sps:$4 sm:$0xff]  }
 0xfd4   :  { %v10853_v38 = vadd.f32 %v10852_v25, %v10851_v54  ;;  %v10871_v22 = vsel %vm4987_vm10, %v10822_v56, 0.0  ;;  %v10490_v32 = vpop.f32.mrb[3].mxu0  ;;  %v13794_v37 = vpop.f32.mrb[201].mxu1  ;;  %v15282_v54 = vld [vmem:[#allocation31 + $0x1c8] ss:$12 sps:$4 sm:$0xff]  }
 0xfd5   :  { %v18391_v7 = vadd.f32 %v10871_v22, %v10870_v34  ;;  %v10825_v17 = vpop.f32.mrb[202].mxu1  ;;  %v15292_v34 = vld [vmem:[#allocation31 + $0x1fc] ss:$12 sps:$4 sm:$0xff]   ;;  %v15296_v40 = vld [vmem:[#allocation31 + $0x214] ss:$12 sps:$4 sm:$0xff]  }
 0xfd6   :  { %v13795_v62 = vpop.f32.mrb[203].mxu1  ;;  %v15294_v39 = vld [vmem:[#allocation31 + $0x210] ss:$12 sps:$4 sm:$0xff]   ;;  %v15300_v12 = vld [vmem:[#allocation31 + $0x22c] ss:$12 sps:$4 sm:$0xff]  }
 0xfd7   :  { %v10892_v25 = vadd.f32 %v10886_v63, %v18391_v7  ;;  %v15298_v56 = vld [vmem:[#allocation31 + $0x228] ss:$12 sps:$4 sm:$0xff]   ;;  %v15302_v37 = vld [vmem:[%s18599_s26 + $0x40] sm:$0xff]  }
 0xfd8   :  { %v15303_v7 = vld [vmem:[%s18599_s26 + $0x80] sm:$0xff]   ;;  %v15305_v62 = vld [vmem:[%s18599_s26 + $0x48] sm:$0xff]  }
 0xfd9   :  { %v10895_v22 = vmax.f32 %v10892_v25, 0.0  ;;  %v15304_v17 = vld [vmem:[%s18599_s26] sm:$0xff]   ;;  %v15329_v25 = vld [vmem:[%s18600_s13 + $0x18] sm:$0xff]  }
 0xfdb   :  { %v10898_v32 = vpack.c.bf16 %v10895_v22, %v10895_v22 }
 0xfe1   :  { %v10633_v5 = vpop.f32.mrb[4].mxu0 }
 0xfe2   :  { %v10839_v18 = vsel %vm4987_vm10, %v10633_v5, 0.0  ;;  %v10635_v61 = vpop.f32.mrb[5].mxu0  ;;  %v15306_v5 = vld [vmem:[%s18599_s26 + $0x88] sm:$0xff]  }
 0xfe3   :  { %v10840_v59 = vadd.f32 %v10839_v18, %v10838_v42  ;;  %v10854_v44 = vsel %vm4987_vm10, %v10635_v61, 0.0  ;;  %v10637_v35 = vpop.f32.mrb[6].mxu0  ;;  %v15297_v42 = vld [vmem:[#allocation31 + $0x218] ss:$12 sps:$4 sm:$0xff]   ;;  %v15308_v61 = vld [vmem:[%s18599_s26 + $0x50] sm:$0xff]  }
 0xfe4   :  { %v10855_v41 = vadd.f32 %v10854_v44, %v10853_v38  ;;  %v10638_v20 = vpop.f32.mrb[7].mxu0  ;;  %v15301_v38 = vld [vmem:[#allocation31 + $0x230] ss:$12 sps:$4 sm:$0xff]   ;;  %v15307_v18 = vld [vmem:[%s18599_s26 + $0x8] sm:$0xff]   ;;  %v15311_v35 = vld [vmem:[%s18599_s26 + $0x58] sm:$0xff]  }
 0xfe5   :  { %v15310_v44 = vld [vmem:[%s18599_s26 + $0x10] sm:$0xff]   ;;  %v15313_v20 = vld [vmem:[%s18599_s26 + $0x18] sm:$0xff]  }
 0xff1   :  { %v10781_v43 = vpop.f32.mrb[8].mxu0 }
 0xff2   :  { %v10841_v52 = vsel %vm4987_vm10, %v10781_v43, 0.0  ;;  %v10783_v9 = vpop.f32.mrb[9].mxu0  ;;  %v15315_v43 = vld [vmem:[%s18599_s26 + $0xa0] sm:$0xff]  }
 0xff3   :  { %v10842_v57 = vadd.f32 %v10841_v52, %v10840_v59  ;;  %v10856_v15 = vsel %vm4987_vm10, %v10783_v9, 0.0  ;;  %v10785_v36 = vpop.f32.mrb[10].mxu0  ;;  %v15309_v59 = vld [vmem:[%s18599_s26 + $0x90] sm:$0xff]   ;;  %v15317_v52 = vld [vmem:[%s18599_s26 + $0x68] sm:$0xff]  }
 0xff4   :  { %v10857_v21 = vadd.f32 %v10856_v15, %v10855_v41  ;;  %v10786_v33 = vpop.f32.mrb[11].mxu0  ;;  %v15312_v41 = vld [vmem:[%s18599_s26 + $0x98] sm:$0xff]   ;;  %v15318_v9 = vld [vmem:[%s18599_s26 + $0xa8] sm:$0xff]   ;;  %v15321_v15 = vld [vmem:[%s18599_s26 + $0xb0] sm:$0xff]  }
 0xff5   :  { %v10890_v23 = vadd.f32 %v10878_v19, %v10842_v57  ;;  %v15316_v19 = vld [vmem:[%s18599_s26 + $0x20] sm:$0xff]   ;;  %v15320_v57 = vld [vmem:[%s18599_s26 + $0x70] sm:$0xff]   ;;  %v15324_v33 = vld [vmem:[%s18599_s26 + $0xb8] sm:$0xff]  }
 0xff6   :  { %v10891_v58 = vadd.f32 %v10882_v49, %v10857_v21  ;;  %v15319_v49 = vld [vmem:[%s18599_s26 + $0x28] sm:$0xff]   ;;  %v15322_v36 = vld [vmem:[%s18599_s26 + $0x30] sm:$0xff]   ;;  %v15323_v21 = vld [vmem:[%s18599_s26 + $0x78] sm:$0xff]  }
 0xff7   :  { %v10893_v11 = vmax.f32 %v10890_v23, 0.0  ;;  %v15325_v23 = vld [vmem:[%s18599_s26 + $0x38] sm:$0xff]  }
 0xff8   :  { %v10894_v45 = vmax.f32 %v10891_v58, 0.0  ;;  %v15326_v58 = vld [vmem:[%s18600_s13] sm:$0xff]  }
 0xff9   :  { %v10896_v53 = vpack.c.bf16 %v10893_v11, %v10893_v11 }
 0xffa   :  { %v10897_v50 = vpack.c.bf16 %v10894_v45, %v10894_v45 }
 0xffc   :  { %11428 = vmatprep.mubr.bf16.mxu0 %v10897_v50  ;;  %11510 = vmatprep.mubr.bf16.mxu1 %v10897_v50 }
 0xffd   :  { %11429 = vmatmul.mubr.bf16.vlgmr.msra.gmra.mrb[12].mxu0 %v10896_v53  ;;  %11511 = vmatmul.mubr.bf16.vlgmr.msra.gmra.mrb[204].mxu1 %v10896_v53  ;;  %v10995_v53 = vld [vmem:[#allocation32] sm:$0x7] }
 0xffe   :  { %11438 = vmatpush1.bf16.msra.mxu0 %v15270_v55  ;;  %13797 = vmatpush3.bf16.msra.mxu1 %v15273_v60 }
 0xfff   :  { %11439 = vmatprep.subr.bf16.mxu0 %v15276_v29  ;;  %13798 = vmatprep.subr.bf16.mxu1 %v18582_v24  ;;  %v11008_v29 = vrot.slane %v10995_v53, %v18583_v13 }
0x1000   :  { %11469 = vmatprep.mubr.bf16.mxu0 %v18587_v1  ;;  %13812 = vmatprep.mubr.msk.bf16.mxu1 %vm16017_vm0, %v18582_v24  ;;  %v15286_v1 = vld [vmem:[#allocation31 + $0x1e0] ss:$12 sps:$4 sm:$0xff]  }
0x1002   :  { %11440 = vmatpush1.bf16.msra.mxu0 %v15274_v0  ;;  %13799 = vmatpush3.bf16.msra.mxu1 %v15277_v3  ;;  %v11000_v0 = vrot.slane %v10995_v53, %v16507_v46 }
0x1003   :  { %11441 = vmatprep.subr.bf16.mxu0 %v15280_v14  ;;  %13800 = vmatprep.subr.bf16.mxu1 %v18582_v24 }
0x1006   :  { %11442 = vmatpush1.bf16.msra.mxu0 %v15278_v47  ;;  %13801 = vmatpush3.bf16.msra.mxu1 %v15281_v8 }
0x1007   :  { %11443 = vmatprep.subr.bf16.mxu0 %v15284_v27  ;;  %13802 = vmatprep.subr.bf16.mxu1 %v18582_v24 }
0x100a   :  { %11444 = vmatpush1.bf16.msra.mxu0 %v15282_v54  ;;  %13803 = vmatpush3.bf16.msra.mxu1 %v15285_v30 }
0x100b   :  { %11445 = vmatprep.subr.bf16.mxu0 %v15288_v48  ;;  %13804 = vmatprep.subr.bf16.mxu1 %v18582_v24 }
0x100e   :  { %11446 = vmatpush1.bf16.msra.mxu0 %v15286_v1  ;;  %13805 = vmatpush3.bf16.msra.mxu1 %v15289_v6 }
0x100f   :  { %11447 = vmatprep.subr.bf16.mxu0 %v15292_v34  ;;  %13806 = vmatprep.subr.bf16.mxu1 %v18582_v24 }
0x1012   :  { %11448 = vmatpush1.bf16.msra.mxu0 %v15290_v26  ;;  %13807 = vmatpush3.bf16.msra.mxu1 %v15293_v51 }
0x1013   :  { %11449 = vmatprep.subr.bf16.mxu0 %v15296_v40  ;;  %13808 = vmatprep.subr.bf16.mxu1 %v18582_v24 }
0x1016   :  { %11450 = vmatpush1.bf16.msra.mxu0 %v15294_v39  ;;  %13809 = vmatpush3.bf16.msra.mxu1 %v15297_v42  ;;  %v15327_v39 = vld [vmem:[%s18600_s13 + $0x8] sm:$0xff]   ;;  %v15328_v42 = vld [vmem:[%s18600_s13 + $0x10] sm:$0xff]  }
0x1017   :  { %11451 = vmatprep.subr.bf16.mxu0 %v15300_v12  ;;  %13810 = vmatprep.subr.bf16.mxu1 %v18582_v24  ;;  %v15330_v12 = vld [vmem:[#allocation35] sm:$0xff]  }
0x101a   :  { %11452 = vmatpush1.bf16.msra.mxu0 %v15298_v56  ;;  %13811 = vmatpush3.bf16.msra.mxu1 %v15301_v38  ;;  %v15331_v56 = vld [vmem:[#allocation35 + $0x8] sm:$0xff]  }
0x101b   :  { %13816 = vmatprep.subr.bf16.mxu0 %v18582_v24  ;;  %13541 = vmatprep.subr.bf16.mxu1 %v15302_v37  ;;  %v15335_v38 = vld [vmem:[#allocation37 + $0x8] sm:$0xff]  }
0x101d   :  { %11470 = vmatmul.mubr.bf16.vlgmr.msra.gmra.mrb[12].mxu0 %v10898_v32  ;;  %13813 = vmatmul.mubr.bf16.vlgmr.msra.gmra.mrb[208].mxu1 %v10898_v32 }
0x101e   :  { %13832 = vmatprep.mubr.msk.bf16.mxu0 %vm16017_vm0, %v18582_v24  ;;  %13817 = vmatpush3.bf16.msra.mxu0 %v15303_v7  ;;  %v13226_v7 = vld [vmem:[#allocation34] ss:$0 sm:$0xff]  ;;  %vm11843_vm0 = vcmask 59392  }
0x101f   :  { %13542 = vmatpush3.bf16.msra.mxu1 %v15304_v17  ;;  %13818 = vmatprep.subr.bf16.mxu0 %v18582_v24 }
0x1020   :  { %13543 = vmatprep.subr.bf16.mxu1 %v15305_v62 }
0x1022   :  { %13819 = vmatpush3.bf16.msra.mxu0 %v15306_v5 }
0x1023   :  { %13544 = vmatpush3.bf16.msra.mxu1 %v15307_v18  ;;  %13820 = vmatprep.subr.bf16.mxu0 %v18582_v24 }
0x1024   :  { %13545 = vmatprep.subr.bf16.mxu1 %v15308_v61 }
0x1026   :  { %13821 = vmatpush3.bf16.msra.mxu0 %v15309_v59 }
0x1027   :  { %13546 = vmatpush3.bf16.msra.mxu1 %v15310_v44  ;;  %13822 = vmatprep.subr.bf16.mxu0 %v18582_v24 }
0x1028   :  { %13547 = vmatprep.subr.bf16.mxu1 %v15311_v35  ;;  %v13251_v35 = vld [vmem:[%s18601_s20] ss:$0 sm:$0xff] }
0x102a   :  { %13823 = vmatpush3.bf16.msra.mxu0 %v15312_v41 }
0x102b   :  { %13548 = vmatpush3.bf16.msra.mxu1 %v15313_v20  ;;  %13824 = vmatprep.subr.bf16.mxu0 %v18582_v24 }
0x102c   :  { %13549 = vmatprep.subr.bf16.mxu1 %v15314_v16 }
0x102e   :  { %13825 = vmatpush3.bf16.msra.mxu0 %v15315_v43 }
0x102f   :  { %13550 = vmatpush3.bf16.msra.mxu1 %v15316_v19  ;;  %13826 = vmatprep.subr.bf16.mxu0 %v18582_v24 }
0x1030   :  { %13551 = vmatprep.subr.bf16.mxu1 %v15317_v52 }
0x1032   :  { %13827 = vmatpush3.bf16.msra.mxu0 %v15318_v9 }
0x1033   :  { %13552 = vmatpush3.bf16.msra.mxu1 %v15319_v49  ;;  %13828 = vmatprep.subr.bf16.mxu0 %v18582_v24 }
0x1034   :  { %13553 = vmatprep.subr.bf16.mxu1 %v15320_v57 }
0x1036   :  { %13829 = vmatpush3.bf16.msra.mxu0 %v15321_v15 }
0x1037   :  { %13554 = vmatpush3.bf16.msra.mxu1 %v15322_v36  ;;  %13830 = vmatprep.subr.bf16.mxu0 %v18582_v24  ;;  %v11004_v24 = vrot.slane %v10995_v53, %v18584_v28 }
0x1038   :  { %13555 = vmatprep.subr.bf16.mxu1 %v15323_v21 }
0x103a   :  { %13831 = vmatpush3.bf16.msra.mxu0 %v15324_v33  ;;  %v15336_v33 = vld [vmem:[#allocation37 + $0x10] sm:$0xff]  }
0x103b   :  { %13556 = vmatpush3.bf16.msra.mxu1 %v15325_v23  ;;  %v15337_v23 = vld [vmem:[#allocation37 + $0x18] sm:$0xff]  }
0x103c   :  { %13836 = vmatprep.subr.bf16.mxu1 %v15326_v58 }
0x10d0   :  { %v13526_v11 = vpop.f32.mrb[204].mxu1 }
0x10d1   :  { %v13527_v45 = vpop.f32.mrb[205].mxu1 }
0x10d2   :  { %v13528_v50 = vadd.f32 %v13527_v45, %v13526_v11  ;;  %v13529_v55 = vpop.f32.mrb[206].mxu1 }
0x10d3   :  { %v13530_v60 = vpop.f32.mrb[207].mxu1 }
0x10d4   :  { %v11513_v3 = vadd.f32 %v13528_v50, %v11008_v29 }
0x10f0   :  { %v11471_v14 = vpop.f32.mrb[12].mxu0  ;;  %v11552_v47 = vpop.f32.mrb[208].mxu1 }
0x10f1   :  { %v13930_v8 = vadd.f32 %v11471_v14, %v11000_v0  ;;  %v11553_v27 = vadd.f32 %v11552_v47, %v11513_v3  ;;  %v11473_v54 = vpop.f32.mrb[13].mxu0  ;;  %v13814_v30 = vpop.f32.mrb[209].mxu1 }
0x10f2   :  { %v13931_v48 = vadd.f32 %v11473_v54, %v11004_v24  ;;  %v11475_v1 = vpop.f32.mrb[14].mxu0  ;;  %v11555_v6 = vpop.f32.mrb[210].mxu1 }
0x10f3   :  { %v11558_v34 = vmax.f32 %v13930_v8, 0.0  ;;  %v11560_v26 = vmax.f32 %v11553_v27, 0.0  ;;  %v11476_v51 = vpop.f32.mrb[15].mxu0  ;;  %v13815_v13 = vpop.f32.mrb[211].mxu1 }
0x10f4   :  { %v11559_v46 = vmax.f32 %v13931_v48, 0.0 }
0x10f5   :  { %v11563_v63 = vpack.c.bf16 %v11560_v26, %v11560_v26  ;;  %v11561_v40 = vpack.c.bf16 %v11558_v34, %v11558_v34 }
0x10f6   :  { %v11562_v28 = vpack.c.bf16 %v11559_v46, %v11559_v46 }
0x10f7   :  { %13833 = vmatmul.mubr.bf16.vlgmr.msra.gmra.mrb[16].mxu0 %v11563_v63 }
0x10f8   :  { %11795 = vmatprep.mubr.bf16.mxu1 %v11562_v28 }
0x10f9   :  { %11796 = vmatmul.mubr.bf16.vlgmr.msra.gmra.mrb[212].mxu1 %v11561_v40 }
0x10fa   :  { %13837 = vmatpush3.bf16.msra.mxu1 %v15326_v58  ;;  %13844 = vmatprep.mubr.msk.bf16.mxu1 %vm529_vm1, %v11845_v2  ;;  %v15334_v2 = vld [vmem:[#allocation37] sm:$0xff]   ;;  %v13258_v58 = vld [vmem:[%s18602_s5] ss:$0 sm:$0xff] }
0x10fb   :  { %13838 = vmatprep.subr.bf16.mxu1 %v15327_v39  ;;  %13860 = vmatprep.subr.bf16.mxu0 %v15334_v2 }
0x10fc   :  { %13861 = vmatpush3.bf16.msra.mxu0 %v15334_v2 }
0x10fd   :  { %13862 = vmatprep.subr.bf16.mxu0 %v15335_v38 }
0x10fe   :  { %13839 = vmatpush3.bf16.msra.mxu1 %v15327_v39 }
0x10ff   :  { %13840 = vmatprep.subr.bf16.mxu1 %v15328_v42 }
0x1100   :  { %13863 = vmatpush3.bf16.msra.mxu0 %v15335_v38 }
0x1101   :  { %13864 = vmatprep.subr.bf16.mxu0 %v15336_v33 }
0x1102   :  { %13841 = vmatpush3.bf16.msra.mxu1 %v15328_v42 }
0x1103   :  { %13842 = vmatprep.subr.bf16.mxu1 %v15329_v25 }
0x1104   :  { %13865 = vmatpush3.bf16.msra.mxu0 %v15336_v33 }
0x1105   :  { %13866 = vmatprep.subr.bf16.mxu0 %v15337_v23 }
0x1106   :  { %13843 = vmatpush3.bf16.msra.mxu1 %v15329_v25 }
0x1107   :  { %13848 = vmatprep.subr.bf16.mxu1 %v15330_v12 }
0x1108   :  { %13867 = vmatpush3.bf16.msra.mxu0 %v15337_v23 }
0x1109   :  { %13845 = vmatmul.mubr.msk.bf16.vlgmr.msra.gmra.mrb[216].mxu1 %vm529_vm1, %v18188_v31 }
0x110a   :  { %13849 = vmatpush3.bf16.msra.mxu1 %v15330_v12 }
0x110b   :  { %13850 = vmatprep.subr.bf16.mxu1 %v15331_v56 }
0x110e   :  { %13851 = vmatpush3.bf16.msra.mxu1 %v15331_v56 }
0x110f   :  { %13852 = vmatprep.subr.bf16.mxu1 %v15332_v4 }
0x1112   :  { %13853 = vmatpush3.bf16.msra.mxu1 %v15332_v4 }
0x1113   :  { %13854 = vmatprep.subr.bf16.mxu1 %v15333_v10 }
0x1116   :  { %13855 = vmatpush3.bf16.msra.mxu1 %v15333_v10 }
0x11ca   :  { %v11837_v31 = vpop.f32.mrb[16].mxu0 }
0x11cb   :  { %v13834_v22 = vpop.f32.mrb[17].mxu0 }
0x11cc   :  { %v13557_v32 = vpop.f32.mrb[212].mxu1  ;;  %v11840_v37 = vpop.f32.mrb[18].mxu0 }
0x11cd   :  { %v13558_v17 = vpop.f32.mrb[213].mxu1  ;;  %v13835_v62 = vpop.f32.mrb[19].mxu0 }
0x11ce   :  { %v13559_v5 = vadd.f32 %v13558_v17, %v13557_v32  ;;  %v13560_v18 = vpop.f32.mrb[214].mxu1 }
0x11cf   :  { %v13561_v61 = vpop.f32.mrb[215].mxu1 }
0x11d0   :  { %v11798_v59 = vadd.f32 %v13559_v5, %v13226_v7 }
0x11d2   :  { %v11838_v44 = vadd.f32 %v11837_v31, %v11798_v59 }
0x11d4   :  { %11844 = vst.msk [vmem:[#allocation39] sm:$0x7] %vm11843_vm0, %v11838_v44 }
0x11dc   :  { %v13846_v41 = vpop.f32.mrb[216].mxu1 }
0x11dd   :  { %v11934_v20 = vadd.f32 %v13846_v41, %v13251_v35  ;;  %v11925_v16 = vpop.f32.mrb[217].mxu1 }
0x11de   :  { %v11926_v43 = vadd.f32 %v13251_v35, %v11925_v16  ;;  %v13847_v19 = vpop.f32.mrb[218].mxu1 }
0x11df   :  { %v11928_v52 = vpop.f32.mrb[219].mxu1  ;;  %v11941_v49 = vmax.f32 %v11934_v20, 0.0 }
0x11e0   :  { %v11929_v9 = vadd.f32 %v13251_v35, %v11928_v52  ;;  %v11939_v57 = vmax.f32 %v11926_v43, 0.0 }
0x11e1   :  { %v11943_v21 = vpack.c.bf16 %v11941_v49, %v11941_v49 }
0x11e2   :  { %v11940_v15 = vmax.f32 %v11929_v9, 0.0 }
0x11e4   :  { %v11942_v36 = vpack.c.bf16 %v11940_v15, %v11939_v57 }
0x11e6   :  { %13856 = vmatprep.mubr.msk.bf16.mxu1 %vm529_vm1, %v11942_v36 }
0x11e7   :  { %13857 = vmatmul.mubr.msk.bf16.vlgmr.msra.gmra.mrb[220].mxu1 %vm529_vm1, %v11943_v21 }
0x12ba   :  { %v13858_v11 = vpop.f32.mrb[220].mxu1 }
0x12bb   :  { %v12032_v45 = vadd.f32 %v13858_v11, %v13258_v58  ;;  %v12023_v50 = vpop.f32.mrb[221].mxu1 }
0x12bc   :  { %v12024_v55 = vadd.f32 %v13258_v58, %v12023_v50  ;;  %v13859_v60 = vpop.f32.mrb[222].mxu1 }
0x12bd   :  { %v12026_v53 = vpop.f32.mrb[223].mxu1  ;;  %v12039_v0 = vmax.f32 %v12032_v45, 0.0 }
0x12be   :  { %v12027_v29 = vadd.f32 %v13258_v58, %v12026_v53  ;;  %v12037_v24 = vmax.f32 %v12024_v55, 0.0 }
0x12bf   :  { %v12041_v47 = vpack.c.bf16 %v12039_v0, %v12039_v0 }
0x12c0   :  { %v12038_v3 = vmax.f32 %v12027_v29, 0.0 }
0x12c2   :  { %v12040_v14 = vpack.c.bf16 %v12038_v3, %v12037_v24 }
0x12c4   :  { %13868 = vmatprep.mubr.msk.bf16.mxu0 %vm529_vm1, %v12040_v14 }
0x12c5   :  { %13869 = vmatmul.mubr.msk.bf16.vlgmr.msra.gmra.mrb[20].mxu0 %vm529_vm1, %v12041_v47 }
0x12c6   :  { %15881 = shalt.err (!%p15878_p6)
}
0x12c7   :  { %s15882_s22 = scalar_lea.hbm %s16247_s21, 64 }
0x12c8   :  { %p15883_p7 = scmp.ne.s32.totalorder %s16247_s21, %s15882_s22  ;;  %p15886_p8 = scmp.lt.u32.totalorder %s15882_s22, %s16247_s21 }
0x12ca   :  { %p15888_p9 = pnand %p15886_p8, %p15883_p7 }
0x12cc   :  { %15891 = shalt.err (!%p15888_p9)
}
0x12cd   :  { %12159 = dma.vmem_to_hbm [thread:$0]  %s12157_s3, 64, %s16247_s21, [#allocation40]   ;;  %v13265_v8 = vld [vmem:[%s16237_s27] ss:$0 sm:$0xff] }
0x12ce   :  { %s16023_s6 = smov [#allocation38]  }
0x12cf   :  { %s12143_s0 = sshll.u32 %s16023_s6, 4  ;;  %s12144_s0 = int_to_ptr.vmem [resolvable:$true] %s12143_s0 }
0x12d0   :  { %s15892_s4 = scalar_lea.vmem %s12144_s0, 384  ;;  %p15897_p11 = scmp.lt.s32.totalorder %s12144_s0, %s12144_s0 }
0x12d1   :  { %p15893_p10 = scmp.ne.s32.totalorder %s12144_s0, %s15892_s4  ;;  %p15898_p12 = scmp.lt.s32.totalorder %s15892_s4, %s15892_s4 }
0x12d3   :  { %p15899_p13 = por %p15898_p12, %p15897_p11 }
0x12d5   :  { %p15900_p0 = pnand %p15899_p13, %p15893_p10 }
0x1398   :  { %v13870_v27 = vpop.f32.mrb[20].mxu0 }
0x1399   :  { %v12130_v54 = vadd.f32 %v13870_v27, %v13265_v8  ;;  %v12121_v30 = vpop.f32.mrb[21].mxu0 }
0x139a   :  { %v12122_v48 = vadd.f32 %v13265_v8, %v12121_v30  ;;  %v13871_v1 = vpop.f32.mrb[22].mxu0 }
0x139b   :  { %12137 = vst.msk [vmem:[#allocation38 + $0x10] sm:$0xff] %vm529_vm1, %v12130_v54  ;;  %v12124_v6 = vpop.f32.mrb[23].mxu0 }
0x139c   :  { %12135 = vst.msk [vmem:[#allocation38] sm:$0xff] %vm529_vm1, %v12122_v48  ;;  %v12125_v34 = vadd.f32 %v13265_v8, %v12124_v6 }
0x139e   :  { %12136 = vst.msk [vmem:[#allocation38 + $0x8] sm:$0xff] %vm529_vm1, %v12125_v34 }
0x139f   :  { %15903 = shalt.err (!%p15900_p0)
}
0x13a0   :  { %s15904_s21 = scalar_lea.hbm %s16242_s30, 384 }
0x13a1   :  { %p15905_p1 = scmp.ne.s32.totalorder %s16242_s30, %s15904_s21  ;;  %p15908_p2 = scmp.lt.u32.totalorder %s15904_s21, %s16242_s30 }
0x13a3   :  { %p15910_p3 = pnand %p15908_p2, %p15905_p1 }
0x13a5   :  { %15913 = shalt.err (!%p15910_p3)
}
0x13a6   :  { %12149 = dma.vmem_to_hbm [thread:$0]  %s12144_s0, 384, %s16242_s30, [#allocation4], %s15986_s28, %s15986_s28, %s15987_s1  }
0x13a7   :  { %15938 = dma.done.wait [#allocation4], 384  }
0x13a8   :  { %15939 = vsyncadd [#allocation4], 4294966912 }
0x13a9   :  { %15940 = dma.done.wait [#allocation40], 64  }
0x13aa   :  { %15941 = vsyncadd [#allocation40], 4294967232 }
0x13ab   :  { %12166 = vsyncpa [#allocation3], 1 }
0x13ac   :  { %12167 = vsyncpa [#allocation6], 1 }
0x13ad   :  { %12168 = vsyncpa [#allocation9], 1 }
0x13ae   :  { %12169 = vsyncpa [#allocation12], 1 }
0x13af   :  { %12170 = vsyncpa [#allocation15], 1 }
0x13b0   :  { %12171 = vsyncpa [#allocation18], 1 }
0x13b1   :  { %12172 = vsyncpa [#allocation21], 1 }
0x13b2   :  { %12173 = vsyncpa [#allocation24], 1 }
0x13b3   :  { %12174 = vsyncpa [#allocation27], 1 }
0x13b4   :  { %12175 = vsyncpa [#allocation30], 1 }
0x13b5   :  { %12176 = vsyncpa [#allocation33], 1 }
0x13b6   :  { %12177 = vsyncpa [#allocation36], 1 }
0x13b7   :  { %12178 = vsyncpa [#allocation4], 1 }
0x13b8   :  { %12179 = vsyncpa [#allocation40], 1 }

</bundles_post_ra>
